<compile_context>
chip_gen: v5e
topology: v5e:2x2
jax: 0.10.0
libtpu: 0.0.40
codegen_flags: <defaults>
</compile_context>

<pallas_src>
import functools

import jax
import jax.numpy as jnp
from jax import lax
from jax.experimental import pallas as pl
from jax.experimental.pallas import tpu as pltpu

KW = 4            # kernel_size
PAD = 2           # int(ceil((4 - 1) / 2))
LRELU_SLOPE = 0.2
BN_EPS = 1e-5


def _vmem_limit_bytes():
    # Generation-aware scoped-VMEM budget (leave >=16 MiB headroom, esp. v7x 64 MiB).
    try:
        cap = int(pltpu.get_tpu_info().vmem_capacity_bytes)
    except Exception:
        cap = 64 * 1024 * 1024
    return int(min(max(cap - 16 * 1024 * 1024, 32 * 1024 * 1024), 100 * 1024 * 1024))


# ----------------------------- Pallas kernel ----------------------------------

def _conv4x4_kernel(x_ref, w_ref, b_ref, o_ref, *opt_stats, stride, oh, ow, ws,
                    fuse_act, emit_stats):
    """Fused 4x4 conv over flattened phase planes.

    x_ref : (1, S2, L, Cin)  bf16  zero-padded, phase-split, row-flattened input
    w_ref : (16, Cin, Cout)  bf16  one (Cin, Cout) tap matrix per (ky, kx)
    b_ref : (1, Cout)        f32
    o_ref : (1, M, Cout)     bf16/f32, M = OH*Ws (garbage cols sliced in wrapper)
    opt_stats[0] : (1, 2, Cout) f32  per-channel [sum, sum-of-squares] (pre-act,
                                     garbage columns masked out)
    """
    m = oh * ws
    cout = o_ref.shape[-1]
    acc = jnp.zeros((m, cout), jnp.float32)
    # 16 whole-image MXU matmuls (M = OH*Ws rows each), statically unrolled.
    for ky in range(KW):
        for kx in range(KW):
            p = (ky % stride) * stride + (kx % stride)        # phase plane
            shift = (ky // stride) * ws + (kx // stride)      # flat-index shift
            lhs = x_ref[0, p, shift:shift + m, :]             # (M, Cin) contiguous
            acc += jnp.dot(lhs, w_ref[ky * KW + kx],
                           preferred_element_type=jnp.float32)
    acc = acc + b_ref[...]                                    # fused bias (f32)

    if emit_stats:
        # BN batch statistics (pre-activation).  Mask the wrap-around columns
        # j in [OW, Ws) so only valid output positions contribute.
        col = lax.broadcasted_iota(jnp.int32, (m, 1), 0) % ws
        valid = col < ow
        av = jnp.where(valid, acc, 0.0)
        stats_ref = opt_stats[0]
        stats_ref[0, 0:1, :] = jnp.sum(av, axis=0, keepdims=True)
        stats_ref[0, 1:2, :] = jnp.sum(av * av, axis=0, keepdims=True)

    if fuse_act:                                              # non-BN layers only
        acc = jnp.where(acc >= 0.0, acc, LRELU_SLOPE * acc)

    o_ref[0] = acc.astype(o_ref.dtype)                        # single dense store


# ----------------------------- wrappers ---------------------------------------

def _prep_planes(a, stride):
    """(N,H,W,C) f32 post-activation input -> flattened bf16 phase planes.

    Returns (flat, OH, OW, Ws) with flat of shape (N, stride*stride, L, C):
    zero spatial halo (PAD=2), space-to-depth split by stride, rows flattened so
    a conv tap is a contiguous slice.  L has a little zero slack so every tap's
    shifted (OH*Ws)-row window is in bounds (the slack is only read for the
    garbage columns that get discarded).
    """
    N, H, W, C = a.shape
    OH = (H + 2 * PAD - KW) // stride + 1
    OW = (W + 2 * PAD - KW) // stride + 1
    Hp, Wp = H + 2 * PAD, W + 2 * PAD
    Hp2 = ((Hp + stride - 1) // stride) * stride
    Wp2 = ((Wp + stride - 1) // stride) * stride
    ap = jnp.pad(a, ((0, 0), (PAD, PAD + Hp2 - Hp), (PAD, PAD + Wp2 - Wp), (0, 0)))
    Hs, Ws = Hp2 // stride, Wp2 // stride
    if stride == 1:
        planes = ap[:, None]                                   # (N, 1, Hs, Ws, C)
    else:
        planes = ap.reshape(N, Hs, stride, Ws, stride, C)
        planes = planes.transpose(0, 2, 4, 1, 3, 5)
        planes = planes.reshape(N, stride * stride, Hs, Ws, C)
    flat = planes.reshape(N, planes.shape[1], Hs * Ws, C)
    d = KW // stride - 1
    need = OH * Ws + d * Ws + d                                # max shift + M
    L = max(Hs * Ws, need)
    L = ((L + 7) // 8) * 8                                     # sublane-friendly
    if L > Hs * Ws:
        flat = jnp.pad(flat, ((0, 0), (0, 0), (0, L - Hs * Ws), (0, 0)))
    return flat.astype(jnp.bfloat16), OH, OW, Ws


def _conv4x4(a, w_oihw, b, stride, *, fuse_act, emit_stats, out_dtype):
    """Conv2d(k=4, p=2, stride) + bias (+fused LeakyReLU / +BN statistics)."""
    assert not (fuse_act and emit_stats), "stats must be pre-activation"
    flat, OH, OW, Ws = _prep_planes(a, stride)
    N, S2, L, Cin = flat.shape
    Cout = w_oihw.shape[0]
    M = OH * Ws

    # (Cout, Cin, KH, KW) -> (KH*KW, Cin, Cout), bf16 MXU operands.
    w = jnp.transpose(w_oihw, (2, 3, 1, 0)).reshape(KW * KW, Cin, Cout)
    w = w.astype(jnp.bfloat16)
    b2 = b.reshape(1, Cout).astype(jnp.float32)

    out_shapes = [jax.ShapeDtypeStruct((N, M, Cout), out_dtype)]
    out_specs = [pl.BlockSpec((1, M, Cout), lambda n: (n, 0, 0))]
    if emit_stats:
        out_shapes.append(jax.ShapeDtypeStruct((N, 2, Cout), jnp.float32))
        out_specs.append(pl.BlockSpec((1, 2, Cout), lambda n: (n, 0, 0)))

    kernel = functools.partial(_conv4x4_kernel, stride=stride, oh=OH, ow=OW, ws=Ws,
                               fuse_act=fuse_act, emit_stats=emit_stats)
    res = pl.pallas_call(
        kernel,
        out_shape=tuple(out_shapes),
        grid=(N,),
        in_specs=[
            pl.BlockSpec((1, S2, L, Cin), lambda n: (n, 0, 0, 0)),
            pl.BlockSpec((KW * KW, Cin, Cout), lambda n: (0, 0, 0)),
            pl.BlockSpec((1, Cout), lambda n: (0, 0)),
        ],
        out_specs=tuple(out_specs),
        compiler_params=pltpu.CompilerParams(
            dimension_semantics=("parallel",),
            vmem_limit_bytes=_vmem_limit_bytes()),
    )(flat, w, b2)

    y = res[0].reshape(N, OH, Ws, Cout)[:, :, :OW, :]   # drop wrap-around columns
    if emit_stats:
        return y, res[1]
    return y


# ----------------------------- model glue --------------------------------------

def _layer_cfgs(n_layers):
    # (stride, use_bn, use_lrelu) mirroring the PyTorch sequence
    cfgs = [(2, False, True)]
    for _ in range(1, n_layers):
        cfgs.append((2, True, True))
    cfgs.append((1, True, True))
    cfgs.append((1, False, False))
    return cfgs


def nlayer_discriminator_forward(x_nchw, params, n_layers=3):
    """Pallas forward of NLayerDiscriminator (use_sigmoid=False, getIntermFeat=False)."""
    x = jnp.transpose(x_nchw, (0, 2, 3, 1)).astype(jnp.float32)   # NHWC
    cfgs = _layer_cfgs(n_layers)
    last = len(cfgs) - 1
    for li, (stride, use_bn, use_act) in enumerate(cfgs):
        w, b = params[f"w{li}"], params[f"b{li}"]
        out_dtype = jnp.float32 if li == last else jnp.bfloat16   # bf16 intermediates
        if use_bn:
            y, stats = _conv4x4(x, w, b, stride, fuse_act=False, emit_stats=True,
                                out_dtype=out_dtype)
            N, OH, OW, C = y.shape
            cnt = N * OH * OW
            mean = jnp.sum(stats[:, 0, :], axis=0) / cnt
            # NOTE: E[x^2]-E[x]^2 in f32 (clamped); fine at these scales -- switch to
            # a centered/Welford merge before scaling up (see review).
            var = jnp.maximum(jnp.sum(stats[:, 1, :], axis=0) / cnt - mean * mean, 0.0)
            # nn.BatchNorm2d training-mode (biased batch stats) folded into an affine.
            scale = params[f"gamma{li}"] / jnp.sqrt(var + BN_EPS)
            shift = params[f"beta{li}"] - mean * scale
            # Folded BN affine + LeakyReLU: plain XLA ops that fuse with the next
            # layer's pad/phase-split/bf16-cast prologue (no extra Pallas pass).
            z = y.astype(jnp.float32) * scale + shift
            x = jnp.where(z >= 0.0, z, LRELU_SLOPE * z)
        else:
            # layer 0: conv + LeakyReLU fused in-kernel; final layer: conv only.
            y = _conv4x4(x, w, b, stride, fuse_act=use_act, emit_stats=False,
                         out_dtype=out_dtype)
            x = y.astype(jnp.float32)
    return jnp.transpose(x, (0, 3, 1, 2))   # back to NCHW


# ----------------------------- params + reference -------------------------------

def init_params(key, input_nc=4, ndf=8, n_layers=3):
    channels = [input_nc, ndf]
    nf = ndf
    for _ in range(1, n_layers):
        nf = min(nf * 2, 512)
        channels.append(nf)
    nf = min(nf * 2, 512)
    channels.append(nf)
    channels.append(1)
    params = {}
    keys = jax.random.split(key, len(channels) - 1)
    for li in range(len(channels) - 1):
        cin, cout = channels[li], channels[li + 1]
        kw_key, kb_key = jax.random.split(keys[li])
        bound = 1.0 / float(cin * KW * KW) ** 0.5
        params[f"w{li}"] = jax.random.uniform(
            kw_key, (cout, cin, KW, KW), jnp.float32, -bound, bound)
        params[f"b{li}"] = jax.random.uniform(
            kb_key, (cout,), jnp.float32, -bound, bound)
    for li in range(1, n_layers + 1):  # layers with BatchNorm2d
        c = channels[li + 1]
        params[f"gamma{li}"] = jnp.ones((c,), jnp.float32)
        params[f"beta{li}"] = jnp.zeros((c,), jnp.float32)
    return params


def ref_forward(x_nchw, params, n_layers=3):
    """Pure-JAX reference mirroring the kernel numerics (bf16 MXU operands, f32
    accumulation/stats, bf16 HBM intermediates, BN batch stats in training mode)."""
    x = jnp.transpose(x_nchw, (0, 2, 3, 1)).astype(jnp.float32)   # NHWC
    cfgs = _layer_cfgs(n_layers)
    last = len(cfgs) - 1
    for li, (stride, use_bn, use_act) in enumerate(cfgs):
        y = lax.conv_general_dilated(
            x.astype(jnp.bfloat16), params[f"w{li}"].astype(jnp.bfloat16),
            (stride, stride), [(PAD, PAD), (PAD, PAD)],
            dimension_numbers=("NHWC", "OIHW", "NHWC"),
            preferred_element_type=jnp.float32)
        y = y + params[f"b{li}"][None, None, None, :]
        if use_bn:
            mean = jnp.mean(y, axis=(0, 1, 2))
            var = jnp.maximum(jnp.mean(y * y, axis=(0, 1, 2)) - mean * mean, 0.0)
            scale = params[f"gamma{li}"] / jnp.sqrt(var + BN_EPS)
            shift = params[f"beta{li}"] - mean * scale
            y_b = y.astype(jnp.bfloat16).astype(jnp.float32)   # bf16 intermediate
            z = y_b * scale + shift
            x = jnp.where(z >= 0.0, z, LRELU_SLOPE * z)
        elif use_act:
            z = jnp.where(y >= 0.0, y, LRELU_SLOPE * y)        # act fused pre-store
            x = z.astype(jnp.bfloat16).astype(jnp.float32)     # bf16 intermediate
        else:
            x = y                                              # final layer: f32
    return jnp.transpose(x, (0, 3, 1, 2))


if __name__ == "__main__":
    key = jax.random.PRNGKey(0)
    pkey, xkey = jax.random.split(key)
    params = init_params(pkey, input_nc=4, ndf=8, n_layers=3)
    x = jax.random.normal(xkey, (2, 4, 16, 16), jnp.float32)

    out = jax.jit(nlayer_discriminator_forward)(x, params)
    out = jax.block_until_ready(out)

    # Conv2d(k=4, p=2): 16 -> 9 -> 5 -> 3 (stride 2,2,2) -> 4 -> 5 (stride 1,1)
    assert out.shape == (2, 1, 5, 5), out.shape
    ref = jax.jit(ref_forward)(x, params)
    max_err = float(jnp.max(jnp.abs(out - ref)))
    assert max_err < 2e-3, f"max abs error {max_err}"
    print("KERNEL_OK")
</pallas_src>

<mosaic_0001>
module attributes {stable_mosaic.version = 11 : i64} {
  func.func @_conv4x4_kernel(%arg0: i32, %arg1: memref<1x4x104x4xbf16, #tpu.memory_space<vmem>>, %arg2: memref<16x4x8xbf16, #tpu.memory_space<vmem>>, %arg3: memref<1x8xf32, #tpu.memory_space<vmem>>, %arg4: memref<1x90x8xbf16, #tpu.memory_space<vmem>>) attributes {dimension_semantics = [#tpu.dimension_semantics<parallel>], iteration_bounds = array<i64: 2>, scalar_prefetch = 0 : i64, scratch_operands = 0 : i64, tpu.core_type = #tpu.core_type<tc>, window_params = [{transform_indices = @transform_0, window_bounds = array<i64: 1, 4, 104, 4>}, {pipeline_mode = #tpu.pipeline_mode<synchronous>, transform_indices = @transform_1, window_bounds = array<i64: 16, 4, 8>}, {pipeline_mode = #tpu.pipeline_mode<synchronous>, transform_indices = @transform_2, window_bounds = array<i64: 1, 8>}, {transform_indices = @transform_3, window_bounds = array<i64: 1, 90, 8>}]} {
    %cst = arith.constant 0.000000e+00 : f32
    %0 = vector.broadcast %cst : f32 to vector<90x8xf32>
    %c0 = arith.constant 0 : index
    %c0_0 = arith.constant 0 : index
    %c0_1 = arith.constant 0 : index
    %c0_2 = arith.constant 0 : index
    %1 = vector.load %arg1[%c0, %c0_0, %c0_1, %c0_2] : memref<1x4x104x4xbf16, #tpu.memory_space<vmem>>, vector<1x1x90x4xbf16>
    %2 = vector.shape_cast %1 : vector<1x1x90x4xbf16> to vector<90x4xbf16>
    %c0_3 = arith.constant 0 : index
    %c0_4 = arith.constant 0 : index
    %c0_5 = arith.constant 0 : index
    %3 = vector.load %arg2[%c0_3, %c0_4, %c0_5] : memref<16x4x8xbf16, #tpu.memory_space<vmem>>, vector<1x4x8xbf16>
    %4 = vector.shape_cast %3 : vector<1x4x8xbf16> to vector<4x8xbf16>
    %cst_6 = arith.constant dense<0.000000e+00> : vector<90x8xf32>
    %5 = tpu.matmul %2, %4, %cst_6 {dimension_numbers = #tpu.dot_dimension_numbers<[1], [0], [0], [1], [0, 0, 1, 1], [], []>} : vector<90x4xbf16>, vector<4x8xbf16>, vector<90x8xf32> -> vector<90x8xf32>
    %6 = arith.addf %0, %5 : vector<90x8xf32>
    %c0_7 = arith.constant 0 : index
    %c1 = arith.constant 1 : index
    %c0_8 = arith.constant 0 : index
    %c0_9 = arith.constant 0 : index
    %7 = vector.load %arg1[%c0_7, %c1, %c0_8, %c0_9] : memref<1x4x104x4xbf16, #tpu.memory_space<vmem>>, vector<1x1x90x4xbf16>
    %8 = vector.shape_cast %7 : vector<1x1x90x4xbf16> to vector<90x4xbf16>
    %c1_10 = arith.constant 1 : index
    %c0_11 = arith.constant 0 : index
    %c0_12 = arith.constant 0 : index
    %9 = vector.load %arg2[%c1_10, %c0_11, %c0_12] : memref<16x4x8xbf16, #tpu.memory_space<vmem>>, vector<1x4x8xbf16>
    %10 = vector.shape_cast %9 : vector<1x4x8xbf16> to vector<4x8xbf16>
    %cst_13 = arith.constant dense<0.000000e+00> : vector<90x8xf32>
    %11 = tpu.matmul %8, %10, %cst_13 {dimension_numbers = #tpu.dot_dimension_numbers<[1], [0], [0], [1], [0, 0, 1, 1], [], []>} : vector<90x4xbf16>, vector<4x8xbf16>, vector<90x8xf32> -> vector<90x8xf32>
    %12 = arith.addf %6, %11 : vector<90x8xf32>
    %c0_14 = arith.constant 0 : index
    %c0_15 = arith.constant 0 : index
    %c1_16 = arith.constant 1 : index
    %c0_17 = arith.constant 0 : index
    %13 = vector.load %arg1[%c0_14, %c0_15, %c1_16, %c0_17] : memref<1x4x104x4xbf16, #tpu.memory_space<vmem>>, vector<1x1x90x4xbf16>
    %14 = vector.shape_cast %13 : vector<1x1x90x4xbf16> to vector<90x4xbf16>
    %c2 = arith.constant 2 : index
    %c0_18 = arith.constant 0 : index
    %c0_19 = arith.constant 0 : index
    %15 = vector.load %arg2[%c2, %c0_18, %c0_19] : memref<16x4x8xbf16, #tpu.memory_space<vmem>>, vector<1x4x8xbf16>
    %16 = vector.shape_cast %15 : vector<1x4x8xbf16> to vector<4x8xbf16>
    %cst_20 = arith.constant dense<0.000000e+00> : vector<90x8xf32>
    %17 = tpu.matmul %14, %16, %cst_20 {dimension_numbers = #tpu.dot_dimension_numbers<[1], [0], [0], [1], [0, 0, 1, 1], [], []>} : vector<90x4xbf16>, vector<4x8xbf16>, vector<90x8xf32> -> vector<90x8xf32>
    %18 = arith.addf %12, %17 : vector<90x8xf32>
    %c0_21 = arith.constant 0 : index
    %c1_22 = arith.constant 1 : index
    %c1_23 = arith.constant 1 : index
    %c0_24 = arith.constant 0 : index
    %19 = vector.load %arg1[%c0_21, %c1_22, %c1_23, %c0_24] : memref<1x4x104x4xbf16, #tpu.memory_space<vmem>>, vector<1x1x90x4xbf16>
    %20 = vector.shape_cast %19 : vector<1x1x90x4xbf16> to vector<90x4xbf16>
    %c3 = arith.constant 3 : index
    %c0_25 = arith.constant 0 : index
    %c0_26 = arith.constant 0 : index
    %21 = vector.load %arg2[%c3, %c0_25, %c0_26] : memref<16x4x8xbf16, #tpu.memory_space<vmem>>, vector<1x4x8xbf16>
    %22 = vector.shape_cast %21 : vector<1x4x8xbf16> to vector<4x8xbf16>
    %cst_27 = arith.constant dense<0.000000e+00> : vector<90x8xf32>
    %23 = tpu.matmul %20, %22, %cst_27 {dimension_numbers = #tpu.dot_dimension_numbers<[1], [0], [0], [1], [0, 0, 1, 1], [], []>} : vector<90x4xbf16>, vector<4x8xbf16>, vector<90x8xf32> -> vector<90x8xf32>
    %24 = arith.addf %18, %23 : vector<90x8xf32>
    %c0_28 = arith.constant 0 : index
    %c2_29 = arith.constant 2 : index
    %c0_30 = arith.constant 0 : index
    %c0_31 = arith.constant 0 : index
    %25 = vector.load %arg1[%c0_28, %c2_29, %c0_30, %c0_31] : memref<1x4x104x4xbf16, #tpu.memory_space<vmem>>, vector<1x1x90x4xbf16>
    %26 = vector.shape_cast %25 : vector<1x1x90x4xbf16> to vector<90x4xbf16>
    %c4 = arith.constant 4 : index
    %c0_32 = arith.constant 0 : index
    %c0_33 = arith.constant 0 : index
    %27 = vector.load %arg2[%c4, %c0_32, %c0_33] : memref<16x4x8xbf16, #tpu.memory_space<vmem>>, vector<1x4x8xbf16>
    %28 = vector.shape_cast %27 : vector<1x4x8xbf16> to vector<4x8xbf16>
    %cst_34 = arith.constant dense<0.000000e+00> : vector<90x8xf32>
    %29 = tpu.matmul %26, %28, %cst_34 {dimension_numbers = #tpu.dot_dimension_numbers<[1], [0], [0], [1], [0, 0, 1, 1], [], []>} : vector<90x4xbf16>, vector<4x8xbf16>, vector<90x8xf32> -> vector<90x8xf32>
    %30 = arith.addf %24, %29 : vector<90x8xf32>
    %c0_35 = arith.constant 0 : index
    %c3_36 = arith.constant 3 : index
    %c0_37 = arith.constant 0 : index
    %c0_38 = arith.constant 0 : index
    %31 = vector.load %arg1[%c0_35, %c3_36, %c0_37, %c0_38] : memref<1x4x104x4xbf16, #tpu.memory_space<vmem>>, vector<1x1x90x4xbf16>
    %32 = vector.shape_cast %31 : vector<1x1x90x4xbf16> to vector<90x4xbf16>
    %c5 = arith.constant 5 : index
    %c0_39 = arith.constant 0 : index
    %c0_40 = arith.constant 0 : index
    %33 = vector.load %arg2[%c5, %c0_39, %c0_40] : memref<16x4x8xbf16, #tpu.memory_space<vmem>>, vector<1x4x8xbf16>
    %34 = vector.shape_cast %33 : vector<1x4x8xbf16> to vector<4x8xbf16>
    %cst_41 = arith.constant dense<0.000000e+00> : vector<90x8xf32>
    %35 = tpu.matmul %32, %34, %cst_41 {dimension_numbers = #tpu.dot_dimension_numbers<[1], [0], [0], [1], [0, 0, 1, 1], [], []>} : vector<90x4xbf16>, vector<4x8xbf16>, vector<90x8xf32> -> vector<90x8xf32>
    %36 = arith.addf %30, %35 : vector<90x8xf32>
    %c0_42 = arith.constant 0 : index
    %c2_43 = arith.constant 2 : index
    %c1_44 = arith.constant 1 : index
    %c0_45 = arith.constant 0 : index
    %37 = vector.load %arg1[%c0_42, %c2_43, %c1_44, %c0_45] : memref<1x4x104x4xbf16, #tpu.memory_space<vmem>>, vector<1x1x90x4xbf16>
    %38 = vector.shape_cast %37 : vector<1x1x90x4xbf16> to vector<90x4xbf16>
    %c6 = arith.constant 6 : index
    %c0_46 = arith.constant 0 : index
    %c0_47 = arith.constant 0 : index
    %39 = vector.load %arg2[%c6, %c0_46, %c0_47] : memref<16x4x8xbf16, #tpu.memory_space<vmem>>, vector<1x4x8xbf16>
    %40 = vector.shape_cast %39 : vector<1x4x8xbf16> to vector<4x8xbf16>
    %cst_48 = arith.constant dense<0.000000e+00> : vector<90x8xf32>
    %41 = tpu.matmul %38, %40, %cst_48 {dimension_numbers = #tpu.dot_dimension_numbers<[1], [0], [0], [1], [0, 0, 1, 1], [], []>} : vector<90x4xbf16>, vector<4x8xbf16>, vector<90x8xf32> -> vector<90x8xf32>
    %42 = arith.addf %36, %41 : vector<90x8xf32>
    %c0_49 = arith.constant 0 : index
    %c3_50 = arith.constant 3 : index
    %c1_51 = arith.constant 1 : index
    %c0_52 = arith.constant 0 : index
    %43 = vector.load %arg1[%c0_49, %c3_50, %c1_51, %c0_52] : memref<1x4x104x4xbf16, #tpu.memory_space<vmem>>, vector<1x1x90x4xbf16>
    %44 = vector.shape_cast %43 : vector<1x1x90x4xbf16> to vector<90x4xbf16>
    %c7 = arith.constant 7 : index
    %c0_53 = arith.constant 0 : index
    %c0_54 = arith.constant 0 : index
    %45 = vector.load %arg2[%c7, %c0_53, %c0_54] : memref<16x4x8xbf16, #tpu.memory_space<vmem>>, vector<1x4x8xbf16>
    %46 = vector.shape_cast %45 : vector<1x4x8xbf16> to vector<4x8xbf16>
    %cst_55 = arith.constant dense<0.000000e+00> : vector<90x8xf32>
    %47 = tpu.matmul %44, %46, %cst_55 {dimension_numbers = #tpu.dot_dimension_numbers<[1], [0], [0], [1], [0, 0, 1, 1], [], []>} : vector<90x4xbf16>, vector<4x8xbf16>, vector<90x8xf32> -> vector<90x8xf32>
    %48 = arith.addf %42, %47 : vector<90x8xf32>
    %c0_56 = arith.constant 0 : index
    %c0_57 = arith.constant 0 : index
    %c10 = arith.constant 10 : index
    %c0_58 = arith.constant 0 : index
    %49 = vector.load %arg1[%c0_56, %c0_57, %c10, %c0_58] : memref<1x4x104x4xbf16, #tpu.memory_space<vmem>>, vector<1x1x90x4xbf16>
    %50 = vector.shape_cast %49 : vector<1x1x90x4xbf16> to vector<90x4xbf16>
    %c8 = arith.constant 8 : index
    %c0_59 = arith.constant 0 : index
    %c0_60 = arith.constant 0 : index
    %51 = vector.load %arg2[%c8, %c0_59, %c0_60] : memref<16x4x8xbf16, #tpu.memory_space<vmem>>, vector<1x4x8xbf16>
    %52 = vector.shape_cast %51 : vector<1x4x8xbf16> to vector<4x8xbf16>
    %cst_61 = arith.constant dense<0.000000e+00> : vector<90x8xf32>
    %53 = tpu.matmul %50, %52, %cst_61 {dimension_numbers = #tpu.dot_dimension_numbers<[1], [0], [0], [1], [0, 0, 1, 1], [], []>} : vector<90x4xbf16>, vector<4x8xbf16>, vector<90x8xf32> -> vector<90x8xf32>
    %54 = arith.addf %48, %53 : vector<90x8xf32>
    %c0_62 = arith.constant 0 : index
    %c1_63 = arith.constant 1 : index
    %c10_64 = arith.constant 10 : index
    %c0_65 = arith.constant 0 : index
    %55 = vector.load %arg1[%c0_62, %c1_63, %c10_64, %c0_65] : memref<1x4x104x4xbf16, #tpu.memory_space<vmem>>, vector<1x1x90x4xbf16>
    %56 = vector.shape_cast %55 : vector<1x1x90x4xbf16> to vector<90x4xbf16>
    %c9 = arith.constant 9 : index
    %c0_66 = arith.constant 0 : index
    %c0_67 = arith.constant 0 : index
    %57 = vector.load %arg2[%c9, %c0_66, %c0_67] : memref<16x4x8xbf16, #tpu.memory_space<vmem>>, vector<1x4x8xbf16>
    %58 = vector.shape_cast %57 : vector<1x4x8xbf16> to vector<4x8xbf16>
    %cst_68 = arith.constant dense<0.000000e+00> : vector<90x8xf32>
    %59 = tpu.matmul %56, %58, %cst_68 {dimension_numbers = #tpu.dot_dimension_numbers<[1], [0], [0], [1], [0, 0, 1, 1], [], []>} : vector<90x4xbf16>, vector<4x8xbf16>, vector<90x8xf32> -> vector<90x8xf32>
    %60 = arith.addf %54, %59 : vector<90x8xf32>
    %c0_69 = arith.constant 0 : index
    %c0_70 = arith.constant 0 : index
    %c11 = arith.constant 11 : index
    %c0_71 = arith.constant 0 : index
    %61 = vector.load %arg1[%c0_69, %c0_70, %c11, %c0_71] : memref<1x4x104x4xbf16, #tpu.memory_space<vmem>>, vector<1x1x90x4xbf16>
    %62 = vector.shape_cast %61 : vector<1x1x90x4xbf16> to vector<90x4xbf16>
    %c10_72 = arith.constant 10 : index
    %c0_73 = arith.constant 0 : index
    %c0_74 = arith.constant 0 : index
    %63 = vector.load %arg2[%c10_72, %c0_73, %c0_74] : memref<16x4x8xbf16, #tpu.memory_space<vmem>>, vector<1x4x8xbf16>
    %64 = vector.shape_cast %63 : vector<1x4x8xbf16> to vector<4x8xbf16>
    %cst_75 = arith.constant dense<0.000000e+00> : vector<90x8xf32>
    %65 = tpu.matmul %62, %64, %cst_75 {dimension_numbers = #tpu.dot_dimension_numbers<[1], [0], [0], [1], [0, 0, 1, 1], [], []>} : vector<90x4xbf16>, vector<4x8xbf16>, vector<90x8xf32> -> vector<90x8xf32>
    %66 = arith.addf %60, %65 : vector<90x8xf32>
    %c0_76 = arith.constant 0 : index
    %c1_77 = arith.constant 1 : index
    %c11_78 = arith.constant 11 : index
    %c0_79 = arith.constant 0 : index
    %67 = vector.load %arg1[%c0_76, %c1_77, %c11_78, %c0_79] : memref<1x4x104x4xbf16, #tpu.memory_space<vmem>>, vector<1x1x90x4xbf16>
    %68 = vector.shape_cast %67 : vector<1x1x90x4xbf16> to vector<90x4xbf16>
    %c11_80 = arith.constant 11 : index
    %c0_81 = arith.constant 0 : index
    %c0_82 = arith.constant 0 : index
    %69 = vector.load %arg2[%c11_80, %c0_81, %c0_82] : memref<16x4x8xbf16, #tpu.memory_space<vmem>>, vector<1x4x8xbf16>
    %70 = vector.shape_cast %69 : vector<1x4x8xbf16> to vector<4x8xbf16>
    %cst_83 = arith.constant dense<0.000000e+00> : vector<90x8xf32>
    %71 = tpu.matmul %68, %70, %cst_83 {dimension_numbers = #tpu.dot_dimension_numbers<[1], [0], [0], [1], [0, 0, 1, 1], [], []>} : vector<90x4xbf16>, vector<4x8xbf16>, vector<90x8xf32> -> vector<90x8xf32>
    %72 = arith.addf %66, %71 : vector<90x8xf32>
    %c0_84 = arith.constant 0 : index
    %c2_85 = arith.constant 2 : index
    %c10_86 = arith.constant 10 : index
    %c0_87 = arith.constant 0 : index
    %73 = vector.load %arg1[%c0_84, %c2_85, %c10_86, %c0_87] : memref<1x4x104x4xbf16, #tpu.memory_space<vmem>>, vector<1x1x90x4xbf16>
    %74 = vector.shape_cast %73 : vector<1x1x90x4xbf16> to vector<90x4xbf16>
    %c12 = arith.constant 12 : index
    %c0_88 = arith.constant 0 : index
    %c0_89 = arith.constant 0 : index
    %75 = vector.load %arg2[%c12, %c0_88, %c0_89] : memref<16x4x8xbf16, #tpu.memory_space<vmem>>, vector<1x4x8xbf16>
    %76 = vector.shape_cast %75 : vector<1x4x8xbf16> to vector<4x8xbf16>
    %cst_90 = arith.constant dense<0.000000e+00> : vector<90x8xf32>
    %77 = tpu.matmul %74, %76, %cst_90 {dimension_numbers = #tpu.dot_dimension_numbers<[1], [0], [0], [1], [0, 0, 1, 1], [], []>} : vector<90x4xbf16>, vector<4x8xbf16>, vector<90x8xf32> -> vector<90x8xf32>
    %78 = arith.addf %72, %77 : vector<90x8xf32>
    %c0_91 = arith.constant 0 : index
    %c3_92 = arith.constant 3 : index
    %c10_93 = arith.constant 10 : index
    %c0_94 = arith.constant 0 : index
    %79 = vector.load %arg1[%c0_91, %c3_92, %c10_93, %c0_94] : memref<1x4x104x4xbf16, #tpu.memory_space<vmem>>, vector<1x1x90x4xbf16>
    %80 = vector.shape_cast %79 : vector<1x1x90x4xbf16> to vector<90x4xbf16>
    %c13 = arith.constant 13 : index
    %c0_95 = arith.constant 0 : index
    %c0_96 = arith.constant 0 : index
    %81 = vector.load %arg2[%c13, %c0_95, %c0_96] : memref<16x4x8xbf16, #tpu.memory_space<vmem>>, vector<1x4x8xbf16>
    %82 = vector.shape_cast %81 : vector<1x4x8xbf16> to vector<4x8xbf16>
    %cst_97 = arith.constant dense<0.000000e+00> : vector<90x8xf32>
    %83 = tpu.matmul %80, %82, %cst_97 {dimension_numbers = #tpu.dot_dimension_numbers<[1], [0], [0], [1], [0, 0, 1, 1], [], []>} : vector<90x4xbf16>, vector<4x8xbf16>, vector<90x8xf32> -> vector<90x8xf32>
    %84 = arith.addf %78, %83 : vector<90x8xf32>
    %c0_98 = arith.constant 0 : index
    %c2_99 = arith.constant 2 : index
    %c11_100 = arith.constant 11 : index
    %c0_101 = arith.constant 0 : index
    %85 = vector.load %arg1[%c0_98, %c2_99, %c11_100, %c0_101] : memref<1x4x104x4xbf16, #tpu.memory_space<vmem>>, vector<1x1x90x4xbf16>
    %86 = vector.shape_cast %85 : vector<1x1x90x4xbf16> to vector<90x4xbf16>
    %c14 = arith.constant 14 : index
    %c0_102 = arith.constant 0 : index
    %c0_103 = arith.constant 0 : index
    %87 = vector.load %arg2[%c14, %c0_102, %c0_103] : memref<16x4x8xbf16, #tpu.memory_space<vmem>>, vector<1x4x8xbf16>
    %88 = vector.shape_cast %87 : vector<1x4x8xbf16> to vector<4x8xbf16>
    %cst_104 = arith.constant dense<0.000000e+00> : vector<90x8xf32>
    %89 = tpu.matmul %86, %88, %cst_104 {dimension_numbers = #tpu.dot_dimension_numbers<[1], [0], [0], [1], [0, 0, 1, 1], [], []>} : vector<90x4xbf16>, vector<4x8xbf16>, vector<90x8xf32> -> vector<90x8xf32>
    %90 = arith.addf %84, %89 : vector<90x8xf32>
    %c0_105 = arith.constant 0 : index
    %c3_106 = arith.constant 3 : index
    %c11_107 = arith.constant 11 : index
    %c0_108 = arith.constant 0 : index
    %91 = vector.load %arg1[%c0_105, %c3_106, %c11_107, %c0_108] : memref<1x4x104x4xbf16, #tpu.memory_space<vmem>>, vector<1x1x90x4xbf16>
    %92 = vector.shape_cast %91 : vector<1x1x90x4xbf16> to vector<90x4xbf16>
    %c15 = arith.constant 15 : index
    %c0_109 = arith.constant 0 : index
    %c0_110 = arith.constant 0 : index
    %93 = vector.load %arg2[%c15, %c0_109, %c0_110] : memref<16x4x8xbf16, #tpu.memory_space<vmem>>, vector<1x4x8xbf16>
    %94 = vector.shape_cast %93 : vector<1x4x8xbf16> to vector<4x8xbf16>
    %cst_111 = arith.constant dense<0.000000e+00> : vector<90x8xf32>
    %95 = tpu.matmul %92, %94, %cst_111 {dimension_numbers = #tpu.dot_dimension_numbers<[1], [0], [0], [1], [0, 0, 1, 1], [], []>} : vector<90x4xbf16>, vector<4x8xbf16>, vector<90x8xf32> -> vector<90x8xf32>
    %96 = arith.addf %90, %95 : vector<90x8xf32>
    %c0_112 = arith.constant 0 : index
    %c0_113 = arith.constant 0 : index
    %97 = vector.load %arg3[%c0_112, %c0_113] : memref<1x8xf32, #tpu.memory_space<vmem>>, vector<1x8xf32>
    %98 = vector.broadcast %97 : vector<1x8xf32> to vector<90x8xf32>
    %99 = arith.addf %96, %98 : vector<90x8xf32>
    %cst_114 = arith.constant 0.000000e+00 : f32
    %100 = vector.broadcast %cst_114 : f32 to vector<90x8xf32>
    %101 = arith.cmpf oge, %99, %100 : vector<90x8xf32>
    %cst_115 = arith.constant 2.000000e-01 : f32
    %102 = vector.broadcast %cst_115 : f32 to vector<90x8xf32>
    %103 = arith.mulf %102, %99 : vector<90x8xf32>
    %104 = arith.select %101, %99, %103 : vector<90x8xi1>, vector<90x8xf32>
    %105 = arith.truncf %104 : vector<90x8xf32> to vector<90x8xbf16>
    %c0_116 = arith.constant 0 : index
    %c0_117 = arith.constant 0 : index
    %c0_118 = arith.constant 0 : index
    %106 = vector.load %arg4[%c0_116, %c0_117, %c0_118] : memref<1x90x8xbf16, #tpu.memory_space<vmem>>, vector<1x90x8xbf16>
    %107 = vector.shape_cast %106 : vector<1x90x8xbf16> to vector<90x8xbf16>
    %108 = vector.shape_cast %105 : vector<90x8xbf16> to vector<1x90x8xbf16>
    tpu.vector_store %arg4[%c0_116, %c0_117, %c0_118], %108 {strides = array<i32>} : memref<1x90x8xbf16, #tpu.memory_space<vmem>>, vector<1x90x8xbf16>,
    return
  }
  func.func @transform_0(%arg0: i32) -> (i32, i32, i32, i32) {
    %c0_i32 = arith.constant 0 : i32
    %c0_i32_0 = arith.constant 0 : i32
    %c0_i32_1 = arith.constant 0 : i32
    %c0_i32_2 = arith.constant 0 : i32
    return %arg0, %c0_i32, %c0_i32_0, %c0_i32_1 : i32, i32, i32, i32
  }
  func.func @transform_1(%arg0: i32) -> (i32, i32, i32) {
    %c0_i32 = arith.constant 0 : i32
    %c0_i32_0 = arith.constant 0 : i32
    %c0_i32_1 = arith.constant 0 : i32
    %c0_i32_2 = arith.constant 0 : i32
    return %c0_i32, %c0_i32_0, %c0_i32_1 : i32, i32, i32
  }
  func.func @transform_2(%arg0: i32) -> (i32, i32) {
    %c0_i32 = arith.constant 0 : i32
    %c0_i32_0 = arith.constant 0 : i32
    %c0_i32_1 = arith.constant 0 : i32
    return %c0_i32, %c0_i32_0 : i32, i32
  }
  func.func @transform_3(%arg0: i32) -> (i32, i32, i32) {
    %c0_i32 = arith.constant 0 : i32
    %c0_i32_0 = arith.constant 0 : i32
    %c0_i32_1 = arith.constant 0 : i32
    return %arg0, %c0_i32, %c0_i32_0 : i32, i32, i32
  }
}

module attributes {stable_mosaic.version = 11 : i64} {
  func.func @_conv4x4_kernel(%arg0: i32, %arg1: memref<1x4x56x8xbf16, #tpu.memory_space<vmem>>, %arg2: memref<16x8x16xbf16, #tpu.memory_space<vmem>>, %arg3: memref<1x16xf32, #tpu.memory_space<vmem>>, %arg4: memref<1x35x16xbf16, #tpu.memory_space<vmem>>, %arg5: memref<1x2x16xf32, #tpu.memory_space<vmem>>) attributes {dimension_semantics = [#tpu.dimension_semantics<parallel>], iteration_bounds = array<i64: 2>, scalar_prefetch = 0 : i64, scratch_operands = 0 : i64, tpu.core_type = #tpu.core_type<tc>, window_params = [{transform_indices = @transform_0, window_bounds = array<i64: 1, 4, 56, 8>}, {pipeline_mode = #tpu.pipeline_mode<synchronous>, transform_indices = @transform_1, window_bounds = array<i64: 16, 8, 16>}, {pipeline_mode = #tpu.pipeline_mode<synchronous>, transform_indices = @transform_2, window_bounds = array<i64: 1, 16>}, {transform_indices = @transform_3, window_bounds = array<i64: 1, 35, 16>}, {transform_indices = @transform_4, window_bounds = array<i64: 1, 2, 16>}]} {
    %cst = arith.constant 0.000000e+00 : f32
    %0 = vector.broadcast %cst : f32 to vector<35x16xf32>
    %c0 = arith.constant 0 : index
    %c0_0 = arith.constant 0 : index
    %c0_1 = arith.constant 0 : index
    %c0_2 = arith.constant 0 : index
    %1 = vector.load %arg1[%c0, %c0_0, %c0_1, %c0_2] : memref<1x4x56x8xbf16, #tpu.memory_space<vmem>>, vector<1x1x35x8xbf16>
    %2 = vector.shape_cast %1 : vector<1x1x35x8xbf16> to vector<35x8xbf16>
    %c0_3 = arith.constant 0 : index
    %c0_4 = arith.constant 0 : index
    %c0_5 = arith.constant 0 : index
    %3 = vector.load %arg2[%c0_3, %c0_4, %c0_5] : memref<16x8x16xbf16, #tpu.memory_space<vmem>>, vector<1x8x16xbf16>
    %4 = vector.shape_cast %3 : vector<1x8x16xbf16> to vector<8x16xbf16>
    %cst_6 = arith.constant dense<0.000000e+00> : vector<35x16xf32>
    %5 = tpu.matmul %2, %4, %cst_6 {dimension_numbers = #tpu.dot_dimension_numbers<[1], [0], [0], [1], [0, 0, 1, 1], [], []>} : vector<35x8xbf16>, vector<8x16xbf16>, vector<35x16xf32> -> vector<35x16xf32>
    %6 = arith.addf %0, %5 : vector<35x16xf32>
    %c0_7 = arith.constant 0 : index
    %c1 = arith.constant 1 : index
    %c0_8 = arith.constant 0 : index
    %c0_9 = arith.constant 0 : index
    %7 = vector.load %arg1[%c0_7, %c1, %c0_8, %c0_9] : memref<1x4x56x8xbf16, #tpu.memory_space<vmem>>, vector<1x1x35x8xbf16>
    %8 = vector.shape_cast %7 : vector<1x1x35x8xbf16> to vector<35x8xbf16>
    %c1_10 = arith.constant 1 : index
    %c0_11 = arith.constant 0 : index
    %c0_12 = arith.constant 0 : index
    %9 = vector.load %arg2[%c1_10, %c0_11, %c0_12] : memref<16x8x16xbf16, #tpu.memory_space<vmem>>, vector<1x8x16xbf16>
    %10 = vector.shape_cast %9 : vector<1x8x16xbf16> to vector<8x16xbf16>
    %cst_13 = arith.constant dense<0.000000e+00> : vector<35x16xf32>
    %11 = tpu.matmul %8, %10, %cst_13 {dimension_numbers = #tpu.dot_dimension_numbers<[1], [0], [0], [1], [0, 0, 1, 1], [], []>} : vector<35x8xbf16>, vector<8x16xbf16>, vector<35x16xf32> -> vector<35x16xf32>
    %12 = arith.addf %6, %11 : vector<35x16xf32>
    %c0_14 = arith.constant 0 : index
    %c0_15 = arith.constant 0 : index
    %c1_16 = arith.constant 1 : index
    %c0_17 = arith.constant 0 : index
    %13 = vector.load %arg1[%c0_14, %c0_15, %c1_16, %c0_17] : memref<1x4x56x8xbf16, #tpu.memory_space<vmem>>, vector<1x1x35x8xbf16>
    %14 = vector.shape_cast %13 : vector<1x1x35x8xbf16> to vector<35x8xbf16>
    %c2 = arith.constant 2 : index
    %c0_18 = arith.constant 0 : index
    %c0_19 = arith.constant 0 : index
    %15 = vector.load %arg2[%c2, %c0_18, %c0_19] : memref<16x8x16xbf16, #tpu.memory_space<vmem>>, vector<1x8x16xbf16>
    %16 = vector.shape_cast %15 : vector<1x8x16xbf16> to vector<8x16xbf16>
    %cst_20 = arith.constant dense<0.000000e+00> : vector<35x16xf32>
    %17 = tpu.matmul %14, %16, %cst_20 {dimension_numbers = #tpu.dot_dimension_numbers<[1], [0], [0], [1], [0, 0, 1, 1], [], []>} : vector<35x8xbf16>, vector<8x16xbf16>, vector<35x16xf32> -> vector<35x16xf32>
    %18 = arith.addf %12, %17 : vector<35x16xf32>
    %c0_21 = arith.constant 0 : index
    %c1_22 = arith.constant 1 : index
    %c1_23 = arith.constant 1 : index
    %c0_24 = arith.constant 0 : index
    %19 = vector.load %arg1[%c0_21, %c1_22, %c1_23, %c0_24] : memref<1x4x56x8xbf16, #tpu.memory_space<vmem>>, vector<1x1x35x8xbf16>
    %20 = vector.shape_cast %19 : vector<1x1x35x8xbf16> to vector<35x8xbf16>
    %c3 = arith.constant 3 : index
    %c0_25 = arith.constant 0 : index
    %c0_26 = arith.constant 0 : index
    %21 = vector.load %arg2[%c3, %c0_25, %c0_26] : memref<16x8x16xbf16, #tpu.memory_space<vmem>>, vector<1x8x16xbf16>
    %22 = vector.shape_cast %21 : vector<1x8x16xbf16> to vector<8x16xbf16>
    %cst_27 = arith.constant dense<0.000000e+00> : vector<35x16xf32>
    %23 = tpu.matmul %20, %22, %cst_27 {dimension_numbers = #tpu.dot_dimension_numbers<[1], [0], [0], [1], [0, 0, 1, 1], [], []>} : vector<35x8xbf16>, vector<8x16xbf16>, vector<35x16xf32> -> vector<35x16xf32>
    %24 = arith.addf %18, %23 : vector<35x16xf32>
    %c0_28 = arith.constant 0 : index
    %c2_29 = arith.constant 2 : index
    %c0_30 = arith.constant 0 : index
    %c0_31 = arith.constant 0 : index
    %25 = vector.load %arg1[%c0_28, %c2_29, %c0_30, %c0_31] : memref<1x4x56x8xbf16, #tpu.memory_space<vmem>>, vector<1x1x35x8xbf16>
    %26 = vector.shape_cast %25 : vector<1x1x35x8xbf16> to vector<35x8xbf16>
    %c4 = arith.constant 4 : index
    %c0_32 = arith.constant 0 : index
    %c0_33 = arith.constant 0 : index
    %27 = vector.load %arg2[%c4, %c0_32, %c0_33] : memref<16x8x16xbf16, #tpu.memory_space<vmem>>, vector<1x8x16xbf16>
    %28 = vector.shape_cast %27 : vector<1x8x16xbf16> to vector<8x16xbf16>
    %cst_34 = arith.constant dense<0.000000e+00> : vector<35x16xf32>
    %29 = tpu.matmul %26, %28, %cst_34 {dimension_numbers = #tpu.dot_dimension_numbers<[1], [0], [0], [1], [0, 0, 1, 1], [], []>} : vector<35x8xbf16>, vector<8x16xbf16>, vector<35x16xf32> -> vector<35x16xf32>
    %30 = arith.addf %24, %29 : vector<35x16xf32>
    %c0_35 = arith.constant 0 : index
    %c3_36 = arith.constant 3 : index
    %c0_37 = arith.constant 0 : index
    %c0_38 = arith.constant 0 : index
    %31 = vector.load %arg1[%c0_35, %c3_36, %c0_37, %c0_38] : memref<1x4x56x8xbf16, #tpu.memory_space<vmem>>, vector<1x1x35x8xbf16>
    %32 = vector.shape_cast %31 : vector<1x1x35x8xbf16> to vector<35x8xbf16>
    %c5 = arith.constant 5 : index
    %c0_39 = arith.constant 0 : index
    %c0_40 = arith.constant 0 : index
    %33 = vector.load %arg2[%c5, %c0_39, %c0_40] : memref<16x8x16xbf16, #tpu.memory_space<vmem>>, vector<1x8x16xbf16>
    %34 = vector.shape_cast %33 : vector<1x8x16xbf16> to vector<8x16xbf16>
    %cst_41 = arith.constant dense<0.000000e+00> : vector<35x16xf32>
    %35 = tpu.matmul %32, %34, %cst_41 {dimension_numbers = #tpu.dot_dimension_numbers<[1], [0], [0], [1], [0, 0, 1, 1], [], []>} : vector<35x8xbf16>, vector<8x16xbf16>, vector<35x16xf32> -> vector<35x16xf32>
    %36 = arith.addf %30, %35 : vector<35x16xf32>
    %c0_42 = arith.constant 0 : index
    %c2_43 = arith.constant 2 : index
    %c1_44 = arith.constant 1 : index
    %c0_45 = arith.constant 0 : index
    %37 = vector.load %arg1[%c0_42, %c2_43, %c1_44, %c0_45] : memref<1x4x56x8xbf16, #tpu.memory_space<vmem>>, vector<1x1x35x8xbf16>
    %38 = vector.shape_cast %37 : vector<1x1x35x8xbf16> to vector<35x8xbf16>
    %c6 = arith.constant 6 : index
    %c0_46 = arith.constant 0 : index
    %c0_47 = arith.constant 0 : index
    %39 = vector.load %arg2[%c6, %c0_46, %c0_47] : memref<16x8x16xbf16, #tpu.memory_space<vmem>>, vector<1x8x16xbf16>
    %40 = vector.shape_cast %39 : vector<1x8x16xbf16> to vector<8x16xbf16>
    %cst_48 = arith.constant dense<0.000000e+00> : vector<35x16xf32>
    %41 = tpu.matmul %38, %40, %cst_48 {dimension_numbers = #tpu.dot_dimension_numbers<[1], [0], [0], [1], [0, 0, 1, 1], [], []>} : vector<35x8xbf16>, vector<8x16xbf16>, vector<35x16xf32> -> vector<35x16xf32>
    %42 = arith.addf %36, %41 : vector<35x16xf32>
    %c0_49 = arith.constant 0 : index
    %c3_50 = arith.constant 3 : index
    %c1_51 = arith.constant 1 : index
    %c0_52 = arith.constant 0 : index
    %43 = vector.load %arg1[%c0_49, %c3_50, %c1_51, %c0_52] : memref<1x4x56x8xbf16, #tpu.memory_space<vmem>>, vector<1x1x35x8xbf16>
    %44 = vector.shape_cast %43 : vector<1x1x35x8xbf16> to vector<35x8xbf16>
    %c7 = arith.constant 7 : index
    %c0_53 = arith.constant 0 : index
    %c0_54 = arith.constant 0 : index
    %45 = vector.load %arg2[%c7, %c0_53, %c0_54] : memref<16x8x16xbf16, #tpu.memory_space<vmem>>, vector<1x8x16xbf16>
    %46 = vector.shape_cast %45 : vector<1x8x16xbf16> to vector<8x16xbf16>
    %cst_55 = arith.constant dense<0.000000e+00> : vector<35x16xf32>
    %47 = tpu.matmul %44, %46, %cst_55 {dimension_numbers = #tpu.dot_dimension_numbers<[1], [0], [0], [1], [0, 0, 1, 1], [], []>} : vector<35x8xbf16>, vector<8x16xbf16>, vector<35x16xf32> -> vector<35x16xf32>
    %48 = arith.addf %42, %47 : vector<35x16xf32>
    %c0_56 = arith.constant 0 : index
    %c0_57 = arith.constant 0 : index
    %c7_58 = arith.constant 7 : index
    %c0_59 = arith.constant 0 : index
    %49 = vector.load %arg1[%c0_56, %c0_57, %c7_58, %c0_59] : memref<1x4x56x8xbf16, #tpu.memory_space<vmem>>, vector<1x1x35x8xbf16>
    %50 = vector.shape_cast %49 : vector<1x1x35x8xbf16> to vector<35x8xbf16>
    %c8 = arith.constant 8 : index
    %c0_60 = arith.constant 0 : index
    %c0_61 = arith.constant 0 : index
    %51 = vector.load %arg2[%c8, %c0_60, %c0_61] : memref<16x8x16xbf16, #tpu.memory_space<vmem>>, vector<1x8x16xbf16>
    %52 = vector.shape_cast %51 : vector<1x8x16xbf16> to vector<8x16xbf16>
    %cst_62 = arith.constant dense<0.000000e+00> : vector<35x16xf32>
    %53 = tpu.matmul %50, %52, %cst_62 {dimension_numbers = #tpu.dot_dimension_numbers<[1], [0], [0], [1], [0, 0, 1, 1], [], []>} : vector<35x8xbf16>, vector<8x16xbf16>, vector<35x16xf32> -> vector<35x16xf32>
    %54 = arith.addf %48, %53 : vector<35x16xf32>
    %c0_63 = arith.constant 0 : index
    %c1_64 = arith.constant 1 : index
    %c7_65 = arith.constant 7 : index
    %c0_66 = arith.constant 0 : index
    %55 = vector.load %arg1[%c0_63, %c1_64, %c7_65, %c0_66] : memref<1x4x56x8xbf16, #tpu.memory_space<vmem>>, vector<1x1x35x8xbf16>
    %56 = vector.shape_cast %55 : vector<1x1x35x8xbf16> to vector<35x8xbf16>
    %c9 = arith.constant 9 : index
    %c0_67 = arith.constant 0 : index
    %c0_68 = arith.constant 0 : index
    %57 = vector.load %arg2[%c9, %c0_67, %c0_68] : memref<16x8x16xbf16, #tpu.memory_space<vmem>>, vector<1x8x16xbf16>
    %58 = vector.shape_cast %57 : vector<1x8x16xbf16> to vector<8x16xbf16>
    %cst_69 = arith.constant dense<0.000000e+00> : vector<35x16xf32>
    %59 = tpu.matmul %56, %58, %cst_69 {dimension_numbers = #tpu.dot_dimension_numbers<[1], [0], [0], [1], [0, 0, 1, 1], [], []>} : vector<35x8xbf16>, vector<8x16xbf16>, vector<35x16xf32> -> vector<35x16xf32>
    %60 = arith.addf %54, %59 : vector<35x16xf32>
    %c0_70 = arith.constant 0 : index
    %c0_71 = arith.constant 0 : index
    %c8_72 = arith.constant 8 : index
    %c0_73 = arith.constant 0 : index
    %61 = vector.load %arg1[%c0_70, %c0_71, %c8_72, %c0_73] : memref<1x4x56x8xbf16, #tpu.memory_space<vmem>>, vector<1x1x35x8xbf16>
    %62 = vector.shape_cast %61 : vector<1x1x35x8xbf16> to vector<35x8xbf16>
    %c10 = arith.constant 10 : index
    %c0_74 = arith.constant 0 : index
    %c0_75 = arith.constant 0 : index
    %63 = vector.load %arg2[%c10, %c0_74, %c0_75] : memref<16x8x16xbf16, #tpu.memory_space<vmem>>, vector<1x8x16xbf16>
    %64 = vector.shape_cast %63 : vector<1x8x16xbf16> to vector<8x16xbf16>
    %cst_76 = arith.constant dense<0.000000e+00> : vector<35x16xf32>
    %65 = tpu.matmul %62, %64, %cst_76 {dimension_numbers = #tpu.dot_dimension_numbers<[1], [0], [0], [1], [0, 0, 1, 1], [], []>} : vector<35x8xbf16>, vector<8x16xbf16>, vector<35x16xf32> -> vector<35x16xf32>
    %66 = arith.addf %60, %65 : vector<35x16xf32>
    %c0_77 = arith.constant 0 : index
    %c1_78 = arith.constant 1 : index
    %c8_79 = arith.constant 8 : index
    %c0_80 = arith.constant 0 : index
    %67 = vector.load %arg1[%c0_77, %c1_78, %c8_79, %c0_80] : memref<1x4x56x8xbf16, #tpu.memory_space<vmem>>, vector<1x1x35x8xbf16>
    %68 = vector.shape_cast %67 : vector<1x1x35x8xbf16> to vector<35x8xbf16>
    %c11 = arith.constant 11 : index
    %c0_81 = arith.constant 0 : index
    %c0_82 = arith.constant 0 : index
    %69 = vector.load %arg2[%c11, %c0_81, %c0_82] : memref<16x8x16xbf16, #tpu.memory_space<vmem>>, vector<1x8x16xbf16>
    %70 = vector.shape_cast %69 : vector<1x8x16xbf16> to vector<8x16xbf16>
    %cst_83 = arith.constant dense<0.000000e+00> : vector<35x16xf32>
    %71 = tpu.matmul %68, %70, %cst_83 {dimension_numbers = #tpu.dot_dimension_numbers<[1], [0], [0], [1], [0, 0, 1, 1], [], []>} : vector<35x8xbf16>, vector<8x16xbf16>, vector<35x16xf32> -> vector<35x16xf32>
    %72 = arith.addf %66, %71 : vector<35x16xf32>
    %c0_84 = arith.constant 0 : index
    %c2_85 = arith.constant 2 : index
    %c7_86 = arith.constant 7 : index
    %c0_87 = arith.constant 0 : index
    %73 = vector.load %arg1[%c0_84, %c2_85, %c7_86, %c0_87] : memref<1x4x56x8xbf16, #tpu.memory_space<vmem>>, vector<1x1x35x8xbf16>
    %74 = vector.shape_cast %73 : vector<1x1x35x8xbf16> to vector<35x8xbf16>
    %c12 = arith.constant 12 : index
    %c0_88 = arith.constant 0 : index
    %c0_89 = arith.constant 0 : index
    %75 = vector.load %arg2[%c12, %c0_88, %c0_89] : memref<16x8x16xbf16, #tpu.memory_space<vmem>>, vector<1x8x16xbf16>
    %76 = vector.shape_cast %75 : vector<1x8x16xbf16> to vector<8x16xbf16>
    %cst_90 = arith.constant dense<0.000000e+00> : vector<35x16xf32>
    %77 = tpu.matmul %74, %76, %cst_90 {dimension_numbers = #tpu.dot_dimension_numbers<[1], [0], [0], [1], [0, 0, 1, 1], [], []>} : vector<35x8xbf16>, vector<8x16xbf16>, vector<35x16xf32> -> vector<35x16xf32>
    %78 = arith.addf %72, %77 : vector<35x16xf32>
    %c0_91 = arith.constant 0 : index
    %c3_92 = arith.constant 3 : index
    %c7_93 = arith.constant 7 : index
    %c0_94 = arith.constant 0 : index
    %79 = vector.load %arg1[%c0_91, %c3_92, %c7_93, %c0_94] : memref<1x4x56x8xbf16, #tpu.memory_space<vmem>>, vector<1x1x35x8xbf16>
    %80 = vector.shape_cast %79 : vector<1x1x35x8xbf16> to vector<35x8xbf16>
    %c13 = arith.constant 13 : index
    %c0_95 = arith.constant 0 : index
    %c0_96 = arith.constant 0 : index
    %81 = vector.load %arg2[%c13, %c0_95, %c0_96] : memref<16x8x16xbf16, #tpu.memory_space<vmem>>, vector<1x8x16xbf16>
    %82 = vector.shape_cast %81 : vector<1x8x16xbf16> to vector<8x16xbf16>
    %cst_97 = arith.constant dense<0.000000e+00> : vector<35x16xf32>
    %83 = tpu.matmul %80, %82, %cst_97 {dimension_numbers = #tpu.dot_dimension_numbers<[1], [0], [0], [1], [0, 0, 1, 1], [], []>} : vector<35x8xbf16>, vector<8x16xbf16>, vector<35x16xf32> -> vector<35x16xf32>
    %84 = arith.addf %78, %83 : vector<35x16xf32>
    %c0_98 = arith.constant 0 : index
    %c2_99 = arith.constant 2 : index
    %c8_100 = arith.constant 8 : index
    %c0_101 = arith.constant 0 : index
    %85 = vector.load %arg1[%c0_98, %c2_99, %c8_100, %c0_101] : memref<1x4x56x8xbf16, #tpu.memory_space<vmem>>, vector<1x1x35x8xbf16>
    %86 = vector.shape_cast %85 : vector<1x1x35x8xbf16> to vector<35x8xbf16>
    %c14 = arith.constant 14 : index
    %c0_102 = arith.constant 0 : index
    %c0_103 = arith.constant 0 : index
    %87 = vector.load %arg2[%c14, %c0_102, %c0_103] : memref<16x8x16xbf16, #tpu.memory_space<vmem>>, vector<1x8x16xbf16>
    %88 = vector.shape_cast %87 : vector<1x8x16xbf16> to vector<8x16xbf16>
    %cst_104 = arith.constant dense<0.000000e+00> : vector<35x16xf32>
    %89 = tpu.matmul %86, %88, %cst_104 {dimension_numbers = #tpu.dot_dimension_numbers<[1], [0], [0], [1], [0, 0, 1, 1], [], []>} : vector<35x8xbf16>, vector<8x16xbf16>, vector<35x16xf32> -> vector<35x16xf32>
    %90 = arith.addf %84, %89 : vector<35x16xf32>
    %c0_105 = arith.constant 0 : index
    %c3_106 = arith.constant 3 : index
    %c8_107 = arith.constant 8 : index
    %c0_108 = arith.constant 0 : index
    %91 = vector.load %arg1[%c0_105, %c3_106, %c8_107, %c0_108] : memref<1x4x56x8xbf16, #tpu.memory_space<vmem>>, vector<1x1x35x8xbf16>
    %92 = vector.shape_cast %91 : vector<1x1x35x8xbf16> to vector<35x8xbf16>
    %c15 = arith.constant 15 : index
    %c0_109 = arith.constant 0 : index
    %c0_110 = arith.constant 0 : index
    %93 = vector.load %arg2[%c15, %c0_109, %c0_110] : memref<16x8x16xbf16, #tpu.memory_space<vmem>>, vector<1x8x16xbf16>
    %94 = vector.shape_cast %93 : vector<1x8x16xbf16> to vector<8x16xbf16>
    %cst_111 = arith.constant dense<0.000000e+00> : vector<35x16xf32>
    %95 = tpu.matmul %92, %94, %cst_111 {dimension_numbers = #tpu.dot_dimension_numbers<[1], [0], [0], [1], [0, 0, 1, 1], [], []>} : vector<35x8xbf16>, vector<8x16xbf16>, vector<35x16xf32> -> vector<35x16xf32>
    %96 = arith.addf %90, %95 : vector<35x16xf32>
    %c0_112 = arith.constant 0 : index
    %c0_113 = arith.constant 0 : index
    %97 = vector.load %arg3[%c0_112, %c0_113] : memref<1x16xf32, #tpu.memory_space<vmem>>, vector<1x16xf32>
    %98 = vector.broadcast %97 : vector<1x16xf32> to vector<35x16xf32>
    %99 = arith.addf %96, %98 : vector<35x16xf32>
    %100 = tpu.iota {dimensions = array<i32: 0>} : vector<35x1xi32>
    %c7_i32 = arith.constant 7 : i32
    %c0_i32 = arith.constant 0 : i32
    %101 = arith.cmpi eq, %c7_i32, %c0_i32 : i32
    %c1_i32 = arith.constant 1 : i32
    %102 = arith.select %101, %c1_i32, %c7_i32 : i32
    %103 = vector.broadcast %102 : i32 to vector<35x1xi32>
    %104 = arith.remsi %100, %103 : vector<35x1xi32>
    %c0_i32_114 = arith.constant 0 : i32
    %105 = vector.broadcast %c0_i32_114 : i32 to vector<35x1xi32>
    %106 = arith.cmpi ne, %104, %105 : vector<35x1xi32>
    %c0_i32_115 = arith.constant 0 : i32
    %107 = vector.broadcast %c0_i32_115 : i32 to vector<35x1xi32>
    %108 = arith.cmpi slt, %104, %107 : vector<35x1xi32>
    %c0_i32_116 = arith.constant 0 : i32
    %109 = arith.cmpi slt, %102, %c0_i32_116 : i32
    %110 = vector.broadcast %109 : i1 to vector<35x1xi1>
    %111 = vector.broadcast %110 : vector<35x1xi1> to vector<35x1xi1>
    %112 = arith.xori %108, %111 : vector<35x1xi1>
    %113 = arith.andi %112, %106 : vector<35x1xi1>
    %114 = vector.broadcast %102 : i32 to vector<35x1xi32>
    %115 = arith.addi %104, %114 : vector<35x1xi32>
    %116 = arith.select %113, %115, %104 : vector<35x1xi1>, vector<35x1xi32>
    %c5_i32 = arith.constant 5 : i32
    %117 = vector.broadcast %c5_i32 : i32 to vector<35x1xi32>
    %118 = arith.cmpi slt, %116, %117 : vector<35x1xi32>
    %cst_117 = arith.constant 0.000000e+00 : f32
    %119 = vector.shape_cast %118 : vector<35x1xi1> to vector<35x1xi1>
    %120 = vector.broadcast %119 : vector<35x1xi1> to vector<35x16xi1>
    %121 = vector.broadcast %cst_117 : f32 to vector<35x16xf32>
    %122 = arith.select %120, %99, %121 : vector<35x16xi1>, vector<35x16xf32>
    %cst_118 = arith.constant dense<0.000000e+00> : vector<16xf32>
    %123 = vector.multi_reduction <add>, %122, %cst_118 [0] : vector<35x16xf32> to vector<16xf32>
    %124 = vector.shape_cast %123 : vector<16xf32> to vector<1x16xf32>
    %c0_119 = arith.constant 0 : index
    %c0_120 = arith.constant 0 : index
    %c0_121 = arith.constant 0 : index
    %125 = vector.load %arg5[%c0_119, %c0_120, %c0_121] : memref<1x2x16xf32, #tpu.memory_space<vmem>>, vector<1x1x16xf32>
    %126 = vector.shape_cast %125 : vector<1x1x16xf32> to vector<1x16xf32>
    %127 = vector.shape_cast %124 : vector<1x16xf32> to vector<1x1x16xf32>
    tpu.vector_store %arg5[%c0_119, %c0_120, %c0_121], %127 {strides = array<i32>} : memref<1x2x16xf32, #tpu.memory_space<vmem>>, vector<1x1x16xf32>,
    %128 = arith.mulf %122, %122 : vector<35x16xf32>
    %cst_122 = arith.constant dense<0.000000e+00> : vector<16xf32>
    %129 = vector.multi_reduction <add>, %128, %cst_122 [0] : vector<35x16xf32> to vector<16xf32>
    %130 = vector.shape_cast %129 : vector<16xf32> to vector<1x16xf32>
    %c0_123 = arith.constant 0 : index
    %c1_124 = arith.constant 1 : index
    %c0_125 = arith.constant 0 : index
    %131 = vector.load %arg5[%c0_123, %c1_124, %c0_125] : memref<1x2x16xf32, #tpu.memory_space<vmem>>, vector<1x1x16xf32>
    %132 = vector.shape_cast %131 : vector<1x1x16xf32> to vector<1x16xf32>
    %133 = vector.shape_cast %130 : vector<1x16xf32> to vector<1x1x16xf32>
    tpu.vector_store %arg5[%c0_123, %c1_124, %c0_125], %133 {strides = array<i32>} : memref<1x2x16xf32, #tpu.memory_space<vmem>>, vector<1x1x16xf32>,
    %134 = arith.truncf %99 : vector<35x16xf32> to vector<35x16xbf16>
    %c0_126 = arith.constant 0 : index
    %c0_127 = arith.constant 0 : index
    %c0_128 = arith.constant 0 : index
    %135 = vector.load %arg4[%c0_126, %c0_127, %c0_128] : memref<1x35x16xbf16, #tpu.memory_space<vmem>>, vector<1x35x16xbf16>
    %136 = vector.shape_cast %135 : vector<1x35x16xbf16> to vector<35x16xbf16>
    %137 = vector.shape_cast %134 : vector<35x16xbf16> to vector<1x35x16xbf16>
    tpu.vector_store %arg4[%c0_126, %c0_127, %c0_128], %137 {strides = array<i32>} : memref<1x35x16xbf16, #tpu.memory_space<vmem>>, vector<1x35x16xbf16>,
    return
  }
  func.func @transform_0(%arg0: i32) -> (i32, i32, i32, i32) {
    %c0_i32 = arith.constant 0 : i32
    %c0_i32_0 = arith.constant 0 : i32
    %c0_i32_1 = arith.constant 0 : i32
    %c0_i32_2 = arith.constant 0 : i32
    return %arg0, %c0_i32, %c0_i32_0, %c0_i32_1 : i32, i32, i32, i32
  }
  func.func @transform_1(%arg0: i32) -> (i32, i32, i32) {
    %c0_i32 = arith.constant 0 : i32
    %c0_i32_0 = arith.constant 0 : i32
    %c0_i32_1 = arith.constant 0 : i32
    %c0_i32_2 = arith.constant 0 : i32
    return %c0_i32, %c0_i32_0, %c0_i32_1 : i32, i32, i32
  }
  func.func @transform_2(%arg0: i32) -> (i32, i32) {
    %c0_i32 = arith.constant 0 : i32
    %c0_i32_0 = arith.constant 0 : i32
    %c0_i32_1 = arith.constant 0 : i32
    return %c0_i32, %c0_i32_0 : i32, i32
  }
  func.func @transform_3(%arg0: i32) -> (i32, i32, i32) {
    %c0_i32 = arith.constant 0 : i32
    %c0_i32_0 = arith.constant 0 : i32
    %c0_i32_1 = arith.constant 0 : i32
    return %arg0, %c0_i32, %c0_i32_0 : i32, i32, i32
  }
  func.func @transform_4(%arg0: i32) -> (i32, i32, i32) {
    %c0_i32 = arith.constant 0 : i32
    %c0_i32_0 = arith.constant 0 : i32
    %c0_i32_1 = arith.constant 0 : i32
    return %arg0, %c0_i32, %c0_i32_0 : i32, i32, i32
  }
}

module attributes {stable_mosaic.version = 11 : i64} {
  func.func @_conv4x4_kernel(%arg0: i32, %arg1: memref<1x4x32x16xbf16, #tpu.memory_space<vmem>>, %arg2: memref<16x16x32xbf16, #tpu.memory_space<vmem>>, %arg3: memref<1x32xf32, #tpu.memory_space<vmem>>, %arg4: memref<1x15x32xbf16, #tpu.memory_space<vmem>>, %arg5: memref<1x2x32xf32, #tpu.memory_space<vmem>>) attributes {dimension_semantics = [#tpu.dimension_semantics<parallel>], iteration_bounds = array<i64: 2>, scalar_prefetch = 0 : i64, scratch_operands = 0 : i64, tpu.core_type = #tpu.core_type<tc>, window_params = [{transform_indices = @transform_0, window_bounds = array<i64: 1, 4, 32, 16>}, {pipeline_mode = #tpu.pipeline_mode<synchronous>, transform_indices = @transform_1, window_bounds = array<i64: 16, 16, 32>}, {pipeline_mode = #tpu.pipeline_mode<synchronous>, transform_indices = @transform_2, window_bounds = array<i64: 1, 32>}, {transform_indices = @transform_3, window_bounds = array<i64: 1, 15, 32>}, {transform_indices = @transform_4, window_bounds = array<i64: 1, 2, 32>}]} {
    %cst = arith.constant 0.000000e+00 : f32
    %0 = vector.broadcast %cst : f32 to vector<15x32xf32>
    %c0 = arith.constant 0 : index
    %c0_0 = arith.constant 0 : index
    %c0_1 = arith.constant 0 : index
    %c0_2 = arith.constant 0 : index
    %1 = vector.load %arg1[%c0, %c0_0, %c0_1, %c0_2] : memref<1x4x32x16xbf16, #tpu.memory_space<vmem>>, vector<1x1x15x16xbf16>
    %2 = vector.shape_cast %1 : vector<1x1x15x16xbf16> to vector<15x16xbf16>
    %c0_3 = arith.constant 0 : index
    %c0_4 = arith.constant 0 : index
    %c0_5 = arith.constant 0 : index
    %3 = vector.load %arg2[%c0_3, %c0_4, %c0_5] : memref<16x16x32xbf16, #tpu.memory_space<vmem>>, vector<1x16x32xbf16>
    %4 = vector.shape_cast %3 : vector<1x16x32xbf16> to vector<16x32xbf16>
    %cst_6 = arith.constant dense<0.000000e+00> : vector<15x32xf32>
    %5 = tpu.matmul %2, %4, %cst_6 {dimension_numbers = #tpu.dot_dimension_numbers<[1], [0], [0], [1], [0, 0, 1, 1], [], []>} : vector<15x16xbf16>, vector<16x32xbf16>, vector<15x32xf32> -> vector<15x32xf32>
    %6 = arith.addf %0, %5 : vector<15x32xf32>
    %c0_7 = arith.constant 0 : index
    %c1 = arith.constant 1 : index
    %c0_8 = arith.constant 0 : index
    %c0_9 = arith.constant 0 : index
    %7 = vector.load %arg1[%c0_7, %c1, %c0_8, %c0_9] : memref<1x4x32x16xbf16, #tpu.memory_space<vmem>>, vector<1x1x15x16xbf16>
    %8 = vector.shape_cast %7 : vector<1x1x15x16xbf16> to vector<15x16xbf16>
    %c1_10 = arith.constant 1 : index
    %c0_11 = arith.constant 0 : index
    %c0_12 = arith.constant 0 : index
    %9 = vector.load %arg2[%c1_10, %c0_11, %c0_12] : memref<16x16x32xbf16, #tpu.memory_space<vmem>>, vector<1x16x32xbf16>
    %10 = vector.shape_cast %9 : vector<1x16x32xbf16> to vector<16x32xbf16>
    %cst_13 = arith.constant dense<0.000000e+00> : vector<15x32xf32>
    %11 = tpu.matmul %8, %10, %cst_13 {dimension_numbers = #tpu.dot_dimension_numbers<[1], [0], [0], [1], [0, 0, 1, 1], [], []>} : vector<15x16xbf16>, vector<16x32xbf16>, vector<15x32xf32> -> vector<15x32xf32>
    %12 = arith.addf %6, %11 : vector<15x32xf32>
    %c0_14 = arith.constant 0 : index
    %c0_15 = arith.constant 0 : index
    %c1_16 = arith.constant 1 : index
    %c0_17 = arith.constant 0 : index
    %13 = vector.load %arg1[%c0_14, %c0_15, %c1_16, %c0_17] : memref<1x4x32x16xbf16, #tpu.memory_space<vmem>>, vector<1x1x15x16xbf16>
    %14 = vector.shape_cast %13 : vector<1x1x15x16xbf16> to vector<15x16xbf16>
    %c2 = arith.constant 2 : index
    %c0_18 = arith.constant 0 : index
    %c0_19 = arith.constant 0 : index
    %15 = vector.load %arg2[%c2, %c0_18, %c0_19] : memref<16x16x32xbf16, #tpu.memory_space<vmem>>, vector<1x16x32xbf16>
    %16 = vector.shape_cast %15 : vector<1x16x32xbf16> to vector<16x32xbf16>
    %cst_20 = arith.constant dense<0.000000e+00> : vector<15x32xf32>
    %17 = tpu.matmul %14, %16, %cst_20 {dimension_numbers = #tpu.dot_dimension_numbers<[1], [0], [0], [1], [0, 0, 1, 1], [], []>} : vector<15x16xbf16>, vector<16x32xbf16>, vector<15x32xf32> -> vector<15x32xf32>
    %18 = arith.addf %12, %17 : vector<15x32xf32>
    %c0_21 = arith.constant 0 : index
    %c1_22 = arith.constant 1 : index
    %c1_23 = arith.constant 1 : index
    %c0_24 = arith.constant 0 : index
    %19 = vector.load %arg1[%c0_21, %c1_22, %c1_23, %c0_24] : memref<1x4x32x16xbf16, #tpu.memory_space<vmem>>, vector<1x1x15x16xbf16>
    %20 = vector.shape_cast %19 : vector<1x1x15x16xbf16> to vector<15x16xbf16>
    %c3 = arith.constant 3 : index
    %c0_25 = arith.constant 0 : index
    %c0_26 = arith.constant 0 : index
    %21 = vector.load %arg2[%c3, %c0_25, %c0_26] : memref<16x16x32xbf16, #tpu.memory_space<vmem>>, vector<1x16x32xbf16>
    %22 = vector.shape_cast %21 : vector<1x16x32xbf16> to vector<16x32xbf16>
    %cst_27 = arith.constant dense<0.000000e+00> : vector<15x32xf32>
    %23 = tpu.matmul %20, %22, %cst_27 {dimension_numbers = #tpu.dot_dimension_numbers<[1], [0], [0], [1], [0, 0, 1, 1], [], []>} : vector<15x16xbf16>, vector<16x32xbf16>, vector<15x32xf32> -> vector<15x32xf32>
    %24 = arith.addf %18, %23 : vector<15x32xf32>
    %c0_28 = arith.constant 0 : index
    %c2_29 = arith.constant 2 : index
    %c0_30 = arith.constant 0 : index
    %c0_31 = arith.constant 0 : index
    %25 = vector.load %arg1[%c0_28, %c2_29, %c0_30, %c0_31] : memref<1x4x32x16xbf16, #tpu.memory_space<vmem>>, vector<1x1x15x16xbf16>
    %26 = vector.shape_cast %25 : vector<1x1x15x16xbf16> to vector<15x16xbf16>
    %c4 = arith.constant 4 : index
    %c0_32 = arith.constant 0 : index
    %c0_33 = arith.constant 0 : index
    %27 = vector.load %arg2[%c4, %c0_32, %c0_33] : memref<16x16x32xbf16, #tpu.memory_space<vmem>>, vector<1x16x32xbf16>
    %28 = vector.shape_cast %27 : vector<1x16x32xbf16> to vector<16x32xbf16>
    %cst_34 = arith.constant dense<0.000000e+00> : vector<15x32xf32>
    %29 = tpu.matmul %26, %28, %cst_34 {dimension_numbers = #tpu.dot_dimension_numbers<[1], [0], [0], [1], [0, 0, 1, 1], [], []>} : vector<15x16xbf16>, vector<16x32xbf16>, vector<15x32xf32> -> vector<15x32xf32>
    %30 = arith.addf %24, %29 : vector<15x32xf32>
    %c0_35 = arith.constant 0 : index
    %c3_36 = arith.constant 3 : index
    %c0_37 = arith.constant 0 : index
    %c0_38 = arith.constant 0 : index
    %31 = vector.load %arg1[%c0_35, %c3_36, %c0_37, %c0_38] : memref<1x4x32x16xbf16, #tpu.memory_space<vmem>>, vector<1x1x15x16xbf16>
    %32 = vector.shape_cast %31 : vector<1x1x15x16xbf16> to vector<15x16xbf16>
    %c5 = arith.constant 5 : index
    %c0_39 = arith.constant 0 : index
    %c0_40 = arith.constant 0 : index
    %33 = vector.load %arg2[%c5, %c0_39, %c0_40] : memref<16x16x32xbf16, #tpu.memory_space<vmem>>, vector<1x16x32xbf16>
    %34 = vector.shape_cast %33 : vector<1x16x32xbf16> to vector<16x32xbf16>
    %cst_41 = arith.constant dense<0.000000e+00> : vector<15x32xf32>
    %35 = tpu.matmul %32, %34, %cst_41 {dimension_numbers = #tpu.dot_dimension_numbers<[1], [0], [0], [1], [0, 0, 1, 1], [], []>} : vector<15x16xbf16>, vector<16x32xbf16>, vector<15x32xf32> -> vector<15x32xf32>
    %36 = arith.addf %30, %35 : vector<15x32xf32>
    %c0_42 = arith.constant 0 : index
    %c2_43 = arith.constant 2 : index
    %c1_44 = arith.constant 1 : index
    %c0_45 = arith.constant 0 : index
    %37 = vector.load %arg1[%c0_42, %c2_43, %c1_44, %c0_45] : memref<1x4x32x16xbf16, #tpu.memory_space<vmem>>, vector<1x1x15x16xbf16>
    %38 = vector.shape_cast %37 : vector<1x1x15x16xbf16> to vector<15x16xbf16>
    %c6 = arith.constant 6 : index
    %c0_46 = arith.constant 0 : index
    %c0_47 = arith.constant 0 : index
    %39 = vector.load %arg2[%c6, %c0_46, %c0_47] : memref<16x16x32xbf16, #tpu.memory_space<vmem>>, vector<1x16x32xbf16>
    %40 = vector.shape_cast %39 : vector<1x16x32xbf16> to vector<16x32xbf16>
    %cst_48 = arith.constant dense<0.000000e+00> : vector<15x32xf32>
    %41 = tpu.matmul %38, %40, %cst_48 {dimension_numbers = #tpu.dot_dimension_numbers<[1], [0], [0], [1], [0, 0, 1, 1], [], []>} : vector<15x16xbf16>, vector<16x32xbf16>, vector<15x32xf32> -> vector<15x32xf32>
    %42 = arith.addf %36, %41 : vector<15x32xf32>
    %c0_49 = arith.constant 0 : index
    %c3_50 = arith.constant 3 : index
    %c1_51 = arith.constant 1 : index
    %c0_52 = arith.constant 0 : index
    %43 = vector.load %arg1[%c0_49, %c3_50, %c1_51, %c0_52] : memref<1x4x32x16xbf16, #tpu.memory_space<vmem>>, vector<1x1x15x16xbf16>
    %44 = vector.shape_cast %43 : vector<1x1x15x16xbf16> to vector<15x16xbf16>
    %c7 = arith.constant 7 : index
    %c0_53 = arith.constant 0 : index
    %c0_54 = arith.constant 0 : index
    %45 = vector.load %arg2[%c7, %c0_53, %c0_54] : memref<16x16x32xbf16, #tpu.memory_space<vmem>>, vector<1x16x32xbf16>
    %46 = vector.shape_cast %45 : vector<1x16x32xbf16> to vector<16x32xbf16>
    %cst_55 = arith.constant dense<0.000000e+00> : vector<15x32xf32>
    %47 = tpu.matmul %44, %46, %cst_55 {dimension_numbers = #tpu.dot_dimension_numbers<[1], [0], [0], [1], [0, 0, 1, 1], [], []>} : vector<15x16xbf16>, vector<16x32xbf16>, vector<15x32xf32> -> vector<15x32xf32>
    %48 = arith.addf %42, %47 : vector<15x32xf32>
    %c0_56 = arith.constant 0 : index
    %c0_57 = arith.constant 0 : index
    %c5_58 = arith.constant 5 : index
    %c0_59 = arith.constant 0 : index
    %49 = vector.load %arg1[%c0_56, %c0_57, %c5_58, %c0_59] : memref<1x4x32x16xbf16, #tpu.memory_space<vmem>>, vector<1x1x15x16xbf16>
    %50 = vector.shape_cast %49 : vector<1x1x15x16xbf16> to vector<15x16xbf16>
    %c8 = arith.constant 8 : index
    %c0_60 = arith.constant 0 : index
    %c0_61 = arith.constant 0 : index
    %51 = vector.load %arg2[%c8, %c0_60, %c0_61] : memref<16x16x32xbf16, #tpu.memory_space<vmem>>, vector<1x16x32xbf16>
    %52 = vector.shape_cast %51 : vector<1x16x32xbf16> to vector<16x32xbf16>
    %cst_62 = arith.constant dense<0.000000e+00> : vector<15x32xf32>
    %53 = tpu.matmul %50, %52, %cst_62 {dimension_numbers = #tpu.dot_dimension_numbers<[1], [0], [0], [1], [0, 0, 1, 1], [], []>} : vector<15x16xbf16>, vector<16x32xbf16>, vector<15x32xf32> -> vector<15x32xf32>
    %54 = arith.addf %48, %53 : vector<15x32xf32>
    %c0_63 = arith.constant 0 : index
    %c1_64 = arith.constant 1 : index
    %c5_65 = arith.constant 5 : index
    %c0_66 = arith.constant 0 : index
    %55 = vector.load %arg1[%c0_63, %c1_64, %c5_65, %c0_66] : memref<1x4x32x16xbf16, #tpu.memory_space<vmem>>, vector<1x1x15x16xbf16>
    %56 = vector.shape_cast %55 : vector<1x1x15x16xbf16> to vector<15x16xbf16>
    %c9 = arith.constant 9 : index
    %c0_67 = arith.constant 0 : index
    %c0_68 = arith.constant 0 : index
    %57 = vector.load %arg2[%c9, %c0_67, %c0_68] : memref<16x16x32xbf16, #tpu.memory_space<vmem>>, vector<1x16x32xbf16>
    %58 = vector.shape_cast %57 : vector<1x16x32xbf16> to vector<16x32xbf16>
    %cst_69 = arith.constant dense<0.000000e+00> : vector<15x32xf32>
    %59 = tpu.matmul %56, %58, %cst_69 {dimension_numbers = #tpu.dot_dimension_numbers<[1], [0], [0], [1], [0, 0, 1, 1], [], []>} : vector<15x16xbf16>, vector<16x32xbf16>, vector<15x32xf32> -> vector<15x32xf32>
    %60 = arith.addf %54, %59 : vector<15x32xf32>
    %c0_70 = arith.constant 0 : index
    %c0_71 = arith.constant 0 : index
    %c6_72 = arith.constant 6 : index
    %c0_73 = arith.constant 0 : index
    %61 = vector.load %arg1[%c0_70, %c0_71, %c6_72, %c0_73] : memref<1x4x32x16xbf16, #tpu.memory_space<vmem>>, vector<1x1x15x16xbf16>
    %62 = vector.shape_cast %61 : vector<1x1x15x16xbf16> to vector<15x16xbf16>
    %c10 = arith.constant 10 : index
    %c0_74 = arith.constant 0 : index
    %c0_75 = arith.constant 0 : index
    %63 = vector.load %arg2[%c10, %c0_74, %c0_75] : memref<16x16x32xbf16, #tpu.memory_space<vmem>>, vector<1x16x32xbf16>
    %64 = vector.shape_cast %63 : vector<1x16x32xbf16> to vector<16x32xbf16>
    %cst_76 = arith.constant dense<0.000000e+00> : vector<15x32xf32>
    %65 = tpu.matmul %62, %64, %cst_76 {dimension_numbers = #tpu.dot_dimension_numbers<[1], [0], [0], [1], [0, 0, 1, 1], [], []>} : vector<15x16xbf16>, vector<16x32xbf16>, vector<15x32xf32> -> vector<15x32xf32>
    %66 = arith.addf %60, %65 : vector<15x32xf32>
    %c0_77 = arith.constant 0 : index
    %c1_78 = arith.constant 1 : index
    %c6_79 = arith.constant 6 : index
    %c0_80 = arith.constant 0 : index
    %67 = vector.load %arg1[%c0_77, %c1_78, %c6_79, %c0_80] : memref<1x4x32x16xbf16, #tpu.memory_space<vmem>>, vector<1x1x15x16xbf16>
    %68 = vector.shape_cast %67 : vector<1x1x15x16xbf16> to vector<15x16xbf16>
    %c11 = arith.constant 11 : index
    %c0_81 = arith.constant 0 : index
    %c0_82 = arith.constant 0 : index
    %69 = vector.load %arg2[%c11, %c0_81, %c0_82] : memref<16x16x32xbf16, #tpu.memory_space<vmem>>, vector<1x16x32xbf16>
    %70 = vector.shape_cast %69 : vector<1x16x32xbf16> to vector<16x32xbf16>
    %cst_83 = arith.constant dense<0.000000e+00> : vector<15x32xf32>
    %71 = tpu.matmul %68, %70, %cst_83 {dimension_numbers = #tpu.dot_dimension_numbers<[1], [0], [0], [1], [0, 0, 1, 1], [], []>} : vector<15x16xbf16>, vector<16x32xbf16>, vector<15x32xf32> -> vector<15x32xf32>
    %72 = arith.addf %66, %71 : vector<15x32xf32>
    %c0_84 = arith.constant 0 : index
    %c2_85 = arith.constant 2 : index
    %c5_86 = arith.constant 5 : index
    %c0_87 = arith.constant 0 : index
    %73 = vector.load %arg1[%c0_84, %c2_85, %c5_86, %c0_87] : memref<1x4x32x16xbf16, #tpu.memory_space<vmem>>, vector<1x1x15x16xbf16>
    %74 = vector.shape_cast %73 : vector<1x1x15x16xbf16> to vector<15x16xbf16>
    %c12 = arith.constant 12 : index
    %c0_88 = arith.constant 0 : index
    %c0_89 = arith.constant 0 : index
    %75 = vector.load %arg2[%c12, %c0_88, %c0_89] : memref<16x16x32xbf16, #tpu.memory_space<vmem>>, vector<1x16x32xbf16>
    %76 = vector.shape_cast %75 : vector<1x16x32xbf16> to vector<16x32xbf16>
    %cst_90 = arith.constant dense<0.000000e+00> : vector<15x32xf32>
    %77 = tpu.matmul %74, %76, %cst_90 {dimension_numbers = #tpu.dot_dimension_numbers<[1], [0], [0], [1], [0, 0, 1, 1], [], []>} : vector<15x16xbf16>, vector<16x32xbf16>, vector<15x32xf32> -> vector<15x32xf32>
    %78 = arith.addf %72, %77 : vector<15x32xf32>
    %c0_91 = arith.constant 0 : index
    %c3_92 = arith.constant 3 : index
    %c5_93 = arith.constant 5 : index
    %c0_94 = arith.constant 0 : index
    %79 = vector.load %arg1[%c0_91, %c3_92, %c5_93, %c0_94] : memref<1x4x32x16xbf16, #tpu.memory_space<vmem>>, vector<1x1x15x16xbf16>
    %80 = vector.shape_cast %79 : vector<1x1x15x16xbf16> to vector<15x16xbf16>
    %c13 = arith.constant 13 : index
    %c0_95 = arith.constant 0 : index
    %c0_96 = arith.constant 0 : index
    %81 = vector.load %arg2[%c13, %c0_95, %c0_96] : memref<16x16x32xbf16, #tpu.memory_space<vmem>>, vector<1x16x32xbf16>
    %82 = vector.shape_cast %81 : vector<1x16x32xbf16> to vector<16x32xbf16>
    %cst_97 = arith.constant dense<0.000000e+00> : vector<15x32xf32>
    %83 = tpu.matmul %80, %82, %cst_97 {dimension_numbers = #tpu.dot_dimension_numbers<[1], [0], [0], [1], [0, 0, 1, 1], [], []>} : vector<15x16xbf16>, vector<16x32xbf16>, vector<15x32xf32> -> vector<15x32xf32>
    %84 = arith.addf %78, %83 : vector<15x32xf32>
    %c0_98 = arith.constant 0 : index
    %c2_99 = arith.constant 2 : index
    %c6_100 = arith.constant 6 : index
    %c0_101 = arith.constant 0 : index
    %85 = vector.load %arg1[%c0_98, %c2_99, %c6_100, %c0_101] : memref<1x4x32x16xbf16, #tpu.memory_space<vmem>>, vector<1x1x15x16xbf16>
    %86 = vector.shape_cast %85 : vector<1x1x15x16xbf16> to vector<15x16xbf16>
    %c14 = arith.constant 14 : index
    %c0_102 = arith.constant 0 : index
    %c0_103 = arith.constant 0 : index
    %87 = vector.load %arg2[%c14, %c0_102, %c0_103] : memref<16x16x32xbf16, #tpu.memory_space<vmem>>, vector<1x16x32xbf16>
    %88 = vector.shape_cast %87 : vector<1x16x32xbf16> to vector<16x32xbf16>
    %cst_104 = arith.constant dense<0.000000e+00> : vector<15x32xf32>
    %89 = tpu.matmul %86, %88, %cst_104 {dimension_numbers = #tpu.dot_dimension_numbers<[1], [0], [0], [1], [0, 0, 1, 1], [], []>} : vector<15x16xbf16>, vector<16x32xbf16>, vector<15x32xf32> -> vector<15x32xf32>
    %90 = arith.addf %84, %89 : vector<15x32xf32>
    %c0_105 = arith.constant 0 : index
    %c3_106 = arith.constant 3 : index
    %c6_107 = arith.constant 6 : index
    %c0_108 = arith.constant 0 : index
    %91 = vector.load %arg1[%c0_105, %c3_106, %c6_107, %c0_108] : memref<1x4x32x16xbf16, #tpu.memory_space<vmem>>, vector<1x1x15x16xbf16>
    %92 = vector.shape_cast %91 : vector<1x1x15x16xbf16> to vector<15x16xbf16>
    %c15 = arith.constant 15 : index
    %c0_109 = arith.constant 0 : index
    %c0_110 = arith.constant 0 : index
    %93 = vector.load %arg2[%c15, %c0_109, %c0_110] : memref<16x16x32xbf16, #tpu.memory_space<vmem>>, vector<1x16x32xbf16>
    %94 = vector.shape_cast %93 : vector<1x16x32xbf16> to vector<16x32xbf16>
    %cst_111 = arith.constant dense<0.000000e+00> : vector<15x32xf32>
    %95 = tpu.matmul %92, %94, %cst_111 {dimension_numbers = #tpu.dot_dimension_numbers<[1], [0], [0], [1], [0, 0, 1, 1], [], []>} : vector<15x16xbf16>, vector<16x32xbf16>, vector<15x32xf32> -> vector<15x32xf32>
    %96 = arith.addf %90, %95 : vector<15x32xf32>
    %c0_112 = arith.constant 0 : index
    %c0_113 = arith.constant 0 : index
    %97 = vector.load %arg3[%c0_112, %c0_113] : memref<1x32xf32, #tpu.memory_space<vmem>>, vector<1x32xf32>
    %98 = vector.broadcast %97 : vector<1x32xf32> to vector<15x32xf32>
    %99 = arith.addf %96, %98 : vector<15x32xf32>
    %100 = tpu.iota {dimensions = array<i32: 0>} : vector<15x1xi32>
    %c5_i32 = arith.constant 5 : i32
    %c0_i32 = arith.constant 0 : i32
    %101 = arith.cmpi eq, %c5_i32, %c0_i32 : i32
    %c1_i32 = arith.constant 1 : i32
    %102 = arith.select %101, %c1_i32, %c5_i32 : i32
    %103 = vector.broadcast %102 : i32 to vector<15x1xi32>
    %104 = arith.remsi %100, %103 : vector<15x1xi32>
    %c0_i32_114 = arith.constant 0 : i32
    %105 = vector.broadcast %c0_i32_114 : i32 to vector<15x1xi32>
    %106 = arith.cmpi ne, %104, %105 : vector<15x1xi32>
    %c0_i32_115 = arith.constant 0 : i32
    %107 = vector.broadcast %c0_i32_115 : i32 to vector<15x1xi32>
    %108 = arith.cmpi slt, %104, %107 : vector<15x1xi32>
    %c0_i32_116 = arith.constant 0 : i32
    %109 = arith.cmpi slt, %102, %c0_i32_116 : i32
    %110 = vector.broadcast %109 : i1 to vector<15x1xi1>
    %111 = vector.broadcast %110 : vector<15x1xi1> to vector<15x1xi1>
    %112 = arith.xori %108, %111 : vector<15x1xi1>
    %113 = arith.andi %112, %106 : vector<15x1xi1>
    %114 = vector.broadcast %102 : i32 to vector<15x1xi32>
    %115 = arith.addi %104, %114 : vector<15x1xi32>
    %116 = arith.select %113, %115, %104 : vector<15x1xi1>, vector<15x1xi32>
    %c3_i32 = arith.constant 3 : i32
    %117 = vector.broadcast %c3_i32 : i32 to vector<15x1xi32>
    %118 = arith.cmpi slt, %116, %117 : vector<15x1xi32>
    %cst_117 = arith.constant 0.000000e+00 : f32
    %119 = vector.shape_cast %118 : vector<15x1xi1> to vector<15x1xi1>
    %120 = vector.broadcast %119 : vector<15x1xi1> to vector<15x32xi1>
    %121 = vector.broadcast %cst_117 : f32 to vector<15x32xf32>
    %122 = arith.select %120, %99, %121 : vector<15x32xi1>, vector<15x32xf32>
    %cst_118 = arith.constant dense<0.000000e+00> : vector<32xf32>
    %123 = vector.multi_reduction <add>, %122, %cst_118 [0] : vector<15x32xf32> to vector<32xf32>
    %124 = vector.shape_cast %123 : vector<32xf32> to vector<1x32xf32>
    %c0_119 = arith.constant 0 : index
    %c0_120 = arith.constant 0 : index
    %c0_121 = arith.constant 0 : index
    %125 = vector.load %arg5[%c0_119, %c0_120, %c0_121] : memref<1x2x32xf32, #tpu.memory_space<vmem>>, vector<1x1x32xf32>
    %126 = vector.shape_cast %125 : vector<1x1x32xf32> to vector<1x32xf32>
    %127 = vector.shape_cast %124 : vector<1x32xf32> to vector<1x1x32xf32>
    tpu.vector_store %arg5[%c0_119, %c0_120, %c0_121], %127 {strides = array<i32>} : memref<1x2x32xf32, #tpu.memory_space<vmem>>, vector<1x1x32xf32>,
    %128 = arith.mulf %122, %122 : vector<15x32xf32>
    %cst_122 = arith.constant dense<0.000000e+00> : vector<32xf32>
    %129 = vector.multi_reduction <add>, %128, %cst_122 [0] : vector<15x32xf32> to vector<32xf32>
    %130 = vector.shape_cast %129 : vector<32xf32> to vector<1x32xf32>
    %c0_123 = arith.constant 0 : index
    %c1_124 = arith.constant 1 : index
    %c0_125 = arith.constant 0 : index
    %131 = vector.load %arg5[%c0_123, %c1_124, %c0_125] : memref<1x2x32xf32, #tpu.memory_space<vmem>>, vector<1x1x32xf32>
    %132 = vector.shape_cast %131 : vector<1x1x32xf32> to vector<1x32xf32>
    %133 = vector.shape_cast %130 : vector<1x32xf32> to vector<1x1x32xf32>
    tpu.vector_store %arg5[%c0_123, %c1_124, %c0_125], %133 {strides = array<i32>} : memref<1x2x32xf32, #tpu.memory_space<vmem>>, vector<1x1x32xf32>,
    %134 = arith.truncf %99 : vector<15x32xf32> to vector<15x32xbf16>
    %c0_126 = arith.constant 0 : index
    %c0_127 = arith.constant 0 : index
    %c0_128 = arith.constant 0 : index
    %135 = vector.load %arg4[%c0_126, %c0_127, %c0_128] : memref<1x15x32xbf16, #tpu.memory_space<vmem>>, vector<1x15x32xbf16>
    %136 = vector.shape_cast %135 : vector<1x15x32xbf16> to vector<15x32xbf16>
    %137 = vector.shape_cast %134 : vector<15x32xbf16> to vector<1x15x32xbf16>
    tpu.vector_store %arg4[%c0_126, %c0_127, %c0_128], %137 {strides = array<i32>} : memref<1x15x32xbf16, #tpu.memory_space<vmem>>, vector<1x15x32xbf16>,
    return
  }
  func.func @transform_0(%arg0: i32) -> (i32, i32, i32, i32) {
    %c0_i32 = arith.constant 0 : i32
    %c0_i32_0 = arith.constant 0 : i32
    %c0_i32_1 = arith.constant 0 : i32
    %c0_i32_2 = arith.constant 0 : i32
    return %arg0, %c0_i32, %c0_i32_0, %c0_i32_1 : i32, i32, i32, i32
  }
  func.func @transform_1(%arg0: i32) -> (i32, i32, i32) {
    %c0_i32 = arith.constant 0 : i32
    %c0_i32_0 = arith.constant 0 : i32
    %c0_i32_1 = arith.constant 0 : i32
    %c0_i32_2 = arith.constant 0 : i32
    return %c0_i32, %c0_i32_0, %c0_i32_1 : i32, i32, i32
  }
  func.func @transform_2(%arg0: i32) -> (i32, i32) {
    %c0_i32 = arith.constant 0 : i32
    %c0_i32_0 = arith.constant 0 : i32
    %c0_i32_1 = arith.constant 0 : i32
    return %c0_i32, %c0_i32_0 : i32, i32
  }
  func.func @transform_3(%arg0: i32) -> (i32, i32, i32) {
    %c0_i32 = arith.constant 0 : i32
    %c0_i32_0 = arith.constant 0 : i32
    %c0_i32_1 = arith.constant 0 : i32
    return %arg0, %c0_i32, %c0_i32_0 : i32, i32, i32
  }
  func.func @transform_4(%arg0: i32) -> (i32, i32, i32) {
    %c0_i32 = arith.constant 0 : i32
    %c0_i32_0 = arith.constant 0 : i32
    %c0_i32_1 = arith.constant 0 : i32
    return %arg0, %c0_i32, %c0_i32_0 : i32, i32, i32
  }
}

module attributes {stable_mosaic.version = 11 : i64} {
  func.func @_conv4x4_kernel(%arg0: i32, %arg1: memref<1x1x56x32xbf16, #tpu.memory_space<vmem>>, %arg2: memref<16x32x64xbf16, #tpu.memory_space<vmem>>, %arg3: memref<1x64xf32, #tpu.memory_space<vmem>>, %arg4: memref<1x28x64xbf16, #tpu.memory_space<vmem>>, %arg5: memref<1x2x64xf32, #tpu.memory_space<vmem>>) attributes {dimension_semantics = [#tpu.dimension_semantics<parallel>], iteration_bounds = array<i64: 2>, scalar_prefetch = 0 : i64, scratch_operands = 0 : i64, tpu.core_type = #tpu.core_type<tc>, window_params = [{transform_indices = @transform_0, window_bounds = array<i64: 1, 1, 56, 32>}, {pipeline_mode = #tpu.pipeline_mode<synchronous>, transform_indices = @transform_1, window_bounds = array<i64: 16, 32, 64>}, {pipeline_mode = #tpu.pipeline_mode<synchronous>, transform_indices = @transform_2, window_bounds = array<i64: 1, 64>}, {transform_indices = @transform_3, window_bounds = array<i64: 1, 28, 64>}, {transform_indices = @transform_4, window_bounds = array<i64: 1, 2, 64>}]} {
    %cst = arith.constant 0.000000e+00 : f32
    %0 = vector.broadcast %cst : f32 to vector<28x64xf32>
    %c0 = arith.constant 0 : index
    %c0_0 = arith.constant 0 : index
    %c0_1 = arith.constant 0 : index
    %c0_2 = arith.constant 0 : index
    %1 = vector.load %arg1[%c0, %c0_0, %c0_1, %c0_2] : memref<1x1x56x32xbf16, #tpu.memory_space<vmem>>, vector<1x1x28x32xbf16>
    %2 = vector.shape_cast %1 : vector<1x1x28x32xbf16> to vector<28x32xbf16>
    %c0_3 = arith.constant 0 : index
    %c0_4 = arith.constant 0 : index
    %c0_5 = arith.constant 0 : index
    %3 = vector.load %arg2[%c0_3, %c0_4, %c0_5] : memref<16x32x64xbf16, #tpu.memory_space<vmem>>, vector<1x32x64xbf16>
    %4 = vector.shape_cast %3 : vector<1x32x64xbf16> to vector<32x64xbf16>
    %cst_6 = arith.constant dense<0.000000e+00> : vector<28x64xf32>
    %5 = tpu.matmul %2, %4, %cst_6 {dimension_numbers = #tpu.dot_dimension_numbers<[1], [0], [0], [1], [0, 0, 1, 1], [], []>} : vector<28x32xbf16>, vector<32x64xbf16>, vector<28x64xf32> -> vector<28x64xf32>
    %6 = arith.addf %0, %5 : vector<28x64xf32>
    %c0_7 = arith.constant 0 : index
    %c0_8 = arith.constant 0 : index
    %c1 = arith.constant 1 : index
    %c0_9 = arith.constant 0 : index
    %7 = vector.load %arg1[%c0_7, %c0_8, %c1, %c0_9] : memref<1x1x56x32xbf16, #tpu.memory_space<vmem>>, vector<1x1x28x32xbf16>
    %8 = vector.shape_cast %7 : vector<1x1x28x32xbf16> to vector<28x32xbf16>
    %c1_10 = arith.constant 1 : index
    %c0_11 = arith.constant 0 : index
    %c0_12 = arith.constant 0 : index
    %9 = vector.load %arg2[%c1_10, %c0_11, %c0_12] : memref<16x32x64xbf16, #tpu.memory_space<vmem>>, vector<1x32x64xbf16>
    %10 = vector.shape_cast %9 : vector<1x32x64xbf16> to vector<32x64xbf16>
    %cst_13 = arith.constant dense<0.000000e+00> : vector<28x64xf32>
    %11 = tpu.matmul %8, %10, %cst_13 {dimension_numbers = #tpu.dot_dimension_numbers<[1], [0], [0], [1], [0, 0, 1, 1], [], []>} : vector<28x32xbf16>, vector<32x64xbf16>, vector<28x64xf32> -> vector<28x64xf32>
    %12 = arith.addf %6, %11 : vector<28x64xf32>
    %c0_14 = arith.constant 0 : index
    %c0_15 = arith.constant 0 : index
    %c2 = arith.constant 2 : index
    %c0_16 = arith.constant 0 : index
    %13 = vector.load %arg1[%c0_14, %c0_15, %c2, %c0_16] : memref<1x1x56x32xbf16, #tpu.memory_space<vmem>>, vector<1x1x28x32xbf16>
    %14 = vector.shape_cast %13 : vector<1x1x28x32xbf16> to vector<28x32xbf16>
    %c2_17 = arith.constant 2 : index
    %c0_18 = arith.constant 0 : index
    %c0_19 = arith.constant 0 : index
    %15 = vector.load %arg2[%c2_17, %c0_18, %c0_19] : memref<16x32x64xbf16, #tpu.memory_space<vmem>>, vector<1x32x64xbf16>
    %16 = vector.shape_cast %15 : vector<1x32x64xbf16> to vector<32x64xbf16>
    %cst_20 = arith.constant dense<0.000000e+00> : vector<28x64xf32>
    %17 = tpu.matmul %14, %16, %cst_20 {dimension_numbers = #tpu.dot_dimension_numbers<[1], [0], [0], [1], [0, 0, 1, 1], [], []>} : vector<28x32xbf16>, vector<32x64xbf16>, vector<28x64xf32> -> vector<28x64xf32>
    %18 = arith.addf %12, %17 : vector<28x64xf32>
    %c0_21 = arith.constant 0 : index
    %c0_22 = arith.constant 0 : index
    %c3 = arith.constant 3 : index
    %c0_23 = arith.constant 0 : index
    %19 = vector.load %arg1[%c0_21, %c0_22, %c3, %c0_23] : memref<1x1x56x32xbf16, #tpu.memory_space<vmem>>, vector<1x1x28x32xbf16>
    %20 = vector.shape_cast %19 : vector<1x1x28x32xbf16> to vector<28x32xbf16>
    %c3_24 = arith.constant 3 : index
    %c0_25 = arith.constant 0 : index
    %c0_26 = arith.constant 0 : index
    %21 = vector.load %arg2[%c3_24, %c0_25, %c0_26] : memref<16x32x64xbf16, #tpu.memory_space<vmem>>, vector<1x32x64xbf16>
    %22 = vector.shape_cast %21 : vector<1x32x64xbf16> to vector<32x64xbf16>
    %cst_27 = arith.constant dense<0.000000e+00> : vector<28x64xf32>
    %23 = tpu.matmul %20, %22, %cst_27 {dimension_numbers = #tpu.dot_dimension_numbers<[1], [0], [0], [1], [0, 0, 1, 1], [], []>} : vector<28x32xbf16>, vector<32x64xbf16>, vector<28x64xf32> -> vector<28x64xf32>
    %24 = arith.addf %18, %23 : vector<28x64xf32>
    %c0_28 = arith.constant 0 : index
    %c0_29 = arith.constant 0 : index
    %c7 = arith.constant 7 : index
    %c0_30 = arith.constant 0 : index
    %25 = vector.load %arg1[%c0_28, %c0_29, %c7, %c0_30] : memref<1x1x56x32xbf16, #tpu.memory_space<vmem>>, vector<1x1x28x32xbf16>
    %26 = vector.shape_cast %25 : vector<1x1x28x32xbf16> to vector<28x32xbf16>
    %c4 = arith.constant 4 : index
    %c0_31 = arith.constant 0 : index
    %c0_32 = arith.constant 0 : index
    %27 = vector.load %arg2[%c4, %c0_31, %c0_32] : memref<16x32x64xbf16, #tpu.memory_space<vmem>>, vector<1x32x64xbf16>
    %28 = vector.shape_cast %27 : vector<1x32x64xbf16> to vector<32x64xbf16>
    %cst_33 = arith.constant dense<0.000000e+00> : vector<28x64xf32>
    %29 = tpu.matmul %26, %28, %cst_33 {dimension_numbers = #tpu.dot_dimension_numbers<[1], [0], [0], [1], [0, 0, 1, 1], [], []>} : vector<28x32xbf16>, vector<32x64xbf16>, vector<28x64xf32> -> vector<28x64xf32>
    %30 = arith.addf %24, %29 : vector<28x64xf32>
    %c0_34 = arith.constant 0 : index
    %c0_35 = arith.constant 0 : index
    %c8 = arith.constant 8 : index
    %c0_36 = arith.constant 0 : index
    %31 = vector.load %arg1[%c0_34, %c0_35, %c8, %c0_36] : memref<1x1x56x32xbf16, #tpu.memory_space<vmem>>, vector<1x1x28x32xbf16>
    %32 = vector.shape_cast %31 : vector<1x1x28x32xbf16> to vector<28x32xbf16>
    %c5 = arith.constant 5 : index
    %c0_37 = arith.constant 0 : index
    %c0_38 = arith.constant 0 : index
    %33 = vector.load %arg2[%c5, %c0_37, %c0_38] : memref<16x32x64xbf16, #tpu.memory_space<vmem>>, vector<1x32x64xbf16>
    %34 = vector.shape_cast %33 : vector<1x32x64xbf16> to vector<32x64xbf16>
    %cst_39 = arith.constant dense<0.000000e+00> : vector<28x64xf32>
    %35 = tpu.matmul %32, %34, %cst_39 {dimension_numbers = #tpu.dot_dimension_numbers<[1], [0], [0], [1], [0, 0, 1, 1], [], []>} : vector<28x32xbf16>, vector<32x64xbf16>, vector<28x64xf32> -> vector<28x64xf32>
    %36 = arith.addf %30, %35 : vector<28x64xf32>
    %c0_40 = arith.constant 0 : index
    %c0_41 = arith.constant 0 : index
    %c9 = arith.constant 9 : index
    %c0_42 = arith.constant 0 : index
    %37 = vector.load %arg1[%c0_40, %c0_41, %c9, %c0_42] : memref<1x1x56x32xbf16, #tpu.memory_space<vmem>>, vector<1x1x28x32xbf16>
    %38 = vector.shape_cast %37 : vector<1x1x28x32xbf16> to vector<28x32xbf16>
    %c6 = arith.constant 6 : index
    %c0_43 = arith.constant 0 : index
    %c0_44 = arith.constant 0 : index
    %39 = vector.load %arg2[%c6, %c0_43, %c0_44] : memref<16x32x64xbf16, #tpu.memory_space<vmem>>, vector<1x32x64xbf16>
    %40 = vector.shape_cast %39 : vector<1x32x64xbf16> to vector<32x64xbf16>
    %cst_45 = arith.constant dense<0.000000e+00> : vector<28x64xf32>
    %41 = tpu.matmul %38, %40, %cst_45 {dimension_numbers = #tpu.dot_dimension_numbers<[1], [0], [0], [1], [0, 0, 1, 1], [], []>} : vector<28x32xbf16>, vector<32x64xbf16>, vector<28x64xf32> -> vector<28x64xf32>
    %42 = arith.addf %36, %41 : vector<28x64xf32>
    %c0_46 = arith.constant 0 : index
    %c0_47 = arith.constant 0 : index
    %c10 = arith.constant 10 : index
    %c0_48 = arith.constant 0 : index
    %43 = vector.load %arg1[%c0_46, %c0_47, %c10, %c0_48] : memref<1x1x56x32xbf16, #tpu.memory_space<vmem>>, vector<1x1x28x32xbf16>
    %44 = vector.shape_cast %43 : vector<1x1x28x32xbf16> to vector<28x32xbf16>
    %c7_49 = arith.constant 7 : index
    %c0_50 = arith.constant 0 : index
    %c0_51 = arith.constant 0 : index
    %45 = vector.load %arg2[%c7_49, %c0_50, %c0_51] : memref<16x32x64xbf16, #tpu.memory_space<vmem>>, vector<1x32x64xbf16>
    %46 = vector.shape_cast %45 : vector<1x32x64xbf16> to vector<32x64xbf16>
    %cst_52 = arith.constant dense<0.000000e+00> : vector<28x64xf32>
    %47 = tpu.matmul %44, %46, %cst_52 {dimension_numbers = #tpu.dot_dimension_numbers<[1], [0], [0], [1], [0, 0, 1, 1], [], []>} : vector<28x32xbf16>, vector<32x64xbf16>, vector<28x64xf32> -> vector<28x64xf32>
    %48 = arith.addf %42, %47 : vector<28x64xf32>
    %c0_53 = arith.constant 0 : index
    %c0_54 = arith.constant 0 : index
    %c14 = arith.constant 14 : index
    %c0_55 = arith.constant 0 : index
    %49 = vector.load %arg1[%c0_53, %c0_54, %c14, %c0_55] : memref<1x1x56x32xbf16, #tpu.memory_space<vmem>>, vector<1x1x28x32xbf16>
    %50 = vector.shape_cast %49 : vector<1x1x28x32xbf16> to vector<28x32xbf16>
    %c8_56 = arith.constant 8 : index
    %c0_57 = arith.constant 0 : index
    %c0_58 = arith.constant 0 : index
    %51 = vector.load %arg2[%c8_56, %c0_57, %c0_58] : memref<16x32x64xbf16, #tpu.memory_space<vmem>>, vector<1x32x64xbf16>
    %52 = vector.shape_cast %51 : vector<1x32x64xbf16> to vector<32x64xbf16>
    %cst_59 = arith.constant dense<0.000000e+00> : vector<28x64xf32>
    %53 = tpu.matmul %50, %52, %cst_59 {dimension_numbers = #tpu.dot_dimension_numbers<[1], [0], [0], [1], [0, 0, 1, 1], [], []>} : vector<28x32xbf16>, vector<32x64xbf16>, vector<28x64xf32> -> vector<28x64xf32>
    %54 = arith.addf %48, %53 : vector<28x64xf32>
    %c0_60 = arith.constant 0 : index
    %c0_61 = arith.constant 0 : index
    %c15 = arith.constant 15 : index
    %c0_62 = arith.constant 0 : index
    %55 = vector.load %arg1[%c0_60, %c0_61, %c15, %c0_62] : memref<1x1x56x32xbf16, #tpu.memory_space<vmem>>, vector<1x1x28x32xbf16>
    %56 = vector.shape_cast %55 : vector<1x1x28x32xbf16> to vector<28x32xbf16>
    %c9_63 = arith.constant 9 : index
    %c0_64 = arith.constant 0 : index
    %c0_65 = arith.constant 0 : index
    %57 = vector.load %arg2[%c9_63, %c0_64, %c0_65] : memref<16x32x64xbf16, #tpu.memory_space<vmem>>, vector<1x32x64xbf16>
    %58 = vector.shape_cast %57 : vector<1x32x64xbf16> to vector<32x64xbf16>
    %cst_66 = arith.constant dense<0.000000e+00> : vector<28x64xf32>
    %59 = tpu.matmul %56, %58, %cst_66 {dimension_numbers = #tpu.dot_dimension_numbers<[1], [0], [0], [1], [0, 0, 1, 1], [], []>} : vector<28x32xbf16>, vector<32x64xbf16>, vector<28x64xf32> -> vector<28x64xf32>
    %60 = arith.addf %54, %59 : vector<28x64xf32>
    %c0_67 = arith.constant 0 : index
    %c0_68 = arith.constant 0 : index
    %c16 = arith.constant 16 : index
    %c0_69 = arith.constant 0 : index
    %61 = vector.load %arg1[%c0_67, %c0_68, %c16, %c0_69] : memref<1x1x56x32xbf16, #tpu.memory_space<vmem>>, vector<1x1x28x32xbf16>
    %62 = vector.shape_cast %61 : vector<1x1x28x32xbf16> to vector<28x32xbf16>
    %c10_70 = arith.constant 10 : index
    %c0_71 = arith.constant 0 : index
    %c0_72 = arith.constant 0 : index
    %63 = vector.load %arg2[%c10_70, %c0_71, %c0_72] : memref<16x32x64xbf16, #tpu.memory_space<vmem>>, vector<1x32x64xbf16>
    %64 = vector.shape_cast %63 : vector<1x32x64xbf16> to vector<32x64xbf16>
    %cst_73 = arith.constant dense<0.000000e+00> : vector<28x64xf32>
    %65 = tpu.matmul %62, %64, %cst_73 {dimension_numbers = #tpu.dot_dimension_numbers<[1], [0], [0], [1], [0, 0, 1, 1], [], []>} : vector<28x32xbf16>, vector<32x64xbf16>, vector<28x64xf32> -> vector<28x64xf32>
    %66 = arith.addf %60, %65 : vector<28x64xf32>
    %c0_74 = arith.constant 0 : index
    %c0_75 = arith.constant 0 : index
    %c17 = arith.constant 17 : index
    %c0_76 = arith.constant 0 : index
    %67 = vector.load %arg1[%c0_74, %c0_75, %c17, %c0_76] : memref<1x1x56x32xbf16, #tpu.memory_space<vmem>>, vector<1x1x28x32xbf16>
    %68 = vector.shape_cast %67 : vector<1x1x28x32xbf16> to vector<28x32xbf16>
    %c11 = arith.constant 11 : index
    %c0_77 = arith.constant 0 : index
    %c0_78 = arith.constant 0 : index
    %69 = vector.load %arg2[%c11, %c0_77, %c0_78] : memref<16x32x64xbf16, #tpu.memory_space<vmem>>, vector<1x32x64xbf16>
    %70 = vector.shape_cast %69 : vector<1x32x64xbf16> to vector<32x64xbf16>
    %cst_79 = arith.constant dense<0.000000e+00> : vector<28x64xf32>
    %71 = tpu.matmul %68, %70, %cst_79 {dimension_numbers = #tpu.dot_dimension_numbers<[1], [0], [0], [1], [0, 0, 1, 1], [], []>} : vector<28x32xbf16>, vector<32x64xbf16>, vector<28x64xf32> -> vector<28x64xf32>
    %72 = arith.addf %66, %71 : vector<28x64xf32>
    %c0_80 = arith.constant 0 : index
    %c0_81 = arith.constant 0 : index
    %c21 = arith.constant 21 : index
    %c0_82 = arith.constant 0 : index
    %73 = vector.load %arg1[%c0_80, %c0_81, %c21, %c0_82] : memref<1x1x56x32xbf16, #tpu.memory_space<vmem>>, vector<1x1x28x32xbf16>
    %74 = vector.shape_cast %73 : vector<1x1x28x32xbf16> to vector<28x32xbf16>
    %c12 = arith.constant 12 : index
    %c0_83 = arith.constant 0 : index
    %c0_84 = arith.constant 0 : index
    %75 = vector.load %arg2[%c12, %c0_83, %c0_84] : memref<16x32x64xbf16, #tpu.memory_space<vmem>>, vector<1x32x64xbf16>
    %76 = vector.shape_cast %75 : vector<1x32x64xbf16> to vector<32x64xbf16>
    %cst_85 = arith.constant dense<0.000000e+00> : vector<28x64xf32>
    %77 = tpu.matmul %74, %76, %cst_85 {dimension_numbers = #tpu.dot_dimension_numbers<[1], [0], [0], [1], [0, 0, 1, 1], [], []>} : vector<28x32xbf16>, vector<32x64xbf16>, vector<28x64xf32> -> vector<28x64xf32>
    %78 = arith.addf %72, %77 : vector<28x64xf32>
    %c0_86 = arith.constant 0 : index
    %c0_87 = arith.constant 0 : index
    %c22 = arith.constant 22 : index
    %c0_88 = arith.constant 0 : index
    %79 = vector.load %arg1[%c0_86, %c0_87, %c22, %c0_88] : memref<1x1x56x32xbf16, #tpu.memory_space<vmem>>, vector<1x1x28x32xbf16>
    %80 = vector.shape_cast %79 : vector<1x1x28x32xbf16> to vector<28x32xbf16>
    %c13 = arith.constant 13 : index
    %c0_89 = arith.constant 0 : index
    %c0_90 = arith.constant 0 : index
    %81 = vector.load %arg2[%c13, %c0_89, %c0_90] : memref<16x32x64xbf16, #tpu.memory_space<vmem>>, vector<1x32x64xbf16>
    %82 = vector.shape_cast %81 : vector<1x32x64xbf16> to vector<32x64xbf16>
    %cst_91 = arith.constant dense<0.000000e+00> : vector<28x64xf32>
    %83 = tpu.matmul %80, %82, %cst_91 {dimension_numbers = #tpu.dot_dimension_numbers<[1], [0], [0], [1], [0, 0, 1, 1], [], []>} : vector<28x32xbf16>, vector<32x64xbf16>, vector<28x64xf32> -> vector<28x64xf32>
    %84 = arith.addf %78, %83 : vector<28x64xf32>
    %c0_92 = arith.constant 0 : index
    %c0_93 = arith.constant 0 : index
    %c23 = arith.constant 23 : index
    %c0_94 = arith.constant 0 : index
    %85 = vector.load %arg1[%c0_92, %c0_93, %c23, %c0_94] : memref<1x1x56x32xbf16, #tpu.memory_space<vmem>>, vector<1x1x28x32xbf16>
    %86 = vector.shape_cast %85 : vector<1x1x28x32xbf16> to vector<28x32xbf16>
    %c14_95 = arith.constant 14 : index
    %c0_96 = arith.constant 0 : index
    %c0_97 = arith.constant 0 : index
    %87 = vector.load %arg2[%c14_95, %c0_96, %c0_97] : memref<16x32x64xbf16, #tpu.memory_space<vmem>>, vector<1x32x64xbf16>
    %88 = vector.shape_cast %87 : vector<1x32x64xbf16> to vector<32x64xbf16>
    %cst_98 = arith.constant dense<0.000000e+00> : vector<28x64xf32>
    %89 = tpu.matmul %86, %88, %cst_98 {dimension_numbers = #tpu.dot_dimension_numbers<[1], [0], [0], [1], [0, 0, 1, 1], [], []>} : vector<28x32xbf16>, vector<32x64xbf16>, vector<28x64xf32> -> vector<28x64xf32>
    %90 = arith.addf %84, %89 : vector<28x64xf32>
    %c0_99 = arith.constant 0 : index
    %c0_100 = arith.constant 0 : index
    %c24 = arith.constant 24 : index
    %c0_101 = arith.constant 0 : index
    %91 = vector.load %arg1[%c0_99, %c0_100, %c24, %c0_101] : memref<1x1x56x32xbf16, #tpu.memory_space<vmem>>, vector<1x1x28x32xbf16>
    %92 = vector.shape_cast %91 : vector<1x1x28x32xbf16> to vector<28x32xbf16>
    %c15_102 = arith.constant 15 : index
    %c0_103 = arith.constant 0 : index
    %c0_104 = arith.constant 0 : index
    %93 = vector.load %arg2[%c15_102, %c0_103, %c0_104] : memref<16x32x64xbf16, #tpu.memory_space<vmem>>, vector<1x32x64xbf16>
    %94 = vector.shape_cast %93 : vector<1x32x64xbf16> to vector<32x64xbf16>
    %cst_105 = arith.constant dense<0.000000e+00> : vector<28x64xf32>
    %95 = tpu.matmul %92, %94, %cst_105 {dimension_numbers = #tpu.dot_dimension_numbers<[1], [0], [0], [1], [0, 0, 1, 1], [], []>} : vector<28x32xbf16>, vector<32x64xbf16>, vector<28x64xf32> -> vector<28x64xf32>
    %96 = arith.addf %90, %95 : vector<28x64xf32>
    %c0_106 = arith.constant 0 : index
    %c0_107 = arith.constant 0 : index
    %97 = vector.load %arg3[%c0_106, %c0_107] : memref<1x64xf32, #tpu.memory_space<vmem>>, vector<1x64xf32>
    %98 = vector.broadcast %97 : vector<1x64xf32> to vector<28x64xf32>
    %99 = arith.addf %96, %98 : vector<28x64xf32>
    %100 = tpu.iota {dimensions = array<i32: 0>} : vector<28x1xi32>
    %c7_i32 = arith.constant 7 : i32
    %c0_i32 = arith.constant 0 : i32
    %101 = arith.cmpi eq, %c7_i32, %c0_i32 : i32
    %c1_i32 = arith.constant 1 : i32
    %102 = arith.select %101, %c1_i32, %c7_i32 : i32
    %103 = vector.broadcast %102 : i32 to vector<28x1xi32>
    %104 = arith.remsi %100, %103 : vector<28x1xi32>
    %c0_i32_108 = arith.constant 0 : i32
    %105 = vector.broadcast %c0_i32_108 : i32 to vector<28x1xi32>
    %106 = arith.cmpi ne, %104, %105 : vector<28x1xi32>
    %c0_i32_109 = arith.constant 0 : i32
    %107 = vector.broadcast %c0_i32_109 : i32 to vector<28x1xi32>
    %108 = arith.cmpi slt, %104, %107 : vector<28x1xi32>
    %c0_i32_110 = arith.constant 0 : i32
    %109 = arith.cmpi slt, %102, %c0_i32_110 : i32
    %110 = vector.broadcast %109 : i1 to vector<28x1xi1>
    %111 = vector.broadcast %110 : vector<28x1xi1> to vector<28x1xi1>
    %112 = arith.xori %108, %111 : vector<28x1xi1>
    %113 = arith.andi %112, %106 : vector<28x1xi1>
    %114 = vector.broadcast %102 : i32 to vector<28x1xi32>
    %115 = arith.addi %104, %114 : vector<28x1xi32>
    %116 = arith.select %113, %115, %104 : vector<28x1xi1>, vector<28x1xi32>
    %c4_i32 = arith.constant 4 : i32
    %117 = vector.broadcast %c4_i32 : i32 to vector<28x1xi32>
    %118 = arith.cmpi slt, %116, %117 : vector<28x1xi32>
    %cst_111 = arith.constant 0.000000e+00 : f32
    %119 = vector.shape_cast %118 : vector<28x1xi1> to vector<28x1xi1>
    %120 = vector.broadcast %119 : vector<28x1xi1> to vector<28x64xi1>
    %121 = vector.broadcast %cst_111 : f32 to vector<28x64xf32>
    %122 = arith.select %120, %99, %121 : vector<28x64xi1>, vector<28x64xf32>
    %cst_112 = arith.constant dense<0.000000e+00> : vector<64xf32>
    %123 = vector.multi_reduction <add>, %122, %cst_112 [0] : vector<28x64xf32> to vector<64xf32>
    %124 = vector.shape_cast %123 : vector<64xf32> to vector<1x64xf32>
    %c0_113 = arith.constant 0 : index
    %c0_114 = arith.constant 0 : index
    %c0_115 = arith.constant 0 : index
    %125 = vector.load %arg5[%c0_113, %c0_114, %c0_115] : memref<1x2x64xf32, #tpu.memory_space<vmem>>, vector<1x1x64xf32>
    %126 = vector.shape_cast %125 : vector<1x1x64xf32> to vector<1x64xf32>
    %127 = vector.shape_cast %124 : vector<1x64xf32> to vector<1x1x64xf32>
    tpu.vector_store %arg5[%c0_113, %c0_114, %c0_115], %127 {strides = array<i32>} : memref<1x2x64xf32, #tpu.memory_space<vmem>>, vector<1x1x64xf32>,
    %128 = arith.mulf %122, %122 : vector<28x64xf32>
    %cst_116 = arith.constant dense<0.000000e+00> : vector<64xf32>
    %129 = vector.multi_reduction <add>, %128, %cst_116 [0] : vector<28x64xf32> to vector<64xf32>
    %130 = vector.shape_cast %129 : vector<64xf32> to vector<1x64xf32>
    %c0_117 = arith.constant 0 : index
    %c1_118 = arith.constant 1 : index
    %c0_119 = arith.constant 0 : index
    %131 = vector.load %arg5[%c0_117, %c1_118, %c0_119] : memref<1x2x64xf32, #tpu.memory_space<vmem>>, vector<1x1x64xf32>
    %132 = vector.shape_cast %131 : vector<1x1x64xf32> to vector<1x64xf32>
    %133 = vector.shape_cast %130 : vector<1x64xf32> to vector<1x1x64xf32>
    tpu.vector_store %arg5[%c0_117, %c1_118, %c0_119], %133 {strides = array<i32>} : memref<1x2x64xf32, #tpu.memory_space<vmem>>, vector<1x1x64xf32>,
    %134 = arith.truncf %99 : vector<28x64xf32> to vector<28x64xbf16>
    %c0_120 = arith.constant 0 : index
    %c0_121 = arith.constant 0 : index
    %c0_122 = arith.constant 0 : index
    %135 = vector.load %arg4[%c0_120, %c0_121, %c0_122] : memref<1x28x64xbf16, #tpu.memory_space<vmem>>, vector<1x28x64xbf16>
    %136 = vector.shape_cast %135 : vector<1x28x64xbf16> to vector<28x64xbf16>
    %137 = vector.shape_cast %134 : vector<28x64xbf16> to vector<1x28x64xbf16>
    tpu.vector_store %arg4[%c0_120, %c0_121, %c0_122], %137 {strides = array<i32>} : memref<1x28x64xbf16, #tpu.memory_space<vmem>>, vector<1x28x64xbf16>,
    return
  }
  func.func @transform_0(%arg0: i32) -> (i32, i32, i32, i32) {
    %c0_i32 = arith.constant 0 : i32
    %c0_i32_0 = arith.constant 0 : i32
    %c0_i32_1 = arith.constant 0 : i32
    %c0_i32_2 = arith.constant 0 : i32
    return %arg0, %c0_i32, %c0_i32_0, %c0_i32_1 : i32, i32, i32, i32
  }
  func.func @transform_1(%arg0: i32) -> (i32, i32, i32) {
    %c0_i32 = arith.constant 0 : i32
    %c0_i32_0 = arith.constant 0 : i32
    %c0_i32_1 = arith.constant 0 : i32
    %c0_i32_2 = arith.constant 0 : i32
    return %c0_i32, %c0_i32_0, %c0_i32_1 : i32, i32, i32
  }
  func.func @transform_2(%arg0: i32) -> (i32, i32) {
    %c0_i32 = arith.constant 0 : i32
    %c0_i32_0 = arith.constant 0 : i32
    %c0_i32_1 = arith.constant 0 : i32
    return %c0_i32, %c0_i32_0 : i32, i32
  }
  func.func @transform_3(%arg0: i32) -> (i32, i32, i32) {
    %c0_i32 = arith.constant 0 : i32
    %c0_i32_0 = arith.constant 0 : i32
    %c0_i32_1 = arith.constant 0 : i32
    return %arg0, %c0_i32, %c0_i32_0 : i32, i32, i32
  }
  func.func @transform_4(%arg0: i32) -> (i32, i32, i32) {
    %c0_i32 = arith.constant 0 : i32
    %c0_i32_0 = arith.constant 0 : i32
    %c0_i32_1 = arith.constant 0 : i32
    return %arg0, %c0_i32, %c0_i32_0 : i32, i32, i32
  }
}

module attributes {stable_mosaic.version = 11 : i64} {
  func.func @_conv4x4_kernel(%arg0: i32, %arg1: memref<1x1x72x64xbf16, #tpu.memory_space<vmem>>, %arg2: memref<16x64x1xbf16, #tpu.memory_space<vmem>>, %arg3: memref<1x1xf32, #tpu.memory_space<vmem>>, %arg4: memref<1x40x1xf32, #tpu.memory_space<vmem>>) attributes {dimension_semantics = [#tpu.dimension_semantics<parallel>], iteration_bounds = array<i64: 2>, scalar_prefetch = 0 : i64, scratch_operands = 0 : i64, tpu.core_type = #tpu.core_type<tc>, window_params = [{transform_indices = @transform_0, window_bounds = array<i64: 1, 1, 72, 64>}, {pipeline_mode = #tpu.pipeline_mode<synchronous>, transform_indices = @transform_1, window_bounds = array<i64: 16, 64, 1>}, {pipeline_mode = #tpu.pipeline_mode<synchronous>, transform_indices = @transform_2, window_bounds = array<i64: 1, 1>}, {transform_indices = @transform_3, window_bounds = array<i64: 1, 40, 1>}]} {
    %cst = arith.constant 0.000000e+00 : f32
    %0 = vector.broadcast %cst : f32 to vector<40x1xf32>
    %c0 = arith.constant 0 : index
    %c0_0 = arith.constant 0 : index
    %c0_1 = arith.constant 0 : index
    %c0_2 = arith.constant 0 : index
    %1 = vector.load %arg1[%c0, %c0_0, %c0_1, %c0_2] : memref<1x1x72x64xbf16, #tpu.memory_space<vmem>>, vector<1x1x40x64xbf16>
    %2 = vector.shape_cast %1 : vector<1x1x40x64xbf16> to vector<40x64xbf16>
    %c0_3 = arith.constant 0 : index
    %c0_4 = arith.constant 0 : index
    %c0_5 = arith.constant 0 : index
    %3 = vector.load %arg2[%c0_3, %c0_4, %c0_5] : memref<16x64x1xbf16, #tpu.memory_space<vmem>>, vector<1x64x1xbf16>
    %4 = vector.shape_cast %3 : vector<1x64x1xbf16> to vector<64x1xbf16>
    %cst_6 = arith.constant dense<0.000000e+00> : vector<40x1xf32>
    %5 = tpu.matmul %2, %4, %cst_6 {dimension_numbers = #tpu.dot_dimension_numbers<[1], [0], [0], [1], [0, 0, 1, 1], [], []>} : vector<40x64xbf16>, vector<64x1xbf16>, vector<40x1xf32> -> vector<40x1xf32>
    %6 = arith.addf %0, %5 : vector<40x1xf32>
    %c0_7 = arith.constant 0 : index
    %c0_8 = arith.constant 0 : index
    %c1 = arith.constant 1 : index
    %c0_9 = arith.constant 0 : index
    %7 = vector.load %arg1[%c0_7, %c0_8, %c1, %c0_9] : memref<1x1x72x64xbf16, #tpu.memory_space<vmem>>, vector<1x1x40x64xbf16>
    %8 = vector.shape_cast %7 : vector<1x1x40x64xbf16> to vector<40x64xbf16>
    %c1_10 = arith.constant 1 : index
    %c0_11 = arith.constant 0 : index
    %c0_12 = arith.constant 0 : index
    %9 = vector.load %arg2[%c1_10, %c0_11, %c0_12] : memref<16x64x1xbf16, #tpu.memory_space<vmem>>, vector<1x64x1xbf16>
    %10 = vector.shape_cast %9 : vector<1x64x1xbf16> to vector<64x1xbf16>
    %cst_13 = arith.constant dense<0.000000e+00> : vector<40x1xf32>
    %11 = tpu.matmul %8, %10, %cst_13 {dimension_numbers = #tpu.dot_dimension_numbers<[1], [0], [0], [1], [0, 0, 1, 1], [], []>} : vector<40x64xbf16>, vector<64x1xbf16>, vector<40x1xf32> -> vector<40x1xf32>
    %12 = arith.addf %6, %11 : vector<40x1xf32>
    %c0_14 = arith.constant 0 : index
    %c0_15 = arith.constant 0 : index
    %c2 = arith.constant 2 : index
    %c0_16 = arith.constant 0 : index
    %13 = vector.load %arg1[%c0_14, %c0_15, %c2, %c0_16] : memref<1x1x72x64xbf16, #tpu.memory_space<vmem>>, vector<1x1x40x64xbf16>
    %14 = vector.shape_cast %13 : vector<1x1x40x64xbf16> to vector<40x64xbf16>
    %c2_17 = arith.constant 2 : index
    %c0_18 = arith.constant 0 : index
    %c0_19 = arith.constant 0 : index
    %15 = vector.load %arg2[%c2_17, %c0_18, %c0_19] : memref<16x64x1xbf16, #tpu.memory_space<vmem>>, vector<1x64x1xbf16>
    %16 = vector.shape_cast %15 : vector<1x64x1xbf16> to vector<64x1xbf16>
    %cst_20 = arith.constant dense<0.000000e+00> : vector<40x1xf32>
    %17 = tpu.matmul %14, %16, %cst_20 {dimension_numbers = #tpu.dot_dimension_numbers<[1], [0], [0], [1], [0, 0, 1, 1], [], []>} : vector<40x64xbf16>, vector<64x1xbf16>, vector<40x1xf32> -> vector<40x1xf32>
    %18 = arith.addf %12, %17 : vector<40x1xf32>
    %c0_21 = arith.constant 0 : index
    %c0_22 = arith.constant 0 : index
    %c3 = arith.constant 3 : index
    %c0_23 = arith.constant 0 : index
    %19 = vector.load %arg1[%c0_21, %c0_22, %c3, %c0_23] : memref<1x1x72x64xbf16, #tpu.memory_space<vmem>>, vector<1x1x40x64xbf16>
    %20 = vector.shape_cast %19 : vector<1x1x40x64xbf16> to vector<40x64xbf16>
    %c3_24 = arith.constant 3 : index
    %c0_25 = arith.constant 0 : index
    %c0_26 = arith.constant 0 : index
    %21 = vector.load %arg2[%c3_24, %c0_25, %c0_26] : memref<16x64x1xbf16, #tpu.memory_space<vmem>>, vector<1x64x1xbf16>
    %22 = vector.shape_cast %21 : vector<1x64x1xbf16> to vector<64x1xbf16>
    %cst_27 = arith.constant dense<0.000000e+00> : vector<40x1xf32>
    %23 = tpu.matmul %20, %22, %cst_27 {dimension_numbers = #tpu.dot_dimension_numbers<[1], [0], [0], [1], [0, 0, 1, 1], [], []>} : vector<40x64xbf16>, vector<64x1xbf16>, vector<40x1xf32> -> vector<40x1xf32>
    %24 = arith.addf %18, %23 : vector<40x1xf32>
    %c0_28 = arith.constant 0 : index
    %c0_29 = arith.constant 0 : index
    %c8 = arith.constant 8 : index
    %c0_30 = arith.constant 0 : index
    %25 = vector.load %arg1[%c0_28, %c0_29, %c8, %c0_30] : memref<1x1x72x64xbf16, #tpu.memory_space<vmem>>, vector<1x1x40x64xbf16>
    %26 = vector.shape_cast %25 : vector<1x1x40x64xbf16> to vector<40x64xbf16>
    %c4 = arith.constant 4 : index
    %c0_31 = arith.constant 0 : index
    %c0_32 = arith.constant 0 : index
    %27 = vector.load %arg2[%c4, %c0_31, %c0_32] : memref<16x64x1xbf16, #tpu.memory_space<vmem>>, vector<1x64x1xbf16>
    %28 = vector.shape_cast %27 : vector<1x64x1xbf16> to vector<64x1xbf16>
    %cst_33 = arith.constant dense<0.000000e+00> : vector<40x1xf32>
    %29 = tpu.matmul %26, %28, %cst_33 {dimension_numbers = #tpu.dot_dimension_numbers<[1], [0], [0], [1], [0, 0, 1, 1], [], []>} : vector<40x64xbf16>, vector<64x1xbf16>, vector<40x1xf32> -> vector<40x1xf32>
    %30 = arith.addf %24, %29 : vector<40x1xf32>
    %c0_34 = arith.constant 0 : index
    %c0_35 = arith.constant 0 : index
    %c9 = arith.constant 9 : index
    %c0_36 = arith.constant 0 : index
    %31 = vector.load %arg1[%c0_34, %c0_35, %c9, %c0_36] : memref<1x1x72x64xbf16, #tpu.memory_space<vmem>>, vector<1x1x40x64xbf16>
    %32 = vector.shape_cast %31 : vector<1x1x40x64xbf16> to vector<40x64xbf16>
    %c5 = arith.constant 5 : index
    %c0_37 = arith.constant 0 : index
    %c0_38 = arith.constant 0 : index
    %33 = vector.load %arg2[%c5, %c0_37, %c0_38] : memref<16x64x1xbf16, #tpu.memory_space<vmem>>, vector<1x64x1xbf16>
    %34 = vector.shape_cast %33 : vector<1x64x1xbf16> to vector<64x1xbf16>
    %cst_39 = arith.constant dense<0.000000e+00> : vector<40x1xf32>
    %35 = tpu.matmul %32, %34, %cst_39 {dimension_numbers = #tpu.dot_dimension_numbers<[1], [0], [0], [1], [0, 0, 1, 1], [], []>} : vector<40x64xbf16>, vector<64x1xbf16>, vector<40x1xf32> -> vector<40x1xf32>
    %36 = arith.addf %30, %35 : vector<40x1xf32>
    %c0_40 = arith.constant 0 : index
    %c0_41 = arith.constant 0 : index
    %c10 = arith.constant 10 : index
    %c0_42 = arith.constant 0 : index
    %37 = vector.load %arg1[%c0_40, %c0_41, %c10, %c0_42] : memref<1x1x72x64xbf16, #tpu.memory_space<vmem>>, vector<1x1x40x64xbf16>
    %38 = vector.shape_cast %37 : vector<1x1x40x64xbf16> to vector<40x64xbf16>
    %c6 = arith.constant 6 : index
    %c0_43 = arith.constant 0 : index
    %c0_44 = arith.constant 0 : index
    %39 = vector.load %arg2[%c6, %c0_43, %c0_44] : memref<16x64x1xbf16, #tpu.memory_space<vmem>>, vector<1x64x1xbf16>
    %40 = vector.shape_cast %39 : vector<1x64x1xbf16> to vector<64x1xbf16>
    %cst_45 = arith.constant dense<0.000000e+00> : vector<40x1xf32>
    %41 = tpu.matmul %38, %40, %cst_45 {dimension_numbers = #tpu.dot_dimension_numbers<[1], [0], [0], [1], [0, 0, 1, 1], [], []>} : vector<40x64xbf16>, vector<64x1xbf16>, vector<40x1xf32> -> vector<40x1xf32>
    %42 = arith.addf %36, %41 : vector<40x1xf32>
    %c0_46 = arith.constant 0 : index
    %c0_47 = arith.constant 0 : index
    %c11 = arith.constant 11 : index
    %c0_48 = arith.constant 0 : index
    %43 = vector.load %arg1[%c0_46, %c0_47, %c11, %c0_48] : memref<1x1x72x64xbf16, #tpu.memory_space<vmem>>, vector<1x1x40x64xbf16>
    %44 = vector.shape_cast %43 : vector<1x1x40x64xbf16> to vector<40x64xbf16>
    %c7 = arith.constant 7 : index
    %c0_49 = arith.constant 0 : index
    %c0_50 = arith.constant 0 : index
    %45 = vector.load %arg2[%c7, %c0_49, %c0_50] : memref<16x64x1xbf16, #tpu.memory_space<vmem>>, vector<1x64x1xbf16>
    %46 = vector.shape_cast %45 : vector<1x64x1xbf16> to vector<64x1xbf16>
    %cst_51 = arith.constant dense<0.000000e+00> : vector<40x1xf32>
    %47 = tpu.matmul %44, %46, %cst_51 {dimension_numbers = #tpu.dot_dimension_numbers<[1], [0], [0], [1], [0, 0, 1, 1], [], []>} : vector<40x64xbf16>, vector<64x1xbf16>, vector<40x1xf32> -> vector<40x1xf32>
    %48 = arith.addf %42, %47 : vector<40x1xf32>
    %c0_52 = arith.constant 0 : index
    %c0_53 = arith.constant 0 : index
    %c16 = arith.constant 16 : index
    %c0_54 = arith.constant 0 : index
    %49 = vector.load %arg1[%c0_52, %c0_53, %c16, %c0_54] : memref<1x1x72x64xbf16, #tpu.memory_space<vmem>>, vector<1x1x40x64xbf16>
    %50 = vector.shape_cast %49 : vector<1x1x40x64xbf16> to vector<40x64xbf16>
    %c8_55 = arith.constant 8 : index
    %c0_56 = arith.constant 0 : index
    %c0_57 = arith.constant 0 : index
    %51 = vector.load %arg2[%c8_55, %c0_56, %c0_57] : memref<16x64x1xbf16, #tpu.memory_space<vmem>>, vector<1x64x1xbf16>
    %52 = vector.shape_cast %51 : vector<1x64x1xbf16> to vector<64x1xbf16>
    %cst_58 = arith.constant dense<0.000000e+00> : vector<40x1xf32>
    %53 = tpu.matmul %50, %52, %cst_58 {dimension_numbers = #tpu.dot_dimension_numbers<[1], [0], [0], [1], [0, 0, 1, 1], [], []>} : vector<40x64xbf16>, vector<64x1xbf16>, vector<40x1xf32> -> vector<40x1xf32>
    %54 = arith.addf %48, %53 : vector<40x1xf32>
    %c0_59 = arith.constant 0 : index
    %c0_60 = arith.constant 0 : index
    %c17 = arith.constant 17 : index
    %c0_61 = arith.constant 0 : index
    %55 = vector.load %arg1[%c0_59, %c0_60, %c17, %c0_61] : memref<1x1x72x64xbf16, #tpu.memory_space<vmem>>, vector<1x1x40x64xbf16>
    %56 = vector.shape_cast %55 : vector<1x1x40x64xbf16> to vector<40x64xbf16>
    %c9_62 = arith.constant 9 : index
    %c0_63 = arith.constant 0 : index
    %c0_64 = arith.constant 0 : index
    %57 = vector.load %arg2[%c9_62, %c0_63, %c0_64] : memref<16x64x1xbf16, #tpu.memory_space<vmem>>, vector<1x64x1xbf16>
    %58 = vector.shape_cast %57 : vector<1x64x1xbf16> to vector<64x1xbf16>
    %cst_65 = arith.constant dense<0.000000e+00> : vector<40x1xf32>
    %59 = tpu.matmul %56, %58, %cst_65 {dimension_numbers = #tpu.dot_dimension_numbers<[1], [0], [0], [1], [0, 0, 1, 1], [], []>} : vector<40x64xbf16>, vector<64x1xbf16>, vector<40x1xf32> -> vector<40x1xf32>
    %60 = arith.addf %54, %59 : vector<40x1xf32>
    %c0_66 = arith.constant 0 : index
    %c0_67 = arith.constant 0 : index
    %c18 = arith.constant 18 : index
    %c0_68 = arith.constant 0 : index
    %61 = vector.load %arg1[%c0_66, %c0_67, %c18, %c0_68] : memref<1x1x72x64xbf16, #tpu.memory_space<vmem>>, vector<1x1x40x64xbf16>
    %62 = vector.shape_cast %61 : vector<1x1x40x64xbf16> to vector<40x64xbf16>
    %c10_69 = arith.constant 10 : index
    %c0_70 = arith.constant 0 : index
    %c0_71 = arith.constant 0 : index
    %63 = vector.load %arg2[%c10_69, %c0_70, %c0_71] : memref<16x64x1xbf16, #tpu.memory_space<vmem>>, vector<1x64x1xbf16>
    %64 = vector.shape_cast %63 : vector<1x64x1xbf16> to vector<64x1xbf16>
    %cst_72 = arith.constant dense<0.000000e+00> : vector<40x1xf32>
    %65 = tpu.matmul %62, %64, %cst_72 {dimension_numbers = #tpu.dot_dimension_numbers<[1], [0], [0], [1], [0, 0, 1, 1], [], []>} : vector<40x64xbf16>, vector<64x1xbf16>, vector<40x1xf32> -> vector<40x1xf32>
    %66 = arith.addf %60, %65 : vector<40x1xf32>
    %c0_73 = arith.constant 0 : index
    %c0_74 = arith.constant 0 : index
    %c19 = arith.constant 19 : index
    %c0_75 = arith.constant 0 : index
    %67 = vector.load %arg1[%c0_73, %c0_74, %c19, %c0_75] : memref<1x1x72x64xbf16, #tpu.memory_space<vmem>>, vector<1x1x40x64xbf16>
    %68 = vector.shape_cast %67 : vector<1x1x40x64xbf16> to vector<40x64xbf16>
    %c11_76 = arith.constant 11 : index
    %c0_77 = arith.constant 0 : index
    %c0_78 = arith.constant 0 : index
    %69 = vector.load %arg2[%c11_76, %c0_77, %c0_78] : memref<16x64x1xbf16, #tpu.memory_space<vmem>>, vector<1x64x1xbf16>
    %70 = vector.shape_cast %69 : vector<1x64x1xbf16> to vector<64x1xbf16>
    %cst_79 = arith.constant dense<0.000000e+00> : vector<40x1xf32>
    %71 = tpu.matmul %68, %70, %cst_79 {dimension_numbers = #tpu.dot_dimension_numbers<[1], [0], [0], [1], [0, 0, 1, 1], [], []>} : vector<40x64xbf16>, vector<64x1xbf16>, vector<40x1xf32> -> vector<40x1xf32>
    %72 = arith.addf %66, %71 : vector<40x1xf32>
    %c0_80 = arith.constant 0 : index
    %c0_81 = arith.constant 0 : index
    %c24 = arith.constant 24 : index
    %c0_82 = arith.constant 0 : index
    %73 = vector.load %arg1[%c0_80, %c0_81, %c24, %c0_82] : memref<1x1x72x64xbf16, #tpu.memory_space<vmem>>, vector<1x1x40x64xbf16>
    %74 = vector.shape_cast %73 : vector<1x1x40x64xbf16> to vector<40x64xbf16>
    %c12 = arith.constant 12 : index
    %c0_83 = arith.constant 0 : index
    %c0_84 = arith.constant 0 : index
    %75 = vector.load %arg2[%c12, %c0_83, %c0_84] : memref<16x64x1xbf16, #tpu.memory_space<vmem>>, vector<1x64x1xbf16>
    %76 = vector.shape_cast %75 : vector<1x64x1xbf16> to vector<64x1xbf16>
    %cst_85 = arith.constant dense<0.000000e+00> : vector<40x1xf32>
    %77 = tpu.matmul %74, %76, %cst_85 {dimension_numbers = #tpu.dot_dimension_numbers<[1], [0], [0], [1], [0, 0, 1, 1], [], []>} : vector<40x64xbf16>, vector<64x1xbf16>, vector<40x1xf32> -> vector<40x1xf32>
    %78 = arith.addf %72, %77 : vector<40x1xf32>
    %c0_86 = arith.constant 0 : index
    %c0_87 = arith.constant 0 : index
    %c25 = arith.constant 25 : index
    %c0_88 = arith.constant 0 : index
    %79 = vector.load %arg1[%c0_86, %c0_87, %c25, %c0_88] : memref<1x1x72x64xbf16, #tpu.memory_space<vmem>>, vector<1x1x40x64xbf16>
    %80 = vector.shape_cast %79 : vector<1x1x40x64xbf16> to vector<40x64xbf16>
    %c13 = arith.constant 13 : index
    %c0_89 = arith.constant 0 : index
    %c0_90 = arith.constant 0 : index
    %81 = vector.load %arg2[%c13, %c0_89, %c0_90] : memref<16x64x1xbf16, #tpu.memory_space<vmem>>, vector<1x64x1xbf16>
    %82 = vector.shape_cast %81 : vector<1x64x1xbf16> to vector<64x1xbf16>
    %cst_91 = arith.constant dense<0.000000e+00> : vector<40x1xf32>
    %83 = tpu.matmul %80, %82, %cst_91 {dimension_numbers = #tpu.dot_dimension_numbers<[1], [0], [0], [1], [0, 0, 1, 1], [], []>} : vector<40x64xbf16>, vector<64x1xbf16>, vector<40x1xf32> -> vector<40x1xf32>
    %84 = arith.addf %78, %83 : vector<40x1xf32>
    %c0_92 = arith.constant 0 : index
    %c0_93 = arith.constant 0 : index
    %c26 = arith.constant 26 : index
    %c0_94 = arith.constant 0 : index
    %85 = vector.load %arg1[%c0_92, %c0_93, %c26, %c0_94] : memref<1x1x72x64xbf16, #tpu.memory_space<vmem>>, vector<1x1x40x64xbf16>
    %86 = vector.shape_cast %85 : vector<1x1x40x64xbf16> to vector<40x64xbf16>
    %c14 = arith.constant 14 : index
    %c0_95 = arith.constant 0 : index
    %c0_96 = arith.constant 0 : index
    %87 = vector.load %arg2[%c14, %c0_95, %c0_96] : memref<16x64x1xbf16, #tpu.memory_space<vmem>>, vector<1x64x1xbf16>
    %88 = vector.shape_cast %87 : vector<1x64x1xbf16> to vector<64x1xbf16>
    %cst_97 = arith.constant dense<0.000000e+00> : vector<40x1xf32>
    %89 = tpu.matmul %86, %88, %cst_97 {dimension_numbers = #tpu.dot_dimension_numbers<[1], [0], [0], [1], [0, 0, 1, 1], [], []>} : vector<40x64xbf16>, vector<64x1xbf16>, vector<40x1xf32> -> vector<40x1xf32>
    %90 = arith.addf %84, %89 : vector<40x1xf32>
    %c0_98 = arith.constant 0 : index
    %c0_99 = arith.constant 0 : index
    %c27 = arith.constant 27 : index
    %c0_100 = arith.constant 0 : index
    %91 = vector.load %arg1[%c0_98, %c0_99, %c27, %c0_100] : memref<1x1x72x64xbf16, #tpu.memory_space<vmem>>, vector<1x1x40x64xbf16>
    %92 = vector.shape_cast %91 : vector<1x1x40x64xbf16> to vector<40x64xbf16>
    %c15 = arith.constant 15 : index
    %c0_101 = arith.constant 0 : index
    %c0_102 = arith.constant 0 : index
    %93 = vector.load %arg2[%c15, %c0_101, %c0_102] : memref<16x64x1xbf16, #tpu.memory_space<vmem>>, vector<1x64x1xbf16>
    %94 = vector.shape_cast %93 : vector<1x64x1xbf16> to vector<64x1xbf16>
    %cst_103 = arith.constant dense<0.000000e+00> : vector<40x1xf32>
    %95 = tpu.matmul %92, %94, %cst_103 {dimension_numbers = #tpu.dot_dimension_numbers<[1], [0], [0], [1], [0, 0, 1, 1], [], []>} : vector<40x64xbf16>, vector<64x1xbf16>, vector<40x1xf32> -> vector<40x1xf32>
    %96 = arith.addf %90, %95 : vector<40x1xf32>
    %c0_104 = arith.constant 0 : index
    %c0_105 = arith.constant 0 : index
    %97 = vector.load %arg3[%c0_104, %c0_105] : memref<1x1xf32, #tpu.memory_space<vmem>>, vector<1x1xf32>
    %98 = vector.broadcast %97 : vector<1x1xf32> to vector<40x1xf32>
    %99 = arith.addf %96, %98 : vector<40x1xf32>
    %c0_106 = arith.constant 0 : index
    %c0_107 = arith.constant 0 : index
    %c0_108 = arith.constant 0 : index
    %100 = vector.load %arg4[%c0_106, %c0_107, %c0_108] : memref<1x40x1xf32, #tpu.memory_space<vmem>>, vector<1x40x1xf32>
    %101 = vector.shape_cast %100 : vector<1x40x1xf32> to vector<40x1xf32>
    %102 = vector.shape_cast %99 : vector<40x1xf32> to vector<1x40x1xf32>
    tpu.vector_store %arg4[%c0_106, %c0_107, %c0_108], %102 {strides = array<i32>} : memref<1x40x1xf32, #tpu.memory_space<vmem>>, vector<1x40x1xf32>,
    return
  }
  func.func @transform_0(%arg0: i32) -> (i32, i32, i32, i32) {
    %c0_i32 = arith.constant 0 : i32
    %c0_i32_0 = arith.constant 0 : i32
    %c0_i32_1 = arith.constant 0 : i32
    %c0_i32_2 = arith.constant 0 : i32
    return %arg0, %c0_i32, %c0_i32_0, %c0_i32_1 : i32, i32, i32, i32
  }
  func.func @transform_1(%arg0: i32) -> (i32, i32, i32) {
    %c0_i32 = arith.constant 0 : i32
    %c0_i32_0 = arith.constant 0 : i32
    %c0_i32_1 = arith.constant 0 : i32
    %c0_i32_2 = arith.constant 0 : i32
    return %c0_i32, %c0_i32_0, %c0_i32_1 : i32, i32, i32
  }
  func.func @transform_2(%arg0: i32) -> (i32, i32) {
    %c0_i32 = arith.constant 0 : i32
    %c0_i32_0 = arith.constant 0 : i32
    %c0_i32_1 = arith.constant 0 : i32
    return %c0_i32, %c0_i32_0 : i32, i32
  }
  func.func @transform_3(%arg0: i32) -> (i32, i32, i32) {
    %c0_i32 = arith.constant 0 : i32
    %c0_i32_0 = arith.constant 0 : i32
    %c0_i32_1 = arith.constant 0 : i32
    return %arg0, %c0_i32, %c0_i32_0 : i32, i32, i32
  }
}

</mosaic_0001>

<bundles_post_ra>
// kernel: nlayer_discriminator_forward.5
= control target key start
LH: loop header
LB: loop body
LE: loop exit
PB: predicated region body
PF: predicated region fallthrough
CT: control target
= control target key end

     0   :  { %s2701_s12 = smov 0   ;;  %s3252_s0 = inlined_call_operand.vmem [shape: bf16[2,4,104,4], index: 0, kind: input, shape index: {}]   ;;  %s3253_s1 = inlined_call_operand.vmem [shape: bf16[16,4,8], index: 1, kind: input, shape index: {}]   ;;  %s3254_s2 = inlined_call_operand.vmem [shape: f32[1,8], index: 2, kind: input, shape index: {}]   ;;  %s3255_s3 = inlined_call_operand.vmem [shape: bf16[2,90,8], index: 3, kind: output, shape index: {}]  }
   0x1 LB: > { %s2264_s13 = sadd.s32 4294967295, %s2679_s12   ;;  %p2268_p0 = scmp.ge.s32.totalorder %s2679_s12, 1  ;;  %s2679_s12 = sphi %s2701_s12, %s13_s12  }
   0x2   : > { %p137_p1 = scmp.lt.s32.totalorder %s2679_s12, 3 }
   0x4   : > { %p138_p2 = pnand %p2268_p0, %p137_p1 }
   0x5   : > { %p161_p3 = scmp.lt.s32.totalorder (!%p138_p2), %s2264_s13, 1 }
   0x6   : > { %141 = sbr.rel (%p138_p2) target bundleno = 545 (0x221), region = 32 }
   0xb   : > { %v2283_v0 = vld [vmem:[%s3253_s1 + $0x2] sm:$0x3]  ;;  %vm249_vm0 = vcmask 1041408   ;;  %v184_v1 = vld [vmem:[%s3253_s1] sm:$0x3]  ;;  %s3257_s13 = smov (!%p161_p3, %s2264_s13), 1 }
   0xc   : > { %v251_v2 = vsel %vm249_vm0, %v2283_v0, 0  ;;  %v341_v3 = vsel %vm249_vm0, %v184_v1, 0  ;;  %v2336_v4 = vld [vmem:[%s3253_s1 + $0x4] sm:$0x3]  ;;  %v2344_v6 = vld [vmem:[%s3253_s1 + $0x6] sm:$0x3] }
   0xd   : > { %260 = vmatpush.bf16.msra.mxu0 %v251_v2  ;;  %350 = vmatpush.bf16.msra.mxu1 %v341_v3  ;;  %v450_v5 = vsel %vm249_vm0, %v2336_v4, 0  ;;  %v570_v7 = vsel %vm249_vm0, %v2344_v6, 0  ;;  %v2430_v8 = vld [vmem:[%s3253_s1 + $0xc] sm:$0x3]  ;;  %v2363_v9 = vld [vmem:[%s3253_s1 + $0x8] sm:$0x3] }
   0xe   : > { %459 = vmatpush.bf16.msra.mxu2 %v450_v5  ;;  %s2662_s26 = smul.u32 208, %s3257_s13  ;;  %579 = vmatpush.bf16.msra.mxu3 %v570_v7  ;;  %v924_v10 = vsel %vm249_vm0, %v2430_v8, 0  ;;  %v687_v11 = vsel %vm249_vm0, %v2363_v9, 0  ;;  %v2438_v12 = vld [vmem:[%s3253_s1 + $0xe] sm:$0x3]  ;;  %vm230_vm1 = vcmask 31744  }
   0xf   : > { %v1044_v13 = vsel %vm249_vm0, %v2438_v12, 0  ;;  %v2402_v14 = vld [vmem:[%s3253_s1 + $0xa] sm:$0x3]  ;;  %vm388_vm2 = vsmask.f32 7424  ;;  %vm1141_vm3 = vcmask 1046528  }
  0x10   : > { %s2746_s6 = scalar_lea.vmem %s3252_s0, %s2662_s26  ;;  %v804_v15 = vsel %vm249_vm0, %v2402_v14, 0  ;;  %vm1358_vm4 = vsmask.f32 6400  ;;  %s2663_s27 = smul.u32 48, %s3257_s13  ;;  %vm2195_vm6 = vcmask 60416  }
  0x11   : > { %696 = vmatpush.bf16.msrb.mxu0 %v687_v11  ;;  %v2627_v16 = vld [vmem:[%s2746_s6 + $0x34] sm:$0xff]  ;;  %v2622_v17 = vld [vmem:[%s2746_s6] sm:$0xff]  ;;  %v2623_v18 = vld [vmem:[%s2746_s6 + $0x8] sm:$0xff]  ;;  %813 = vmatpush.bf16.msrb.mxu1 %v804_v15 }
  0x12   : > { %933 = vmatpush.bf16.msrb.mxu2 %v924_v10  ;;  %1053 = vmatpush.bf16.msrb.mxu3 %v1044_v13  ;;  %v2628_v19 = vld [vmem:[%s2746_s6 + $0x3c] sm:$0xff]  ;;  %v511_v20 = vshll.u32 %v2627_v16, 16  ;;  %v391_v21 = vshll.u32 %v2622_v17, 16  ;;  %v389_v22 = vshrl.u32 %v2622_v17, 16  ;;  %v395_v23 = vshll.u32 %v2623_v18, 16  ;;  %v2624_v34 = vld [vmem:[%s2746_s6 + $0x10] sm:$0xff]  ;;  %s3203_s30 = scalar_lea.vmem %s3255_s3, %s2663_s27 }
  0x13   : > { %2304 = vmatmul.msk.bf16.vlgmr.msra.gmra.mxu0 %vm230_vm1, %v2627_v16  ;;  %2330 = vmatmul.msk.bf16.vlgmr.msra.gmra.mxu1 %vm230_vm1, %v2622_v17  ;;  %v509_v24 = vshrl.u32 %v2627_v16, 16  ;;  %v515_v25 = vshll.u32 %v2628_v19, 16  ;;  %v2629_v35 = vld [vmem:[%s2746_s6 + $0x44] sm:$0xff]  ;;  %v399_v36 = vshrl.u32 %v2623_v18, 16  ;;  %v402_v37 = vshll.u32 %v2624_v34, 16  ;;  %v2625_v46 = vld [vmem:[%s2746_s6 + $0x18] sm:$0xff] }
  0x14   : > { %v393_v26 = vrot.slane %v391_v21, 1  ;;  %v397_v27 = vrot.slane %v395_v23, 1  ;;  %v513_v28 = vrot.slane %v511_v20, 1  ;;  %v519_v38 = vshrl.u32 %v2628_v19, 16  ;;  %v2630_v47 = vld [vmem:[%s2746_s6 + $0x4c] sm:$0xff]  ;;  %v2626_v58 = vld [vmem:[%s2746_s6 + $0x20] sm:$0xff] }
  0x15   : > { %v517_v29 = vrot.slane %v515_v25, 1  ;;  %v522_v39 = vshll.u32 %v2629_v35, 16  ;;  %v404_v41 = vrot.slane %v402_v37, 1  ;;  %v406_v48 = vshrl.u32 %v2624_v34, 16  ;;  %v2631_v59 = vld [vmem:[%s2746_s6 + $0x54] sm:$0xff] }
  0x16   : > { %v394_v30 = vor.u32 %v393_v26, %v389_v22  ;;  %v514_v31 = vor.u32 %v513_v28, %v509_v24  ;;  %v401_v40 = vor.u32 %v399_v36, %v397_v27  ;;  %v409_v49 = vshll.u32 %v2625_v46, 16  ;;  %v182_v4 = vld [vmem:[%s2746_s6 + $0x28] sm:$0xf]  ;;  %v382_v5 = vld [vmem:[%s2746_s6 + $0x2c] sm:$0x3] }
  0x17   : > { %v521_v42 = vor.u32 %v519_v38, %v517_v29  ;;  %v524_v43 = vrot.slane %v522_v39, 1  ;;  %v526_v50 = vshrl.u32 %v2629_v35, 16  ;;  %v529_v51 = vshll.u32 %v2630_v47, 16  ;;  %v2281_v6 = vld [vmem:[%s2746_s6 + $0x5c] sm:$0xf] }
  0x18   : > { %v398_v32 = vsel %vm388_vm2, %v394_v30, %v397_v27  ;;  %v518_v33 = vsel %vm388_vm2, %v514_v31, %v517_v29  ;;  %v405_v44 = vsel %vm388_vm2, %v401_v40, %v404_v41  ;;  %v408_v52 = vor.u32 %v406_v48, %v404_v41  ;;  %v2343_v7 = vld [vmem:[%s2746_s6 + $0x60] sm:$0x3]  ;;  %v183_v27 = vld [vmem:[%s2746_s6 + $0x2c] sm:$0x1]  ;;  %v2511_v29 = vld [vmem:[%s3253_s1 + $0x14] sm:$0x3] }
  0x19   : > { %2337 = vmatmul.msk.bf16.vlgmr.msra.gmra.mxu2 %vm230_vm1, %v398_v32  ;;  %2345 = vmatmul.msk.bf16.vlgmr.msra.gmra.mxu3 %vm230_vm1, %v518_v33  ;;  %v525_v45 = vsel %vm388_vm2, %v521_v42, %v524_v43  ;;  %v411_v53 = vrot.slane %v409_v49, 1  ;;  %v528_v54 = vor.u32 %v526_v50, %v524_v43  ;;  %v531_v55 = vrot.slane %v529_v51, 1  ;;  %v2282_v26 = vld [vmem:[%s2746_s6 + $0x60] sm:$0x1]  ;;  %v2445_v30 = vld [vmem:[%s3253_s1 + $0x10] sm:$0x3] }
  0x1a   : > { %v413_v60 = vshrl.u32 %v2625_v46, 16  ;;  %v416_v61 = vshll.u32 %v2626_v58, 16  ;;  %v533_v62 = vshrl.u32 %v2630_v47, 16  ;;  %v536_v63 = vshll.u32 %v2631_v59, 16  ;;  %v2519_v31 = vld [vmem:[%s3253_s1 + $0x16] sm:$0x3] }
  0x1b   : > { %v412_v56 = vsel %vm388_vm2, %v408_v52, %v411_v53  ;;  %v532_v57 = vsel %vm388_vm2, %v528_v54, %v531_v55  ;;  %v314_v10 = vunpack.c.l.b16 %v182_v4  ;;  %v386_v11 = vunpack.c.l.b16 %v382_v5  ;;  %v2484_v36 = vld [vmem:[%s3253_s1 + $0x12] sm:$0x3]  ;;  %v2638_v48 = vld [vmem:[%s2746_s6 + $0xa4] sm:$0xff] }
  0x1c   : > { %v415_v0 = vor.u32 %v413_v60, %v411_v53  ;;  %v418_v1 = vrot.slane %v416_v61, 1  ;;  %v535_v2 = vor.u32 %v533_v62, %v531_v55  ;;  %v538_v3 = vrot.slane %v536_v63, 1  ;;  %v2634_v62 = vld [vmem:[%s2746_s6 + $0x78] sm:$0xff]  ;;  %v2639_v63 = vld [vmem:[%s2746_s6 + $0xac] sm:$0xff] }
  0x1d   : > { %v222_v12 = vunpack.c.l.b16 %v2281_v6  ;;  %v507_v13 = vunpack.c.l.b16 %v2343_v7  ;;  %v387_v14 = vpack.c.b16 %v386_v11, %v314_v10  ;;  %v420_v16 = vshrl.u32 %v2626_v58, 16  ;;  %v2640_v11 = vld [vmem:[%s2746_s6 + $0xb4] sm:$0xff] }
  0x1e   : > { %v419_v8 = vsel %vm388_vm2, %v415_v0, %v418_v1  ;;  %v539_v9 = vsel %vm388_vm2, %v535_v2, %v538_v3  ;;  %v223_v28 = vunpack.c.l.b16 %v2282_v26  ;;  %v315_v32 = vunpack.c.l.b16 %v183_v27 }
  0x1f   : > { %v508_v15 = vpack.c.b16 %v507_v13, %v222_v12  ;;  %v424_v17 = vshll.u32 %v387_v14, 16  ;;  %v422_v20 = vor.u32 %v420_v16, %v418_v1  ;;  %v1431_v33 = vsel %vm249_vm0, %v2511_v29, 0  ;;  %v2641_v29 = vld [vmem:[%s2746_s6 + $0xbc] sm:$0xff] }
  0x20   : > { %1440 = vmatpush.bf16.msra.mxu2 %v1431_v33  ;;  %v1299_v37 = vsel %vm249_vm0, %v2484_v36, 0  ;;  %v229_v38 = vpack.c.b16 %v223_v28, %v222_v12  ;;  %v321_v39 = vpack.c.b16 %v315_v32, %v314_v10  ;;  %v428_v40 = vshrl.u32 %v387_v14, 16  ;;  %v2635_v10 = vld [vmem:[%s2746_s6 + $0x80] sm:$0xff]  ;;  %v2636_v28 = vld [vmem:[%s2746_s6 + $0x88] sm:$0xff] }
  0x21   : > { %v426_v21 = vrot.slane %v424_v17, 1  ;;  %1308 = vmatpush.bf16.msra.mxu1 %v1299_v37  ;;  %v548_v41 = vshrl.u32 %v508_v15, 16  ;;  %v989_v55 = vshll.u32 %v2638_v48, 16  ;;  %v876_v1 = vshll.u32 %v2634_v62, 16 }
  0x22   : > { %v993_v2 = vshrl.u32 %v2638_v48, 16  ;;  %v880_v12 = vshrl.u32 %v2634_v62, 16  ;;  %v883_v13 = vshll.u32 %v2635_v10, 16  ;;  %v1000_v14 = vshrl.u32 %v2639_v63, 16 }
  0x23   : > { %2305 = vmatmul.msk.bf16.gmra.mxu0 %vm230_vm1, %v2628_v19  ;;  %2331 = vmatmul.msk.bf16.gmra.mxu1 %vm230_vm1, %v2623_v18  ;;  %v540_v18 = vshrl.u32 %v2631_v59, 16  ;;  %v544_v19 = vshll.u32 %v508_v15, 16  ;;  %v427_v24 = vsel %vm388_vm2, %v422_v20, %v426_v21  ;;  %v430_v42 = vor.u32 %v428_v40, %v426_v21 }
  0x24   : > { %v878_v5 = vrot.slane %v876_v1, 1  ;;  %v1003_v15 = vshll.u32 %v2640_v11, 16  ;;  %v885_v20 = vrot.slane %v883_v13, 1  ;;  %v887_v32 = vshrl.u32 %v2635_v10, 16 }
  0x25   : > { %v542_v22 = vor.u32 %v540_v18, %v538_v3  ;;  %v546_v23 = vrot.slane %v544_v19, 1  ;;  %v996_v3 = vshll.u32 %v2639_v63, 16  ;;  %v1010_v36 = vshll.u32 %v2641_v29, 16 }
  0x26   : > { %v882_v19 = vor.u32 %v880_v12, %v878_v5 }
  0x27   : > { %v547_v25 = vsel %vm388_vm2, %v542_v22, %v546_v23  ;;  %v550_v43 = vor.u32 %v548_v41, %v546_v23  ;;  %v998_v7 = vrot.slane %v996_v3, 1  ;;  %v1005_v22 = vrot.slane %v1003_v15, 1 }
  0x28   : > { %v886_v23 = vsel %vm388_vm2, %v882_v19, %v885_v20  ;;  %v889_v41 = vor.u32 %v887_v32, %v885_v20  ;;  %v894_v3 = vshrl.u32 %v2636_v28, 16  ;;  %v2362_v20 = vld [vmem:[%s2746_s6 + $0x94] sm:$0x1] }
  0x29   : > { %2338 = vmatmul.msk.bf16.gmra.mxu2 %vm230_vm1, %v405_v44  ;;  %2346 = vmatmul.msk.bf16.gmra.mxu3 %vm230_vm1, %v525_v45  ;;  %v2632_v44 = vld [vmem:[%s2746_s6 + $0x68] sm:$0xff]  ;;  %v2637_v45 = vld [vmem:[%s2746_s6 + $0x9c] sm:$0xff]  ;;  %v1002_v21 = vor.u32 %v1000_v14, %v998_v7 }
  0x2a   : > { %v985_v49 = vshll.u32 %v2637_v45, 16  ;;  %v863_v50 = vshrl.u32 %v2632_v44, 16  ;;  %v983_v53 = vshrl.u32 %v2637_v45, 16 }
  0x2c   : > { %v987_v54 = vrot.slane %v985_v49, 1 }
  0x33   : > { %2306 = vmatmul.msk.bf16.gmra.mxu0 %vm230_vm1, %v2629_v35  ;;  %2332 = vmatmul.msk.bf16.gmra.mxu1 %vm230_vm1, %v2624_v34  ;;  %v1172_v34 = vsel %vm249_vm0, %v2445_v30, 0  ;;  %v1562_v35 = vsel %vm249_vm0, %v2519_v31, 0 }
  0x34   : > { %1181 = vmatpush.bf16.msra.mxu0 %v1172_v34  ;;  %1571 = vmatpush.bf16.msra.mxu3 %v1562_v35  ;;  %v890_v34 = vshll.u32 %v2636_v28, 16  ;;  %v1007_v35 = vshrl.u32 %v2640_v11, 16 }
  0x39   : > { %2339 = vmatmul.msk.bf16.gmra.mxu2 %vm230_vm1, %v412_v56  ;;  %2347 = vmatmul.msk.bf16.gmra.mxu3 %vm230_vm1, %v532_v57 }
  0x43   : > { %2307 = vmatmul.msk.bf16.gmra.mxu0 %vm230_vm1, %v2630_v47  ;;  %2333 = vmatmul.msk.bf16.gmra.mxu1 %vm230_vm1, %v2625_v46  ;;  %v865_v46 = vshll.u32 %v2632_v44, 16  ;;  %v2633_v47 = vld [vmem:[%s2746_s6 + $0x70] sm:$0xff] }
  0x44   : > { %v869_v52 = vshll.u32 %v2633_v47, 16  ;;  %v873_v0 = vshrl.u32 %v2633_v47, 16 }
  0x45   : > { %v867_v51 = vrot.slane %v865_v46, 1  ;;  %v2429_v46 = vld [vmem:[%s2746_s6 + $0x94] sm:$0x3] }
  0x46   : > { %v871_v57 = vrot.slane %v869_v52, 1 }
  0x47   : > { %v868_v56 = vor.u32 %v867_v51, %v863_v50 }
  0x48   : > { %v875_v4 = vor.u32 %v873_v0, %v871_v57 }
  0x49   : > { %2340 = vmatmul.msk.bf16.gmra.mxu2 %vm230_vm1, %v419_v8  ;;  %2348 = vmatmul.msk.bf16.gmra.mxu3 %vm230_vm1, %v539_v9  ;;  %v872_v60 = vsel %vm388_vm2, %v868_v56, %v871_v57 }
  0x4a   : > { %v879_v8 = vsel %vm388_vm2, %v875_v4, %v878_v5  ;;  %v1014_v5 = vshrl.u32 %v2641_v29, 16 }
  0x53   : > { %2308 = vmatmul.msk.bf16.gmra.mxu0 %vm230_vm1, %v2631_v59  ;;  %2334 = vmatmul.msk.bf16.gmra.mxu1 %vm230_vm1, %v2626_v58  ;;  %v988_v58 = vor.u32 %v987_v54, %v983_v53  ;;  %v991_v59 = vrot.slane %v989_v55, 1  ;;  %v861_v55 = vunpack.c.l.b16 %v2429_v46 }
  0x55   : > { %v992_v61 = vsel %vm388_vm2, %v988_v58, %v991_v59  ;;  %v995_v6 = vor.u32 %v993_v2, %v991_v59 }
  0x57   : > { %v999_v9 = vsel %vm388_vm2, %v995_v6, %v998_v7 }
  0x59   : > { %2341 = vmatmul.msk.bf16.gmra.mxu2 %vm230_vm1, %v427_v24  ;;  %2349 = vmatmul.msk.bf16.gmra.mxu3 %vm230_vm1, %v547_v25  ;;  %v1006_v24 = vsel %vm388_vm2, %v1002_v21, %v1005_v22 }
  0x63   : > { %2309 = vmatmul.msk.bf16.gmra.mxu0 %vm230_vm1, %v229_v38  ;;  %2335 = vmatmul.msk.bf16.gmra.mxu1 %vm230_vm1, %v321_v39 }
  0x69   : > { %2342 = vmatmul.msk.bf16.gmra.mxu2 %vm230_vm1, %v430_v42  ;;  %2350 = vmatmul.msk.bf16.gmra.mxu3 %vm230_vm1, %v550_v43  ;;  %v892_v42 = vrot.slane %v890_v34, 1  ;;  %v1009_v43 = vor.u32 %v1007_v35, %v1005_v22 }
  0x6b   : > { %v893_v52 = vsel %vm388_vm2, %v889_v41, %v892_v42 }
  0x73   : > { %2384 = vmatmul.msk.bf16.vlgmr.msrb.gmra.mxu0 %vm230_vm1, %v2632_v44  ;;  %2423 = vmatmul.msk.bf16.vlgmr.msrb.gmra.mxu1 %vm230_vm1, %v2637_v45  ;;  %v1012_v44 = vrot.slane %v1010_v36, 1  ;;  %v2848_v45 = vld [vmem:[%s2746_s6 + $0x90] sm:$0xf] }
  0x74   : > { %v660_v54 = vunpack.c.l.b16 %v2848_v45 }
  0x75   : > { %v1013_v53 = vsel %vm388_vm2, %v1009_v43, %v1012_v44  ;;  %v1016_v13 = vor.u32 %v1014_v5, %v1012_v44  ;;  %v2577_v43 = vld [vmem:[%s3253_s1 + $0x1a] sm:$0x3] }
  0x76   : > { %v1816_v45 = vsel %vm249_vm0, %v2577_v43, 0 }
  0x77   : > { %1825 = vmatpush.bf16.msrb.mxu1 %v1816_v45 }
  0x79   : > { %2431 = vmatmul.msk.bf16.vlgmr.msrb.gmra.mxu2 %vm230_vm1, %v872_v60  ;;  %2439 = vmatmul.msk.bf16.vlgmr.msrb.gmra.mxu3 %vm230_vm1, %v992_v61 }
  0x83   : > { %2385 = vmatmul.msk.bf16.gmra.mxu0 %vm230_vm1, %v2633_v47  ;;  %2424 = vmatmul.msk.bf16.gmra.mxu1 %vm230_vm1, %v2638_v48  ;;  %v2852_v47 = vld [vmem:[%s2746_s6 + $0xc4] sm:$0xf]  ;;  %v2437_v48 = vld [vmem:[%s2746_s6 + $0xc8] sm:$0x3] }
  0x84   : > { %v777_v56 = vunpack.c.l.b16 %v2852_v47  ;;  %v981_v57 = vunpack.c.l.b16 %v2437_v48  ;;  %v2448_v48 = vld [vmem:[%s2746_s6 + $0x4] sm:$0xe] }
  0x89   : > { %2432 = vmatmul.msk.bf16.gmra.mxu2 %vm230_vm1, %v879_v8  ;;  %2440 = vmatmul.msk.bf16.gmra.mxu3 %vm230_vm1, %v999_v9 }
  0x90   : > { %v262_v16 = vpop.f32.mrf.mxu0  ;;  %v352_v17 = vpop.f32.mrf.mxu1 }
  0x91   : > { %v353_v18 = vadd.f32 %v352_v17, %v262_v16 }
  0x93   : > { %2386 = vmatmul.msk.bf16.gmra.mxu0 %vm230_vm1, %v2634_v62  ;;  %2425 = vmatmul.msk.bf16.gmra.mxu1 %vm230_vm1, %v2639_v63  ;;  %v2863_v62 = vpack.c.b16 %v861_v55, %v660_v54  ;;  %v2865_v63 = vpack.c.b16 %v981_v57, %v777_v56 }
  0x95   : > { %v898_v4 = vshll.u32 %v2863_v62, 16  ;;  %v1018_v6 = vshll.u32 %v2865_v63, 16  ;;  %v902_v46 = vshrl.u32 %v2863_v62, 16  ;;  %v1022_v47 = vshrl.u32 %v2865_v63, 16 }
  0x97   : > { %v900_v12 = vrot.slane %v898_v4, 1  ;;  %v1020_v14 = vrot.slane %v1018_v6, 1 }
  0x98   : > { %v264_v25 = vpop.f32.mrf.mxu0  ;;  %v354_v26 = vpop.f32.mrf.mxu1 }
  0x99   : > { %v355_v27 = vadd.f32 %v354_v26, %v264_v25  ;;  %2433 = vmatmul.msk.bf16.gmra.mxu2 %vm230_vm1, %v886_v23  ;;  %2441 = vmatmul.msk.bf16.gmra.mxu3 %vm230_vm1, %v1006_v24  ;;  %v1021_v19 = vsel %vm388_vm2, %v1016_v13, %v1020_v14  ;;  %v2401_v24 = vld [vmem:[%s2746_s6 + $0xc8] sm:$0x1]  ;;  %v661_v26 = vunpack.c.l.b16 %v2362_v20  ;;  %v904_v55 = vor.u32 %v902_v46, %v900_v12 }
  0x9c   : > { %v461_v30 = vpop.f32.mrf.mxu2  ;;  %v581_v31 = vpop.f32.mrf.mxu3 }
  0x9d   : > { %v491_v33 = vadd.f32 %v461_v30, %v353_v18  ;;  %v778_v30 = vunpack.c.l.b16 %v2401_v24 }
  0x9f   : > { %v2843_v37 = vadd.f32 %v581_v31, %v491_v33 }
  0xa0   : > { %v267_v38 = vpop.f32.mrf.mxu0  ;;  %v357_v39 = vpop.f32.mrf.mxu1 }
  0xa1   : > { %v358_v40 = vadd.f32 %v357_v39, %v267_v38  ;;  %v667_v38 = vpack.c.b16 %v661_v26, %v660_v54  ;;  %v784_v39 = vpack.c.b16 %v778_v30, %v777_v56  ;;  %v1024_v56 = vor.u32 %v1022_v47, %v1020_v14 }
  0xa3   : > { %2387 = vmatmul.msk.bf16.gmra.mxu0 %vm230_vm1, %v2635_v10  ;;  %2426 = vmatmul.msk.bf16.gmra.mxu1 %vm230_vm1, %v2640_v11  ;;  %v896_v11 = vor.u32 %v894_v3, %v892_v42 }
  0xa4   : > { %v463_v49 = vpop.f32.mrf.mxu2  ;;  %v583_v50 = vpop.f32.mrf.mxu3 }
  0xa5   : > { %v492_v51 = vadd.f32 %v463_v49, %v355_v27  ;;  %v901_v18 = vsel %vm388_vm2, %v896_v11, %v900_v12  ;;  %v2605_v27 = vld [vmem:[%s3253_s1 + $0x1c] sm:$0x3]  ;;  %v2642_v49 = vld [vmem:[%s2746_s6 + $0x4] sm:$0xf0]  ;;  %vm2207_vm2 = vcmask 57344  }
  0xa6   : > { %v1947_v31 = vsel %vm249_vm0, %v2605_v27, 0  ;;  %v2449_v57 = vor.u32 %v2642_v49, %v2448_v48  ;;  %v2644_v48 = vld [vmem:[%s2746_s6 + $0x14] sm:$0xff] }
  0xa7   : > { %v2859_v58 = vadd.f32 %v583_v50, %v492_v51  ;;  %1956 = vmatpush.bf16.msrb.mxu2 %v1947_v31  ;;  %v2487_v50 = vld [vmem:[%s2746_s6 + $0x38] sm:$0xe]  ;;  %v2647_v51 = vld [vmem:[%s2746_s6 + $0x38] sm:$0xf0] }
  0xa8   : > { %v269_v59 = vpop.f32.mrf.mxu0  ;;  %v359_v60 = vpop.f32.mrf.mxu1  ;;  %v1363_v3 = vshll.u32 %v2449_v57, 16  ;;  %v1142_v11 = vrot.slane %v2449_v57, 1 }
  0xa9   : > { %v360_v61 = vadd.f32 %v359_v60, %v269_v59  ;;  %2434 = vmatmul.msk.bf16.gmra.mxu2 %vm230_vm1, %v893_v52  ;;  %2442 = vmatmul.msk.bf16.gmra.mxu3 %vm230_vm1, %v1013_v53  ;;  %v2908_v59 = vld [vmem:[%s2746_s6 + $0x40] sm:$0xff]  ;;  %v2488_v60 = vor.u32 %v2647_v51, %v2487_v50  ;;  %v1377_v50 = vshrl.u32 %v2644_v48, 16  ;;  %v1380_v51 = vshll.u32 %v2644_v48, 16 }
  0xaa   : > { %v1270_v14 = vrot.slane %v2908_v59, 1 }
  0xab   : > { %v1491_v6 = vshrl.u32 %v2488_v60, 16  ;;  %v1269_v13 = vrot.slane %v2488_v60, 1 }
  0xac   : > { %v466_v0 = vpop.f32.mrf.mxu2  ;;  %v586_v1 = vpop.f32.mrf.mxu3 }
  0xad   : > { %v493_v2 = vadd.f32 %v466_v0, %v358_v40  ;;  %v2913_v0 = vld [vmem:[%s2746_s6 + $0xc] sm:$0xff]  ;;  %v1271_v31 = vsel %vm1141_vm3, %v1269_v13, %v1270_v14 }
  0xae   : > { %v1368_v4 = vshrl.u32 %v2913_v0, 16  ;;  %v1371_v5 = vshll.u32 %v2913_v0, 16  ;;  %v1143_v12 = vrot.slane %v2913_v0, 1 }
  0xaf   : > { %v2869_v7 = vadd.f32 %v586_v1, %v493_v2  ;;  %v1360_v2 = vshrl.u32 %v2449_v57, 16 }
  0xb0   : > { %v272_v8 = vpop.f32.mrf.mxu0  ;;  %v362_v9 = vpop.f32.mrf.mxu1  ;;  %v1370_v20 = vrot.slane %v1368_v4, 1  ;;  %v1144_v30 = vsel %vm1141_vm3, %v1142_v11, %v1143_v12 }
  0xb1   : > { %v363_v10 = vadd.f32 %v362_v9, %v272_v8  ;;  %v1494_v8 = vshll.u32 %v2488_v60, 16  ;;  %v1499_v9 = vshrl.u32 %v2908_v59, 16  ;;  %v1379_v60 = vrot.slane %v1377_v50, 1 }
  0xb3   : > { %2388 = vmatmul.msk.bf16.gmra.mxu0 %vm230_vm1, %v2636_v28  ;;  %2427 = vmatmul.msk.bf16.gmra.mxu1 %vm230_vm1, %v2641_v29  ;;  %v2538_v28 = vld [vmem:[%s3253_s1 + $0x18] sm:$0x3]  ;;  %v2613_v29 = vld [vmem:[%s3253_s1 + $0x1e] sm:$0x3]  ;;  %v1496_v24 = vrot.slane %v1494_v8, 2 }
  0xb4   : > { %v468_v15 = vpop.f32.mrf.mxu2  ;;  %v588_v16 = vpop.f32.mrf.mxu3  ;;  %v1689_v32 = vsel %vm249_vm0, %v2538_v28, 0  ;;  %v2078_v33 = vsel %vm249_vm0, %v2613_v29, 0 }
  0xb5   : > { %v494_v17 = vadd.f32 %v468_v15, %v360_v61  ;;  %1698 = vmatpush.bf16.msrb.mxu0 %v1689_v32  ;;  %2087 = vmatpush.bf16.msrb.mxu3 %v2078_v33 }
  0xb7   : > { %v2876_v21 = vadd.f32 %v588_v16, %v494_v17  ;;  %v1362_v17 = vrot.slane %v1360_v2, 1 }
  0xb8   : > { %v274_v22 = vpop.f32.mrf.mxu0  ;;  %v364_v23 = vpop.f32.mrf.mxu1 }
  0xb9   : > { %v365_v25 = vadd.f32 %v364_v23, %v274_v22  ;;  %2435 = vmatmul.msk.bf16.gmra.mxu2 %vm230_vm1, %v901_v18  ;;  %2443 = vmatmul.msk.bf16.gmra.mxu3 %vm230_vm1, %v1021_v19  ;;  %v1365_v19 = vrot.slane %v1363_v3, 2  ;;  %v1373_v22 = vrot.slane %v1371_v5, 2  ;;  %v1493_v23 = vrot.slane %v1491_v6, 1 }
  0xbb   : > { %v1366_v33 = vor.u32 %v1365_v19, %v1362_v17  ;;  %v2951_v17 = vld [vmem:[%s2746_s6 + $0x50] sm:$0xff]  ;;  %v2645_v19 = vld [vmem:[%s2746_s6 + $0x1c] sm:$0xff] }
  0xbc   : > { %v471_v34 = vpop.f32.mrf.mxu2  ;;  %v591_v35 = vpop.f32.mrf.mxu3 }
  0xbd   : > { %v495_v36 = vadd.f32 %v471_v34, %v363_v10  ;;  %v1502_v10 = vshll.u32 %v2908_v59, 16  ;;  %v1374_v34 = vor.u32 %v1373_v22, %v1370_v20  ;;  %v1386_v22 = vshrl.u32 %v2645_v19, 16 }
  0xbf   : > { %v2893_v40 = vadd.f32 %v591_v35, %v495_v36  ;;  %v1504_v26 = vrot.slane %v1502_v10, 2  ;;  %v1497_v35 = vor.u32 %v1496_v24, %v1493_v23  ;;  %v1389_v23 = vshll.u32 %v2645_v19, 16 }
  0xc0   : > { %v277_v41 = vpop.f32.mrf.mxu0  ;;  %v367_v42 = vpop.f32.mrf.mxu1  ;;  %v1517_v24 = vshrl.u32 %v2951_v17, 16 }
  0xc1   : > { %v368_v44 = vadd.f32 %v367_v42, %v277_v41  ;;  %v1375_v42 = vsel %vm1358_vm4, %v1366_v33, %v1374_v34  ;;  %v1391_v33 = vrot.slane %v1389_v23, 2  ;;  %v1108_v23 = vld [vmem:[%s2746_s6 + $0x30] sm:$0x3] }
  0xc3   : > { %2389 = vmatmul.msk.bf16.gmra.mxu0 %vm230_vm1, %v667_v38  ;;  %2428 = vmatmul.msk.bf16.gmra.mxu1 %vm230_vm1, %v784_v39 }
  0xc4   : > { %v473_v52 = vpop.f32.mrf.mxu2  ;;  %v593_v53 = vpop.f32.mrf.mxu3 }
  0xc5   : > { %v496_v54 = vadd.f32 %v473_v52, %v365_v25  ;;  %v1501_v25 = vrot.slane %v1499_v9, 1 }
  0xc7   : > { %v2910_v61 = vadd.f32 %v593_v53, %v496_v54  ;;  %v1505_v36 = vor.u32 %v1504_v26, %v1501_v25  ;;  %v1145_v54 = vrot.slane %v2644_v48, 1  ;;  %v1520_v25 = vshll.u32 %v2951_v17, 16 }
  0xc8   : > { %v279_v62 = vpop.f32.mrf.mxu0  ;;  %v369_v63 = vpop.f32.mrf.mxu1  ;;  %v1147_v26 = vrot.slane %v2645_v19, 1  ;;  %v2518_v19 = vld [vmem:[%s2746_s6 + $0x64] sm:$0x7] }
  0xc9   : > { %v370_v1 = vadd.f32 %v369_v63, %v279_v62  ;;  %2436 = vmatmul.msk.bf16.gmra.mxu2 %vm230_vm1, %v904_v55  ;;  %2444 = vmatmul.msk.bf16.gmra.mxu3 %vm230_vm1, %v1024_v56  ;;  %v1506_v43 = vsel %vm1358_vm4, %v1497_v35, %v1505_v36  ;;  %v1382_v62 = vrot.slane %v1380_v51, 2  ;;  %v1146_v4 = vsel %vm1141_vm3, %v1143_v12, %v1145_v54 }
  0xca   : > { %v1522_v35 = vrot.slane %v1520_v25, 2 }
  0xcb   : > { %v1383_v8 = vor.u32 %v1382_v62, %v1379_v60 }
  0xcc   : > { %v476_v15 = vpop.f32.mrf.mxu2  ;;  %v596_v16 = vpop.f32.mrf.mxu3 }
  0xcd   : > { %v497_v18 = vadd.f32 %v476_v15, %v368_v44  ;;  %v2932_v44 = vld [vmem:[%s2746_s6 + $0x48] sm:$0xff]  ;;  %v1384_v15 = vsel %vm1358_vm4, %v1374_v34, %v1383_v8  ;;  %v1519_v34 = vrot.slane %v1517_v24, 1  ;;  %v2483_v24 = vld [vmem:[%s2746_s6 + $0x64] sm:$0x3] }
  0xce   : > { %v1508_v52 = vshrl.u32 %v2932_v44, 16  ;;  %v1511_v53 = vshll.u32 %v2932_v44, 16  ;;  %v1272_v55 = vrot.slane %v2932_v44, 1 }
  0xcf   : > { %v2923_v27 = vadd.f32 %v596_v16, %v497_v18 }
  0xd0   : > { %v282_v28 = vpop.f32.mrf.mxu0  ;;  %v372_v29 = vpop.f32.mrf.mxu1  ;;  %v1510_v63 = vrot.slane %v1508_v52, 1  ;;  %v1513_v0 = vrot.slane %v1511_v53, 2  ;;  %v1273_v5 = vsel %vm1141_vm3, %v1270_v14, %v1272_v55  ;;  %v2971_v53 = vld [vmem:[%s2746_s6 + $0x58] sm:$0xff] }
  0xd1   : > { %v373_v32 = vadd.f32 %v372_v29, %v282_v28  ;;  %v1274_v28 = vrot.slane %v2951_v17, 1 }
  0xd2   : > { %v1514_v9 = vor.u32 %v1513_v0, %v1510_v63  ;;  %v1526_v63 = vshrl.u32 %v2971_v53, 16  ;;  %v1529_v0 = vshll.u32 %v2971_v53, 16 }
  0xd3   : > { %2466 = vmatmul.msk.bf16.vlgmr.msra.gmra.mxu0 %vm230_vm1, %v1144_v30  ;;  %2505 = vmatmul.msk.bf16.vlgmr.msra.gmra.mxu1 %vm230_vm1, %v1271_v31 }
  0xd4   : > { %v478_v38 = vpop.f32.mrf.mxu2  ;;  %v598_v39 = vpop.f32.mrf.mxu3  ;;  %v1515_v16 = vsel %vm1358_vm4, %v1505_v36, %v1514_v9 }
  0xd5   : > { %v498_v41 = vadd.f32 %v478_v38, %v370_v1 }
  0xd7   : > { %v2934_v45 = vadd.f32 %v598_v39, %v498_v41  ;;  %v1148_v41 = vsel %vm1141_vm3, %v1145_v54, %v1147_v26 }
  0xd8   : > { %v284_v46 = vpop.f32.mrf.mxu0  ;;  %v374_v47 = vpop.f32.mrf.mxu1 }
  0xd9   : > { %v375_v49 = vadd.f32 %v374_v47, %v284_v46  ;;  %2512 = vmatmul.msk.bf16.vlgmr.msra.gmra.mxu2 %vm230_vm1, %v1375_v42  ;;  %2520 = vmatmul.msk.bf16.vlgmr.msra.gmra.mxu3 %vm230_vm1, %v1506_v43  ;;  %v1275_v42 = vsel %vm1141_vm3, %v1272_v55, %v1274_v28  ;;  %v1523_v47 = vor.u32 %v1522_v35, %v1519_v34  ;;  %v1134_v34 = vunpack.c.l.b16 %v1108_v23 }
  0xdb   : > { %v1524_v52 = vsel %vm1358_vm4, %v1514_v9, %v1523_v47  ;;  %v1528_v9 = vrot.slane %v1526_v63, 1 }
  0xdc   : > { %v481_v56 = vpop.f32.mrf.mxu2  ;;  %v601_v57 = vpop.f32.mrf.mxu3 }
  0xdd   : > { %v499_v59 = vadd.f32 %v481_v56, %v373_v32  ;;  %v1388_v32 = vrot.slane %v1386_v22, 1  ;;  %v2976_v56 = vld [vmem:[%s2746_s6 + $0x24] sm:$0xff]  ;;  %v1107_v22 = vld [vmem:[%s2746_s6 + $0x2c] sm:$0xf] }
  0xde   : > { %v1398_v60 = vshll.u32 %v2976_v56, 16 }
  0xdf   : > { %v2942_v1 = vadd.f32 %v601_v57, %v499_v59  ;;  %v1392_v46 = vor.u32 %v1391_v33, %v1388_v32  ;;  %v1395_v59 = vshrl.u32 %v2976_v56, 16  ;;  %v1488_v32 = vunpack.c.l.b16 %v2518_v19 }
  0xe0   : > { %v287_v2 = vpop.f32.mrf.mxu0  ;;  %v377_v3 = vpop.f32.mrf.mxu1  ;;  %v1133_v33 = vunpack.c.l.b16 %v1107_v22 }
  0xe1   : > { %v378_v6 = vadd.f32 %v377_v3, %v287_v2  ;;  %v1393_v51 = vsel %vm1358_vm4, %v1383_v8, %v1392_v46  ;;  %v1149_v2 = vrot.slane %v2976_v56, 1  ;;  %v1400_v8 = vrot.slane %v1398_v60, 2 }
  0xe3   : > { %2467 = vmatmul.msk.bf16.gmra.mxu0 %vm230_vm1, %v1146_v4  ;;  %2506 = vmatmul.msk.bf16.gmra.mxu1 %vm230_vm1, %v1273_v5  ;;  %v1150_v17 = vsel %vm1141_vm3, %v1147_v26, %v1149_v2 }
  0xe4   : > { %v483_v10 = vpop.f32.mrf.mxu2  ;;  %v603_v11 = vpop.f32.mrf.mxu3 }
  0xe5   : > { %v500_v13 = vadd.f32 %v483_v10, %v375_v49  ;;  %v1531_v10 = vrot.slane %v1529_v0, 2 }
  0xe7   : > { %v2953_v12 = vadd.f32 %v603_v11, %v500_v13  ;;  %v1352_v11 = vld [vmem:[%s2746_s6 + $0x30] sm:$0x7] }
  0xe8   : > { %v289_v18 = vpop.f32.mrf.mxu0  ;;  %v379_v14 = vpop.f32.mrf.mxu1 }
  0xe9   : > { %v380_v20 = vadd.f32 %v379_v14, %v289_v18  ;;  %2513 = vmatmul.msk.bf16.gmra.mxu2 %vm230_vm1, %v1384_v15  ;;  %2521 = vmatmul.msk.bf16.gmra.mxu3 %vm230_vm1, %v1515_v16  ;;  %v2482_v14 = vld [vmem:[%s2746_s6 + $0x60] sm:$0xf] }
  0xea   : > { %v1261_v26 = vunpack.c.l.b16 %v2482_v14 }
  0xec   : > { %v486_v29 = vpop.f32.mrf.mxu2  ;;  %v606_v30 = vpop.f32.mrf.mxu3 }
  0xed   : > { %v501_v31 = vadd.f32 %v486_v29, %v378_v6  ;;  %v1397_v6 = vrot.slane %v1395_v59, 1  ;;  %v1356_v29 = vunpack.c.l.b16 %v1352_v11 }
  0xef   : > { %v2961_v36 = vadd.f32 %v606_v30, %v501_v31  ;;  %v1401_v25 = vor.u32 %v1400_v8, %v1397_v6  ;;  %v1532_v31 = vor.u32 %v1531_v10, %v1528_v9 }
  0xf0   : > { %v698_v38 = vpop.f32.mrf.mxu0  ;;  %v815_v39 = vpop.f32.mrf.mxu1 }
  0xf1   : > { %v728_v43 = vadd.f32 %v698_v38, %v2843_v37 }
  0xf3   : > { %v845_v44 = vadd.f32 %v815_v39, %v728_v43  ;;  %2468 = vmatmul.msk.bf16.gmra.mxu0 %vm230_vm1, %v1148_v41  ;;  %2507 = vmatmul.msk.bf16.gmra.mxu1 %vm230_vm1, %v1275_v42  ;;  %v1402_v41 = vsel %vm1358_vm4, %v1392_v46, %v1401_v25  ;;  %v1533_v42 = vsel %vm1358_vm4, %v1523_v47, %v1532_v31 }
  0xf4   : > { %v488_v48 = vpop.f32.mrf.mxu2  ;;  %v608_v49 = vpop.f32.mrf.mxu3  ;;  %v1489_v43 = vpack.c.b16 %v1488_v32, %v1261_v26 }
  0xf5   : > { %v502_v50 = vadd.f32 %v488_v48, %v380_v20 }
  0xf6   : > { %v1535_v59 = vshrl.u32 %v1489_v43, 16  ;;  %v1538_v46 = vshll.u32 %v1489_v43, 16  ;;  %v3039_v43 = vld [vmem:[%s2746_s6 + $0xa8] sm:$0xff] }
  0xf7   : > { %v2973_v54 = vadd.f32 %v608_v49, %v502_v50  ;;  %v1140_v50 = vpack.c.b16 %v1134_v34, %v1133_v33  ;;  %v2657_v34 = vld [vmem:[%s2746_s6 + $0xa0] sm:$0xf0] }
  0xf8   : > { %v700_v55 = vpop.f32.mrf.mxu0  ;;  %v817_v37 = vpop.f32.mrf.mxu1  ;;  %v1540_v6 = vrot.slane %v1538_v46, 2 }
  0xf9   : > { %v729_v57 = vadd.f32 %v700_v55, %v2859_v58  ;;  %2514 = vmatmul.msk.bf16.gmra.mxu2 %vm230_vm1, %v1393_v51  ;;  %2522 = vmatmul.msk.bf16.gmra.mxu3 %vm230_vm1, %v1524_v52  ;;  %v1276_v58 = vrot.slane %v2971_v53, 1  ;;  %v1151_v60 = vrot.slane %v1140_v50, 1  ;;  %v3044_v50 = vld [vmem:[%s2746_s6 + $0x74] sm:$0xff] }
  0xfb   : > { %v846_v62 = vadd.f32 %v817_v37, %v729_v57  ;;  %v1277_v18 = vsel %vm1141_vm3, %v1274_v28, %v1276_v58  ;;  %v1262_v28 = vunpack.c.l.b16 %v2483_v24  ;;  %v1152_v10 = vsel %vm1141_vm3, %v1149_v2, %v1151_v60 }
  0xfc   : > { %v935_v3 = vpop.f32.mrf.mxu2  ;;  %v1055_v4 = vpop.f32.mrf.mxu3 }
  0xfd   : > { %v965_v5 = vadd.f32 %v935_v3, %v845_v44  ;;  %v1268_v51 = vpack.c.b16 %v1262_v28, %v1261_v26  ;;  %v2541_v28 = vld [vmem:[%s2746_s6 + $0x6c] sm:$0xe] }
  0xff   : > { %v2988_v13 = vadd.f32 %v1055_v4, %v965_v5  ;;  %v1278_v47 = vrot.slane %v1268_v51, 1  ;;  %v1537_v5 = vrot.slane %v1535_v59, 1 }
 0x100   : > { %v703_v15 = vpop.f32.mrf.mxu0  ;;  %v820_v16 = vpop.f32.mrf.mxu1 }
 0x101   : > { %v730_v20 = vadd.f32 %v703_v15, %v2869_v7  ;;  %v1357_v7 = vpack.c.b16 %v1356_v29, %v1133_v33  ;;  %v1279_v11 = vsel %vm1141_vm3, %v1276_v58, %v1278_v47 }
 0x103   : > { %v847_v30 = vadd.f32 %v820_v16, %v730_v20  ;;  %2469 = vmatmul.msk.bf16.gmra.mxu0 %vm230_vm1, %v1150_v17  ;;  %2508 = vmatmul.msk.bf16.gmra.mxu1 %vm230_vm1, %v1277_v18  ;;  %v1404_v55 = vshrl.u32 %v1357_v7, 16  ;;  %v1407_v57 = vshll.u32 %v1357_v7, 16  ;;  %v1541_v18 = vor.u32 %v1540_v6, %v1537_v5 }
 0x104   : > { %v937_v35 = vpop.f32.mrf.mxu2  ;;  %v1057_v38 = vpop.f32.mrf.mxu3 }
 0x105   : > { %v966_v39 = vadd.f32 %v937_v35, %v846_v62  ;;  %v1406_v3 = vrot.slane %v1404_v55, 1  ;;  %v1409_v4 = vrot.slane %v1407_v57, 2  ;;  %v1542_v2 = vsel %vm1358_vm4, %v1532_v31, %v1541_v18  ;;  %v2652_v35 = vld [vmem:[%s2746_s6 + $0x6c] sm:$0xf0] }
 0x106   : > { %v1887_v57 = vshll.u32 %v3044_v50, 16 }
 0x107   : > { %v3006_v44 = vadd.f32 %v1057_v38, %v966_v39  ;;  %v1410_v17 = vor.u32 %v1409_v4, %v1406_v3  ;;  %v1787_v3 = vrot.slane %v3039_v43, 1 }
 0x108   : > { %v705_v48 = vpop.f32.mrf.mxu0  ;;  %v822_v49 = vpop.f32.mrf.mxu1 }
 0x109   : > { %v731_v52 = vadd.f32 %v705_v48, %v2876_v21  ;;  %2515 = vmatmul.msk.bf16.gmra.mxu2 %vm230_vm1, %v1402_v41  ;;  %2523 = vmatmul.msk.bf16.gmra.mxu3 %vm230_vm1, %v1533_v42  ;;  %v1411_v56 = vsel %vm1358_vm4, %v1401_v25, %v1410_v17  ;;  %v2542_v42 = vor.u32 %v2652_v35, %v2541_v28  ;;  %v2654_v35 = vld [vmem:[%s2746_s6 + $0x7c] sm:$0xff] }
 0x10b   : > { %v848_v37 = vadd.f32 %v822_v49, %v731_v52  ;;  %v1876_v52 = vshrl.u32 %v2542_v42, 16  ;;  %v1879_v55 = vshll.u32 %v2542_v42, 16 }
 0x10c   : > { %v940_v62 = vpop.f32.mrf.mxu2  ;;  %v1060_v63 = vpop.f32.mrf.mxu3 }
 0x10d   : > { %v967_v0 = vadd.f32 %v940_v62, %v847_v30  ;;  %v2018_v62 = vshll.u32 %v3039_v43, 16  ;;  %v1878_v6 = vrot.slane %v1876_v52, 1 }
 0x10f   : > { %v3011_v8 = vadd.f32 %v1060_v63, %v967_v0  ;;  %v1659_v63 = vrot.slane %v2542_v42, 1 }
 0x110   : > { %v708_v21 = vpop.f32.mrf.mxu0  ;;  %v825_v9 = vpop.f32.mrf.mxu1 }
 0x111   : > { %v732_v15 = vadd.f32 %v708_v21, %v2893_v40 }
 0x113   : > { %v849_v16 = vadd.f32 %v825_v9, %v732_v15  ;;  %2470 = vmatmul.msk.bf16.gmra.mxu0 %vm230_vm1, %v1152_v10  ;;  %2509 = vmatmul.msk.bf16.gmra.mxu1 %vm230_vm1, %v1279_v11  ;;  %v1881_v9 = vrot.slane %v1879_v55, 2  ;;  %v1889_v11 = vrot.slane %v1887_v57, 2 }
 0x114   : > { %v942_v14 = vpop.f32.mrf.mxu2  ;;  %v1062_v19 = vpop.f32.mrf.mxu3 }
 0x115   : > { %v968_v20 = vadd.f32 %v942_v14, %v848_v37  ;;  %v1884_v37 = vshrl.u32 %v3044_v50, 16 }
 0x117   : > { %v3024_v22 = vadd.f32 %v1062_v19, %v968_v20  ;;  %v1886_v10 = vrot.slane %v1884_v37, 1 }
 0x118   : > { %v710_v53 = vpop.f32.mrf.mxu0  ;;  %v827_v58 = vpop.f32.mrf.mxu1 }
 0x119   : > { %v733_v40 = vadd.f32 %v710_v53, %v2910_v61  ;;  %2516 = vmatmul.msk.bf16.gmra.mxu2 %vm230_vm1, %v1411_v56  ;;  %2524 = vmatmul.msk.bf16.gmra.mxu3 %vm230_vm1, %v1542_v2  ;;  %v2580_v61 = vld [vmem:[%s2746_s6 + $0xa0] sm:$0xe] }
 0x11a   : > { %v2581_v41 = vor.u32 %v2657_v34, %v2580_v61  ;;  %v3065_v61 = vld [vmem:[%s2746_s6 + $0xb0] sm:$0xff] }
 0x11b   : > { %v850_v23 = vadd.f32 %v827_v58, %v733_v40  ;;  %v1882_v58 = vor.u32 %v1881_v9, %v1878_v6  ;;  %v1890_v40 = vor.u32 %v1889_v11, %v1886_v10  ;;  %v2024_v42 = vshrl.u32 %v3065_v61, 16 }
 0x11c   : > { %v945_v24 = vpop.f32.mrf.mxu2  ;;  %v1065_v29 = vpop.f32.mrf.mxu3  ;;  %v2007_v59 = vshrl.u32 %v2581_v41, 16  ;;  %v1786_v0 = vrot.slane %v2581_v41, 1 }
 0x11d   : > { %v969_v25 = vadd.f32 %v945_v24, %v849_v16 }
 0x11e   : > { %v2009_v15 = vrot.slane %v2007_v59, 1  ;;  %v1788_v2 = vsel %vm1141_vm3, %v1786_v0, %v1787_v3 }
 0x11f   : > { %v3029_v30 = vadd.f32 %v1065_v29, %v969_v25 }
 0x120   : > { %v713_v31 = vpop.f32.mrf.mxu0  ;;  %v830_v26 = vpop.f32.mrf.mxu1 }
 0x121   : > { %v734_v32 = vadd.f32 %v713_v31, %v2923_v27 }
 0x123   : > { %v851_v33 = vadd.f32 %v830_v26, %v734_v32  ;;  %2471 = vmatmul.msk.bf16.gmra.mxu0 %vm230_vm1, %v1151_v60  ;;  %2510 = vmatmul.msk.bf16.gmra.mxu1 %vm230_vm1, %v1278_v47  ;;  %v2010_v60 = vshll.u32 %v2581_v41, 16  ;;  %v2015_v47 = vshrl.u32 %v3039_v43, 16  ;;  %v1891_v32 = vsel %vm1358_vm4, %v1882_v58, %v1890_v40 }
 0x124   : > { %v947_v38 = vpop.f32.mrf.mxu2  ;;  %v1067_v39 = vpop.f32.mrf.mxu3  ;;  %v1896_v41 = vshll.u32 %v2654_v35, 16  ;;  %v2027_v43 = vshll.u32 %v3065_v61, 16 }
 0x125   : > { %v970_v7 = vadd.f32 %v947_v38, %v850_v23  ;;  %v2012_v16 = vrot.slane %v2010_v60, 2 }
 0x126   : > { %v1898_v37 = vrot.slane %v1896_v41, 2  ;;  %v2029_v57 = vrot.slane %v2027_v43, 2 }
 0x127   : > { %v3041_v48 = vadd.f32 %v1067_v39, %v970_v7  ;;  %v2013_v24 = vor.u32 %v2012_v16, %v2009_v15  ;;  %v1893_v39 = vshrl.u32 %v2654_v35, 16  ;;  %v2655_v16 = vld [vmem:[%s2746_s6 + $0x84] sm:$0xff] }
 0x128   : > { %v715_v27 = vpop.f32.mrf.mxu0  ;;  %v832_v49 = vpop.f32.mrf.mxu1 }
 0x129   : > { %v735_v51 = vadd.f32 %v715_v27, %v2934_v45  ;;  %2517 = vmatmul.msk.bf16.gmra.mxu2 %vm230_vm1, %v1410_v17  ;;  %2525 = vmatmul.msk.bf16.gmra.mxu3 %vm230_vm1, %v1541_v18  ;;  %v1660_v45 = vrot.slane %v3044_v50, 1  ;;  %v2017_v17 = vrot.slane %v2015_v47, 1  ;;  %v2020_v18 = vrot.slane %v2018_v62, 2 }
 0x12a   : > { %v1662_v27 = vrot.slane %v2654_v35, 1  ;;  %v1895_v55 = vrot.slane %v1893_v39, 1 }
 0x12b   : > { %v852_v46 = vadd.f32 %v832_v49, %v735_v51  ;;  %v1661_v56 = vsel %vm1141_vm3, %v1659_v63, %v1660_v45  ;;  %v2021_v29 = vor.u32 %v2020_v18, %v2017_v17  ;;  %v1789_v49 = vrot.slane %v3065_v61, 1 }
 0x12c   : > { %v950_v4 = vpop.f32.mrf.mxu2  ;;  %v1070_v5 = vpop.f32.mrf.mxu3  ;;  %v1663_v47 = vsel %vm1141_vm3, %v1660_v45, %v1662_v27  ;;  %v3086_v45 = vld [vmem:[%s2746_s6 + $0xb8] sm:$0xff]  ;;  %v1902_v18 = vshrl.u32 %v2655_v16, 16 }
 0x12d   : > { %v971_v21 = vadd.f32 %v950_v4, %v851_v33  ;;  %v2022_v33 = vsel %vm1358_vm4, %v2013_v24, %v2021_v29  ;;  %v1790_v62 = vsel %vm1141_vm3, %v1787_v3, %v1789_v49  ;;  %v1899_v4 = vor.u32 %v1898_v37, %v1895_v55 }
 0x12e   : > { %v1791_v58 = vrot.slane %v3086_v45, 1 }
 0x12f   : > { %v3055_v14 = vadd.f32 %v1070_v5, %v971_v21  ;;  %v1900_v10 = vsel %vm1358_vm4, %v1890_v40, %v1899_v4 }
 0x130   : > { %v718_v19 = vpop.f32.mrf.mxu0  ;;  %v835_v20 = vpop.f32.mrf.mxu1 }
 0x131   : > { %v736_v53 = vadd.f32 %v718_v19, %v2942_v1 }
 0x133   : > { %v853_v23 = vadd.f32 %v835_v20, %v736_v53  ;;  %2559 = vmatmul.msk.bf16.vlgmr.msrb.gmra.mxu0 %vm230_vm1, %v1661_v56  ;;  %2598 = vmatmul.msk.bf16.vlgmr.msrb.gmra.mxu1 %vm230_vm1, %v1788_v2  ;;  %v1905_v20 = vshll.u32 %v2655_v16, 16  ;;  %v2033_v56 = vshrl.u32 %v3086_v45, 16  ;;  %v2036_v2 = vshll.u32 %v3086_v45, 16 }
 0x134   : > { %v952_v25 = vpop.f32.mrf.mxu2  ;;  %v1072_v31 = vpop.f32.mrf.mxu3  ;;  %v1664_v53 = vrot.slane %v2655_v16, 1  ;;  %v2575_v16 = vld [vmem:[%s2746_s6 + $0xc8] sm:$0xf] }
 0x135   : > { %v972_v26 = vadd.f32 %v952_v25, %v852_v46  ;;  %v1907_v25 = vrot.slane %v1905_v20, 2  ;;  %v2537_v20 = vld [vmem:[%s2746_s6 + $0x98] sm:$0x3] }
 0x136   : > { %v1665_v61 = vsel %vm1141_vm3, %v1662_v27, %v1664_v53  ;;  %v3107_v27 = vld [vmem:[%s2746_s6 + $0xc0] sm:$0xff] }
 0x137   : > { %v3067_v1 = vadd.f32 %v1072_v31, %v972_v26  ;;  %v2038_v31 = vrot.slane %v2036_v2, 2 }
 0x138   : > { %v720_v34 = vpop.f32.mrf.mxu0  ;;  %v837_v28 = vpop.f32.mrf.mxu1 }
 0x139   : > { %v737_v38 = vadd.f32 %v720_v34, %v2953_v12  ;;  %2606 = vmatmul.msk.bf16.vlgmr.msrb.gmra.mxu2 %vm230_vm1, %v1891_v32  ;;  %2614 = vmatmul.msk.bf16.vlgmr.msrb.gmra.mxu3 %vm230_vm1, %v2022_v33  ;;  %v2026_v12 = vrot.slane %v2024_v42, 1  ;;  %v1792_v34 = vsel %vm1141_vm3, %v1789_v49, %v1791_v58 }
 0x13b   : > { %v854_v7 = vadd.f32 %v837_v28, %v737_v38  ;;  %v2030_v5 = vor.u32 %v2029_v57, %v2026_v12 }
 0x13c   : > { %v955_v50 = vpop.f32.mrf.mxu2  ;;  %v1075_v51 = vpop.f32.mrf.mxu3 }
 0x13d   : > { %v973_v52 = vadd.f32 %v955_v50, %v853_v23  ;;  %v2031_v11 = vsel %vm1358_vm4, %v2021_v29, %v2030_v5  ;;  %v1904_v29 = vrot.slane %v1902_v18, 1 }
 0x13f   : > { %v3076_v59 = vadd.f32 %v1075_v51, %v973_v52  ;;  %v1908_v38 = vor.u32 %v1907_v25, %v1904_v29  ;;  %v3112_v52 = vld [vmem:[%s2746_s6 + $0x8c] sm:$0xff] }
 0x140   : > { %v723_v46 = vpop.f32.mrf.mxu0  ;;  %v840_v60 = vpop.f32.mrf.mxu1  ;;  %v1911_v37 = vshrl.u32 %v3112_v52, 16  ;;  %v1914_v12 = vshll.u32 %v3112_v52, 16 }
 0x141   : > { %v738_v63 = vadd.f32 %v723_v46, %v2961_v36  ;;  %v1909_v43 = vsel %vm1358_vm4, %v1899_v4, %v1908_v38  ;;  %v2042_v46 = vshrl.u32 %v3107_v27, 16 }
 0x142   : > { %v1913_v4 = vrot.slane %v1911_v37, 1 }
 0x143   : > { %v855_v0 = vadd.f32 %v840_v60, %v738_v63  ;;  %2560 = vmatmul.msk.bf16.gmra.mxu0 %vm230_vm1, %v1663_v47  ;;  %2599 = vmatmul.msk.bf16.gmra.mxu1 %vm230_vm1, %v1790_v62  ;;  %v2045_v60 = vshll.u32 %v3107_v27, 16  ;;  %v1666_v47 = vrot.slane %v3112_v52, 1 }
 0x144   : > { %v957_v6 = vpop.f32.mrf.mxu2  ;;  %v1077_v21 = vpop.f32.mrf.mxu3 }
 0x145   : > { %v974_v9 = vadd.f32 %v957_v6, %v854_v7  ;;  %v2044_v6 = vrot.slane %v2042_v46, 1 }
 0x147   : > { %v3088_v3 = vadd.f32 %v1077_v21, %v974_v9  ;;  %v2047_v21 = vrot.slane %v2045_v60, 2  ;;  %v2604_v9 = vld [vmem:[%s2746_s6 + $0x98] sm:$0x7] }
 0x148   : > { %v725_v15 = vpop.f32.mrf.mxu0  ;;  %v842_v36 = vpop.f32.mrf.mxu1 }
 0x149   : > { %v739_v17 = vadd.f32 %v725_v15, %v2973_v54  ;;  %2607 = vmatmul.msk.bf16.gmra.mxu2 %vm230_vm1, %v1900_v10  ;;  %2615 = vmatmul.msk.bf16.gmra.mxu3 %vm230_vm1, %v2031_v11  ;;  %v2035_v54 = vrot.slane %v2033_v56, 1  ;;  %v1667_v15 = vsel %vm1141_vm3, %v1664_v53, %v1666_v47  ;;  %v2576_v56 = vld [vmem:[%s2746_s6 + $0xcc] sm:$0x3]  ;;  %v1778_v53 = vunpack.c.l.b16 %v2575_v16 }
 0x14b   : > { %v856_v19 = vadd.f32 %v842_v36, %v739_v17  ;;  %v2039_v39 = vor.u32 %v2038_v31, %v2035_v54  ;;  %v2612_v17 = vld [vmem:[%s2746_s6 + $0xcc] sm:$0x7]  ;;  %v1652_v54 = vunpack.c.l.b16 %v2537_v20 }
 0x14c   : > { %v960_v40 = vpop.f32.mrf.mxu2  ;;  %v1080_v23 = vpop.f32.mrf.mxu3  ;;  %v2004_v29 = vunpack.c.l.b16 %v2612_v17 }
 0x14d   : > { %v975_v24 = vadd.f32 %v960_v40, %v855_v0  ;;  %v2040_v50 = vsel %vm1358_vm4, %v2030_v5, %v2039_v39  ;;  %v1916_v5 = vrot.slane %v1914_v12, 2  ;;  %v1873_v40 = vunpack.c.l.b16 %v2604_v9 }
 0x14f   : > { %v3097_v26 = vadd.f32 %v1080_v23, %v975_v24  ;;  %v1917_v2 = vor.u32 %v1916_v5, %v1913_v4  ;;  %v2048_v24 = vor.u32 %v2047_v21, %v2044_v6 }
 0x150   : > { %v1183_v32 = vpop.f32.mrf.mxu0  ;;  %v1310_v33 = vpop.f32.mrf.mxu1 }
 0x151   : > { %v1213_v28 = vadd.f32 %v1183_v32, %v2988_v13 }
 0x153   : > { %v1340_v35 = vadd.f32 %v1310_v33, %v1213_v28  ;;  %2561 = vmatmul.msk.bf16.gmra.mxu0 %vm230_vm1, %v1665_v61  ;;  %2600 = vmatmul.msk.bf16.gmra.mxu1 %vm230_vm1, %v1792_v34  ;;  %v1918_v61 = vsel %vm1358_vm4, %v1908_v38, %v1917_v2  ;;  %v2049_v34 = vsel %vm1358_vm4, %v2039_v39, %v2048_v24 }
 0x154   : > { %v962_v7 = vpop.f32.mrf.mxu2  ;;  %v1082_v41 = vpop.f32.mrf.mxu3  ;;  %v2005_v28 = vpack.c.b16 %v2004_v29, %v1778_v53 }
 0x155   : > { %v976_v42 = vadd.f32 %v962_v7, %v856_v19  ;;  %v2536_v19 = vld [vmem:[%s2746_s6 + $0x94] sm:$0xf] }
 0x156   : > { %v1651_v25 = vunpack.c.l.b16 %v2536_v19  ;;  %v2051_v37 = vshrl.u32 %v2005_v28, 16  ;;  %v2054_v38 = vshll.u32 %v2005_v28, 16 }
 0x157   : > { %v3109_v49 = vadd.f32 %v1082_v41, %v976_v42 }
 0x158   : > { %v1185_v51 = vpop.f32.mrf.mxu0  ;;  %v1312_v13 = vpop.f32.mrf.mxu1  ;;  %v1658_v42 = vpack.c.b16 %v1652_v54, %v1651_v25  ;;  %v2056_v4 = vrot.slane %v2054_v38, 2 }
 0x159   : > { %v1214_v55 = vadd.f32 %v1185_v51, %v3006_v44  ;;  %2608 = vmatmul.msk.bf16.gmra.mxu2 %vm230_vm1, %v1909_v43  ;;  %2616 = vmatmul.msk.bf16.gmra.mxu3 %vm230_vm1, %v2040_v50  ;;  %v1793_v44 = vrot.slane %v3107_v27, 1 }
 0x15a   : > { %v1668_v12 = vrot.slane %v1658_v42, 1 }
 0x15b   : > { %v1341_v57 = vadd.f32 %v1312_v13, %v1214_v55  ;;  %v1794_v36 = vsel %vm1141_vm3, %v1791_v58, %v1793_v44  ;;  %v1779_v58 = vunpack.c.l.b16 %v2576_v56 }
 0x15c   : > { %v1442_v62 = vpop.f32.mrf.mxu2  ;;  %v1573_v63 = vpop.f32.mrf.mxu3  ;;  %v1669_v21 = vsel %vm1141_vm3, %v1666_v47, %v1668_v12 }
 0x15d   : > { %v1472_v0 = vadd.f32 %v1442_v62, %v1340_v35  ;;  %v1785_v43 = vpack.c.b16 %v1779_v58, %v1778_v53 }
 0x15f   : > { %v3124_v10 = vadd.f32 %v1573_v63, %v1472_v0  ;;  %v1795_v39 = vrot.slane %v1785_v43, 1  ;;  %v2053_v0 = vrot.slane %v2051_v37, 1 }
 0x160   : > { %v1188_v11 = vpop.f32.mrf.mxu0  ;;  %v1315_v45 = vpop.f32.mrf.mxu1 }
 0x161   : > { %v1215_v18 = vadd.f32 %v1188_v11, %v3011_v8  ;;  %v1874_v8 = vpack.c.b16 %v1873_v40, %v1651_v25  ;;  %v1796_v9 = vsel %vm1141_vm3, %v1793_v44, %v1795_v39 }
 0x163   : > { %v1342_v23 = vadd.f32 %v1315_v45, %v1215_v18  ;;  %2562 = vmatmul.msk.bf16.gmra.mxu0 %vm230_vm1, %v1667_v15  ;;  %2601 = vmatmul.msk.bf16.gmra.mxu1 %vm230_vm1, %v1794_v36  ;;  %v1920_v51 = vshrl.u32 %v1874_v8, 16  ;;  %v1923_v55 = vshll.u32 %v1874_v8, 16  ;;  %v2057_v36 = vor.u32 %v2056_v4, %v2053_v0 }
 0x164   : > { %v1444_v31 = vpop.f32.mrf.mxu2  ;;  %v1575_v32 = vpop.f32.mrf.mxu3 }
 0x165   : > { %v1473_v33 = vadd.f32 %v1444_v31, %v1341_v57  ;;  %v1922_v62 = vrot.slane %v1920_v51, 1  ;;  %v1925_v63 = vrot.slane %v1923_v55, 2  ;;  %v2058_v47 = vsel %vm1358_vm4, %v2048_v24, %v2057_v36 }
 0x167   : > { %v3142_v35 = vadd.f32 %v1575_v32, %v1473_v33  ;;  %v1926_v15 = vor.u32 %v1925_v63, %v1922_v62 }
 0x168   : > { %v1190_v7 = vpop.f32.mrf.mxu0  ;;  %v1317_v41 = vpop.f32.mrf.mxu1 }
 0x169   : > { %v1216_v50 = vadd.f32 %v1190_v7, %v3024_v22  ;;  %2609 = vmatmul.msk.bf16.gmra.mxu2 %vm230_vm1, %v1918_v61  ;;  %2617 = vmatmul.msk.bf16.gmra.mxu3 %vm230_vm1, %v2049_v34  ;;  %v1927_v52 = vsel %vm1358_vm4, %v1917_v2, %v1926_v15 }
 0x16b   : > { %v1343_v13 = vadd.f32 %v1317_v41, %v1216_v50 }
 0x16c   : > { %v1447_v57 = vpop.f32.mrf.mxu2  ;;  %v1578_v46 = vpop.f32.mrf.mxu3 }
 0x16d   : > { %v1474_v60 = vadd.f32 %v1447_v57, %v1342_v23 }
 0x16f   : > { %v3147_v5 = vadd.f32 %v1578_v46, %v1474_v60 }
 0x170   : > { %v1193_v22 = vpop.f32.mrf.mxu0  ;;  %v1320_v6 = vpop.f32.mrf.mxu1 }
 0x171   : > { %v1217_v11 = vadd.f32 %v1193_v22, %v3029_v30 }
 0x173   : > { %v1344_v45 = vadd.f32 %v1320_v6, %v1217_v11  ;;  %2563 = vmatmul.msk.bf16.gmra.mxu0 %vm230_vm1, %v1669_v21  ;;  %2602 = vmatmul.msk.bf16.gmra.mxu1 %vm230_vm1, %v1796_v9 }
 0x174   : > { %v1449_v16 = vpop.f32.mrf.mxu2  ;;  %v1580_v17 = vpop.f32.mrf.mxu3 }
 0x175   : > { %v1475_v18 = vadd.f32 %v1449_v16, %v1343_v13 }
 0x177   : > { %v3160_v19 = vadd.f32 %v1580_v17, %v1475_v18 }
 0x178   : > { %v1195_v27 = vpop.f32.mrf.mxu0  ;;  %v1322_v44 = vpop.f32.mrf.mxu1 }
 0x179   : > { %v1218_v30 = vadd.f32 %v1195_v27, %v3041_v48  ;;  %2610 = vmatmul.msk.bf16.gmra.mxu2 %vm230_vm1, %v1927_v52  ;;  %2618 = vmatmul.msk.bf16.gmra.mxu3 %vm230_vm1, %v2058_v47 }
 0x17b   : > { %v1345_v20 = vadd.f32 %v1322_v44, %v1218_v30 }
 0x17c   : > { %v1452_v56 = vpop.f32.mrf.mxu2  ;;  %v1583_v40 = vpop.f32.mrf.mxu3 }
 0x17d   : > { %v1476_v23 = vadd.f32 %v1452_v56, %v1344_v45 }
 0x17f   : > { %v3165_v53 = vadd.f32 %v1583_v40, %v1476_v23 }
 0x180   : > { %v1198_v29 = vpop.f32.mrf.mxu0  ;;  %v1325_v2 = vpop.f32.mrf.mxu1 }
 0x181   : > { %v1219_v24 = vadd.f32 %v1198_v29, %v3055_v14 }
 0x183   : > { %v1346_v25 = vadd.f32 %v1325_v2, %v1219_v24  ;;  %2564 = vmatmul.msk.bf16.gmra.mxu0 %vm230_vm1, %v1668_v12  ;;  %2603 = vmatmul.msk.bf16.gmra.mxu1 %vm230_vm1, %v1795_v39  ;;  %v3195_v24 = vld [vmem:[%s3254_s2] ss:$0 sm:$0xff] }
 0x184   : > { %v1454_v48 = vpop.f32.mrf.mxu2  ;;  %v1585_v54 = vpop.f32.mrf.mxu3 }
 0x185   : > { %v1477_v58 = vadd.f32 %v1454_v48, %v1345_v20 }
 0x187   : > { %v3170_v31 = vadd.f32 %v1585_v54, %v1477_v58 }
 0x188   : > { %v1200_v32 = vpop.f32.mrf.mxu0  ;;  %v1327_v33 = vpop.f32.mrf.mxu1 }
 0x189   : > { %v1220_v8 = vadd.f32 %v1200_v32, %v3067_v1  ;;  %2611 = vmatmul.msk.bf16.gmra.mxu2 %vm230_vm1, %v1926_v15  ;;  %2619 = vmatmul.msk.bf16.gmra.mxu3 %vm230_vm1, %v2057_v36 }
 0x18b   : > { %v1347_v61 = vadd.f32 %v1327_v33, %v1220_v8 }
 0x18c   : > { %v1457_v14 = vpop.f32.mrf.mxu2  ;;  %v1588_v34 = vpop.f32.mrf.mxu3 }
 0x18d   : > { %v1478_v28 = vadd.f32 %v1457_v14, %v1346_v25 }
 0x18f   : > { %v3175_v7 = vadd.f32 %v1588_v34, %v1478_v28 }
 0x190   : > { %v1203_v41 = vpop.f32.mrf.mxu0  ;;  %v1330_v42 = vpop.f32.mrf.mxu1 }
 0x191   : > { %v1221_v43 = vadd.f32 %v1203_v41, %v3076_v59 }
 0x193   : > { %v1348_v50 = vadd.f32 %v1330_v42, %v1221_v43 }
 0x194   : > { %v1459_v51 = vpop.f32.mrf.mxu2  ;;  %v1590_v13 = vpop.f32.mrf.mxu3 }
 0x195   : > { %v1479_v55 = vadd.f32 %v1459_v51, %v1347_v61 }
 0x197   : > { %v3178_v37 = vadd.f32 %v1590_v13, %v1479_v55 }
 0x198   : > { %v1205_v1 = vpop.f32.mrf.mxu0  ;;  %v1332_v38 = vpop.f32.mrf.mxu1 }
 0x199   : > { %v1222_v12 = vadd.f32 %v1205_v1, %v3088_v3 }
 0x19b   : > { %v1349_v39 = vadd.f32 %v1332_v38, %v1222_v12 }
 0x19c   : > { %v1462_v57 = vpop.f32.mrf.mxu2  ;;  %v1593_v46 = vpop.f32.mrf.mxu3 }
 0x19d   : > { %v1480_v60 = vadd.f32 %v1462_v57, %v1348_v50 }
 0x19f   : > { %v3181_v62 = vadd.f32 %v1593_v46, %v1480_v60 }
 0x1a0   : > { %v1208_v63 = vpop.f32.mrf.mxu0  ;;  %v1335_v0 = vpop.f32.mrf.mxu1 }
 0x1a1   : > { %v1223_v59 = vadd.f32 %v1208_v63, %v3097_v26 }
 0x1a3   : > { %v1350_v4 = vadd.f32 %v1335_v0, %v1223_v59 }
 0x1a4   : > { %v1464_v22 = vpop.f32.mrf.mxu2  ;;  %v1595_v6 = vpop.f32.mrf.mxu3 }
 0x1a5   : > { %v1481_v21 = vadd.f32 %v1464_v22, %v1349_v39 }
 0x1a7   : > { %v3184_v9 = vadd.f32 %v1595_v6, %v1481_v21 }
 0x1a8   : > { %v1210_v11 = vpop.f32.mrf.mxu0  ;;  %v1337_v45 = vpop.f32.mrf.mxu1 }
 0x1a9   : > { %v1224_v3 = vadd.f32 %v1210_v11, %v3109_v49 }
 0x1ab   : > { %v1351_v15 = vadd.f32 %v1337_v45, %v1224_v3 }
 0x1ac   : > { %v1467_v36 = vpop.f32.mrf.mxu2  ;;  %v1598_v16 = vpop.f32.mrf.mxu3 }
 0x1ad   : > { %v1482_v17 = vadd.f32 %v1467_v36, %v1350_v4 }
 0x1af   : > { %v3187_v18 = vadd.f32 %v1598_v16, %v1482_v17 }
 0x1b0   : > { %v1700_v52 = vpop.f32.mrf.mxu0  ;;  %v1827_v47 = vpop.f32.mrf.mxu1 }
 0x1b1   : > { %v1730_v30 = vadd.f32 %v1700_v52, %v3124_v10 }
 0x1b3   : > { %v1857_v23 = vadd.f32 %v1827_v47, %v1730_v30 }
 0x1b4   : > { %v1469_v27 = vpop.f32.mrf.mxu2  ;;  %v1600_v26 = vpop.f32.mrf.mxu3 }
 0x1b5   : > { %v1483_v44 = vadd.f32 %v1469_v27, %v1351_v15 }
 0x1b7   : > { %v3190_v20 = vadd.f32 %v1600_v26, %v1483_v44 }
 0x1b8   : > { %v1702_v56 = vpop.f32.mrf.mxu0  ;;  %v1829_v40 = vpop.f32.mrf.mxu1 }
 0x1b9   : > { %v1731_v25 = vadd.f32 %v1702_v56, %v3142_v35 }
 0x1bb   : > { %v1858_v32 = vadd.f32 %v1829_v40, %v1731_v25 }
 0x1bc   : > { %v1958_v49 = vpop.f32.mrf.mxu2  ;;  %v2089_v29 = vpop.f32.mrf.mxu3 }
 0x1bd   : > { %v1988_v2 = vadd.f32 %v1958_v49, %v1857_v23 }
 0x1bf   : > { %v2119_v48 = vadd.f32 %v2089_v29, %v1988_v2 }
 0x1c0   : > { %v1705_v54 = vpop.f32.mrf.mxu0  ;;  %v1832_v58 = vpop.f32.mrf.mxu1 }
 0x1c1   : > { %v2135_v10 = vadd.f32 %v3195_v24, %v2119_v48  ;;  %v1732_v28 = vadd.f32 %v1705_v54, %v3147_v5 }
 0x1c3   : > { %vm2147_vm5 = vcmp.ge.f32.partialorder %v2135_v10, 0.0  ;;  %v2159_v33 = vmul.f32 0.2, %v2135_v10  ;;  %v1859_v51 = vadd.f32 %v1832_v58, %v1732_v28 }
 0x1c4   : > { %v1960_v8 = vpop.f32.mrf.mxu2  ;;  %v2091_v61 = vpop.f32.mrf.mxu3 }
 0x1c5   : > { %v2171_v14 = vsel %vm2147_vm5, %v2135_v10, %v2159_v33  ;;  %v1989_v35 = vadd.f32 %v1960_v8, %v1858_v32 }
 0x1c6   : > { %v2183_v34 = vpack.c.bf16 %v2171_v14, %v2171_v14 }
 0x1c7   : > { %v2120_v41 = vadd.f32 %v2091_v61, %v1989_v35 }
 0x1c8   : > { %v1707_v42 = vpop.f32.mrf.mxu0  ;;  %v1834_v43 = vpop.f32.mrf.mxu1  ;;  %2196 = vst.msk [vmem:[%s3203_s30] sm:$0xf] %vm2195_vm6, %v2183_v34 }
 0x1c9   : > { %v2136_v50 = vadd.f32 %v3195_v24, %v2120_v41  ;;  %v1733_v57 = vadd.f32 %v1707_v42, %v3160_v19 }
 0x1cb   : > { %vm2148_vm7 = vcmp.ge.f32.partialorder %v2136_v50, 0.0  ;;  %v2160_v13 = vmul.f32 0.2, %v2136_v50  ;;  %v1860_v0 = vadd.f32 %v1834_v43, %v1733_v57 }
 0x1cc   : > { %v1963_v55 = vpop.f32.mrf.mxu2  ;;  %v2094_v1 = vpop.f32.mrf.mxu3 }
 0x1cd   : > { %v2172_v38 = vsel %vm2148_vm7, %v2136_v50, %v2160_v13  ;;  %v1990_v12 = vadd.f32 %v1963_v55, %v1859_v51 }
 0x1ce   : > { %v2184_v39 = vpack.c.bf16 %v2172_v38, %v2172_v38 }
 0x1cf   : > { %v2121_v46 = vadd.f32 %v2094_v1, %v1990_v12 }
 0x1d0   : > { %v1710_v5 = vpop.f32.mrf.mxu0  ;;  %v1837_v60 = vpop.f32.mrf.mxu1  ;;  %2197 = vst.msk [vmem:[%s3203_s30 + $0x4] sm:$0xf] %vm2195_vm6, %v2184_v39 }
 0x1d1   : > { %v2137_v63 = vadd.f32 %v3195_v24, %v2121_v46  ;;  %v1734_v45 = vadd.f32 %v1710_v5, %v3165_v53 }
 0x1d3   : > { %vm2149_vm8 = vcmp.ge.f32.partialorder %v2137_v63, 0.0  ;;  %v2161_v59 = vmul.f32 0.2, %v2137_v63  ;;  %v1861_v16 = vadd.f32 %v1837_v60, %v1734_v45 }
 0x1d4   : > { %v1965_v4 = vpop.f32.mrf.mxu2  ;;  %v2096_v22 = vpop.f32.mrf.mxu3 }
 0x1d5   : > { %v2173_v6 = vsel %vm2149_vm8, %v2137_v63, %v2161_v59  ;;  %v1991_v21 = vadd.f32 %v1965_v4, %v1860_v0 }
 0x1d6   : > { %v2185_v11 = vpack.c.bf16 %v2173_v6, %v2173_v6 }
 0x1d7   : > { %v2122_v3 = vadd.f32 %v2096_v22, %v1991_v21 }
 0x1d8   : > { %v1712_v19 = vpop.f32.mrf.mxu0  ;;  %v1839_v15 = vpop.f32.mrf.mxu1  ;;  %2198 = vst.msk [vmem:[%s3203_s30 + $0x8] sm:$0xf] %vm2195_vm6, %v2185_v11 }
 0x1d9   : > { %v2138_v36 = vadd.f32 %v3195_v24, %v2122_v3  ;;  %v1735_v30 = vadd.f32 %v1712_v19, %v3170_v31 }
 0x1db   : > { %vm2150_vm9 = vcmp.ge.f32.partialorder %v2138_v36, 0.0  ;;  %v2162_v17 = vmul.f32 0.2, %v2138_v36  ;;  %v1862_v49 = vadd.f32 %v1839_v15, %v1735_v30 }
 0x1dc   : > { %v1968_v52 = vpop.f32.mrf.mxu2  ;;  %v2099_v47 = vpop.f32.mrf.mxu3 }
 0x1dd   : > { %v2174_v27 = vsel %vm2150_vm9, %v2138_v36, %v2162_v17  ;;  %v1992_v26 = vadd.f32 %v1968_v52, %v1861_v16 }
 0x1de   : > { %v2186_v44 = vpack.c.bf16 %v2174_v27, %v2174_v27 }
 0x1df   : > { %v2123_v56 = vadd.f32 %v2099_v47, %v1992_v26 }
 0x1e0   : > { %v1715_v53 = vpop.f32.mrf.mxu0  ;;  %v1842_v40 = vpop.f32.mrf.mxu1  ;;  %2199 = vst.msk [vmem:[%s3203_s30 + $0xc] sm:$0xf] %vm2195_vm6, %v2186_v44 }
 0x1e1   : > { %v2139_v23 = vadd.f32 %v3195_v24, %v2123_v56  ;;  %v1736_v10 = vadd.f32 %v1715_v53, %v3175_v7 }
 0x1e3   : > { %vm2151_vm10 = vcmp.ge.f32.partialorder %v2139_v23, 0.0  ;;  %v2163_v29 = vmul.f32 0.2, %v2139_v23  ;;  %v1863_v61 = vadd.f32 %v1842_v40, %v1736_v10 }
 0x1e4   : > { %v1970_v2 = vpop.f32.mrf.mxu2  ;;  %v2101_v25 = vpop.f32.mrf.mxu3 }
 0x1e5   : > { %v2175_v48 = vsel %vm2151_vm10, %v2139_v23, %v2163_v29  ;;  %v1993_v54 = vadd.f32 %v1970_v2, %v1862_v49 }
 0x1e6   : > { %v2187_v58 = vpack.c.bf16 %v2175_v48, %v2175_v48 }
 0x1e7   : > { %v2124_v32 = vadd.f32 %v2101_v25, %v1993_v54 }
 0x1e8   : > { %v1717_v31 = vpop.f32.mrf.mxu0  ;;  %v1844_v33 = vpop.f32.mrf.mxu1  ;;  %2200 = vst.msk [vmem:[%s3203_s30 + $0x10] sm:$0xf] %vm2195_vm6, %v2187_v58 }
 0x1e9   : > { %v2140_v8 = vadd.f32 %v3195_v24, %v2124_v32  ;;  %v1737_v43 = vadd.f32 %v1717_v31, %v3178_v37 }
 0x1eb   : > { %vm2152_vm11 = vcmp.ge.f32.partialorder %v2140_v8, 0.0  ;;  %v2164_v14 = vmul.f32 0.2, %v2140_v8  ;;  %v1864_v55 = vadd.f32 %v1844_v33, %v1737_v43 }
 0x1ec   : > { %v1973_v35 = vpop.f32.mrf.mxu2  ;;  %v2104_v34 = vpop.f32.mrf.mxu3 }
 0x1ed   : > { %v2176_v28 = vsel %vm2152_vm11, %v2140_v8, %v2164_v14  ;;  %v1994_v41 = vadd.f32 %v1973_v35, %v1863_v61 }
 0x1ee   : > { %v2188_v42 = vpack.c.bf16 %v2176_v28, %v2176_v28 }
 0x1ef   : > { %v2125_v50 = vadd.f32 %v2104_v34, %v1994_v41 }
 0x1f0   : > { %v1720_v7 = vpop.f32.mrf.mxu0  ;;  %2201 = vst.msk [vmem:[%s3203_s30 + $0x14] sm:$0xf] %vm2195_vm6, %v2188_v42  ;;  %v1847_v13 = vpop.f32.mrf.mxu1 }
 0x1f1   : > { %v2141_v51 = vadd.f32 %v3195_v24, %v2125_v50  ;;  %v1738_v5 = vadd.f32 %v1720_v7, %v3181_v62 }
 0x1f3   : > { %vm2153_vm12 = vcmp.ge.f32.partialorder %v2141_v51, 0.0  ;;  %v2165_v1 = vmul.f32 0.2, %v2141_v51  ;;  %v1865_v0 = vadd.f32 %v1847_v13, %v1738_v5 }
 0x1f4   : > { %v1975_v38 = vpop.f32.mrf.mxu2  ;;  %v2106_v12 = vpop.f32.mrf.mxu3 }
 0x1f5   : > { %v2177_v39 = vsel %vm2153_vm12, %v2141_v51, %v2165_v1  ;;  %v1995_v57 = vadd.f32 %v1975_v38, %v1864_v55 }
 0x1f6   : > { %v2189_v46 = vpack.c.bf16 %v2177_v39, %v2177_v39 }
 0x1f7   : > { %v2126_v37 = vadd.f32 %v2106_v12, %v1995_v57 }
 0x1f8   : > { %v1722_v60 = vpop.f32.mrf.mxu0  ;;  %2202 = vst.msk [vmem:[%s3203_s30 + $0x18] sm:$0xf] %vm2195_vm6, %v2189_v46  ;;  %v1849_v4 = vpop.f32.mrf.mxu1 }
 0x1f9   : > { %v2142_v63 = vadd.f32 %v3195_v24, %v2126_v37  ;;  %v1739_v3 = vadd.f32 %v1722_v60, %v3184_v9 }
 0x1fb   : > { %vm2154_vm13 = vcmp.ge.f32.partialorder %v2142_v63, 0.0  ;;  %v2166_v59 = vmul.f32 0.2, %v2142_v63  ;;  %v1866_v36 = vadd.f32 %v1849_v4, %v1739_v3 }
 0x1fc   : > { %v1978_v22 = vpop.f32.mrf.mxu2  ;;  %v2109_v6 = vpop.f32.mrf.mxu3 }
 0x1fd   : > { %v2178_v21 = vsel %vm2154_vm13, %v2142_v63, %v2166_v59  ;;  %v1996_v11 = vadd.f32 %v1978_v22, %v1865_v0 }
 0x1fe   : > { %v2190_v45 = vpack.c.bf16 %v2178_v21, %v2178_v21 }
 0x1ff   : > { %v2127_v62 = vadd.f32 %v2109_v6, %v1996_v11 }
 0x200   : > { %2203 = vst.msk [vmem:[%s3203_s30 + $0x1c] sm:$0xf] %vm2195_vm6, %v2190_v45  ;;  %v1725_v15 = vpop.f32.mrf.mxu0  ;;  %v1852_v44 = vpop.f32.mrf.mxu1 }
 0x201   : > { %v2143_v19 = vadd.f32 %v3195_v24, %v2127_v62  ;;  %v1740_v30 = vadd.f32 %v1725_v15, %v3187_v18 }
 0x203   : > { %vm2155_vm14 = vcmp.ge.f32.partialorder %v2143_v19, 0.0  ;;  %v2167_v16 = vmul.f32 0.2, %v2143_v19  ;;  %v1867_v53 = vadd.f32 %v1852_v44, %v1740_v30 }
 0x204   : > { %v1980_v17 = vpop.f32.mrf.mxu2  ;;  %v2111_v52 = vpop.f32.mrf.mxu3 }
 0x205   : > { %v2179_v47 = vsel %vm2155_vm14, %v2143_v19, %v2167_v16  ;;  %v1997_v27 = vadd.f32 %v1980_v17, %v1866_v36 }
 0x206   : > { %v2191_v26 = vpack.c.bf16 %v2179_v47, %v2179_v47 }
 0x207   : > { %v2128_v9 = vadd.f32 %v2111_v52, %v1997_v27 }
 0x208   : > { %2204 = vst.msk [vmem:[%s3203_s30 + $0x20] sm:$0xf] %vm2195_vm6, %v2191_v26  ;;  %v1727_v23 = vpop.f32.mrf.mxu0  ;;  %v1854_v18 = vpop.f32.mrf.mxu1 }
 0x209   : > { %v2144_v56 = vadd.f32 %v3195_v24, %v2128_v9  ;;  %v1741_v54 = vadd.f32 %v1727_v23, %v3190_v20 }
 0x20b   : > { %vm2156_vm15 = vcmp.ge.f32.partialorder %v2144_v56, 0.0  ;;  %v2168_v40 = vmul.f32 0.2, %v2144_v56  ;;  %v1868_v32 = vadd.f32 %v1854_v18, %v1741_v54 }
 0x20c   : > { %v1983_v49 = vpop.f32.mrf.mxu2  ;;  %v2114_v29 = vpop.f32.mrf.mxu3 }
 0x20d   : > { %v2180_v2 = vsel %vm2156_vm15, %v2144_v56, %v2168_v40  ;;  %v1998_v25 = vadd.f32 %v1983_v49, %v1867_v53 }
 0x20e   : > { %v2192_v48 = vpack.c.bf16 %v2180_v2, %v2180_v2 }
 0x20f   : > { %v2129_v58 = vadd.f32 %v2114_v29, %v1998_v25 }
 0x210   : > { %2205 = vst.msk [vmem:[%s3203_s30 + $0x24] sm:$0xf] %vm2195_vm6, %v2192_v48 }
 0x211   : > { %v2145_v10 = vadd.f32 %v3195_v24, %v2129_v58 }
 0x213   : > { %vm2157_vm0 = vcmp.ge.f32.partialorder %v2145_v10, 0.0  ;;  %v2169_v31 = vmul.f32 0.2, %v2145_v10 }
 0x214   : > { %v1985_v33 = vpop.f32.mrf.mxu2  ;;  %v2116_v35 = vpop.f32.mrf.mxu3 }
 0x215   : > { %v2181_v8 = vsel %vm2157_vm0, %v2145_v10, %v2169_v31  ;;  %v1999_v61 = vadd.f32 %v1985_v33, %v1868_v32 }
 0x216   : > { %v2193_v14 = vpack.c.bf16 %v2181_v8, %v2181_v8 }
 0x217   : > { %v2130_v34 = vadd.f32 %v2116_v35, %v1999_v61 }
 0x218   : > { %2206 = vst.msk [vmem:[%s3203_s30 + $0x28] sm:$0xf] %vm2195_vm6, %v2193_v14 }
 0x219   : > { %v2146_v20 = vadd.f32 %v3195_v24, %v2130_v34 }
 0x21b   : > { %vm2158_vm1 = vcmp.ge.f32.partialorder %v2146_v20, 0.0  ;;  %v2170_v28 = vmul.f32 0.2, %v2146_v20 }
 0x21d   : > { %v2182_v41 = vsel %vm2158_vm1, %v2146_v20, %v2170_v28 }
 0x21e   : > { %v2194_v42 = vpack.c.bf16 %v2182_v41, %v2182_v41 }
 0x220   : > { %2208 = vst.msk [vmem:[%s3203_s30 + $0x2c] sm:$0x1] %vm2207_vm2, %v2194_v42 }
 0x221 PF: > { %s13_s12 = sadd.s32 1, %s2679_s12  }
 0x222   : > { %p10_p4 = scmp.ge.s32.totalorder %s13_s12, 4  }
 0x224   :  { %12 = sbr.rel (!%p10_p4) target bundleno = 1 (0x1), region = 80 }

// kernel: nlayer_discriminator_forward.6
= control target key start
LH: loop header
LB: loop body
LE: loop exit
PB: predicated region body
PF: predicated region fallthrough
CT: control target
= control target key end

     0   :  { %s1867_s15 = smov 0   ;;  %s2296_s0 = inlined_call_operand.vmem [shape: bf16[2,4,56,8], index: 0, kind: input, shape index: {}]   ;;  %s2297_s1 = inlined_call_operand.vmem [shape: bf16[16,8,16], index: 1, kind: input, shape index: {}]   ;;  %s2298_s2 = inlined_call_operand.vmem [shape: f32[1,16], index: 2, kind: input, shape index: {}]   ;;  %s2299_s3 = inlined_call_operand.vmem [shape: bf16[2,35,16], index: 3, kind: output, shape index: {0}]   ;;  %s2300_s4 = inlined_call_operand.vmem [shape: f32[2,2,16], index: 4, kind: output, shape index: {1}]  }
   0x1 LB: > { %s1604_s16 = sadd.s32 4294967295, %s1839_s15   ;;  %p1608_p0 = scmp.ge.s32.totalorder %s1839_s15, 1  ;;  %s1839_s15 = sphi %s1867_s15, %s15_s15  }
   0x2   : > { %p165_p1 = scmp.lt.s32.totalorder %s1839_s15, 3 }
   0x4   : > { %p166_p2 = pnand %p1608_p0, %p165_p1 }
   0x5   : > { %p195_p3 = scmp.lt.s32.totalorder (!%p166_p2), %s1604_s16, 1 }
   0x6   : > { %169 = sbr.rel (%p166_p2) target bundleno = 359 (0x167), region = 32 }
   0xb   : > { %v1617_v0 = vld [vmem:[%s2297_s1 + $0x4] sm:$0xf]  ;;  %vm247_vm0 = vcmask 1043456   ;;  %v215_v1 = vld [vmem:[%s2297_s1] sm:$0xf]  ;;  %s2312_s16 = smov (!%p195_p3, %s1604_s16), 1 }
   0xc   : > { %v249_v2 = vsel %vm247_vm0, %v1617_v0, 0  ;;  %v297_v3 = vsel %vm247_vm0, %v215_v1, 0  ;;  %v1640_v4 = vld [vmem:[%s2297_s1 + $0x8] sm:$0xf]  ;;  %v1644_v6 = vld [vmem:[%s2297_s1 + $0xc] sm:$0xf] }
   0xd   : > { %258 = vmatpush.bf16.msra.mxu0 %v249_v2  ;;  %306 = vmatpush.bf16.msra.mxu1 %v297_v3  ;;  %v355_v5 = vsel %vm247_vm0, %v1640_v4, 0  ;;  %v417_v7 = vsel %vm247_vm0, %v1644_v6, 0  ;;  %v1682_v8 = vld [vmem:[%s2297_s1 + $0x18] sm:$0xf]  ;;  %v1653_v9 = vld [vmem:[%s2297_s1 + $0x10] sm:$0xf] }
   0xe   : > { %364 = vmatpush.bf16.msra.mxu2 %v355_v5  ;;  %s1821_s29 = smul.u32 112, %s2312_s16  ;;  %426 = vmatpush.bf16.msra.mxu3 %v417_v7  ;;  %v601_v10 = vsel %vm247_vm0, %v1682_v8, 0  ;;  %v478_v11 = vsel %vm247_vm0, %v1653_v9, 0  ;;  %v1686_v12 = vld [vmem:[%s2297_s1 + $0x1c] sm:$0xf]  ;;  %vm237_vm1 = vcmask 64512  }
   0xf   : > { %v663_v13 = vsel %vm247_vm0, %v1686_v12, 0  ;;  %v1670_v14 = vld [vmem:[%s2297_s1 + $0x14] sm:$0xf]  ;;  %vm324_vm2 = vsmask.f32 7424  ;;  %s1822_s5 = smul.u32 20, %s2312_s16 }
  0x10   : > { %s1912_s10 = scalar_lea.vmem %s2296_s0, %s1821_s29  ;;  %v539_v15 = vsel %vm247_vm0, %v1670_v14, 0  ;;  %v1704_v50 = vld [vmem:[%s2297_s1 + $0x28] sm:$0xf]  ;;  %v1690_v51 = vld [vmem:[%s2297_s1 + $0x20] sm:$0xf]  ;;  %s1611_s9 = sshll.u32 %s2312_s16, 1 }
  0x11   : > { %487 = vmatpush.bf16.msrb.mxu0 %v478_v11  ;;  %v1747_v16 = vld [vmem:[%s1912_s10 + $0x1c] sm:$0xff]  ;;  %v1746_v18 = vld [vmem:[%s1912_s10 + $0x8] sm:$0xff]  ;;  %548 = vmatpush.bf16.msrb.mxu1 %v539_v15  ;;  %v214_v26 = vld [vmem:[%s1912_s10 + $0x10] sm:$0x3]  ;;  %v890_v53 = vsel %vm247_vm0, %v1704_v50, 0  ;;  %v753_v54 = vsel %vm247_vm0, %v1690_v51, 0  ;;  %s2227_s8 = scalar_lea.vmem %s2299_s3, %s1822_s5  ;;  %s208_s12 = scalar_lea.vmem %s2300_s4, %s1611_s9 }
  0x12   : > { %610 = vmatpush.bf16.msrb.mxu2 %v601_v10  ;;  %672 = vmatpush.bf16.msrb.mxu3 %v663_v13  ;;  %v1745_v17 = vld [vmem:[%s1912_s10] sm:$0xff]  ;;  %v389_v20 = vshll.u32 %v1747_v16, 16  ;;  %v331_v23 = vshll.u32 %v1746_v18, 16  ;;  %v387_v24 = vshrl.u32 %v1747_v16, 16  ;;  %v1616_v27 = vld [vmem:[%s1912_s10 + $0x2c] sm:$0x3]  ;;  %v283_v34 = vunpack.c.l.b16 %v214_v26 }
  0x13   : > { %v1748_v19 = vld [vmem:[%s1912_s10 + $0x24] sm:$0xff]  ;;  %1626 = vmatmul.msk.bf16.vlgmr.msra.gmra.mxu0 %vm237_vm1, %v1747_v16  ;;  %1637 = vmatmul.msk.bf16.vlgmr.msra.gmra.mxu1 %vm237_vm1, %v1745_v17  ;;  %v327_v21 = vshll.u32 %v1745_v17, 16  ;;  %v325_v22 = vshrl.u32 %v1745_v17, 16  ;;  %v233_v35 = vunpack.c.l.b16 %v1616_v27  ;;  %v335_v40 = vshrl.u32 %v1746_v18, 16  ;;  %v1709_v52 = vld [vmem:[%s2297_s1 + $0x2c] sm:$0xf] }
  0x14   : > { %v393_v25 = vshll.u32 %v1748_v19, 16  ;;  %v333_v29 = vrot.slane %v331_v23, 1  ;;  %v391_v30 = vrot.slane %v389_v20, 1  ;;  %v286_v38 = vpack.c.b16 %v283_v34, %v283_v34  ;;  %v1700_v56 = vld [vmem:[%s2297_s1 + $0x24] sm:$0xf]  ;;  %v1749_v62 = vld [vmem:[%s1912_s10 + $0x38] sm:$0xff] }
  0x15   : > { %v329_v28 = vrot.slane %v327_v21, 1  ;;  %v236_v39 = vpack.c.b16 %v233_v35, %v233_v35  ;;  %v397_v42 = vshrl.u32 %v1748_v19, 16  ;;  %v938_v55 = vsel %vm247_vm0, %v1709_v52, 0  ;;  %762 = vmatpush.bf16.msra.mxu0 %v753_v54  ;;  %v1751_v63 = vld [vmem:[%s1912_s10 + $0x54] sm:$0xff]  ;;  %v1750_v1 = vld [vmem:[%s1912_s10 + $0x40] sm:$0xff] }
  0x16   : > { %v395_v31 = vrot.slane %v393_v25, 1  ;;  %v392_v33 = vor.u32 %v391_v30, %v387_v24  ;;  %v338_v41 = vshll.u32 %v286_v38, 16  ;;  %v337_v44 = vor.u32 %v335_v40, %v333_v29  ;;  %v1752_v2 = vld [vmem:[%s1912_s10 + $0x5c] sm:$0xff]  ;;  %v1652_v14 = vld [vmem:[%s1912_s10 + $0x48] sm:$0x3] }
  0x17   : > { %v330_v32 = vor.u32 %v329_v28, %v325_v22  ;;  %v400_v43 = vshll.u32 %v236_v39, 16  ;;  %v842_v57 = vsel %vm247_vm0, %v1700_v56, 0  ;;  %v342_v58 = vshrl.u32 %v286_v38, 16  ;;  %v1669_v15 = vld [vmem:[%s1912_s10 + $0x64] sm:$0x3] }
  0x18   : > { %v396_v37 = vsel %vm324_vm2, %v392_v33, %v395_v31  ;;  %v340_v45 = vrot.slane %v338_v41, 1  ;;  %v399_v46 = vor.u32 %v397_v42, %v395_v31  ;;  %851 = vmatpush.bf16.msra.mxu1 %v842_v57  ;;  %v404_v59 = vshrl.u32 %v236_v39, 16  ;;  %v1971_v33 = vld [vmem:[%s1912_s10 + $0x4] sm:$0xf]  ;;  %v1734_v35 = vld [vmem:[%s2297_s1 + $0x38] sm:$0xf] }
  0x19   : > { %v334_v36 = vsel %vm324_vm2, %v330_v32, %v333_v29  ;;  %1645 = vmatmul.msk.bf16.vlgmr.msra.gmra.mxu3 %vm237_vm1, %v396_v37  ;;  %v402_v47 = vrot.slane %v400_v43, 1  ;;  %v573_v0 = vshll.u32 %v1749_v62, 16  ;;  %v635_v3 = vshll.u32 %v1751_v63, 16  ;;  %v693_v32 = vld [vmem:[%s1912_s10] sm:$0x8] }
  0x1a   : > { %1641 = vmatmul.msk.bf16.vlgmr.msra.gmra.mxu2 %vm237_vm1, %v334_v36  ;;  %v341_v48 = vsel %vm324_vm2, %v337_v44, %v340_v45  ;;  %947 = vmatpush.bf16.msra.mxu3 %v938_v55  ;;  %v344_v60 = vor.u32 %v342_v58, %v340_v45  ;;  %v571_v4 = vshrl.u32 %v1749_v62, 16  ;;  %v577_v6 = vshll.u32 %v1750_v1, 16  ;;  %v1719_v36 = vld [vmem:[%s2297_s1 + $0x30] sm:$0xf]  ;;  %v1739_v37 = vld [vmem:[%s2297_s1 + $0x3c] sm:$0xf] }
  0x1b   : > { %v403_v49 = vsel %vm324_vm2, %v399_v46, %v402_v47  ;;  %899 = vmatpush.bf16.msra.mxu2 %v890_v53  ;;  %v406_v61 = vor.u32 %v404_v59, %v402_v47  ;;  %v575_v5 = vrot.slane %v573_v0, 1  ;;  %v633_v7 = vshrl.u32 %v1751_v63, 16  ;;  %v1729_v42 = vld [vmem:[%s2297_s1 + $0x34] sm:$0xf]  ;;  %v1785_v44 = vld [vmem:[%s1912_s10 + $0x1c] sm:$0x8] }
  0x1c   : > { %v637_v8 = vrot.slane %v635_v3, 1  ;;  %v639_v9 = vshll.u32 %v1752_v2, 16  ;;  %v579_v11 = vrot.slane %v577_v6, 1  ;;  %v581_v22 = vshrl.u32 %v1750_v1, 16  ;;  %v1812_v45 = vld [vmem:[%s1912_s10 + $0x1c] sm:$0xf0]  }
  0x1d   : > { %v576_v10 = vor.u32 %v575_v5, %v571_v4  ;;  %v643_v24 = vshrl.u32 %v1752_v2, 16  ;;  %v707_v34 = vunpack.c.l.b16 %v693_v32  ;;  %v1027_v40 = vsel %vm247_vm0, %v1719_v36, 0  ;;  %v1995_v47 = vld [vmem:[%s1912_s10 + $0x8] sm:$0xff]   ;;  %v697_v6 = vld [vmem:[%s1912_s10 + $0x10] sm:$0xf] }
  0x1e   : > { %v638_v12 = vor.u32 %v637_v8, %v633_v7  ;;  %v641_v13 = vrot.slane %v639_v9, 1  ;;  %v583_v26 = vor.u32 %v581_v22, %v579_v11  ;;  %v1212_v41 = vsel %vm247_vm0, %v1739_v37, 0  ;;  %v698_v7 = vld [vmem:[%s1912_s10 + $0x14] sm:$0x1]  ;;  %v1779_v37 = vld [vmem:[%s1912_s10 + $0x28] sm:$0xff]  }
  0x1f   : > { %v580_v16 = vsel %vm324_vm2, %v576_v10, %v579_v11  ;;  %v1116_v43 = vsel %vm247_vm0, %v1729_v42, 0  ;;  %v726_v54 = vshrl.u32 %v1995_v47, 16  ;;  %v729_v55 = vshll.u32 %v1995_v47, 16  ;;  %v1799_v42 = vld [vmem:[%s1912_s10 + $0x54] sm:$0x8] }
  0x20   : > { %v642_v17 = vsel %vm324_vm2, %v638_v12, %v641_v13  ;;  %v645_v28 = vor.u32 %v643_v24, %v641_v13  ;;  %v711_v12 = vunpack.c.l.b16 %v697_v6  ;;  %v712_v13 = vunpack.c.l.b16 %v698_v7 }
  0x21   : > { %v728_v0 = vrot.slane %v726_v54, 3  ;;  %vm716_vm3 = vsmask.f32 4352 }
  0x23   : > { %1627 = vmatmul.msk.bf16.gmra.mxu0 %vm237_vm1, %v1748_v19  ;;  %1638 = vmatmul.msk.bf16.gmra.mxu1 %vm237_vm1, %v1746_v18  ;;  %v464_v18 = vunpack.c.l.b16 %v1652_v14  ;;  %v525_v19 = vunpack.c.l.b16 %v1669_v15  ;;  %v1813_v14 = vld [vmem:[%s1912_s10 + $0x2c] sm:$0xf]  ;;  %v1815_v15 = vld [vmem:[%s1912_s10 + $0x2c] sm:$0x10] }
  0x25   : > { %v467_v20 = vpack.c.b16 %v464_v18, %v464_v18  ;;  %v528_v21 = vpack.c.b16 %v525_v19, %v525_v19  ;;  %v715_v18 = vpack.c.b16 %v712_v13, %v711_v12  ;;  %v1796_v19 = vor.u32 %v1815_v15, %v1813_v14 }
  0x27   : > { %v584_v23 = vshll.u32 %v467_v20, 16  ;;  %v646_v25 = vshll.u32 %v528_v21, 16  ;;  %v588_v50 = vshrl.u32 %v467_v20, 16  ;;  %v650_v51 = vshrl.u32 %v528_v21, 16 }
  0x28   : > { %v738_v22 = vshll.u32 %v715_v18, 16  ;;  %v827_v24 = vshll.u32 %v1796_v19, 16 }
  0x29   : > { %1646 = vmatmul.msk.bf16.gmra.mxu3 %vm237_vm1, %v403_v49  ;;  %v586_v27 = vrot.slane %v584_v23, 1  ;;  %v648_v29 = vrot.slane %v646_v25, 1  ;;  %v1786_v49 = vor.u32 %v1812_v45, %v1785_v44  ;;  %v824_v23 = vshrl.u32 %v1796_v19, 16  ;;  %v872_v45 = vld [vmem:[%s1912_s10 + $0x14] sm:$0x3] }
  0x2a   : > { %1642 = vmatmul.msk.bf16.gmra.mxu2 %vm237_vm1, %v341_v48  ;;  %v1814_v48 = vld [vmem:[%s1912_s10 + $0x24] sm:$0xff]  }
  0x2b   : > { %v587_v30 = vsel %vm324_vm2, %v583_v26, %v586_v27  ;;  %v649_v31 = vsel %vm324_vm2, %v645_v28, %v648_v29  ;;  %v807_v56 = vshrl.u32 %v1786_v49, 16  ;;  %v810_v57 = vshll.u32 %v1786_v49, 16  ;;  %v1778_v26 = vld [vmem:[%s1912_s10 + $0x20] sm:$0xff]  }
  0x2c   : > { %v815_v58 = vshrl.u32 %v1814_v48, 16  ;;  %v818_v59 = vshll.u32 %v1814_v48, 16  ;;  %v740_v28 = vrot.slane %v738_v22, 4  ;;  %v1818_v22 = vld [vmem:[%s1912_s10 + $0x64] sm:$0xf] }
  0x2d   : > { %v812_v3 = vrot.slane %v810_v57, 4 }
  0x2e   : > { %v817_v4 = vrot.slane %v815_v58, 3  ;;  %v820_v5 = vrot.slane %v818_v59, 4 }
  0x30   : > { %v821_v11 = vor.u32 %v820_v5, %v817_v4 }
  0x33   : > { %1628 = vmatmul.msk.bf16.gmra.mxu0 %vm237_vm1, %v236_v39  ;;  %1639 = vmatmul.msk.bf16.gmra.mxu1 %vm237_vm1, %v286_v38  ;;  %v708_v38 = vunpack.c.l.b16 %v1971_v33  ;;  %v1164_v39 = vsel %vm247_vm0, %v1734_v35, 0  ;;  %v1756_v35 = vunpack.c.h.b16 %v1995_v47 }
  0x35   : > { %v713_v46 = vpack.c.b16 %v708_v38, %v707_v34  ;;  %v878_v36 = vpack.c.b16 %v711_v12, %v1756_v35  ;;  %v1718_v12 = vld [vmem:[%s1912_s10 + $0x4c] sm:$0x1] }
  0x36   : > { %v987_v15 = vunpack.c.l.b16 %v1718_v12 }
  0x37   : > { %v718_v52 = vshrl.u32 %v713_v46, 16  ;;  %v721_v53 = vshll.u32 %v713_v46, 16  ;;  %v1708_v46 = vld [vmem:[%s1912_s10 + $0x30] sm:$0x3] }
  0x38   : > { %v924_v54 = vunpack.c.l.b16 %v1708_v46 }
  0x39   : > { %1647 = vmatmul.msk.bf16.gmra.mxu3 %vm237_vm1, %v406_v61  ;;  %v652_v61 = vor.u32 %v650_v51, %v648_v29  ;;  %v826_v29 = vrot.slane %v824_v23, 3  ;;  %v1819_v51 = vld [vmem:[%s1912_s10 + $0x5c] sm:$0xff]   ;;  %v1820_v23 = vld [vmem:[%s1912_s10 + $0x64] sm:$0x10] }
  0x3a   : > { %1643 = vmatmul.msk.bf16.gmra.mxu2 %vm237_vm1, %v344_v60  ;;  %v590_v60 = vor.u32 %v588_v50, %v586_v27  ;;  %v2036_v50 = vld [vmem:[%s1912_s10 + $0x40] sm:$0xff]  }
  0x3b   : > { %v1000_v57 = vshrl.u32 %v2036_v50, 16  ;;  %v1003_v58 = vshll.u32 %v2036_v50, 16 }
  0x3d   : > { %v1005_v4 = vrot.slane %v1003_v58, 4 }
  0x43   : > { %1662 = vmatmul.msk.bf16.vlgmr.msrb.gmra.mxu0 %vm237_vm1, %v1749_v62  ;;  %1679 = vmatmul.msk.bf16.vlgmr.msrb.gmra.mxu1 %vm237_vm1, %v1751_v63  ;;  %v720_v62 = vrot.slane %v718_v52, 3  ;;  %v723_v63 = vrot.slane %v721_v53, 4  ;;  %v876_v53 = vunpack.c.l.b16 %v872_v45 }
  0x44   : > { %1036 = vmatpush.bf16.msrb.mxu0 %v1027_v40  ;;  %1125 = vmatpush.bf16.msrb.mxu1 %v1116_v43  ;;  %v1817_v43 = vld [vmem:[%s1912_s10 + $0x54] sm:$0xf0]  }
  0x45   : > { %v724_v8 = vor.u32 %v723_v63, %v720_v62  ;;  %v1092_v62 = vshll.u32 %v1819_v51, 16  ;;  %v879_v63 = vpack.c.b16 %v876_v53, %v876_v53 }
  0x49   : > { %1687 = vmatmul.msk.bf16.vlgmr.msrb.gmra.mxu3 %vm237_vm1, %v642_v17 }
  0x4a   : > { %1683 = vmatmul.msk.bf16.vlgmr.msrb.gmra.mxu2 %vm237_vm1, %v580_v16  ;;  %1221 = vmatpush.bf16.msrb.mxu3 %v1212_v41 }
  0x4b   : > { %1173 = vmatpush.bf16.msrb.mxu2 %v1164_v39  ;;  %v2024_v39 = vld [vmem:[%s1912_s10 + $0x3c] sm:$0xf] }
  0x4c   : > { %v983_v41 = vunpack.c.l.b16 %v2024_v39 }
  0x53   : > { %1663 = vmatmul.msk.bf16.gmra.mxu0 %vm237_vm1, %v1750_v1  ;;  %1680 = vmatmul.msk.bf16.gmra.mxu1 %vm237_vm1, %v1752_v2  ;;  %v731_v1 = vrot.slane %v729_v55, 4  ;;  %v809_v2 = vrot.slane %v807_v56, 3 }
  0x55   : > { %v732_v9 = vor.u32 %v731_v1, %v728_v0  ;;  %v813_v10 = vor.u32 %v812_v3, %v809_v2  ;;  %v927_v0 = vpack.c.b16 %v924_v54, %v924_v54  ;;  %v1002_v3 = vrot.slane %v1000_v57, 3 }
  0x57   : > { %v733_v16 = vsel %vm716_vm3, %v724_v8, %v732_v9  ;;  %v822_v17 = vsel %vm716_vm3, %v813_v10, %v821_v11  ;;  %v1094_v10 = vrot.slane %v1092_v62, 4 }
  0x59   : > { %1688 = vmatmul.msk.bf16.gmra.mxu3 %vm237_vm1, %v649_v31 }
  0x5a   : > { %1684 = vmatmul.msk.bf16.gmra.mxu2 %vm237_vm1, %v587_v30  ;;  %v829_v30 = vrot.slane %v827_v24, 4 }
  0x5c   : > { %v830_v32 = vor.u32 %v829_v30, %v826_v29 }
  0x5e   : > { %v831_v34 = vsel %vm716_vm3, %v821_v11, %v830_v32  ;;  %v2044_v11 = vld [vmem:[%s1912_s10 + $0x48] sm:$0xf] }
  0x5f   : > { %v986_v14 = vunpack.c.l.b16 %v2044_v11  ;;  %v1738_v11 = vld [vmem:[%s1912_s10 + $0x68] sm:$0x3] }
  0x63   : > { %1664 = vmatmul.msk.bf16.gmra.mxu0 %vm237_vm1, %v467_v20  ;;  %1681 = vmatmul.msk.bf16.gmra.mxu1 %vm237_vm1, %v528_v21  ;;  %v1755_v20 = vunpack.c.l.b16 %v1995_v47  ;;  %v735_v21 = vshrl.u32 %v715_v18, 16  ;;  %v1800_v47 = vor.u32 %v1817_v43, %v1799_v42 }
  0x65   : > { %v877_v25 = vpack.c.b16 %v1755_v20, %v708_v38  ;;  %v737_v27 = vrot.slane %v735_v21, 3  ;;  %v1713_v38 = vld [vmem:[%s1912_s10 + $0x38] sm:$0x8]  ;;  %v1081_v59 = vshrl.u32 %v1800_v47, 16 }
  0x66   : > { %v982_v40 = vunpack.c.l.b16 %v1713_v38 }
  0x67   : > { %v741_v31 = vor.u32 %v740_v28, %v737_v27  ;;  %v1083_v5 = vrot.slane %v1081_v59, 3 }
  0x68   : > { %v988_v44 = vpack.c.b16 %v983_v41, %v982_v40 }
  0x69   : > { %1689 = vmatmul.msk.bf16.gmra.mxu3 %vm237_vm1, %v652_v61  ;;  %v742_v33 = vsel %vm716_vm3, %v732_v9, %v741_v31  ;;  %v1089_v61 = vshrl.u32 %v1819_v51, 16 }
  0x6a   : > { %1685 = vmatmul.msk.bf16.gmra.mxu2 %vm237_vm1, %v590_v60  ;;  %v992_v55 = vshrl.u32 %v988_v44, 16  ;;  %v995_v56 = vshll.u32 %v988_v44, 16  ;;  %v1084_v60 = vshll.u32 %v1800_v47, 16  ;;  %v1781_v44 = vld [vmem:[%s1912_s10 + $0x58] sm:$0xff]  }
  0x6b   : > { %v1091_v9 = vrot.slane %v1089_v61, 3 }
  0x6c   : > { %v994_v1 = vrot.slane %v992_v55, 3  ;;  %v997_v2 = vrot.slane %v995_v56, 4  ;;  %v1086_v6 = vrot.slane %v1084_v60, 4 }
  0x6d   : > { %v1095_v19 = vor.u32 %v1094_v10, %v1091_v9  ;;  %v1733_v10 = vld [vmem:[%s1912_s10 + $0x4c] sm:$0x3] }
  0x6e   : > { %v1087_v18 = vor.u32 %v1086_v6, %v1083_v5 }
  0x70   : > { %v1096_v30 = vsel %vm716_vm3, %v1087_v18, %v1095_v19  ;;  %v1198_v18 = vunpack.c.l.b16 %v1738_v11 }
  0x73   : > { %1691 = vmatmul.msk.bf16.vlgmr.msra.gmra.mxu0 %vm237_vm1, %v733_v16  ;;  %1701 = vmatmul.msk.bf16.vlgmr.msra.gmra.mxu1 %vm237_vm1, %v822_v17  ;;  %v998_v16 = vor.u32 %v997_v2, %v994_v1  ;;  %v1006_v17 = vor.u32 %v1005_v4, %v1002_v3  ;;  %v1782_v4 = vld [vmem:[%s1912_s10 + $0x60] sm:$0xff]  }
  0x75   : > { %v1007_v29 = vsel %vm716_vm3, %v998_v16, %v1006_v17 }
  0x79   : > { %1710 = vmatmul.msk.bf16.vlgmr.msra.gmra.mxu3 %vm237_vm1, %v1778_v26 }
  0x7a   : > { %1705 = vmatmul.msk.bf16.vlgmr.msra.gmra.mxu2 %vm237_vm1, %v877_v25  ;;  %v990_v25 = vpack.c.b16 %v987_v15, %v986_v14 }
  0x7c   : > { %v1012_v35 = vshll.u32 %v990_v25, 16 }
  0x83   : > { %1692 = vmatmul.msk.bf16.gmra.mxu0 %vm237_vm1, %v742_v33  ;;  %1702 = vmatmul.msk.bf16.gmra.mxu1 %vm237_vm1, %v831_v34  ;;  %v1767_v33 = vunpack.c.l.b16 %v2036_v50  ;;  %v1009_v34 = vshrl.u32 %v990_v25, 16 }
  0x85   : > { %v1151_v43 = vpack.c.b16 %v1767_v33, %v983_v41  ;;  %v1011_v45 = vrot.slane %v1009_v34, 3 }
  0x89   : > { %1711 = vmatmul.msk.bf16.gmra.mxu3 %vm237_vm1, %v1779_v37 }
  0x8a   : > { %1706 = vmatmul.msk.bf16.gmra.mxu2 %vm237_vm1, %v878_v36 }
  0x90   : > { %v260_v48 = vpop.f32.mrf.mxu0  ;;  %v308_v49 = vpop.f32.mrf.mxu1 }
  0x91   : > { %v309_v52 = vadd.f32 %v308_v49, %v260_v48  ;;  %v1014_v49 = vrot.slane %v1012_v35, 4 }
  0x93   : > { %1693 = vmatmul.msk.bf16.gmra.mxu0 %vm237_vm1, %v741_v31  ;;  %1703 = vmatmul.msk.bf16.gmra.mxu1 %vm237_vm1, %v830_v32  ;;  %v1810_v31 = vor.u32 %v1820_v23, %v1818_v22  ;;  %v1015_v54 = vor.u32 %v1014_v49, %v1011_v45  ;;  %v1201_v22 = vpack.c.b16 %v1198_v18, %v1198_v18 }
  0x95   : > { %v1098_v36 = vshrl.u32 %v1810_v31, 16  ;;  %v1101_v37 = vshll.u32 %v1810_v31, 16  ;;  %v1016_v60 = vsel %vm716_vm3, %v1006_v17, %v1015_v54  ;;  %v1150_v17 = vunpack.c.l.b16 %v1733_v10 }
  0x97   : > { %v1100_v51 = vrot.slane %v1098_v36, 3 }
  0x98   : > { %v262_v7 = vpop.f32.mrf.mxu0  ;;  %v310_v8 = vpop.f32.mrf.mxu1 }
  0x99   : > { %v311_v13 = vadd.f32 %v310_v8, %v262_v7  ;;  %1712 = vmatmul.msk.bf16.gmra.mxu3 %vm237_vm1, %v927_v0 }
  0x9a   : > { %1707 = vmatmul.msk.bf16.gmra.mxu2 %vm237_vm1, %v879_v63  ;;  %v1768_v63 = vunpack.c.h.b16 %v2036_v50 }
  0x9c   : > { %v428_v21 = vpop.f32.mrf.mxu3  ;;  %v1152_v3 = vpack.c.b16 %v986_v14, %v1768_v63 }
  0x9d   : > { %v366_v20 = vpop.f32.mrf.mxu2 }
  0x9e   : > { %v380_v24 = vadd.f32 %v366_v20, %v309_v52  ;;  %v1103_v52 = vrot.slane %v1101_v37, 4 }
  0xa0   : > { %v442_v26 = vadd.f32 %v428_v21, %v380_v24  ;;  %v265_v27 = vpop.f32.mrf.mxu0  ;;  %v313_v28 = vpop.f32.mrf.mxu1  ;;  %v1104_v55 = vor.u32 %v1103_v52, %v1100_v51  ;;  %v1153_v21 = vpack.c.b16 %v1150_v17, %v1150_v17 }
  0xa1   : > { %v314_v32 = vadd.f32 %v313_v28, %v265_v27 }
  0xa2   : > { %v1105_v61 = vsel %vm716_vm3, %v1095_v19, %v1104_v55 }
  0xa3   : > { %1720 = vmatmul.msk.bf16.vlgmr.msrb.gmra.mxu0 %vm237_vm1, %v1007_v29  ;;  %1730 = vmatmul.msk.bf16.vlgmr.msrb.gmra.mxu1 %vm237_vm1, %v1096_v30 }
  0xa4   : > { %v430_v40 = vpop.f32.mrf.mxu3 }
  0xa5   : > { %v368_v38 = vpop.f32.mrf.mxu2 }
  0xa6   : > { %v381_v42 = vadd.f32 %v368_v38, %v311_v13 }
  0xa8   : > { %v443_v46 = vadd.f32 %v430_v40, %v381_v42  ;;  %v267_v47 = vpop.f32.mrf.mxu0  ;;  %v315_v48 = vpop.f32.mrf.mxu1 }
  0xa9   : > { %v316_v53 = vadd.f32 %v315_v48, %v267_v47  ;;  %1740 = vmatmul.msk.bf16.vlgmr.msrb.gmra.mxu3 %vm237_vm1, %v1781_v44 }
  0xaa   : > { %1735 = vmatmul.msk.bf16.vlgmr.msrb.gmra.mxu2 %vm237_vm1, %v1151_v43 }
  0xac   : > { %v433_v57 = vpop.f32.mrf.mxu3 }
  0xad   : > { %v371_v56 = vpop.f32.mrf.mxu2 }
  0xae   : > { %v382_v39 = vadd.f32 %v371_v56, %v314_v32 }
  0xb0   : > { %v444_v41 = vadd.f32 %v433_v57, %v382_v39  ;;  %v270_v58 = vpop.f32.mrf.mxu0  ;;  %v318_v59 = vpop.f32.mrf.mxu1 }
  0xb1   : > { %v319_v62 = vadd.f32 %v318_v59, %v270_v58 }
  0xb3   : > { %1721 = vmatmul.msk.bf16.gmra.mxu0 %vm237_vm1, %v1016_v60  ;;  %1731 = vmatmul.msk.bf16.gmra.mxu1 %vm237_vm1, %v1105_v61 }
  0xb4   : > { %v435_v1 = vpop.f32.mrf.mxu3 }
  0xb5   : > { %v373_v0 = vpop.f32.mrf.mxu2 }
  0xb6   : > { %v383_v2 = vadd.f32 %v373_v0, %v316_v53  ;;  %v1251_v0 = vlaneseq }
  0xb8   : > { %v445_v5 = vadd.f32 %v435_v1, %v383_v2  ;;  %v272_v6 = vpop.f32.mrf.mxu0  ;;  %v320_v7 = vpop.f32.mrf.mxu1 }
  0xb9   : > { %1741 = vmatmul.msk.bf16.gmra.mxu3 %vm237_vm1, %v1782_v4 }
  0xba   : > { %1736 = vmatmul.msk.bf16.gmra.mxu2 %vm237_vm1, %v1152_v3  ;;  %v2090_v3 = vshrl.u32 %v1251_v0, 7 }
  0xbc   : > { %v438_v50 = vpop.f32.mrf.mxu3  ;;  %v1260_v6 = vand.u32 65535, %v2090_v3  ;;  %v1261_v7 = vshrl.u32 %v2090_v3, 16 }
  0xbd   : > { %v376_v8 = vpop.f32.mrf.mxu2 }
  0xbe   : > { %v384_v9 = vadd.f32 %v376_v8, %v319_v62  ;;  %v1264_v8 = vmul.u32 37449, %v1260_v6  ;;  %v1263_v10 = vmul.u32 9362, %v1260_v6  ;;  %v1265_v11 = vmul.u32 9362, %v1261_v7 }
  0xc0   : > { %v446_v12 = vadd.f32 %v438_v50, %v384_v9  ;;  %v489_v13 = vpop.f32.mrf.mxu0  ;;  %v550_v15 = vpop.f32.mrf.mxu1  ;;  %v1269_v18 = vshll.u32 %v1265_v11, 16 }
  0xc1   : > { %v503_v16 = vadd.f32 %v489_v13, %v442_v26  ;;  %v2103_v13 = vadd.s32 8, %v2090_v3 }
  0xc3   : > { %v564_v14 = vadd.f32 %v550_v15, %v503_v16  ;;  %1722 = vmatmul.msk.bf16.gmra.mxu0 %vm237_vm1, %v1015_v54  ;;  %1732 = vmatmul.msk.bf16.gmra.mxu1 %vm237_vm1, %v1104_v55  ;;  %v1292_v17 = vand.u32 65535, %v2103_v13 }
  0xc4   : > { %v440_v20 = vpop.f32.mrf.mxu3 }
  0xc5   : > { %v378_v19 = vpop.f32.mrf.mxu2  ;;  %v2111_v20 = vmul.u32 37449, %v1292_v17 }
  0xc6   : > { %v1293_v19 = vshrl.u32 %v2103_v13, 16 }
  0xc8   : > { %v491_v23 = vpop.f32.mrf.mxu0  ;;  %v552_v24 = vpop.f32.mrf.mxu1 }
  0xc9   : > { %v504_v25 = vadd.f32 %v491_v23, %v443_v46  ;;  %1742 = vmatmul.msk.bf16.gmra.mxu3 %vm237_vm1, %v1201_v22  ;;  %v1266_v23 = vmul.u32 37449, %v1261_v7  ;;  %v1300_v7 = vshrl.u32 %v2111_v20, 16 }
  0xca   : > { %1737 = vmatmul.msk.bf16.gmra.mxu2 %vm237_vm1, %v1153_v21 }
  0xcb   : > { %v565_v27 = vadd.f32 %v552_v24, %v504_v25  ;;  %v2117_v24 = vmul.u32 9362, %v1293_v19  ;;  %v1841_v25 = vmov 0  }
  0xcc   : > { %v674_v28 = vpop.f32.mrf.mxu3 }
  0xcd   : > { %v612_v26 = vpop.f32.mrf.mxu2 }
  0xce   : > { %v626_v29 = vadd.f32 %v612_v26, %v564_v14  ;;  %v1295_v26 = vmul.u32 9362, %v1292_v17 }
  0xd0   : > { %v2076_v30 = vadd.f32 %v674_v28, %v626_v29  ;;  %v494_v31 = vpop.f32.mrf.mxu0  ;;  %v555_v32 = vpop.f32.mrf.mxu1  ;;  %v1299_v28 = vshll.u32 %v2111_v20, 16  ;;  %v2162_v20 = vadd.s32 32, %v2090_v3 }
  0xd1   : > { %v505_v33 = vadd.f32 %v494_v31, %v444_v41 }
  0xd2   : > { %vm1303_vm6 = vc.u32 %v1295_v26, %v1299_v28 }
  0xd3   : > { %v566_v34 = vadd.f32 %v555_v32, %v505_v33  ;;  %v2126_v32 = vadd.s32 16, %v2090_v3 }
  0xd4   : > { %v676_v36 = vpop.f32.mrf.mxu3 }
  0xd5   : > { %v614_v35 = vpop.f32.mrf.mxu2 }
  0xd6   : > { %v627_v37 = vadd.f32 %v614_v35, %v565_v27  ;;  %v1301_v35 = vshll.u32 %v2117_v24, 16 }
  0xd8   : > { %v2078_v38 = vadd.f32 %v676_v36, %v627_v37  ;;  %v496_v40 = vpop.f32.mrf.mxu0  ;;  %v557_v42 = vpop.f32.mrf.mxu1  ;;  %v1305_v36 = vadd.s32 %v1299_v28, %v1295_v26  ;;  %v1324_v37 = vand.u32 65535, %v2126_v32 }
  0xd9   : > { %v506_v43 = vadd.f32 %v496_v40, %v445_v5  ;;  %v1325_v40 = vshrl.u32 %v2126_v32, 16 }
  0xda   : > { %vm1307_vm7 = vc.u32 %v1305_v36, %v1301_v35 }
  0xdb   : > { %v567_v44 = vadd.f32 %v557_v42, %v506_v43  ;;  %v1298_v42 = vmul.u32 37449, %v1293_v19  ;;  %v1327_v43 = vmul.u32 9362, %v1324_v37  ;;  %v1308_v0 = vsel %vm1307_vm7, 1, %v1841_v25 }
  0xdc   : > { %v679_v46 = vpop.f32.mrf.mxu3 }
  0xdd   : > { %v617_v45 = vpop.f32.mrf.mxu2 }
  0xde   : > { %v628_v47 = vadd.f32 %v617_v45, %v566_v34 }
  0xe0   : > { %v2080_v48 = vadd.f32 %v679_v46, %v628_v47  ;;  %v499_v49 = vpop.f32.mrf.mxu0  ;;  %v560_v51 = vpop.f32.mrf.mxu1  ;;  %v1268_v47 = vshrl.u32 %v1264_v8, 16 }
  0xe1   : > { %v507_v52 = vadd.f32 %v499_v49, %v446_v12  ;;  %v1267_v12 = vshll.u32 %v1264_v8, 16 }
  0xe3   : > { %v568_v53 = vadd.f32 %v560_v51, %v507_v52  ;;  %v1273_v14 = vadd.s32 %v1267_v12, %v1263_v10  ;;  %vm1271_vm4 = vc.u32 %v1263_v10, %v1267_v12  ;;  %v1304_v51 = vsel %vm1303_vm6, 1, %v1841_v25 }
  0xe4   : > { %v681_v55 = vpop.f32.mrf.mxu3  ;;  %v1272_v27 = vsel %vm1271_vm4, 1, %v1841_v25  ;;  %v2139_v52 = vmul.u32 9362, %v1325_v40 }
  0xe5   : > { %v619_v54 = vpop.f32.mrf.mxu2  ;;  %vm1275_vm5 = vc.u32 %v1273_v14, %v1269_v18  ;;  %v1274_v33 = vadd.s32 %v1272_v27, %v1266_v23 }
  0xe6   : > { %v629_v56 = vadd.f32 %v619_v54, %v567_v44  ;;  %v1276_v34 = vsel %vm1275_vm5, 1, %v1841_v25  ;;  %v2132_v44 = vmul.u32 37449, %v1324_v37  ;;  %v1277_v54 = vadd.s32 %v1273_v14, %v1269_v18 }
  0xe7   : > { %v1278_v49 = vadd.s32 %v1276_v34, %v1274_v33  ;;  %v1309_v14 = vadd.s32 %v1305_v36, %v1301_v35  ;;  %v1302_v37 = vshrl.u32 %v2117_v24, 16 }
  0xe8   : > { %v2082_v57 = vadd.f32 %v681_v55, %v629_v56  ;;  %v501_v39 = vpop.f32.mrf.mxu0  ;;  %v562_v41 = vpop.f32.mrf.mxu1  ;;  %vm1281_vm9 = vc.u32 %v1277_v54, 2454267026  ;;  %v1332_v35 = vshrl.u32 %v2132_v44, 16  ;;  %v1388_v54 = vand.u32 65535, %v2162_v20 }
  0xe9   : > { %v1306_v39 = vadd.s32 %v1304_v51, %v1298_v42  ;;  %v1333_v41 = vshll.u32 %v2139_v52, 16  ;;  %v1282_v18 = vsel %vm1281_vm9, 1, %v1841_v25  ;;  %vm1313_vm11 = vc.u32 %v1309_v14, 2454267026 }
  0xeb   : > { %v1310_v8 = vadd.s32 %v1308_v0, %v1306_v39 }
  0xec   : > { %v684_v59 = vpop.f32.mrf.mxu3 }
  0xed   : > { %v622_v58 = vpop.f32.mrf.mxu2 }
  0xee   : > { %v630_v60 = vadd.f32 %v622_v58, %v568_v53  ;;  %v1331_v53 = vshll.u32 %v2132_v44, 16  ;;  %v1314_v44 = vsel %vm1313_vm11, 1, %v1841_v25 }
  0xf0   : > { %v2084_v61 = vadd.f32 %v684_v59, %v630_v60  ;;  %v2086_v62 = vpop.f32.mrf.mxu0  ;;  %v2088_v63 = vpop.f32.mrf.mxu1  ;;  %vm1335_vm8 = vc.u32 %v1327_v43, %v1331_v53  ;;  %v1337_v58 = vadd.s32 %v1331_v53, %v1327_v43  ;;  %v1270_v59 = vshrl.u32 %v1265_v11, 16 }
  0xf1   : > { %v1279_v60 = vadd.s32 %v1278_v49, %v1268_v47  ;;  %v1336_v6 = vsel %vm1335_vm8, 1, %v1841_v25  ;;  %v778_v39 = vadd.f32 %v2086_v62, %v2076_v30  ;;  %vm1507_vm8 = vcmask 125952  }
  0xf2   : > { %vm1339_vm10 = vc.u32 %v1337_v58, %v1333_v41 }
  0xf3   : > { %v1280_v17 = vadd.s32 %v1279_v60, %v1270_v59  ;;  %v1340_v27 = vsel %vm1339_vm10, 1, %v1841_v25  ;;  %v1389_v60 = vshrl.u32 %v2162_v20, 16  ;;  %v867_v62 = vadd.f32 %v2088_v63, %v778_v39 }
  0xf4   : > { %v686_v2 = vpop.f32.mrf.mxu3 }
  0xf5   : > { %v624_v1 = vpop.f32.mrf.mxu2  ;;  %v1330_v2 = vmul.u32 37449, %v1325_v40  ;;  %v1311_v40 = vadd.s32 %v1310_v8, %v1300_v7  ;;  %v1283_v43 = vadd.s32 %v1282_v18, %v1280_v17  ;;  %v1334_v8 = vshrl.u32 %v2139_v52, 16 }
  0xf6   : > { %v2149_v1 = vadd.s32 24, %v2090_v3  ;;  %v2180_v18 = vmul.u32 37449, %v1388_v54  ;;  %v2182_v30 = vmul.u32 9362, %v1389_v60 }
  0xf7   : > { %v1338_v19 = vadd.s32 %v1336_v6, %v1330_v2  ;;  %v1312_v24 = vadd.s32 %v1311_v40, %v1302_v37  ;;  %v1341_v6 = vadd.s32 %v1337_v58, %v1333_v41  ;;  %v1284_v7 = vshrl.u32 %v1283_v43, 2 }
  0xf8   : > { %v2092_v4 = vpop.f32.mrf.mxu0  ;;  %v2094_v5 = vpop.f32.mrf.mxu1  ;;  %v1356_v11 = vand.u32 65535, %v2149_v1  ;;  %v1357_v23 = vshrl.u32 %v2149_v1, 16  ;;  %v1394_v43 = vmul.u32 37449, %v1389_v60 }
  0xf9   : > { %v1342_v36 = vadd.s32 %v1340_v27, %v1338_v19  ;;  %v779_v41 = vadd.f32 %v2092_v4, %v2078_v38  ;;  %vm1345_vm14 = vc.u32 %v1341_v6, 2454267026  ;;  %v1285_v58 = vmul.u32 7, %v1284_v7 }
  0xfa   : > { %v1359_v26 = vmul.u32 9362, %v1356_v11  ;;  %v1360_v28 = vmul.u32 37449, %v1356_v11  ;;  %v2165_v42 = vmul.u32 9362, %v1357_v23  ;;  %v1362_v49 = vmul.u32 37449, %v1357_v23 }
  0xfb   : > { %v1343_v17 = vadd.s32 %v1342_v36, %v1332_v35  ;;  %v1315_v23 = vadd.s32 %v1314_v44, %v1312_v24  ;;  %v1346_v35 = vsel %vm1345_vm14, 1, %v1841_v25  ;;  %v1286_v39 = vsub.s32 %v2090_v3, %v1285_v58 }
  0xfc   : > { %v2100_v9 = vpop.f32.mrf.mxu3  ;;  %v1363_v47 = vshll.u32 %v1360_v28, 16  ;;  %v1365_v51 = vshll.u32 %v2165_v42, 16  ;;  %v1364_v40 = vshrl.u32 %v1360_v28, 16  ;;  %v1366_v28 = vshrl.u32 %v2165_v42, 16 }
  0xfd   : > { %v2098_v50 = vpop.f32.mrf.mxu2  ;;  %v1344_v37 = vadd.s32 %v1343_v17, %v1334_v8  ;;  %v868_v44 = vadd.f32 %v2094_v5, %v779_v41  ;;  %vm1417_vm2 = vcmp.ne.s32.totalorder %v1286_v39, 0  ;;  %vm1422_vm3 = vcmp.lt.s32.totalorder %v1286_v39, 0 }
  0xfe   : > { %vm1367_vm12 = vc.u32 %v1359_v26, %v1363_v47  ;;  %v1369_v53 = vadd.s32 %v1363_v47, %v1359_v26  ;;  %v1391_v26 = vmul.u32 9362, %v1388_v54  ;;  %v915_v52 = vadd.f32 %v2098_v50, %v867_v62  ;;  %vm2213_vm4 = vmand %vm1422_vm3, %vm1417_vm2 }
  0xff   : > { %v1368_v59 = vsel %vm1367_vm12, 1, %v1841_v25  ;;  %v1316_v47 = vshrl.u32 %v1315_v23, 2  ;;  %v1347_v24 = vadd.s32 %v1346_v35, %v1344_v37  ;;  %vm1462_vm14 = vcmask 130048  }
 0x100   : > { %v2105_v15 = vpop.f32.mrf.mxu0  ;;  %v2107_v16 = vpop.f32.mrf.mxu1  ;;  %vm1371_vm13 = vc.u32 %v1369_v53, %v1365_v51  ;;  %v1370_v11 = vadd.s32 %v1368_v59, %v1362_v49  ;;  %v1373_v38 = vadd.s32 %v1369_v53, %v1365_v51  ;;  %v963_v50 = vadd.f32 %v2100_v9, %v915_v52  ;;  %v2209_v52 = vld [vmem:[%s2298_s2] ss:$0 sm:$0xff] }
 0x101   : > { %v1372_v27 = vsel %vm1371_vm13, 1, %v1841_v25  ;;  %v1317_v17 = vmul.u32 7, %v1316_v47  ;;  %v780_v9 = vadd.f32 %v2105_v15, %v2080_v48  ;;  %v1348_v53 = vshrl.u32 %v1347_v24, 2 }
 0x102   : > { %v1374_v63 = vadd.s32 %v1372_v27, %v1370_v11  ;;  %vm1377_vm1 = vc.u32 %v1373_v38, 2454267026  ;;  %v1396_v11 = vshrl.u32 %v2180_v18, 16 }
 0x103   : > { %v1378_v23 = vsel %vm1377_vm1, 1, %v1841_v25  ;;  %v869_v48 = vadd.f32 %v2107_v16, %v780_v9 }
 0x104   : > { %v2115_v22 = vpop.f32.mrf.mxu3  ;;  %v1375_v59 = vadd.s32 %v1374_v63, %v1364_v40 }
 0x105   : > { %v2113_v21 = vpop.f32.mrf.mxu2 }
 0x106   : > { %v916_v3 = vadd.f32 %v2113_v21, %v868_v44  ;;  %v1376_v42 = vadd.s32 %v1375_v59, %v1366_v28 }
 0x108   : > { %v2121_v29 = vpop.f32.mrf.mxu0  ;;  %v2123_v31 = vpop.f32.mrf.mxu1  ;;  %v964_v15 = vadd.f32 %v2115_v22, %v916_v3  ;;  %v1379_v58 = vadd.s32 %v1378_v23, %v1376_v42  ;;  %v1515_v3 = vld [vmem:[%s2227_s8 + $0x10] sm:$0x3] }
 0x109   : > { %v781_v63 = vadd.f32 %v2121_v29, %v2082_v57 }
 0x10a   : > { %v1380_v29 = vshrl.u32 %v1379_v58, 2 }
 0x10b   : > { %v870_v59 = vadd.f32 %v2123_v31, %v781_v63 }
 0x10c   : > { %v2136_v46 = vpop.f32.mrf.mxu3 }
 0x10d   : > { %v2134_v45 = vpop.f32.mrf.mxu2 }
 0x110   : > { %v2142_v55 = vpop.f32.mrf.mxu0  ;;  %v2144_v56 = vpop.f32.mrf.mxu1 }
 0x114   : > { %v2155_v12 = vpop.f32.mrf.mxu3 }
 0x115   : > { %v2153_v10 = vpop.f32.mrf.mxu2 }
 0x118   : > { %v776_v33 = vpop.f32.mrf.mxu0  ;;  %v865_v34 = vpop.f32.mrf.mxu1 }
 0x119   : > { %v1395_v33 = vshll.u32 %v2180_v18, 16  ;;  %v1397_v34 = vshll.u32 %v2182_v30, 16  ;;  %v1432_v18 = vadd.s32 7, %v1286_v39 }
 0x11b   : > { %vm1399_vm15 = vc.u32 %v1391_v26, %v1395_v33  ;;  %v1401_v36 = vadd.s32 %v1395_v33, %v1391_v26  ;;  %v1398_v33 = vshrl.u32 %v2182_v30, 16  ;;  %v1437_v35 = vsel %vm2213_vm4, %v1432_v18, %v1286_v39 }
 0x11c   : > { %v2176_v2 = vpop.f32.mrf.mxu3  ;;  %v1400_v4 = vsel %vm1399_vm15, 1, %v1841_v25  ;;  %vm1442_vm10 = vcmp.lt.s32.totalorder %v1437_v35, 5 }
 0x11d   : > { %v2174_v0 = vpop.f32.mrf.mxu2  ;;  %vm1403_vm0 = vc.u32 %v1401_v36, %v1397_v34  ;;  %v1402_v60 = vadd.s32 %v1400_v4, %v1394_v43  ;;  %v1405_v41 = vadd.s32 %v1401_v36, %v1397_v34  ;;  %v917_v43 = vadd.f32 %v2134_v45, %v869_v48 }
 0x11e   : > { %v1404_v51 = vsel %vm1403_vm0, 1, %v1841_v25 }
 0x11f   : > { %v1406_v62 = vadd.s32 %v1404_v51, %v1402_v60  ;;  %vm1409_vm7 = vc.u32 %v1405_v41, 2454267026  ;;  %v965_v39 = vadd.f32 %v2136_v46, %v917_v43  ;;  %v782_v46 = vadd.f32 %v2142_v55, %v2084_v61 }
 0x120   : > { %v1038_v14 = vpop.f32.mrf.mxu0  ;;  %v1127_v19 = vpop.f32.mrf.mxu1  ;;  %v1410_v38 = vsel %vm1409_vm7, 1, %v1841_v25 }
 0x121   : > { %v1052_v6 = vadd.f32 %v1038_v14, %v963_v50  ;;  %v1318_v14 = vsub.s32 %v2103_v13, %v1317_v17  ;;  %v1407_v16 = vadd.s32 %v1406_v62, %v1396_v11  ;;  %v918_v17 = vadd.f32 %v2153_v10, %v870_v59 }
 0x122   : > { %v871_v55 = vadd.f32 %v2144_v56, %v782_v46 }
 0x123   : > { %v1141_v5 = vadd.f32 %v1127_v19, %v1052_v6  ;;  %v1349_v19 = vmul.u32 7, %v1348_v53  ;;  %vm1418_vm5 = vcmp.ne.s32.totalorder %v1318_v14, 0  ;;  %vm1423_vm6 = vcmp.lt.s32.totalorder %v1318_v14, 0 }
 0x124   : > { %v961_v54 = vpop.f32.mrf.mxu3  ;;  %v1433_v36 = vadd.s32 7, %v1318_v14  ;;  %vm2229_vm9 = vmand %vm1423_vm6, %vm1418_vm5  ;;  %v1408_v45 = vadd.s32 %v1407_v16, %v1398_v33 }
 0x125   : > { %v913_v49 = vpop.f32.mrf.mxu2  ;;  %v1350_v57 = vsub.s32 %v2126_v32, %v1349_v19  ;;  %v1381_v32 = vmul.u32 7, %v1380_v29 }
 0x126   : > { %v1438_v28 = vsel %vm2229_vm9, %v1433_v36, %v1318_v14  ;;  %v1411_v60 = vadd.s32 %v1410_v38, %v1408_v45  ;;  %vm1512_vm9 = vcmask 123904  }
 0x127   : > { %vm1419_vm11 = vcmp.ne.s32.totalorder %v1350_v57, 0  ;;  %vm1424_vm12 = vcmp.lt.s32.totalorder %v1350_v57, 0  ;;  %vm1443_vm13 = vcmp.lt.s32.totalorder %v1438_v28, 5  ;;  %v1434_v9 = vadd.s32 7, %v1350_v57 }
 0x128   : > { %v1040_v7 = vpop.f32.mrf.mxu0  ;;  %v1129_v8 = vpop.f32.mrf.mxu1  ;;  %vm2246_vm15 = vmand %vm1424_vm12, %vm1419_vm11  ;;  %v1382_v53 = vsub.s32 %v2149_v1, %v1381_v32  ;;  %v1412_v42 = vshrl.u32 %v1411_v60, 2  ;;  %vm1470_vm12 = vcmask 124928  }
 0x129   : > { %v1053_v34 = vadd.f32 %v1040_v7, %v964_v15  ;;  %v1439_v1 = vsel %vm2246_vm15, %v1434_v9, %v1350_v57 }
 0x12a   : > { %vm1420_vm0 = vcmp.ne.s32.totalorder %v1382_v53, 0  ;;  %vm1425_vm1 = vcmp.lt.s32.totalorder %v1382_v53, 0  ;;  %vm1444_vm2 = vcmp.lt.s32.totalorder %v1439_v1, 5 }
 0x12b   : > { %v1142_v49 = vadd.f32 %v1129_v8, %v1053_v34  ;;  %v1435_v34 = vadd.s32 7, %v1382_v53  ;;  %vm2263_vm3 = vmand %vm1425_vm1, %vm1420_vm0 }
 0x12c   : > { %v1223_v26 = vpop.f32.mrf.mxu3 }
 0x12d   : > { %v1175_v27 = vpop.f32.mrf.mxu2  ;;  %v1440_v45 = vsel %vm2263_vm3, %v1435_v34, %v1382_v53 }
 0x12e   : > { %v1189_v21 = vadd.f32 %v1175_v27, %v1141_v5  ;;  %vm1445_vm6 = vcmp.lt.s32.totalorder %v1440_v45, 5 }
 0x130   : > { %v1237_v22 = vadd.f32 %v1223_v26, %v1189_v21  ;;  %v1043_v37 = vpop.f32.mrf.mxu0  ;;  %v1132_v40 = vpop.f32.mrf.mxu1  ;;  %v966_v26 = vadd.f32 %v2155_v12, %v918_v17  ;;  %v1413_v21 = vmul.u32 7, %v1412_v42  ;;  %v919_v12 = vadd.f32 %v2174_v0, %v871_v55 }
 0x131   : > { %v1054_v6 = vadd.f32 %v1043_v37, %v965_v39 }
 0x132   : > { %v1246_v47 = vadd.f32 %v2209_v52, %v1237_v22  ;;  %v1414_v37 = vsub.s32 %v2162_v20, %v1413_v21  ;;  %v967_v57 = vadd.f32 %v2176_v2, %v919_v12 }
 0x133   : > { %v1143_v11 = vadd.f32 %v1132_v40, %v1054_v6 }
 0x134   : > { %v1502_v54 = vpack.c.bf16 %v1246_v47, %v1246_v47  ;;  %v1225_v50 = vpop.f32.mrf.mxu3  ;;  %v1457_v44 = vsel %vm1442_vm10, %v1246_v47, 0.0  ;;  %vm1421_vm4 = vcmp.ne.s32.totalorder %v1414_v37, 0  ;;  %vm1426_vm5 = vcmp.lt.s32.totalorder %v1414_v37, 0 }
 0x135   : > { %v1177_v4 = vpop.f32.mrf.mxu2  ;;  %v1481_v31 = vmul.f32 %v1457_v44, %v1457_v44  ;;  %v1463_v10 = vsel %vm1462_vm14, %v1457_v44, 0.0  ;;  %v1436_v39 = vadd.s32 7, %v1414_v37  ;;  %vm2276_vm7 = vmand %vm1426_vm5, %vm1421_vm4  ;;  %vm1513_vm10 = vsmask.f32 1280 }
 0x136   : > { %1508 = vst.msk [vmem:[%s2227_s8] sm:$0xf] %vm1507_vm8, %v1502_v54  ;;  %v1190_v24 = vadd.f32 %v1177_v4, %v1142_v49 }
 0x137   : > { %v1486_v15 = vsel %vm1462_vm14, %v1481_v31, 0.0  ;;  %v1441_v46 = vsel %vm2276_vm7, %v1436_v39, %v1414_v37 }
 0x138   : > { %v1238_v7 = vadd.f32 %v1225_v50, %v1190_v24  ;;  %v1045_v25 = vpop.f32.mrf.mxu0  ;;  %v1134_v8 = vpop.f32.mrf.mxu1  ;;  %vm1446_vm11 = vcmp.lt.s32.totalorder %v1441_v46, 5 }
 0x139   : > { %v1055_v13 = vadd.f32 %v1045_v25, %v966_v26 }
 0x13a   : > { %v1247_v51 = vadd.f32 %v2209_v52, %v1238_v7 }
 0x13b   : > { %v1144_v40 = vadd.f32 %v1134_v8, %v1055_v13 }
 0x13c   : > { %v1458_v62 = vsel %vm1443_vm13, %v1247_v51, 0.0  ;;  %v1503_v61 = vpack.c.bf16 %v1247_v51, %v1247_v51  ;;  %v1228_v27 = vpop.f32.mrf.mxu3  ;;  %vm1514_vm13 = vmand %vm1512_vm9, %vm1513_vm10 }
 0x13d   : > { %v1464_v5 = vsel %vm1462_vm14, %v1458_v62, 0.0  ;;  %v1482_v14 = vmul.f32 %v1458_v62, %v1458_v62  ;;  %v1180_v23 = vpop.f32.mrf.mxu2 }
 0x13e   : > { %v1465_v41 = vadd.f32 %v1464_v5, %v1463_v10  ;;  %1509 = vst.msk [vmem:[%s2227_s8 + $0x4] sm:$0xf] %vm1507_vm8, %v1503_v61  ;;  %v1191_v48 = vadd.f32 %v1180_v23, %v1143_v11 }
 0x13f   : > { %v1487_v56 = vsel %vm1462_vm14, %v1482_v14, 0.0 }
 0x140   : > { %v1488_v18 = vadd.f32 %v1487_v56, %v1486_v15  ;;  %v1239_v19 = vadd.f32 %v1228_v27, %v1191_v48  ;;  %v1048_v58 = vpop.f32.mrf.mxu0  ;;  %v1137_v33 = vpop.f32.mrf.mxu1 }
 0x141   : > { %v1056_v54 = vadd.f32 %v1048_v58, %v967_v57 }
 0x142   : > { %v1248_v16 = vadd.f32 %v2209_v52, %v1239_v19 }
 0x143   : > { %v1145_v28 = vadd.f32 %v1137_v33, %v1056_v54 }
 0x144   : > { %v1459_v63 = vsel %vm1444_vm2, %v1248_v16, 0.0  ;;  %v1504_v43 = vpack.c.bf16 %v1248_v16, %v1248_v16  ;;  %v1230_v30 = vpop.f32.mrf.mxu3 }
 0x145   : > { %v1466_v47 = vsel %vm1462_vm14, %v1459_v63, 0.0  ;;  %v1483_v35 = vmul.f32 %v1459_v63, %v1459_v63  ;;  %v1182_v36 = vpop.f32.mrf.mxu2 }
 0x146   : > { %v1467_v0 = vadd.f32 %v1466_v47, %v1465_v41  ;;  %1510 = vst.msk [vmem:[%s2227_s8 + $0x8] sm:$0xf] %vm1507_vm8, %v1504_v43  ;;  %v1192_v29 = vadd.f32 %v1182_v36, %v1144_v40 }
 0x147   : > { %v1489_v49 = vsel %vm1462_vm14, %v1483_v35, 0.0 }
 0x148   : > { %v1490_v20 = vadd.f32 %v1489_v49, %v1488_v18  ;;  %v1240_v38 = vadd.f32 %v1230_v30, %v1192_v29  ;;  %v1050_v4 = vpop.f32.mrf.mxu0  ;;  %v1139_v50 = vpop.f32.mrf.mxu1 }
 0x14a   : > { %v1249_v2 = vadd.f32 %v2209_v52, %v1240_v38 }
 0x14c   : > { %v1460_v59 = vsel %vm1445_vm6, %v1249_v2, 0.0  ;;  %v1505_v32 = vpack.c.bf16 %v1249_v2, %v1249_v2  ;;  %v1233_v7 = vpop.f32.mrf.mxu3 }
 0x14d   : > { %v1468_v60 = vsel %vm1462_vm14, %v1460_v59, 0.0  ;;  %v1484_v44 = vmul.f32 %v1460_v59, %v1460_v59  ;;  %v1185_v6 = vpop.f32.mrf.mxu2 }
 0x14e   : > { %v1469_v25 = vadd.f32 %v1468_v60, %v1467_v0  ;;  %1511 = vst.msk [vmem:[%s2227_s8 + $0xc] sm:$0xf] %vm1507_vm8, %v1505_v32  ;;  %v1193_v8 = vadd.f32 %v1185_v6, %v1145_v28  ;;  %vm1479_vm8 = vcmask 122880  }
 0x14f   : > { %v1491_v17 = vsel %vm1462_vm14, %v1484_v44, 0.0 }
 0x150   : > { %v1492_v51 = vadd.f32 %v1491_v17, %v1490_v20  ;;  %v1241_v9 = vadd.f32 %v1233_v7, %v1193_v8 }
 0x152   : > { %v1250_v31 = vadd.f32 %v2209_v52, %v1241_v9 }
 0x154   : > { %v1461_v53 = vsel %vm1446_vm11, %v1250_v31, 0.0  ;;  %v1506_v42 = vpack.c.bf16 %v1250_v31, %v1250_v31  ;;  %v1235_v55 = vpop.f32.mrf.mxu3 }
 0x155   : > { %v1471_v11 = vsel %vm1470_vm12, %v1461_v53, 0.0  ;;  %v1485_v62 = vmul.f32 %v1461_v53, %v1461_v53  ;;  %v1187_v61 = vpop.f32.mrf.mxu2 }
 0x156   : > { %v1472_v10 = vadd.f32 %v1471_v11, %v1469_v25  ;;  %v1516_v5 = vsel %vm1514_vm13, %v1506_v42, %v1515_v3 }
 0x157   : > { %v1493_v14 = vsel %vm1470_vm12, %v1485_v62, 0.0  ;;  %1517 = vst [vmem:[%s2227_s8 + $0x10] sm:$0x3] %v1516_v5 }
 0x158   : > { %v1473_v23 = vrot.slane %v1472_v10, 4  ;;  %v1494_v27 = vadd.f32 %v1493_v14, %v1492_v51 }
 0x15a   : > { %v1474_v26 = vadd.f32 %v1473_v23, %v1472_v10  ;;  %v1495_v41 = vrot.slane %v1494_v27, 4 }
 0x15c   : > { %v1475_v48 = vrot.slane %v1474_v26, 2  ;;  %v1496_v52 = vadd.f32 %v1495_v41, %v1494_v27 }
 0x15e   : > { %v1476_v1 = vadd.f32 %v1475_v48, %v1474_v26  ;;  %v1497_v15 = vrot.slane %v1496_v52, 2 }
 0x160   : > { %v1477_v56 = vrot.slane %v1476_v1, 1  ;;  %v1498_v21 = vadd.f32 %v1497_v15, %v1496_v52 }
 0x162   : > { %v1478_v18 = vadd.f32 %v1477_v56, %v1476_v1  ;;  %v1499_v13 = vrot.slane %v1498_v21, 1 }
 0x164   : > { %1480 = vst.msk [vmem:[%s208_s12] sm:$0x1] %vm1479_vm8, %v1478_v18  ;;  %v1500_v19 = vadd.f32 %v1499_v13, %v1498_v21 }
 0x166   : > { %1501 = vst.msk [vmem:[%s208_s12 + $0x1] sm:$0x1] %vm1479_vm8, %v1500_v19 }
 0x167 PF: > { %s15_s15 = sadd.s32 1, %s1839_s15  }
 0x168   : > { %p12_p4 = scmp.ge.s32.totalorder %s15_s15, 4  }
 0x16a   :  { %14 = sbr.rel (!%p12_p4) target bundleno = 1 (0x1), region = 92 }

// kernel: nlayer_discriminator_forward.7
= control target key start
LH: loop header
LB: loop body
LE: loop exit
PB: predicated region body
PF: predicated region fallthrough
CT: control target
= control target key end

     0   :  { %s1298_s15 = smov 0   ;;  %s1457_s0 = inlined_call_operand.vmem [shape: bf16[2,4,32,16], index: 0, kind: input, shape index: {}]   ;;  %s1458_s1 = inlined_call_operand.vmem [shape: bf16[16,16,32], index: 1, kind: input, shape index: {}]   ;;  %s1459_s2 = inlined_call_operand.vmem [shape: f32[1,32], index: 2, kind: input, shape index: {}]   ;;  %s1460_s3 = inlined_call_operand.vmem [shape: bf16[2,15,32], index: 3, kind: output, shape index: {0}]   ;;  %s1461_s4 = inlined_call_operand.vmem [shape: f32[2,2,32], index: 4, kind: output, shape index: {1}]  }
   0x1 LB: > { %s1073_s16 = sadd.s32 4294967295, %s1270_s15   ;;  %p1077_p0 = scmp.ge.s32.totalorder %s1270_s15, 1  ;;  %s1270_s15 = sphi %s1298_s15, %s15_s15  }
   0x2   : > { %p165_p1 = scmp.lt.s32.totalorder %s1270_s15, 3 }
   0x4   : > { %p166_p2 = pnand %p1077_p0, %p165_p1 }
   0x5   : > { %p195_p3 = scmp.lt.s32.totalorder (!%p166_p2), %s1073_s16, 1 }
   0x6   : > { %169 = sbr.rel (%p166_p2) target bundleno = 234 (0xea), region = 32 }
   0xb   : > { %v1237_v0 = vld [vmem:[%s1458_s1 + $0x8] sm:$0xff]  ;;  %v1235_v1 = vld [vmem:[%s1458_s1] sm:$0xff]  ;;  %v1238_v2 = vld [vmem:[%s1458_s1 + $0x10] sm:$0xff]  ;;  %s1463_s16 = smov (!%p195_p3, %s1073_s16), 1  ;;  %vm231_vm0 = vcmask 130048   ;;  %vm609_vm2 = vcmask 1044480  }
   0xc   : > { %v1239_v3 = vld [vmem:[%s1458_s1 + $0x18] sm:$0xff]  ;;  %v1244_v4 = vld [vmem:[%s1458_s1 + $0x30] sm:$0xff]  ;;  %v1241_v5 = vld [vmem:[%s1458_s1 + $0x20] sm:$0xff]  ;;  %242 = vmatpush.bf16.msra.mxu0 %v1237_v0  ;;  %270 = vmatpush.bf16.msra.mxu1 %v1235_v1  ;;  %s1232_s7 = sshll.u32 %s1463_s16, 6  ;;  %vm499_vm1 = vsmask.f32 5376 }
   0xd   : > { %v1245_v6 = vld [vmem:[%s1458_s1 + $0x38] sm:$0xff]  ;;  %v1243_v7 = vld [vmem:[%s1458_s1 + $0x28] sm:$0xff]  ;;  %302 = vmatpush.bf16.msra.mxu2 %v1238_v2  ;;  %336 = vmatpush.bf16.msra.mxu3 %v1239_v3  ;;  %s1336_s10 = scalar_lea.vmem %s1457_s0, %s1232_s7  ;;  %v1246_v8 = vld [vmem:[%s1458_s1 + $0x40] sm:$0xff]  ;;  %s1233_s5 = sshll.u32 %s1463_s16, 3  ;;  %vm979_vm12 = vcmask 257024  }
   0xe   : > { %v1247_v9 = vld [vmem:[%s1458_s1 + $0x48] sm:$0xff]  ;;  %v1236_v10 = vld [vmem:[%s1336_s10 + $0x10] sm:$0xff]  ;;  %v1234_v11 = vld [vmem:[%s1336_s10] sm:$0xff]  ;;  %s204_s8 = scalar_lea.vmem %s1460_s3, %s1233_s5  ;;  %vm982_vm15 = vsmask.f32 3328  ;;  %s1082_s9 = sshll.u32 %s1463_s16, 1 }
   0xf   : > { %1095 = vmatmul.msk.bf16.vlgmr.msra.gmra.mxu0 %vm231_vm0, %v1236_v10  ;;  %1104 = vmatmul.msk.bf16.vlgmr.msra.gmra.mxu1 %vm231_vm0, %v1234_v11  ;;  %v280_v12 = vshrl.u32 %v1234_v11, 16  ;;  %v282_v13 = vshll.u32 %v1234_v11, 16  ;;  %v314_v14 = vshrl.u32 %v1236_v10, 16  ;;  %v316_v15 = vshll.u32 %v1236_v10, 16  ;;  %v1248_v18 = vld [vmem:[%s1458_s1 + $0x50] sm:$0xff]  ;;  %v1249_v19 = vld [vmem:[%s1458_s1 + $0x58] sm:$0xff]  ;;  %s208_s12 = scalar_lea.vmem %s1461_s4, %s1082_s9 }
  0x10   : > { %372 = vmatpush.bf16.msrb.mxu0 %v1241_v5  ;;  %408 = vmatpush.bf16.msrb.mxu1 %v1243_v7  ;;  %v485_v22 = vld [vmem:[%s1336_s10] sm:$0xc]  ;;  %v1356_v23 = vld [vmem:[%s1336_s10 + $0x4] sm:$0xf]  ;;  %v487_v24 = vld [vmem:[%s1336_s10 + $0x8] sm:$0x3] }
  0x11   : > { %442 = vmatpush.bf16.msrb.mxu2 %v1244_v4  ;;  %476 = vmatpush.bf16.msrb.mxu3 %v1245_v6  ;;  %v284_v16 = vrot.slane %v282_v13, 1  ;;  %v318_v17 = vrot.slane %v316_v15, 1  ;;  %v1166_v25 = vld [vmem:[%s1336_s10 + $0x10] sm:$0xc]  ;;  %v1361_v26 = vld [vmem:[%s1336_s10 + $0x14] sm:$0xf]  ;;  %v494_v30 = vunpack.c.l.b16 %v485_v22  ;;  %v495_v31 = vunpack.c.l.b16 %v1356_v23 }
  0x12   : > { %v1240_v27 = vld [vmem:[%s1336_s10 + $0x20] sm:$0xff]  ;;  %v1242_v28 = vld [vmem:[%s1336_s10 + $0x30] sm:$0xff]  ;;  %v1168_v29 = vld [vmem:[%s1336_s10 + $0x18] sm:$0x3]  ;;  %v496_v32 = vunpack.c.l.b16 %v487_v24  ;;  %v551_v33 = vunpack.c.l.b16 %v1166_v25  ;;  %v552_v34 = vunpack.c.l.b16 %v1361_v26 }
  0x13   : > { %v285_v20 = vor.u32 %v284_v16, %v280_v12  ;;  %v319_v21 = vor.u32 %v318_v17, %v314_v14  ;;  %v553_v35 = vunpack.c.l.b16 %v1168_v29  ;;  %v422_v36 = vshll.u32 %v1240_v27, 16  ;;  %v1250_v42 = vld [vmem:[%s1458_s1 + $0x60] sm:$0xff]  ;;  %v1251_v43 = vld [vmem:[%s1458_s1 + $0x68] sm:$0xff]  ;;  %v1183_v60 = vld [vmem:[%s1336_s10 + $0x10] sm:$0x8] }
  0x14   : > { %533 = vmatpush.bf16.msra.mxu0 %v1246_v8  ;;  %589 = vmatpush.bf16.msra.mxu1 %v1247_v9  ;;  %v456_v37 = vshll.u32 %v1242_v28, 16  ;;  %v497_v38 = vpack.c.b16 %v495_v31, %v494_v30  ;;  %v498_v39 = vpack.c.b16 %v496_v32, %v496_v32  ;;  %v554_v40 = vpack.c.b16 %v552_v34, %v551_v33  ;;  %v598_v58 = vld [vmem:[%s1336_s10] sm:$0x8]  ;;  %v599_v59 = vld [vmem:[%s1336_s10 + $0x8] sm:$0x7]  ;;  %v1252_v1 = vld [vmem:[%s1458_s1 + $0x70] sm:$0xff] }
  0x15   : > { %1111 = vmatmul.msk.bf16.vlgmr.msra.gmra.mxu2 %vm231_vm0, %v285_v20  ;;  %1118 = vmatmul.msk.bf16.vlgmr.msra.gmra.mxu3 %vm231_vm0, %v319_v21  ;;  %v555_v41 = vpack.c.b16 %v553_v35, %v553_v35  ;;  %v420_v44 = vshrl.u32 %v1240_v27, 16  ;;  %v424_v45 = vrot.slane %v422_v36, 1  ;;  %v454_v46 = vshrl.u32 %v1242_v28, 16  ;;  %v1253_v2 = vld [vmem:[%s1458_s1 + $0x78] sm:$0xff]  ;;  %v1192_v6 = vld [vmem:[%s1336_s10 + $0x20] sm:$0xc] }
  0x16   : > { %629 = vmatpush.bf16.msra.mxu2 %v1248_v18  ;;  %668 = vmatpush.bf16.msra.mxu3 %v1249_v19  ;;  %v458_v47 = vrot.slane %v456_v37, 1  ;;  %v501_v48 = vshrl.u32 %v497_v38, 16  ;;  %v504_v49 = vshll.u32 %v497_v38, 16  ;;  %v509_v50 = vshrl.u32 %v498_v39, 16  ;;  %v1184_v5 = vld [vmem:[%s1336_s10 + $0x18] sm:$0x7] }
  0x17   : > { %v512_v51 = vshll.u32 %v498_v39, 16  ;;  %v557_v52 = vshrl.u32 %v554_v40, 16  ;;  %v560_v53 = vshll.u32 %v554_v40, 16  ;;  %v565_v54 = vshrl.u32 %v555_v41, 16  ;;  %v1394_v9 = vld [vmem:[%s1336_s10 + $0x24] sm:$0xf] }
  0x18   : > { %v568_v55 = vshll.u32 %v555_v41, 16  ;;  %v425_v56 = vor.u32 %v424_v45, %v420_v44  ;;  %v459_v57 = vor.u32 %v458_v47, %v454_v46  ;;  %v503_v61 = vrot.slane %v501_v48, 2  ;;  %v1194_v10 = vld [vmem:[%s1336_s10 + $0x28] sm:$0x3]  ;;  %v1202_v13 = vld [vmem:[%s1336_s10 + $0x30] sm:$0xc] }
  0x19   : > { %v506_v62 = vrot.slane %v504_v49, 3  ;;  %v511_v63 = vrot.slane %v509_v50, 2  ;;  %v514_v0 = vrot.slane %v512_v51, 3  ;;  %v559_v3 = vrot.slane %v557_v52, 2  ;;  %v1401_v14 = vld [vmem:[%s1336_s10 + $0x34] sm:$0xf] }
  0x1a   : > { %v562_v4 = vrot.slane %v560_v53, 3  ;;  %v567_v7 = vrot.slane %v565_v54, 2  ;;  %v570_v8 = vrot.slane %v568_v55, 3  ;;  %v605_v11 = vunpack.c.l.b16 %v598_v58  ;;  %v1204_v15 = vld [vmem:[%s1336_s10 + $0x38] sm:$0x3] }
  0x1b   : > { %v606_v12 = vunpack.c.l.b16 %v599_v59  ;;  %v507_v16 = vor.u32 %v506_v62, %v503_v61  ;;  %v515_v17 = vor.u32 %v514_v0, %v511_v63  ;;  %v645_v18 = vunpack.c.l.b16 %v1183_v60  ;;  %v1212_v52 = vld [vmem:[%s1336_s10 + $0x20] sm:$0x8]  ;;  %v1213_v53 = vld [vmem:[%s1336_s10 + $0x28] sm:$0x7]  ;;  %v1221_v54 = vld [vmem:[%s1336_s10 + $0x30] sm:$0x8] }
  0x1c   : > { %v646_v19 = vunpack.c.l.b16 %v1184_v5  ;;  %v563_v20 = vor.u32 %v562_v4, %v559_v3  ;;  %v686_v21 = vunpack.c.l.b16 %v1192_v6  ;;  %v687_v22 = vunpack.c.l.b16 %v1394_v9  ;;  %v1222_v59 = vld [vmem:[%s1336_s10 + $0x38] sm:$0x7] }
  0x1d   : > { %v688_v24 = vunpack.c.l.b16 %v1194_v10  ;;  %v571_v25 = vor.u32 %v570_v8, %v567_v7  ;;  %v744_v29 = vunpack.c.l.b16 %v1204_v15  ;;  %v607_v30 = vpack.c.b16 %v495_v31, %v605_v11 }
  0x1e   : > { %v608_v32 = vpack.c.b16 %v606_v12, %v606_v12  ;;  %v647_v33 = vpack.c.b16 %v552_v34, %v645_v18  ;;  %v648_v35 = vpack.c.b16 %v646_v19, %v646_v19  ;;  %v689_v36 = vpack.c.b16 %v687_v22, %v686_v21 }
  0x1f   : > { %1131 = vmatmul.msk.bf16.vlgmr.msrb.gmra.mxu0 %vm231_vm0, %v1240_v27  ;;  %1144 = vmatmul.msk.bf16.vlgmr.msrb.gmra.mxu1 %vm231_vm0, %v1242_v28  ;;  %v742_v27 = vunpack.c.l.b16 %v1202_v13  ;;  %v743_v28 = vunpack.c.l.b16 %v1401_v14  ;;  %v690_v37 = vpack.c.b16 %v688_v24, %v688_v24  ;;  %v516_v38 = vsel %vm499_vm1, %v507_v16, %v515_v17 }
  0x20   : > { %724 = vmatpush.bf16.msrb.mxu0 %v1250_v42  ;;  %780 = vmatpush.bf16.msrb.mxu1 %v1251_v43  ;;  %v572_v39 = vsel %vm499_vm1, %v563_v20, %v571_v25  ;;  %v746_v41 = vpack.c.b16 %v744_v29, %v744_v29  ;;  %v610_v42 = vrot.slane %v607_v30, 3  ;;  %v611_v43 = vrot.slane %v608_v32, 3 }
  0x21   : > { %v745_v40 = vpack.c.b16 %v743_v28, %v742_v27  ;;  %v649_v23 = vrot.slane %v647_v33, 3  ;;  %v650_v31 = vrot.slane %v648_v35, 3  ;;  %v692_v26 = vshrl.u32 %v689_v36, 16 }
  0x22   : > { %v695_v34 = vshll.u32 %v689_v36, 16  ;;  %v700_v44 = vshrl.u32 %v690_v37, 16  ;;  %v703_v45 = vshll.u32 %v690_v37, 16  ;;  %v756_v48 = vshrl.u32 %v746_v41, 16 }
  0x23   : > { %v748_v46 = vshrl.u32 %v745_v40, 16  ;;  %v751_v47 = vshll.u32 %v745_v40, 16  ;;  %v759_v49 = vshll.u32 %v746_v41, 16  ;;  %v612_v50 = vsel %vm609_vm2, %v610_v42, %v611_v43 }
  0x24   : > { %v651_v51 = vsel %vm609_vm2, %v649_v23, %v650_v31  ;;  %v694_v55 = vrot.slane %v692_v26, 2  ;;  %v705_v58 = vrot.slane %v703_v45, 3  ;;  %v758_v62 = vrot.slane %v756_v48, 2 }
  0x25   : > { %1151 = vmatmul.msk.bf16.vlgmr.msrb.gmra.mxu2 %vm231_vm0, %v425_v56  ;;  %1158 = vmatmul.msk.bf16.vlgmr.msrb.gmra.mxu3 %vm231_vm0, %v459_v57  ;;  %v697_v56 = vrot.slane %v695_v34, 3  ;;  %v702_v57 = vrot.slane %v700_v44, 2  ;;  %v750_v60 = vrot.slane %v748_v46, 2  ;;  %v753_v61 = vrot.slane %v751_v47, 3 }
  0x26   : > { %819 = vmatpush.bf16.msrb.mxu2 %v1252_v1  ;;  %858 = vmatpush.bf16.msrb.mxu3 %v1253_v2  ;;  %v761_v63 = vrot.slane %v759_v49, 3  ;;  %v796_v0 = vunpack.c.l.b16 %v1212_v52  ;;  %v797_v1 = vunpack.c.l.b16 %v1213_v53  ;;  %v835_v2 = vunpack.c.l.b16 %v1221_v54 }
  0x27   : > { %v836_v3 = vunpack.c.l.b16 %v1222_v59  ;;  %v698_v4 = vor.u32 %v697_v56, %v694_v55  ;;  %v706_v5 = vor.u32 %v705_v58, %v702_v57  ;;  %v754_v6 = vor.u32 %v753_v61, %v750_v60 }
  0x28   : > { %v762_v7 = vor.u32 %v761_v63, %v758_v62  ;;  %v798_v8 = vpack.c.b16 %v687_v22, %v796_v0  ;;  %v799_v9 = vpack.c.b16 %v797_v1, %v797_v1  ;;  %v837_v10 = vpack.c.b16 %v743_v28, %v835_v2 }
  0x29   : > { %v838_v11 = vpack.c.b16 %v836_v3, %v836_v3  ;;  %v707_v12 = vsel %vm499_vm1, %v698_v4, %v706_v5  ;;  %v873_v22 = vlaneseq  ;;  %v1272_v56 = vmov 0  }
  0x2a   : > { %v763_v13 = vsel %vm499_vm1, %v754_v6, %v762_v7  ;;  %v800_v14 = vrot.slane %v798_v8, 3  ;;  %v801_v15 = vrot.slane %v799_v9, 3  ;;  %v839_v16 = vrot.slane %v837_v10, 3 }
  0x2b   : > { %v840_v17 = vrot.slane %v838_v11, 3  ;;  %v1430_v27 = vshrl.u32 %v873_v22, 7  ;;  %vm952_vm1 = vcmask 261120  }
  0x2c   : > { %v802_v18 = vsel %vm609_vm2, %v800_v14, %v801_v15 }
  0x2d   : > { %v841_v19 = vsel %vm609_vm2, %v839_v16, %v840_v17  ;;  %v879_v30 = vand.u32 65535, %v1430_v27  ;;  %v880_v35 = vshrl.u32 %v1430_v27, 16  ;;  %v1435_v37 = vadd.s32 8, %v1430_v27 }
  0x2e   : > { %vm954_vm2 = vcmask 260096  }
  0x2f   : > { %1165 = vmatmul.msk.bf16.vlgmr.msra.gmra.mxu0 %vm231_vm0, %v516_v38  ;;  %1175 = vmatmul.msk.bf16.vlgmr.msra.gmra.mxu1 %vm231_vm0, %v572_v39  ;;  %v883_v36 = vmul.u32 52428, %v879_v30  ;;  %v908_v39 = vand.u32 65535, %v1435_v37  ;;  %v882_v43 = vmul.u32 52429, %v879_v30  ;;  %v884_v23 = vmul.u32 52429, %v880_v35 }
  0x30   : > { %v909_v26 = vshrl.u32 %v1435_v37, 16  ;;  %v885_v53 = vmul.u32 52428, %v880_v35 }
  0x31   : > { %v886_v31 = vshll.u32 %v883_v36, 16  ;;  %v912_v34 = vmul.u32 52428, %v908_v39  ;;  %v888_v47 = vshll.u32 %v884_v23, 16  ;;  %v887_v7 = vshrl.u32 %v883_v36, 16 }
  0x32   : > { %v914_v2 = vmul.u32 52428, %v909_v26  ;;  %v889_v15 = vshrl.u32 %v884_v23, 16 }
  0x33   : > { %vm890_vm3 = vc.u32 %v882_v43, %v886_v31  ;;  %v892_v48 = vadd.s32 %v886_v31, %v882_v43  ;;  %v915_v52 = vshll.u32 %v912_v34, 16 }
  0x34   : > { %v891_v57 = vsel %vm890_vm3, 1, %v1272_v56  ;;  %vm983_vm3 = vmand %vm979_vm12, %vm982_vm15 }
  0x35   : > { %1182 = vmatmul.msk.bf16.vlgmr.msra.gmra.mxu2 %vm231_vm0, %v612_v50  ;;  %1191 = vmatmul.msk.bf16.vlgmr.msra.gmra.mxu3 %vm231_vm0, %v651_v51  ;;  %v911_v50 = vmul.u32 52429, %v908_v39  ;;  %v913_v51 = vmul.u32 52429, %v909_v26  ;;  %vm894_vm4 = vc.u32 %v892_v48, %v888_v47  ;;  %v893_v62 = vadd.s32 %v891_v57, %v885_v53 }
  0x36   : > { %v895_v1 = vsel %vm894_vm4, 1, %v1272_v56  ;;  %vm963_vm4 = vcmask 253952  }
  0x37   : > { %v917_v60 = vshll.u32 %v913_v51, 16  ;;  %vm919_vm5 = vc.u32 %v911_v50, %v915_v52  ;;  %v921_v61 = vadd.s32 %v915_v52, %v911_v50  ;;  %v897_v8 = vadd.s32 %v895_v1, %v893_v62 }
  0x38   : > { %v920_v4 = vsel %vm919_vm5, 1, %v1272_v56 }
  0x39   : > { %vm923_vm6 = vc.u32 %v921_v61, %v917_v60  ;;  %v922_v10 = vadd.s32 %v920_v4, %v914_v2  ;;  %v898_v16 = vadd.s32 %v897_v8, %v887_v7  ;;  %v984_v8 = vld [vmem:[%s204_s8 + $0x4] sm:$0xf] }
  0x3f   : > { %1201 = vmatmul.msk.bf16.vlgmr.msrb.gmra.mxu0 %vm231_vm0, %v707_v12  ;;  %1211 = vmatmul.msk.bf16.vlgmr.msrb.gmra.mxu1 %vm231_vm0, %v763_v13  ;;  %v924_v13 = vsel %vm923_vm6, 1, %v1272_v56  ;;  %v1263_v56 = vld [vmem:[%s1459_s2] ss:$0 sm:$0xff] }
  0x45   : > { %1220 = vmatmul.msk.bf16.vlgmr.msrb.gmra.mxu2 %vm231_vm0, %v802_v18  ;;  %1229 = vmatmul.msk.bf16.vlgmr.msrb.gmra.mxu3 %vm231_vm0, %v841_v19  ;;  %v916_v18 = vshrl.u32 %v912_v34, 16  ;;  %v926_v19 = vadd.s32 %v924_v13, %v922_v10 }
  0x8c   : > { %v244_v20 = vpop.f32.mrf.mxu0  ;;  %v272_v21 = vpop.f32.mrf.mxu1 }
  0x8d   : > { %v273_v38 = vadd.f32 %v272_v21, %v244_v20 }
  0x94   : > { %v246_v24 = vpop.f32.mrf.mxu0  ;;  %v274_v25 = vpop.f32.mrf.mxu1 }
  0x95   : > { %v275_v49 = vadd.f32 %v274_v25, %v246_v24  ;;  %v899_v24 = vadd.s32 %v898_v16, %v889_v15 }
  0x97   : > { %v900_v36 = vshrl.u32 %v899_v24, 2 }
  0x98   : > { %v304_v28 = vpop.f32.mrf.mxu2  ;;  %v338_v29 = vpop.f32.mrf.mxu3 }
  0x99   : > { %v309_v40 = vadd.f32 %v304_v28, %v273_v38  ;;  %v918_v28 = vshrl.u32 %v913_v51, 16 }
  0x9b   : > { %v343_v44 = vadd.f32 %v338_v29, %v309_v40  ;;  %v927_v29 = vadd.s32 %v926_v19, %v916_v18 }
  0x9c   : > { %v374_v32 = vpop.f32.mrf.mxu0  ;;  %v410_v33 = vpop.f32.mrf.mxu1 }
  0x9d   : > { %v379_v54 = vadd.f32 %v374_v32, %v343_v44  ;;  %v928_v39 = vadd.s32 %v927_v29, %v918_v28 }
  0x9f   : > { %v415_v63 = vadd.f32 %v410_v33, %v379_v54  ;;  %v929_v23 = vshrl.u32 %v928_v39, 2 }
  0xa0   : > { %v306_v41 = vpop.f32.mrf.mxu2  ;;  %v340_v42 = vpop.f32.mrf.mxu3 }
  0xa1   : > { %v310_v55 = vadd.f32 %v306_v41, %v275_v49  ;;  %v930_v48 = vmul.u32 5, %v929_v23 }
  0xa3   : > { %v344_v0 = vadd.f32 %v340_v42, %v310_v55  ;;  %v901_v42 = vmul.u32 5, %v900_v36  ;;  %v931_v52 = vsub.s32 %v1435_v37, %v930_v48 }
  0xa4   : > { %v376_v45 = vpop.f32.mrf.mxu0  ;;  %v412_v46 = vpop.f32.mrf.mxu1 }
  0xa5   : > { %v380_v9 = vadd.f32 %v376_v45, %v344_v0  ;;  %v902_v45 = vsub.s32 %v1430_v27, %v901_v42  ;;  %vm935_vm10 = vcmp.ne.s32.totalorder %v931_v52, 0  ;;  %vm937_vm11 = vcmp.lt.s32.totalorder %v931_v52, 0 }
  0xa6   : > { %v941_v62 = vadd.s32 5, %v931_v52  ;;  %vm939_vm13 = vmand %vm937_vm11, %vm935_vm10 }
  0xa7   : > { %v416_v17 = vadd.f32 %v412_v46, %v380_v9  ;;  %vm934_vm7 = vcmp.ne.s32.totalorder %v902_v45, 0  ;;  %vm936_vm8 = vcmp.lt.s32.totalorder %v902_v45, 0  ;;  %v940_v57 = vadd.s32 5, %v902_v45 }
  0xa8   : > { %v444_v58 = vpop.f32.mrf.mxu2  ;;  %v478_v59 = vpop.f32.mrf.mxu3  ;;  %vm938_vm9 = vmand %vm936_vm8, %vm934_vm7  ;;  %v943_v2 = vsel %vm939_vm13, %v941_v62, %v931_v52 }
  0xa9   : > { %v449_v5 = vadd.f32 %v444_v58, %v415_v63  ;;  %v942_v61 = vsel %vm938_vm9, %v940_v57, %v902_v45  ;;  %vm945_vm0 = vcmp.lt.s32.totalorder %v943_v2, 3 }
  0xaa   : > { %vm944_vm14 = vcmp.lt.s32.totalorder %v942_v61, 3 }
  0xab   : > { %v483_v14 = vadd.f32 %v478_v59, %v449_v5 }
  0xac   : > { %v535_v3 = vpop.f32.mrf.mxu0  ;;  %v591_v6 = vpop.f32.mrf.mxu1 }
  0xad   : > { %v540_v21 = vadd.f32 %v535_v3, %v483_v14 }
  0xaf   : > { %v596_v33 = vadd.f32 %v591_v6, %v540_v21 }
  0xb0   : > { %v446_v11 = vpop.f32.mrf.mxu2  ;;  %v480_v12 = vpop.f32.mrf.mxu3 }
  0xb1   : > { %v450_v22 = vadd.f32 %v446_v11, %v416_v17 }
  0xb3   : > { %v484_v35 = vadd.f32 %v480_v12, %v450_v22 }
  0xb4   : > { %v537_v20 = vpop.f32.mrf.mxu0  ;;  %v593_v25 = vpop.f32.mrf.mxu1 }
  0xb5   : > { %v541_v40 = vadd.f32 %v537_v20, %v484_v35 }
  0xb7   : > { %v597_v34 = vadd.f32 %v593_v25, %v541_v40 }
  0xb8   : > { %v631_v30 = vpop.f32.mrf.mxu2  ;;  %v670_v32 = vpop.f32.mrf.mxu3 }
  0xb9   : > { %v636_v38 = vadd.f32 %v631_v30, %v596_v33 }
  0xbb   : > { %v675_v43 = vadd.f32 %v670_v32, %v636_v38 }
  0xbc   : > { %v726_v41 = vpop.f32.mrf.mxu0  ;;  %v782_v44 = vpop.f32.mrf.mxu1 }
  0xbd   : > { %v731_v46 = vadd.f32 %v726_v41, %v675_v43 }
  0xbf   : > { %v787_v49 = vadd.f32 %v782_v44, %v731_v46 }
  0xc0   : > { %v633_v31 = vpop.f32.mrf.mxu2  ;;  %v672_v26 = vpop.f32.mrf.mxu3 }
  0xc1   : > { %v637_v47 = vadd.f32 %v633_v31, %v597_v34 }
  0xc3   : > { %v676_v50 = vadd.f32 %v672_v26, %v637_v47 }
  0xc4   : > { %v728_v51 = vpop.f32.mrf.mxu0  ;;  %v784_v59 = vpop.f32.mrf.mxu1 }
  0xc5   : > { %v732_v27 = vadd.f32 %v728_v51, %v676_v50 }
  0xc7   : > { %v788_v37 = vadd.f32 %v784_v59, %v732_v27 }
  0xc8   : > { %v821_v53 = vpop.f32.mrf.mxu2  ;;  %v860_v54 = vpop.f32.mrf.mxu3 }
  0xc9   : > { %v826_v55 = vadd.f32 %v821_v53, %v787_v49 }
  0xcb   : > { %v865_v58 = vadd.f32 %v860_v54, %v826_v55 }
  0xcd   : > { %v871_v60 = vadd.f32 %v1263_v56, %v865_v58 }
  0xcf   : > { %v977_v63 = vpack.c.bf16 %v871_v60, %v871_v60  ;;  %v950_v4 = vsel %vm944_vm14, %v871_v60, 0.0 }
  0xd0   : > { %v823_v0 = vpop.f32.mrf.mxu2  ;;  %v862_v3 = vpop.f32.mrf.mxu3  ;;  %v965_v7 = vmul.f32 %v950_v4, %v950_v4  ;;  %v953_v11 = vsel %vm952_vm1, %v950_v4, 0.0 }
  0xd1   : > { %980 = vst.msk [vmem:[%s204_s8] sm:$0xf] %vm979_vm12, %v977_v63  ;;  %v827_v1 = vadd.f32 %v823_v0, %v788_v37 }
  0xd2   : > { %v967_v16 = vsel %vm952_vm1, %v965_v7, 0.0 }
  0xd3   : > { %v866_v5 = vadd.f32 %v862_v3, %v827_v1 }
  0xd5   : > { %v872_v6 = vadd.f32 %v1263_v56, %v866_v5 }
  0xd7   : > { %v951_v9 = vsel %vm945_vm0, %v872_v6, 0.0  ;;  %v978_v10 = vpack.c.bf16 %v872_v6, %v872_v6 }
  0xd8   : > { %v955_v12 = vsel %vm954_vm2, %v951_v9, 0.0  ;;  %v966_v13 = vmul.f32 %v951_v9, %v951_v9 }
  0xd9   : > { %v956_v14 = vadd.f32 %v955_v12, %v953_v11  ;;  %v985_v15 = vsel %vm983_vm3, %v978_v10, %v984_v8 }
  0xda   : > { %v968_v17 = vsel %vm954_vm2, %v966_v13, 0.0  ;;  %986 = vst [vmem:[%s204_s8 + $0x4] sm:$0xf] %v985_v15 }
  0xdb   : > { %v957_v18 = vrot.slane %v956_v14, 4  ;;  %v969_v19 = vadd.f32 %v968_v17, %v967_v16 }
  0xdd   : > { %v958_v20 = vadd.f32 %v957_v18, %v956_v14  ;;  %v970_v21 = vrot.slane %v969_v19, 4 }
  0xdf   : > { %v959_v22 = vrot.slane %v958_v20, 2  ;;  %v971_v24 = vadd.f32 %v970_v21, %v969_v19 }
  0xe1   : > { %v960_v25 = vadd.f32 %v959_v22, %v958_v20  ;;  %v972_v28 = vrot.slane %v971_v24, 2 }
  0xe3   : > { %v961_v29 = vrot.slane %v960_v25, 1  ;;  %v973_v30 = vadd.f32 %v972_v28, %v971_v24 }
  0xe5   : > { %v962_v32 = vadd.f32 %v961_v29, %v960_v25  ;;  %v974_v33 = vrot.slane %v973_v30, 1 }
  0xe7   : > { %964 = vst.msk [vmem:[%s208_s12] sm:$0x1] %vm963_vm4, %v962_v32  ;;  %v975_v35 = vadd.f32 %v974_v33, %v973_v30 }
  0xe9   : > { %976 = vst.msk [vmem:[%s208_s12 + $0x1] sm:$0x1] %vm963_vm4, %v975_v35 }
  0xea PF: > { %s15_s15 = sadd.s32 1, %s1270_s15  }
  0xeb   : > { %p12_p4 = scmp.ge.s32.totalorder %s15_s15, 4  }
  0xed   :  { %14 = sbr.rel (!%p12_p4) target bundleno = 1 (0x1), region = 92 }

// kernel: nlayer_discriminator_forward.8
= control target key start
LH: loop header
LB: loop body
LE: loop exit
PB: predicated region body
PF: predicated region fallthrough
CT: control target
= control target key end

     0   :  { %s1867_s15 = smov 0   ;;  %s2310_s0 = inlined_call_operand.vmem [shape: bf16[2,1,56,32], index: 0, kind: input, shape index: {}]   ;;  %s2311_s1 = inlined_call_operand.vmem [shape: bf16[16,32,64], index: 1, kind: input, shape index: {}]   ;;  %s2312_s2 = inlined_call_operand.vmem [shape: f32[1,64], index: 2, kind: input, shape index: {}]   ;;  %s2313_s3 = inlined_call_operand.vmem [shape: bf16[2,28,64], index: 3, kind: output, shape index: {0}]   ;;  %s2314_s4 = inlined_call_operand.vmem [shape: f32[2,2,64], index: 4, kind: output, shape index: {1}]  }
   0x1 LB: > { %s1531_s16 = sadd.s32 4294967295, %s1839_s15   ;;  %p1535_p0 = scmp.ge.s32.totalorder %s1839_s15, 1  ;;  %s1839_s15 = sphi %s1867_s15, %s15_s15  }
   0x2   : > { %p165_p1 = scmp.lt.s32.totalorder %s1839_s15, 3 }
   0x4   : > { %p166_p2 = pnand %p1535_p0, %p165_p1 }
   0x5   : > { %p195_p3 = scmp.lt.s32.totalorder (!%p166_p2), %s1531_s16, 1 }
   0x6   : > { %169 = sbr.rel (%p166_p2) target bundleno = 303 (0x12f), region = 32 }
   0xb   : > { %v1764_v0 = vld [vmem:[%s2311_s1 + $0x8] sm:$0xff]  ;;  %v1766_v2 = vld [vmem:[%s2311_s1 + $0x18] sm:$0xff]  ;;  %v1763_v4 = vld [vmem:[%s2311_s1] sm:$0xff]  ;;  %s2322_s16 = smov (!%p195_p3, %s1531_s16), 1  ;;  %vm262_vm0 = vcmask 261120   ;;  %vm336_vm1 = vcmask 1046528  }
   0xc   : > { %v1768_v1 = vld [vmem:[%s2311_s1 + $0x28] sm:$0xff]  ;;  %v1770_v3 = vld [vmem:[%s2311_s1 + $0x38] sm:$0xff]  ;;  %314 = vmatpush.bf16.msra.mxu1 %v1764_v0  ;;  %v1767_v5 = vld [vmem:[%s2311_s1 + $0x20] sm:$0xff]  ;;  %275 = vmatpush.bf16.msra.mxu0 %v1766_v2  ;;  %s1822_s7 = smul.u32 28, %s2322_s16  ;;  %vm234_vm2 = vsmask.f32 7424 }
   0xd   : > { %364 = vmatpush.bf16.msra.mxu2 %v1768_v1  ;;  %432 = vmatpush.bf16.msra.mxu3 %v1770_v3  ;;  %v1765_v6 = vld [vmem:[%s2311_s1 + $0x10] sm:$0xff]  ;;  %v1776_v8 = vld [vmem:[%s2311_s1 + $0x68] sm:$0xff]  ;;  %v1778_v10 = vld [vmem:[%s2311_s1 + $0x78] sm:$0xff]  ;;  %vm390_vm3 = vsmask.f32 6400  ;;  %vm728_vm5 = vcmask 1044480  }
   0xe   : > { %v1769_v7 = vld [vmem:[%s2311_s1 + $0x30] sm:$0xff]  ;;  %v1772_v9 = vld [vmem:[%s2311_s1 + $0x48] sm:$0xff]  ;;  %s1914_s18 = scalar_lea.vmem %s2310_s0, %s1822_s7  ;;  %v1774_v11 = vld [vmem:[%s2311_s1 + $0x58] sm:$0xff]  ;;  %vm472_vm4 = vsmask.f32 4352  ;;  %s1762_s13 = sshll.u32 %s2322_s16, 4 }
   0xf   : > { %v1775_v12 = vld [vmem:[%s2311_s1 + $0x60] sm:$0xff]  ;;  %v212_v16 = vld [vmem:[%s1914_s18 + $0x8] sm:$0xff]   ;;  %v1777_v24 = vld [vmem:[%s2311_s1 + $0x70] sm:$0xff]  ;;  %vm986_vm6 = vsmask.f32 5376  ;;  %s2262_s19 = scalar_lea.vmem %s2313_s3, %s1762_s13  ;;  %s1539_s20 = sshll.u32 %s2322_s16, 1 }
  0x10   : > { %315 = vmatpush.bf16.msra.mxu1 %v1763_v4  ;;  %v1771_v13 = vld [vmem:[%s2311_s1 + $0x40] sm:$0xff]  ;;  %276 = vmatpush.bf16.msra.mxu0 %v1765_v6  ;;  %v218_v19 = vld [vmem:[%s1914_s18 + $0xc] sm:$0x7]  ;;  %v230_v20 = vunpack.c.l.b16 %v212_v16  ;;  %v1773_v26 = vld [vmem:[%s2311_s1 + $0x50] sm:$0xff]  ;;  %v400_v32 = vshrl.u32 %v212_v16, 16  ;;  %v403_v33 = vshll.u32 %v212_v16, 16  ;;  %s208_s23 = scalar_lea.vmem %s2314_s4, %s1539_s20 }
  0x11   : > { %365 = vmatpush.bf16.msra.mxu2 %v1767_v5  ;;  %v1796_v14 = vld [vmem:[%s1914_s18] sm:$0xff]   ;;  %433 = vmatpush.bf16.msra.mxu3 %v1769_v7  ;;  %v231_v22 = vunpack.c.l.b16 %v218_v19  ;;  %v213_v40 = vld [vmem:[%s1914_s18 + $0xc] sm:$0x3]  ;;  %v1786_v50 = vld [vmem:[%s2311_s1 + $0xb8] sm:$0xff] }
  0x12   : > { %v1811_v15 = vld [vmem:[%s1914_s18] sm:$0xf0]  ;;  %v236_v17 = vshrl.u32 %v1796_v14, 16  ;;  %v238_v18 = vshll.u32 %v1796_v14, 16  ;;  %v1812_v21 = vld [vmem:[%s1914_s18] sm:$0xe]  ;;  %v289_v46 = vunpack.c.l.b16 %v213_v40 }
  0x13   : > { %1562 = vmatmul.msk.bf16.vlgmr.msra.gmra.mxu1 %vm262_vm0, %v1796_v14  ;;  %v1813_v23 = vor.u32 %v1812_v21, %v1811_v15  ;;  %v233_v27 = vpack.c.b16 %v231_v22, %v230_v20  ;;  %v402_v38 = vrot.slane %v400_v32, 1  ;;  %v405_v39 = vrot.slane %v403_v33, 2  ;;  %v1784_v48 = vld [vmem:[%s2311_s1 + $0xa8] sm:$0xff]  ;;  %v1782_v51 = vld [vmem:[%s2311_s1 + $0x98] sm:$0xff]  ;;  %v450_v53 = vld [vmem:[%s1914_s18 + $0x4] sm:$0xf] }
  0x14   : > { %523 = vmatpush.bf16.msrb.mxu0 %v1772_v9  ;;  %v240_v25 = vrot.slane %v238_v18, 1  ;;  %571 = vmatpush.bf16.msrb.mxu1 %v1774_v11  ;;  %v1780_v49 = vld [vmem:[%s2311_s1 + $0x88] sm:$0xff]  ;;  %v290_v52 = vpack.c.b16 %v289_v46, %v230_v20  ;;  %v449_v55 = vld [vmem:[%s1914_s18] sm:$0x8]  ;;  %v465_v57 = vunpack.c.l.b16 %v450_v53  ;;  %v588_v59 = vld [vmem:[%s1914_s18 + $0x10] sm:$0x7] }
  0x15   : > { %635 = vmatpush.bf16.msrb.mxu2 %v1776_v8  ;;  %688 = vmatpush.bf16.msrb.mxu3 %v1778_v10  ;;  %v337_v28 = vrot.slane %v1813_v23, 1  ;;  %v392_v29 = vshrl.u32 %v1813_v23, 16  ;;  %v395_v30 = vshll.u32 %v1813_v23, 16  ;;  %v338_v34 = vrot.slane %v233_v27, 1  ;;  %v1957_v54 = vld [vmem:[%s1914_s18 + $0x8] sm:$0xff]   ;;  %v1783_v6 = vld [vmem:[%s2311_s1 + $0xa0] sm:$0xff] }
  0x16   : > { %v241_v31 = vor.u32 %v240_v25, %v236_v17  ;;  %v243_v35 = vshll.u32 %v233_v27, 16  ;;  %v406_v44 = vor.u32 %v405_v39, %v402_v38  ;;  %v1801_v56 = vunpack.c.l.b16 %v1957_v54  ;;  %v652_v4 = vld [vmem:[%s1914_s18 + $0x4] sm:$0xe]  ;;  %v1785_v11 = vld [vmem:[%s2311_s1 + $0xb0] sm:$0xff]  ;;  %v1792_v38 = vld [vmem:[%s2311_s1 + $0xe8] sm:$0xff] }
  0x17   : > { %v394_v36 = vrot.slane %v392_v29, 1  ;;  %v397_v37 = vrot.slane %v395_v30, 2  ;;  %v339_v41 = vsel %vm336_vm1, %v337_v28, %v338_v34  ;;  %v247_v58 = vshrl.u32 %v233_v27, 16  ;;  %v1779_v10 = vld [vmem:[%s2311_s1 + $0x80] sm:$0xff]  ;;  %v453_v22 = vld [vmem:[%s1914_s18 + $0x10] sm:$0x3] }
  0x18   : > { %524 = vmatpush.bf16.msrb.mxu0 %v1771_v13  ;;  %572 = vmatpush.bf16.msrb.mxu1 %v1773_v26  ;;  %v245_v42 = vrot.slane %v243_v35, 1  ;;  %v464_v60 = vunpack.c.l.b16 %v449_v55  ;;  %v545_v61 = vpack.c.b16 %v1801_v56, %v465_v57  ;;  %v1964_v62 = vunpack.c.h.b16 %v1957_v54  ;;  %v1998_v33 = vld [vmem:[%s1914_s18 + $0xc] sm:$0xff]   ;;  %v1819_v35 = vld [vmem:[%s1914_s18 + $0x4] sm:$0x8] }
  0x19   : > { %636 = vmatpush.bf16.msrb.mxu2 %v1775_v12  ;;  %689 = vmatpush.bf16.msrb.mxu3 %v1777_v24  ;;  %v398_v43 = vor.u32 %v397_v37, %v394_v36  ;;  %v595_v63 = vunpack.c.l.b16 %v588_v59  ;;  %v482_v5 = vshrl.u32 %v1957_v54, 16  ;;  %v485_v9 = vshll.u32 %v1957_v54, 16  ;;  %v1781_v12 = vld [vmem:[%s2311_s1 + $0x90] sm:$0xff]  ;;  %v1821_v36 = vld [vmem:[%s1914_s18 + $0x4] sm:$0xf0]  }
  0x1a   : > { %1576 = vmatmul.msk.bf16.vlgmr.msra.gmra.mxu2 %vm262_vm0, %v339_v41  ;;  %v246_v45 = vsel %vm234_vm2, %v241_v31, %v245_v42  ;;  %v249_v0 = vor.u32 %v247_v58, %v245_v42  ;;  %v469_v1 = vpack.c.b16 %v465_v57, %v464_v60  ;;  %v599_v3 = vshll.u32 %v545_v61, 16  ;;  %v1788_v41 = vld [vmem:[%s2311_s1 + $0xc8] sm:$0xff]  ;;  %v1794_v42 = vld [vmem:[%s2311_s1 + $0xf8] sm:$0xff]  ;;  %v899_v57 = vld [vmem:[%s1914_s18 + $0x14] sm:$0x7] }
  0x1b   : > { %1552 = vmatmul.msk.bf16.vlgmr.msra.gmra.mxu0 %vm262_vm0, %v246_v45  ;;  %v407_v47 = vsel %vm390_vm3, %v398_v43, %v406_v44  ;;  %v1968_v2 = vpack.c.b16 %v595_v63, %v1964_v62  ;;  %v659_v13 = vunpack.c.l.b16 %v652_v4  ;;  %v597_v14 = vshrl.u32 %v545_v61, 16  ;;  %v1790_v43 = vld [vmem:[%s2311_s1 + $0xd8] sm:$0xff]  ;;  %v775_v63 = vld [vmem:[%s1914_s18 + $0x14] sm:$0x3]  ;;  %v1791_v4 = vld [vmem:[%s2311_s1 + $0xe0] sm:$0xff] }
  0x1c   : > { %1590 = vmatmul.msk.bf16.vlgmr.msra.gmra.mxu3 %vm262_vm0, %v407_v47  ;;  %758 = vmatpush.bf16.msra.mxu0 %v1780_v49  ;;  %v474_v7 = vshrl.u32 %v469_v1, 16  ;;  %v477_v8 = vshll.u32 %v469_v1, 16  ;;  %v601_v15 = vrot.slane %v599_v3, 1  ;;  %v484_v19 = vrot.slane %v482_v5, 3 }
  0x1d   : > { %882 = vmatpush.bf16.msra.mxu2 %v1784_v48  ;;  %946 = vmatpush.bf16.msra.mxu3 %v1786_v50  ;;  %v604_v16 = vshll.u32 %v1968_v2, 16  ;;  %v487_v20 = vrot.slane %v485_v9, 4  ;;  %v660_v21 = vpack.c.b16 %v1801_v56, %v659_v13  ;;  %v468_v27 = vunpack.c.l.b16 %v453_v22 }
  0x1e   : > { %834 = vmatpush.bf16.msra.mxu1 %v1782_v51  ;;  %v476_v17 = vrot.slane %v474_v7, 3  ;;  %v479_v18 = vrot.slane %v477_v8, 4  ;;  %v602_v23 = vor.u32 %v601_v15, %v597_v14  ;;  %v662_v29 = vrot.slane %v1968_v2, 1  ;;  %v1793_v7 = vld [vmem:[%s2311_s1 + $0xf0] sm:$0xff] }
  0x1f   : > { %v606_v24 = vrot.slane %v604_v16, 1  ;;  %v488_v26 = vor.u32 %v487_v20, %v484_v19  ;;  %v661_v28 = vrot.slane %v660_v21, 1  ;;  %v471_v32 = vpack.c.b16 %v468_v27, %v468_v27  ;;  %v1789_v8 = vld [vmem:[%s2311_s1 + $0xd0] sm:$0xff] }
  0x20   : > { %759 = vmatpush.bf16.msra.mxu0 %v1779_v10  ;;  %v480_v25 = vor.u32 %v479_v18, %v476_v17  ;;  %v2006_v37 = vunpack.c.h.b16 %v1998_v33  ;;  %v1820_v45 = vor.u32 %v1821_v36, %v1819_v35  ;;  %v608_v49 = vshrl.u32 %v1968_v2, 16 }
  0x21   : > { %883 = vmatpush.bf16.msra.mxu2 %v1783_v6  ;;  %947 = vmatpush.bf16.msra.mxu3 %v1785_v11  ;;  %v607_v30 = vsel %vm234_vm2, %v602_v23, %v606_v24  ;;  %v491_v39 = vshrl.u32 %v471_v32, 16  ;;  %v494_v40 = vshll.u32 %v471_v32, 16  ;;  %v782_v3 = vunpack.c.l.b16 %v775_v63  ;;  %v1787_v6 = vld [vmem:[%s2311_s1 + $0xc0] sm:$0xff] }
  0x22   : > { %835 = vmatpush.bf16.msra.mxu1 %v1781_v12  ;;  %v489_v31 = vsel %vm472_vm4, %v480_v25, %v488_v26  ;;  %v2024_v46 = vpack.c.b16 %v2006_v37, %v1964_v62  ;;  %v785_v50 = vshrl.u32 %v1820_v45, 16  ;;  %v788_v51 = vshll.u32 %v1820_v45, 16 }
  0x23   : > { %1563 = vmatmul.msk.bf16.gmra.mxu1 %vm262_vm0, %v290_v52  ;;  %v493_v47 = vrot.slane %v491_v39, 3  ;;  %v496_v48 = vrot.slane %v494_v40, 4  ;;  %v610_v56 = vor.u32 %v608_v49, %v606_v24  ;;  %v783_v12 = vpack.c.b16 %v782_v3, %v782_v3  ;;  %v709_v24 = vld [vmem:[%s1914_s18 + $0x14] sm:$0x1] }
  0x24   : > { %v793_v52 = vshrl.u32 %v2024_v46, 16  ;;  %v796_v53 = vshll.u32 %v2024_v46, 16  ;;  %v787_v58 = vrot.slane %v785_v50, 3  ;;  %v790_v59 = vrot.slane %v788_v51, 4 }
  0x25   : > { %v497_v55 = vor.u32 %v496_v48, %v493_v47  ;;  %v912_v13 = vrot.slane %v485_v9, 1  ;;  %v802_v15 = vshrl.u32 %v783_v12, 16  ;;  %v805_v16 = vshll.u32 %v783_v12, 16 }
  0x26   : > { %v795_v60 = vrot.slane %v793_v52, 3  ;;  %v791_v1 = vor.u32 %v790_v59, %v787_v58  ;;  %v729_v17 = vrot.slane %v1820_v45, 3  ;;  %v730_v18 = vrot.slane %v2024_v46, 3  ;;  %v967_v59 = vld [vmem:[%s1914_s18 + $0x18] sm:$0x1] }
  0x27   : > { %v913_v19 = vor.u32 %v912_v13, %v482_v5  ;;  %v804_v21 = vrot.slane %v802_v15, 3  ;;  %v807_v22 = vrot.slane %v805_v16, 4  ;;  %v857_v35 = vpack.c.b16 %v782_v3, %v2006_v37 }
  0x28   : > { %v731_v23 = vsel %vm728_vm5, %v729_v17, %v730_v18  ;;  %v982_v63 = vunpack.c.l.b16 %v967_v59 }
  0x29   : > { %v808_v25 = vor.u32 %v807_v22, %v804_v21 }
  0x2a   : > { %1577 = vmatmul.msk.bf16.gmra.mxu2 %vm262_vm0, %v338_v34  ;;  %v663_v34 = vsel %vm336_vm1, %v661_v28, %v662_v29 }
  0x2b   : > { %1553 = vmatmul.msk.bf16.gmra.mxu0 %vm262_vm0, %v249_v0  ;;  %v906_v0 = vunpack.c.l.b16 %v899_v57 }
  0x2c   : > { %1591 = vmatmul.msk.bf16.gmra.mxu3 %vm262_vm0, %v406_v44  ;;  %v546_v44 = vpack.c.b16 %v468_v27, %v1964_v62  ;;  %v498_v62 = vsel %vm472_vm4, %v488_v26, %v497_v55  ;;  %v724_v26 = vunpack.c.l.b16 %v709_v24  ;;  %v1050_v27 = vld [vmem:[%s1914_s18 + $0x8] sm:$0x8] }
  0x2d   : > { %v907_v10 = vpack.c.b16 %v906_v0, %v2006_v37 }
  0x2e   : > { %v727_v28 = vpack.c.b16 %v724_v26, %v724_v26 }
  0x2f   : > { %v915_v14 = vshll.u32 %v907_v10, 16  ;;  %v919_v32 = vshrl.u32 %v907_v10, 16 }
  0x31   : > { %v917_v20 = vrot.slane %v915_v14, 1 }
  0x33   : > { %1618 = vmatmul.msk.bf16.vlgmr.msrb.gmra.mxu1 %vm262_vm0, %v545_v61  ;;  %v798_v61 = vrot.slane %v796_v53, 4  ;;  %v918_v9 = vsel %vm234_vm2, %v913_v19, %v917_v20  ;;  %v921_v40 = vor.u32 %v919_v32, %v917_v20  ;;  %v1105_v53 = vld [vmem:[%s1914_s18 + $0x18] sm:$0x3] }
  0x34   : > { %1088 = vmatpush.bf16.msrb.mxu1 %v1790_v43 }
  0x35   : > { %v799_v2 = vor.u32 %v798_v61, %v795_v60 }
  0x37   : > { %v800_v11 = vsel %vm472_vm4, %v791_v1, %v799_v2  ;;  %v809_v5 = vsel %vm472_vm4, %v799_v2, %v808_v25 }
  0x38   : > { %1089 = vmatpush.bf16.msrb.mxu1 %v1789_v8 }
  0x3a   : > { %1632 = vmatmul.msk.bf16.vlgmr.msrb.gmra.mxu2 %vm262_vm0, %v607_v30  ;;  %v979_v30 = vunpack.c.l.b16 %v1998_v33 }
  0x3b   : > { %1604 = vmatmul.msk.bf16.vlgmr.msrb.gmra.mxu0 %vm262_vm0, %v489_v31  ;;  %1159 = vmatpush.bf16.msrb.mxu2 %v1792_v38  ;;  %v732_v31 = vrot.slane %v727_v28, 3  ;;  %v1816_v38 = vld [vmem:[%s1914_s18 + $0x10] sm:$0xff]  }
  0x3c   : > { %1646 = vmatmul.msk.bf16.vlgmr.msrb.gmra.mxu3 %vm262_vm0, %v663_v34  ;;  %1033 = vmatpush.bf16.msrb.mxu0 %v1788_v41  ;;  %v999_v43 = vshll.u32 %v1816_v38, 16  ;;  %v1060_v46 = vrot.slane %v1816_v38, 3  ;;  %v1809_v2 = vunpack.c.l.b16 %v1816_v38  ;;  %v1810_v19 = vunpack.c.h.b16 %v1816_v38 }
  0x3d   : > { %1207 = vmatpush.bf16.msrb.mxu3 %v1794_v42  ;;  %v733_v39 = vsel %vm728_vm5, %v730_v18, %v732_v31  ;;  %v996_v42 = vshrl.u32 %v1816_v38, 16 }
  0x3e   : > { %v1123_v51 = vrot.slane %v999_v43, 4  ;;  %v1001_v58 = vrot.slane %v999_v43, 3  ;;  %v1181_v8 = vpack.c.b16 %v1809_v2, %v979_v30 }
  0x3f   : > { %1160 = vmatpush.bf16.msrb.mxu2 %v1791_v4  ;;  %v1122_v50 = vrot.slane %v996_v42, 3  ;;  %v998_v57 = vrot.slane %v996_v42, 2 }
  0x40   : > { %1034 = vmatpush.bf16.msrb.mxu0 %v1787_v6  ;;  %v985_v6 = vpack.c.b16 %v982_v63, %v982_v63 }
  0x41   : > { %1208 = vmatpush.bf16.msrb.mxu3 %v1793_v7  ;;  %v1124_v61 = vor.u32 %v1123_v51, %v1122_v50  ;;  %v1002_v1 = vor.u32 %v1001_v58, %v998_v57  ;;  %v1232_v57 = vlaneseq }
  0x42   : > { %v1062_v12 = vrot.slane %v985_v6, 3  ;;  %v1005_v16 = vshll.u32 %v985_v6, 16 }
  0x43   : > { %1619 = vmatmul.msk.bf16.gmra.mxu1 %vm262_vm0, %v546_v44 }
  0x44   : > { %v1063_v15 = vsel %vm728_vm5, %v1060_v46, %v1062_v12  ;;  %v1007_v18 = vrot.slane %v1005_v16, 3 }
  0x46   : > { %v1008_v21 = vsel %vm986_vm6, %v1002_v1, %v1007_v18  ;;  %v1841_v18 = vmov 0  }
  0x4a   : > { %1633 = vmatmul.msk.bf16.gmra.mxu2 %vm262_vm0, %v610_v56 }
  0x4b   : > { %1605 = vmatmul.msk.bf16.gmra.mxu0 %vm262_vm0, %v498_v62  ;;  %v1112_v62 = vunpack.c.l.b16 %v1105_v53 }
  0x4c   : > { %1647 = vmatmul.msk.bf16.gmra.mxu3 %vm262_vm0, %v662_v29  ;;  %v963_v29 = vld [vmem:[%s1914_s18 + $0x8] sm:$0xc] }
  0x4d   : > { %v978_v34 = vunpack.c.l.b16 %v963_v29  ;;  %v1113_v4 = vpack.c.b16 %v1112_v62, %v1112_v62  ;;  %v1182_v22 = vpack.c.b16 %v1112_v62, %v1810_v19 }
  0x4f   : > { %v983_v41 = vpack.c.b16 %v979_v30, %v978_v34  ;;  %v1127_v10 = vshrl.u32 %v1113_v4, 16 }
  0x51   : > { %v988_v37 = vshrl.u32 %v983_v41, 16  ;;  %v991_v47 = vshll.u32 %v983_v41, 16  ;;  %v1129_v13 = vrot.slane %v1127_v10, 3 }
  0x53   : > { %1674 = vmatmul.msk.bf16.vlgmr.msra.gmra.mxu1 %vm262_vm0, %v800_v11  ;;  %v990_v55 = vrot.slane %v988_v37, 2  ;;  %v993_v56 = vrot.slane %v991_v47, 3  ;;  %v1130_v11 = vshll.u32 %v1113_v4, 16 }
  0x55   : > { %v994_v0 = vor.u32 %v993_v56, %v990_v55  ;;  %v1132_v14 = vrot.slane %v1130_v11, 4 }
  0x57   : > { %v1003_v7 = vsel %vm986_vm6, %v994_v0, %v1002_v1  ;;  %v1133_v17 = vor.u32 %v1132_v14, %v1129_v13 }
  0x59   : > { %v1134_v20 = vsel %vm472_vm4, %v1124_v61, %v1133_v17 }
  0x5a   : > { %1688 = vmatmul.msk.bf16.vlgmr.msra.gmra.mxu2 %vm262_vm0, %v1957_v54  ;;  %v1057_v54 = vunpack.c.l.b16 %v1050_v27 }
  0x5b   : > { %1660 = vmatmul.msk.bf16.vlgmr.msra.gmra.mxu0 %vm262_vm0, %v731_v23 }
  0x5c   : > { %1702 = vmatmul.msk.bf16.vlgmr.msra.gmra.mxu3 %vm262_vm0, %v918_v9  ;;  %v1058_v36 = vpack.c.b16 %v979_v30, %v1057_v54 }
  0x5e   : > { %v1115_v44 = vshrl.u32 %v1058_v36, 16  ;;  %v1118_v45 = vshll.u32 %v1058_v36, 16  ;;  %v1059_v33 = vrot.slane %v1058_v36, 3 }
  0x60   : > { %v1117_v48 = vrot.slane %v1115_v44, 3  ;;  %v1120_v49 = vrot.slane %v1118_v45, 4  ;;  %v1061_v52 = vsel %vm728_vm5, %v1059_v33, %v1060_v46 }
  0x62   : > { %v1121_v60 = vor.u32 %v1120_v49, %v1117_v48 }
  0x63   : > { %1675 = vmatmul.msk.bf16.gmra.mxu1 %vm262_vm0, %v809_v5 }
  0x64   : > { %v1125_v3 = vsel %vm472_vm4, %v1121_v60, %v1124_v61  ;;  %v2116_v60 = vshrl.u32 %v1232_v57, 7 }
  0x66   : > { %v1240_v62 = vand.u32 65535, %v2116_v60  ;;  %v1241_v63 = vshrl.u32 %v2116_v60, 16  ;;  %v2133_v10 = vadd.s32 8, %v2116_v60  ;;  %v2176_v57 = vadd.s32 24, %v2116_v60 }
  0x68   : > { %v1244_v0 = vmul.u32 37449, %v1240_v62  ;;  %v2124_v2 = vmul.u32 9362, %v1241_v63  ;;  %v1243_v6 = vmul.u32 9362, %v1240_v62  ;;  %v1272_v12 = vand.u32 65535, %v2133_v10 }
  0x69   : > { %v1273_v14 = vshrl.u32 %v2133_v10, 16  ;;  %v1246_v17 = vmul.u32 37449, %v1241_v63 }
  0x6a   : > { %1689 = vmatmul.msk.bf16.gmra.mxu2 %vm262_vm0, %v857_v35  ;;  %v1249_v11 = vshll.u32 %v2124_v2, 16  ;;  %v2140_v16 = vmul.u32 37449, %v1272_v12 }
  0x6b   : > { %1661 = vmatmul.msk.bf16.gmra.mxu0 %vm262_vm0, %v733_v39 }
  0x6c   : > { %1703 = vmatmul.msk.bf16.gmra.mxu3 %vm262_vm0, %v921_v40 }
  0x73   : > { %1730 = vmatmul.msk.bf16.vlgmr.msrb.gmra.mxu1 %vm262_vm0, %v1061_v52 }
  0x7a   : > { %1744 = vmatmul.msk.bf16.vlgmr.msrb.gmra.mxu2 %vm262_vm0, %v1125_v3 }
  0x7b   : > { %1716 = vmatmul.msk.bf16.vlgmr.msrb.gmra.mxu0 %vm262_vm0, %v1003_v7  ;;  %v1247_v7 = vshll.u32 %v1244_v0, 16 }
  0x7c   : > { %1758 = vmatmul.msk.bf16.vlgmr.msrb.gmra.mxu3 %vm262_vm0, %v1181_v8 }
  0x7d   : > { %vm1251_vm7 = vc.u32 %v1243_v6, %v1247_v7  ;;  %v1253_v13 = vadd.s32 %v1247_v7, %v1243_v6  ;;  %v1250_v6 = vshrl.u32 %v2124_v2, 16 }
  0x7e   : > { %v1252_v19 = vsel %vm1251_vm7, 1, %v1841_v18 }
  0x7f   : > { %vm1255_vm8 = vc.u32 %v1253_v13, %v1249_v11 }
  0x83   : > { %1731 = vmatmul.msk.bf16.gmra.mxu1 %vm262_vm0, %v1063_v15 }
  0x8a   : > { %1745 = vmatmul.msk.bf16.gmra.mxu2 %vm262_vm0, %v1134_v20  ;;  %v1275_v20 = vmul.u32 9362, %v1272_v12  ;;  %v1280_v12 = vshrl.u32 %v2140_v16, 16 }
  0x8b   : > { %1717 = vmatmul.msk.bf16.gmra.mxu0 %vm262_vm0, %v1008_v21  ;;  %v2143_v21 = vmul.u32 9362, %v1273_v14 }
  0x8c   : > { %1759 = vmatmul.msk.bf16.gmra.mxu3 %vm262_vm0, %v1182_v22  ;;  %v1279_v22 = vshll.u32 %v2140_v16, 16 }
  0x8d   : > { %v1282_v16 = vshrl.u32 %v2143_v21, 16 }
  0x8e   : > { %vm1283_vm9 = vc.u32 %v1275_v20, %v1279_v22 }
  0x90   : > { %v317_v23 = vpop.f32.mrf.mxu1 }
  0x98   : > { %v319_v9 = vpop.f32.mrf.mxu1  ;;  %v278_v24 = vpop.f32.mrf.mxu0 }
  0x99   : > { %v318_v25 = vadd.f32 %v317_v23, %v278_v24  ;;  %v2151_v24 = vadd.s32 16, %v2116_v60 }
  0x9d   : > { %v367_v26 = vpop.f32.mrf.mxu2 }
  0x9e   : > { %v377_v5 = vadd.f32 %v367_v26, %v318_v25  ;;  %v1254_v26 = vadd.s32 %v1252_v19, %v1246_v17  ;;  %v1336_v17 = vand.u32 65535, %v2176_v57 }
  0x9f   : > { %v435_v27 = vpop.f32.mrf.mxu3 }
  0xa0   : > { %v322_v28 = vpop.f32.mrf.mxu1  ;;  %v280_v29 = vpop.f32.mrf.mxu0  ;;  %v2090_v30 = vadd.f32 %v435_v27, %v377_v5  ;;  %v1304_v5 = vand.u32 65535, %v2151_v24  ;;  %v1256_v27 = vsel %vm1255_vm8, 1, %v1841_v18  ;;  %vm1407_vm8 = vcmask 519168  }
  0xa1   : > { %v320_v54 = vadd.f32 %v319_v9, %v280_v29  ;;  %v1285_v29 = vadd.s32 %v1279_v22, %v1275_v20 }
  0xa5   : > { %v369_v31 = vpop.f32.mrf.mxu2 }
  0xa6   : > { %v378_v32 = vadd.f32 %v369_v31, %v320_v54 }
  0xa7   : > { %v437_v34 = vpop.f32.mrf.mxu3 }
  0xa8   : > { %v324_v35 = vpop.f32.mrf.mxu1  ;;  %v283_v36 = vpop.f32.mrf.mxu0  ;;  %v2092_v38 = vadd.f32 %v437_v34, %v378_v32  ;;  %v1278_v32 = vmul.u32 37449, %v1273_v14  ;;  %v1305_v34 = vshrl.u32 %v2151_v24, 16 }
  0xa9   : > { %v323_v39 = vadd.f32 %v322_v28, %v283_v36  ;;  %v1281_v28 = vshll.u32 %v2143_v21, 16  ;;  %v1248_v36 = vshrl.u32 %v1244_v0, 16 }
  0xab   : > { %vm1287_vm10 = vc.u32 %v1285_v29, %v1281_v28  ;;  %v1289_v2 = vadd.s32 %v1285_v29, %v1281_v28 }
  0xac   : > { %v1288_v62 = vsel %vm1287_vm10, 1, %v1841_v18 }
  0xad   : > { %v372_v40 = vpop.f32.mrf.mxu2  ;;  %vm1293_vm14 = vc.u32 %v1289_v2, 2454267026 }
  0xae   : > { %v379_v41 = vadd.f32 %v372_v40, %v323_v39  ;;  %v1258_v39 = vadd.s32 %v1256_v27, %v1254_v26  ;;  %v1284_v40 = vsel %vm1283_vm9, 1, %v1841_v18  ;;  %v1337_v26 = vshrl.u32 %v2176_v57, 16 }
  0xaf   : > { %v440_v42 = vpop.f32.mrf.mxu3 }
  0xb0   : > { %v2094_v43 = vpop.f32.mrf.mxu1  ;;  %v285_v44 = vpop.f32.mrf.mxu0  ;;  %v2096_v45 = vadd.f32 %v440_v42, %v379_v41  ;;  %v1307_v41 = vmul.u32 9362, %v1304_v5  ;;  %v2165_v42 = vmul.u32 9362, %v1305_v34  ;;  %v1259_v7 = vadd.s32 %v1258_v39, %v1248_v36 }
  0xb1   : > { %v325_v33 = vadd.f32 %v324_v35, %v285_v44  ;;  %v2162_v35 = vmul.u32 37449, %v1304_v5  ;;  %v1339_v39 = vmul.u32 9362, %v1336_v17 }
  0xb2   : > { %v1313_v63 = vshll.u32 %v2165_v42, 16  ;;  %v1260_v22 = vadd.s32 %v1259_v7, %v1250_v6  ;;  %v1294_v7 = vsel %vm1293_vm14, 1, %v1841_v18  ;;  %vm1401_vm14 = vcmask 523264  }
  0xb3   : > { %v1311_v44 = vshll.u32 %v2162_v35, 16 }
  0xb5   : > { %v374_v46 = vpop.f32.mrf.mxu2  ;;  %vm1315_vm11 = vc.u32 %v1307_v41, %v1311_v44  ;;  %v1317_v0 = vadd.s32 %v1311_v44, %v1307_v41  ;;  %v1312_v44 = vshrl.u32 %v2162_v35, 16  ;;  %v1314_v35 = vshrl.u32 %v2165_v42, 16 }
  0xb6   : > { %v380_v37 = vadd.f32 %v374_v46, %v325_v33  ;;  %v1316_v14 = vsel %vm1315_vm11, 1, %v1841_v18 }
  0xb7   : > { %v442_v47 = vpop.f32.mrf.mxu3  ;;  %vm1319_vm13 = vc.u32 %v1317_v0, %v1313_v63 }
  0xb8   : > { %v2098_v48 = vpop.f32.mrf.mxu1  ;;  %v2100_v49 = vadd.f32 %v442_v47, %v380_v37  ;;  %v526_v50 = vpop.f32.mrf.mxu0 }
  0xb9   : > { %v536_v54 = vadd.f32 %v526_v50, %v2090_v30  ;;  %v1257_v30 = vadd.s32 %v1253_v13, %v1249_v11  ;;  %v1286_v50 = vadd.s32 %v1284_v40, %v1278_v32  ;;  %v1310_v11 = vmul.u32 37449, %v1305_v34 }
  0xba   : > { %v1340_v32 = vmul.u32 37449, %v1336_v17  ;;  %v2197_v40 = vmul.u32 9362, %v1337_v26 }
  0xbb   : > { %v584_v46 = vadd.f32 %v2094_v43, %v536_v54  ;;  %vm1261_vm12 = vc.u32 %v1257_v30, 2454267026  ;;  %v1290_v13 = vadd.s32 %v1288_v62, %v1286_v50  ;;  %v1318_v54 = vadd.s32 %v1316_v14, %v1310_v11 }
  0xbc   : > { %v1262_v27 = vsel %vm1261_vm12, 1, %v1841_v18  ;;  %v1343_v28 = vshll.u32 %v1340_v32, 16  ;;  %v1345_v29 = vshll.u32 %v2197_v40, 16  ;;  %v1342_v62 = vmul.u32 37449, %v1337_v26 }
  0xbd   : > { %v2102_v51 = vpop.f32.mrf.mxu2  ;;  %v1291_v36 = vadd.s32 %v1290_v13, %v1280_v12  ;;  %v1263_v41 = vadd.s32 %v1262_v27, %v1260_v22  ;;  %v1321_v11 = vadd.s32 %v1317_v0, %v1313_v63 }
  0xbe   : > { %v648_v19 = vadd.f32 %v2102_v51, %v584_v46  ;;  %v1320_v51 = vsel %vm1319_vm13, 1, %v1841_v18  ;;  %vm1347_vm15 = vc.u32 %v1339_v39, %v1343_v28  ;;  %v1349_v6 = vadd.s32 %v1343_v28, %v1339_v39 }
  0xbf   : > { %v2104_v52 = vpop.f32.mrf.mxu3  ;;  %v1322_v30 = vadd.s32 %v1320_v51, %v1318_v54  ;;  %v1292_v50 = vadd.s32 %v1291_v36, %v1282_v16  ;;  %v1348_v12 = vsel %vm1347_vm15, 1, %v1841_v18  ;;  %vm1325_vm1 = vc.u32 %v1321_v11, 2454267026 }
  0xc0   : > { %v2106_v53 = vpop.f32.mrf.mxu1  ;;  %v2108_v55 = vpop.f32.mrf.mxu0  ;;  %vm1351_vm0 = vc.u32 %v1349_v6, %v1345_v29  ;;  %v1350_v22 = vadd.s32 %v1348_v12, %v1342_v62  ;;  %v1326_v54 = vsel %vm1325_vm1, 1, %v1841_v18  ;;  %v1344_v36 = vshrl.u32 %v1340_v32, 16 }
  0xc1   : > { %v537_v20 = vadd.f32 %v2108_v55, %v2092_v38  ;;  %v701_v38 = vadd.f32 %v2104_v52, %v648_v19  ;;  %v1323_v14 = vadd.s32 %v1322_v30, %v1312_v44  ;;  %v1352_v0 = vsel %vm1351_vm0, 1, %v1841_v18 }
  0xc2   : > { %v1354_v51 = vadd.s32 %v1352_v0, %v1350_v22  ;;  %v1346_v30 = vshrl.u32 %v2197_v40, 16 }
  0xc3   : > { %v585_v21 = vadd.f32 %v2098_v48, %v537_v20  ;;  %v1264_v48 = vshrl.u32 %v1263_v41, 2  ;;  %v1295_v20 = vadd.s32 %v1294_v7, %v1292_v50  ;;  %v1324_v27 = vadd.s32 %v1323_v14, %v1314_v35 }
  0xc4   : > { %v1355_v32 = vadd.s32 %v1354_v51, %v1344_v36 }
  0xc5   : > { %v2110_v56 = vpop.f32.mrf.mxu2  ;;  %v1265_v26 = vmul.u32 7, %v1264_v48  ;;  %v1327_v28 = vadd.s32 %v1326_v54, %v1324_v27 }
  0xc6   : > { %v649_v17 = vadd.f32 %v2110_v56, %v585_v21  ;;  %v1296_v56 = vshrl.u32 %v1295_v20, 2  ;;  %v1356_v40 = vadd.s32 %v1355_v32, %v1346_v30 }
  0xc7   : > { %v2112_v58 = vpop.f32.mrf.mxu3  ;;  %v1266_v41 = vsub.s32 %v2116_v60, %v1265_v26  ;;  %v1328_v62 = vshrl.u32 %v1327_v28, 2 }
  0xc8   : > { %v2114_v59 = vpop.f32.mrf.mxu1  ;;  %v2118_v61 = vpop.f32.mrf.mxu0  ;;  %v702_v2 = vadd.f32 %v2112_v58, %v649_v17  ;;  %v1297_v44 = vmul.u32 7, %v1296_v56 }
  0xc9   : > { %vm1365_vm3 = vcmp.ne.s32.totalorder %v1266_v41, 0  ;;  %vm1369_vm4 = vcmp.lt.s32.totalorder %v1266_v41, 0  ;;  %v1377_v11 = vadd.s32 7, %v1266_v41 }
  0xca   : > { %v1298_v60 = vsub.s32 %v2133_v10, %v1297_v44  ;;  %vm2248_vm5 = vmand %vm1369_vm4, %vm1365_vm3 }
  0xcc   : > { %vm1366_vm6 = vcmp.ne.s32.totalorder %v1298_v60, 0  ;;  %vm1370_vm7 = vcmp.lt.s32.totalorder %v1298_v60, 0  ;;  %v1378_v22 = vadd.s32 7, %v1298_v60 }
  0xcd   : > { %v2122_v1 = vpop.f32.mrf.mxu2  ;;  %vm2264_vm9 = vmand %vm1370_vm7, %vm1366_vm6  ;;  %vm1416_vm6 = vcmask 516096  }
  0xce   : > { %v1382_v56 = vsel %vm2264_vm9, %v1378_v22, %v1298_v60 }
  0xcf   : > { %v2126_v3 = vpop.f32.mrf.mxu3  ;;  %vm1386_vm13 = vcmp.lt.s32.totalorder %v1382_v56, 4 }
  0xd0   : > { %v2128_v4 = vpop.f32.mrf.mxu1  ;;  %v2130_v8 = vpop.f32.mrf.mxu0 }
  0xd5   : > { %v2138_v15 = vpop.f32.mrf.mxu2 }
  0xd7   : > { %v2146_v23 = vpop.f32.mrf.mxu3 }
  0xd8   : > { %v2148_v9 = vpop.f32.mrf.mxu1  ;;  %v2153_v25 = vpop.f32.mrf.mxu0 }
  0xd9   : > { %v771_v52 = vadd.f32 %v2153_v25, %v701_v38  ;;  %v538_v25 = vadd.f32 %v2118_v61, %v2096_v45 }
  0xdb   : > { %v847_v63 = vadd.f32 %v2128_v4, %v771_v52  ;;  %v586_v39 = vadd.f32 %v2106_v53, %v538_v25  ;;  %v1353_v4 = vadd.s32 %v1349_v6, %v1345_v29  ;;  %v539_v53 = vadd.f32 %v2130_v8, %v2100_v49 }
  0xdd   : > { %v2159_v31 = vpop.f32.mrf.mxu2  ;;  %v650_v50 = vadd.f32 %v2122_v1, %v586_v39  ;;  %vm1357_vm2 = vc.u32 %v1353_v4, 2454267026  ;;  %v587_v1 = vadd.f32 %v2114_v59, %v539_v53  ;;  %v1329_v59 = vmul.u32 7, %v1328_v62 }
  0xde   : > { %v895_v45 = vadd.f32 %v2159_v31, %v847_v63  ;;  %v1358_v8 = vsel %vm1357_vm2, 1, %v1841_v18 }
  0xdf   : > { %v2168_v33 = vpop.f32.mrf.mxu3  ;;  %v1359_v18 = vadd.s32 %v1358_v8, %v1356_v40  ;;  %v651_v35 = vadd.f32 %v2138_v15, %v587_v1 }
  0xe0   : > { %v2171_v37 = vpop.f32.mrf.mxu0  ;;  %v2173_v47 = vpop.f32.mrf.mxu1  ;;  %v959_v38 = vadd.f32 %v2168_v33, %v895_v45  ;;  %v703_v33 = vadd.f32 %v2126_v3, %v650_v50  ;;  %v2245_v3 = vld [vmem:[%s2312_s2] ss:$0 sm:$0xff] }
  0xe1   : > { %v772_v61 = vadd.f32 %v2171_v37, %v702_v2  ;;  %v704_v25 = vadd.f32 %v2146_v23, %v651_v35  ;;  %v1360_v26 = vshrl.u32 %v1359_v18, 2 }
  0xe3   : > { %v848_v31 = vadd.f32 %v2148_v9, %v772_v61  ;;  %v1361_v61 = vmul.u32 7, %v1360_v26 }
  0xe5   : > { %v2181_v43 = vpop.f32.mrf.mxu2  ;;  %v1362_v32 = vsub.s32 %v2176_v57, %v1361_v61 }
  0xe6   : > { %v896_v52 = vadd.f32 %v2181_v43, %v848_v31 }
  0xe7   : > { %v2190_v5 = vpop.f32.mrf.mxu3  ;;  %vm1368_vm0 = vcmp.ne.s32.totalorder %v1362_v32, 0  ;;  %vm1372_vm1 = vcmp.lt.s32.totalorder %v1362_v32, 0 }
  0xe8   : > { %v2194_v34 = vpop.f32.mrf.mxu0  ;;  %v2200_v55 = vpop.f32.mrf.mxu1  ;;  %v960_v12 = vadd.f32 %v2190_v5, %v896_v52  ;;  %v1381_v5 = vsel %vm2248_vm5, %v1377_v11, %v1266_v41  ;;  %vm1376_vm3 = vmand %vm1372_vm1, %vm1368_vm0  ;;  %vm1443_vm5 = vcmask 517120  }
  0xe9   : > { %v773_v49 = vadd.f32 %v2194_v34, %v703_v33  ;;  %vm1385_vm10 = vcmp.lt.s32.totalorder %v1381_v5, 4 }
  0xeb   : > { %v849_v14 = vadd.f32 %v2173_v47, %v773_v49  ;;  %v1330_v47 = vsub.s32 %v2151_v24, %v1329_v59 }
  0xed   : > { %v2205_v46 = vpop.f32.mrf.mxu2  ;;  %vm1367_vm11 = vcmp.ne.s32.totalorder %v1330_v47, 0  ;;  %vm1371_vm12 = vcmp.lt.s32.totalorder %v1330_v47, 0 }
  0xee   : > { %v897_v27 = vadd.f32 %v2205_v46, %v849_v14  ;;  %vm2279_vm15 = vmand %vm1371_vm12, %vm1367_vm11 }
  0xef   : > { %v2210_v13 = vpop.f32.mrf.mxu3 }
  0xf0   : > { %v2214_v19 = vpop.f32.mrf.mxu0  ;;  %v1091_v16 = vpop.f32.mrf.mxu1  ;;  %v961_v54 = vadd.f32 %v2210_v13, %v897_v27 }
  0xf1   : > { %v774_v23 = vadd.f32 %v2214_v19, %v704_v25 }
  0xf3   : > { %v850_v46 = vadd.f32 %v2200_v55, %v774_v23 }
  0xf5   : > { %v2221_v42 = vpop.f32.mrf.mxu2 }
  0xf6   : > { %v898_v55 = vadd.f32 %v2221_v42, %v850_v46 }
  0xf7   : > { %v2228_v58 = vpop.f32.mrf.mxu3 }
  0xf8   : > { %v1036_v21 = vpop.f32.mrf.mxu0  ;;  %v1093_v9 = vpop.f32.mrf.mxu1  ;;  %v962_v62 = vadd.f32 %v2228_v58, %v898_v55 }
  0xf9   : > { %v1046_v37 = vadd.f32 %v1036_v21, %v959_v38  ;;  %v1379_v38 = vadd.s32 7, %v1330_v47 }
  0xfb   : > { %v1101_v29 = vadd.f32 %v1091_v16, %v1046_v37 }
  0xfd   : > { %v1162_v6 = vpop.f32.mrf.mxu2 }
  0xfe   : > { %v1172_v7 = vadd.f32 %v1162_v6, %v1101_v29  ;;  %v1383_v29 = vsel %vm2279_vm15, %v1379_v38, %v1330_v47 }
  0xff   : > { %v1210_v10 = vpop.f32.mrf.mxu3  ;;  %vm1387_vm2 = vcmp.lt.s32.totalorder %v1383_v29, 4 }
 0x100   : > { %v1038_v43 = vpop.f32.mrf.mxu0  ;;  %v1220_v34 = vadd.f32 %v1210_v10, %v1172_v7  ;;  %v1096_v24 = vpop.f32.mrf.mxu1 }
 0x101   : > { %v1047_v17 = vadd.f32 %v1038_v43, %v960_v12 }
 0x102   : > { %v1228_v20 = vadd.f32 %v2245_v3, %v1220_v34 }
 0x103   : > { %v1102_v63 = vadd.f32 %v1093_v9, %v1047_v17  ;;  %v1380_v9 = vadd.s32 7, %v1362_v32 }
 0x104   : > { %v1436_v0 = vpack.c.bf16 %v1228_v20, %v1228_v20  ;;  %v1397_v51 = vsel %vm1385_vm10, %v1228_v20, 0.0 }
 0x105   : > { %v1164_v2 = vpop.f32.mrf.mxu2  ;;  %v1418_v28 = vmul.f32 %v1397_v51, %v1397_v51  ;;  %v1402_v50 = vsel %vm1401_vm14, %v1397_v51, 0.0  ;;  %v1384_v34 = vsel %vm1376_vm3, %v1380_v9, %v1362_v32 }
 0x106   : > { %1440 = vst.msk [vmem:[%s2262_s19] sm:$0xf] %vm1407_vm8, %v1436_v0  ;;  %v1173_v16 = vadd.f32 %v1164_v2, %v1102_v63  ;;  %vm1388_vm4 = vcmp.lt.s32.totalorder %v1384_v34, 4 }
 0x107   : > { %v1212_v36 = vpop.f32.mrf.mxu3  ;;  %v1422_v6 = vsel %vm1401_vm14, %v1418_v28, 0.0 }
 0x108   : > { %v1041_v39 = vpop.f32.mrf.mxu0  ;;  %v1221_v45 = vadd.f32 %v1212_v36, %v1173_v16  ;;  %v1098_v49 = vpop.f32.mrf.mxu1 }
 0x109   : > { %v1048_v19 = vadd.f32 %v1041_v39, %v961_v54 }
 0x10a   : > { %v1229_v4 = vadd.f32 %v2245_v3, %v1221_v45 }
 0x10b   : > { %v1103_v21 = vadd.f32 %v1096_v24, %v1048_v19 }
 0x10c   : > { %v1398_v41 = vsel %vm1386_vm13, %v1229_v4, 0.0  ;;  %v1437_v44 = vpack.c.bf16 %v1229_v4, %v1229_v4 }
 0x10d   : > { %v1167_v30 = vpop.f32.mrf.mxu2  ;;  %v1403_v53 = vsel %vm1401_vm14, %v1398_v41, 0.0  ;;  %v1419_v31 = vmul.f32 %v1398_v41, %v1398_v41 }
 0x10e   : > { %v1404_v37 = vadd.f32 %v1403_v53, %v1402_v50  ;;  %1441 = vst.msk [vmem:[%s2262_s19 + $0x4] sm:$0xf] %vm1407_vm8, %v1437_v44  ;;  %v1174_v33 = vadd.f32 %v1167_v30, %v1103_v21 }
 0x10f   : > { %v1423_v57 = vsel %vm1401_vm14, %v1419_v31, 0.0  ;;  %v1215_v60 = vpop.f32.mrf.mxu3 }
 0x110   : > { %v1424_v42 = vadd.f32 %v1423_v57, %v1422_v6  ;;  %v1043_v40 = vpop.f32.mrf.mxu0  ;;  %v1222_v1 = vadd.f32 %v1215_v60, %v1174_v33 }
 0x111   : > { %v1049_v52 = vadd.f32 %v1043_v40, %v962_v62 }
 0x112   : > { %v1230_v8 = vadd.f32 %v2245_v3, %v1222_v1 }
 0x113   : > { %v1104_v7 = vadd.f32 %v1098_v49, %v1049_v52 }
 0x114   : > { %v1399_v58 = vsel %vm1387_vm2, %v1230_v8, 0.0  ;;  %v1438_v11 = vpack.c.bf16 %v1230_v8, %v1230_v8 }
 0x115   : > { %v1169_v12 = vpop.f32.mrf.mxu2  ;;  %v1405_v10 = vsel %vm1401_vm14, %v1399_v58, 0.0  ;;  %v1420_v48 = vmul.f32 %v1399_v58, %v1399_v58 }
 0x116   : > { %v1406_v59 = vadd.f32 %v1405_v10, %v1404_v37  ;;  %1442 = vst.msk [vmem:[%s2262_s19 + $0x8] sm:$0xf] %vm1407_vm8, %v1438_v11  ;;  %v1175_v43 = vadd.f32 %v1169_v12, %v1104_v7 }
 0x117   : > { %v1425_v18 = vsel %vm1401_vm14, %v1420_v48, 0.0  ;;  %v1217_v35 = vpop.f32.mrf.mxu3 }
 0x118   : > { %v1426_v14 = vadd.f32 %v1425_v18, %v1424_v42  ;;  %v1223_v17 = vadd.f32 %v1217_v35, %v1175_v43 }
 0x11a   : > { %v1231_v20 = vadd.f32 %v2245_v3, %v1223_v17 }
 0x11c   : > { %v1400_v5 = vsel %vm1388_vm4, %v1231_v20, 0.0  ;;  %v1439_v22 = vpack.c.bf16 %v1231_v20, %v1231_v20 }
 0x11d   : > { %v1408_v25 = vsel %vm1407_vm8, %v1400_v5, 0.0  ;;  %v1421_v63 = vmul.f32 %v1400_v5, %v1400_v5 }
 0x11e   : > { %v1409_v15 = vadd.f32 %v1408_v25, %v1406_v59  ;;  %1444 = vst.msk [vmem:[%s2262_s19 + $0xc] sm:$0x3] %vm1443_vm5, %v1439_v22 }
 0x11f   : > { %v1427_v47 = vsel %vm1407_vm8, %v1421_v63, 0.0 }
 0x120   : > { %v1410_v0 = vrot.slane %v1409_v15, 4  ;;  %v1428_v2 = vadd.f32 %v1427_v47, %v1426_v14 }
 0x122   : > { %v1411_v26 = vadd.f32 %v1410_v0, %v1409_v15  ;;  %v1429_v27 = vrot.slane %v1428_v2, 4 }
 0x124   : > { %v1412_v23 = vrot.slane %v1411_v26, 2  ;;  %v1430_v16 = vadd.f32 %v1429_v27, %v1428_v2 }
 0x126   : > { %v1413_v56 = vadd.f32 %v1412_v23, %v1411_v26  ;;  %v1431_v54 = vrot.slane %v1430_v16, 2 }
 0x128   : > { %v1414_v3 = vrot.slane %v1413_v56, 1  ;;  %v1432_v36 = vadd.f32 %v1431_v54, %v1430_v16 }
 0x12a   : > { %v1415_v51 = vadd.f32 %v1414_v3, %v1413_v56  ;;  %v1433_v24 = vrot.slane %v1432_v36, 1 }
 0x12c   : > { %1417 = vst.msk [vmem:[%s208_s23] sm:$0x1] %vm1416_vm6, %v1415_v51  ;;  %v1434_v39 = vadd.f32 %v1433_v24, %v1432_v36 }
 0x12e   : > { %1435 = vst.msk [vmem:[%s208_s23 + $0x1] sm:$0x1] %vm1416_vm6, %v1434_v39 }
 0x12f PF: > { %s15_s15 = sadd.s32 1, %s1839_s15  }
 0x130   : > { %p12_p4 = scmp.ge.s32.totalorder %s15_s15, 4  }
 0x132   :  { %14 = sbr.rel (!%p12_p4) target bundleno = 1 (0x1), region = 89 }

// kernel: nlayer_discriminator_forward.9
= control target key start
LH: loop header
LB: loop body
LE: loop exit
PB: predicated region body
PF: predicated region fallthrough
CT: control target
= control target key end

     0   :  { %s2269_s14 = smov 0   ;;  %s2692_s0 = inlined_call_operand.vmem [shape: bf16[2,1,72,64], index: 0, kind: input, shape index: {}]   ;;  %s2693_s1 = inlined_call_operand.vmem [shape: bf16[16,64,1], index: 1, kind: input, shape index: {}]   ;;  %s2694_s2 = inlined_call_operand.<no memory space> [shape: f32[1,1], index: 2, kind: input, shape index: {}]   ;;  %s2695_s3 = inlined_call_operand.vmem [shape: f32[2,40,1], index: 3, kind: output, shape index: {}]  }
   0x1   :  { %v8_v0 = vstv %s2694_s2 }
   0x2   :  { %9 = vst [vmem:[#allocation2] sm:$0x1] %v8_v0 }
   0x3 LB: > { %s1686_s15 = sadd.s32 4294967295, %s2244_s14   ;;  %p1690_p0 = scmp.ge.s32.totalorder %s2244_s14, 1  ;;  %s2244_s14 = sphi %s2269_s14, %s15_s14  }
   0x4   : > { %p139_p1 = scmp.lt.s32.totalorder %s2244_s14, 3 }
   0x6   : > { %p140_p2 = pnand %p1690_p0, %p139_p1 }
   0x7   : > { %p163_p3 = scmp.lt.s32.totalorder (!%p140_p2), %s1686_s15, 1 }
   0x8   : > { %143 = sbr.rel (%p140_p2) target bundleno = 348 (0x15c), region = 32 }
   0xd   : > { %v2130_v1 = vld [vmem:[%s2693_s1 + $0x38] sm:$0xff]  ;;  %v2129_v5 = vld [vmem:[%s2693_s1 + $0x30] sm:$0xff]  ;;  %s2697_s15 = smov (!%p163_p3, %s1686_s15), 1  ;;  %v2128_v9 = vld [vmem:[%s2693_s1 + $0x28] sm:$0xff]  ;;  %vm212_vm0 = vsmask.f32 7424 }
   0xe   : > { %v2126_v2 = vld [vmem:[%s2693_s1 + $0x18] sm:$0xff]  ;;  %274 = vmatpush.bf16.msra.mxu0 %v2130_v1  ;;  %v2125_v6 = vld [vmem:[%s2693_s1 + $0x10] sm:$0xff]  ;;  %s2224_s4 = smul.u32 36, %s2697_s15  ;;  %v2124_v10 = vld [vmem:[%s2693_s1 + $0x8] sm:$0xff]  ;;  %vm361_vm1 = vcmask 1046528   ;;  %vm260_vm2 = vcmask 523264  }
   0xf   : > { %v2134_v3 = vld [vmem:[%s2693_s1 + $0x58] sm:$0xff]  ;;  %329 = vmatpush.bf16.msra.mxu1 %v2126_v2  ;;  %v2133_v7 = vld [vmem:[%s2693_s1 + $0x50] sm:$0xff]  ;;  %v2132_v11 = vld [vmem:[%s2693_s1 + $0x48] sm:$0xff]  ;;  %vm441_vm3 = vsmask.f32 6400  ;;  %vm1625_vm4 = vcmask 7168  }
  0x10   : > { %v2138_v4 = vld [vmem:[%s2693_s1 + $0x78] sm:$0xff]  ;;  %404 = vmatpush.bf16.msra.mxu2 %v2134_v3  ;;  %v2137_v8 = vld [vmem:[%s2693_s1 + $0x70] sm:$0xff]  ;;  %v2136_v12 = vld [vmem:[%s2693_s1 + $0x68] sm:$0xff]  ;;  %s2319_s17 = scalar_lea.vmem %s2692_s0, %s2224_s4 }
  0x11   : > { %500 = vmatpush.bf16.msra.mxu3 %v2138_v4  ;;  %v2322_v13 = vld [vmem:[%s2319_s17] sm:$0xff]   ;;  %v2325_v14 = vld [vmem:[%s2319_s17 + $0x8] sm:$0xff]   ;;  %v2343_v25 = vld [vmem:[%s2319_s17 + $0x10] sm:$0xff]  }
  0x12   : > { %275 = vmatpush.bf16.msra.mxu0 %v2129_v5  ;;  %v348_v15 = vld [vmem:[%s2319_s17] sm:$0xe]  ;;  %v214_v17 = vshrl.u32 %v2322_v13, 16  ;;  %v216_v18 = vshll.u32 %v2322_v13, 16  ;;  %v221_v19 = vshll.u32 %v2325_v14, 16  ;;  %v2191_v20 = vunpack.c.h.b16 %v2322_v13  ;;  %v2150_v36 = vld [vmem:[%s2693_s1 + $0xd8] sm:$0xff] }
  0x13   : > { %330 = vmatpush.bf16.msra.mxu1 %v2125_v6  ;;  %v2127_v16 = vld [vmem:[%s2693_s1 + $0x20] sm:$0xff]  ;;  %v359_v23 = vunpack.c.l.b16 %v348_v15  ;;  %v225_v24 = vshrl.u32 %v2325_v14, 16  ;;  %v363_v29 = vrot.slane %v2325_v14, 1  ;;  %v428_v30 = vld [vmem:[%s2319_s17 + $0x14] sm:$0x3]  ;;  %v2154_v37 = vld [vmem:[%s2693_s1 + $0xf8] sm:$0xff]  ;;  %v2364_v38 = vunpack.c.l.b16 %v2343_v25 }
  0x14   : > { %405 = vmatpush.bf16.msra.mxu2 %v2133_v7  ;;  %v2123_v21 = vld [vmem:[%s2693_s1] sm:$0xff]  ;;  %v218_v27 = vrot.slane %v216_v18, 1  ;;  %v2348_v28 = vrot.slane %v221_v19, 1  ;;  %v451_v33 = vrot.slane %v221_v19, 2  ;;  %v187_v34 = vld [vmem:[%s2319_s17 + $0x14] sm:$0x1]  ;;  %v439_v42 = vunpack.c.l.b16 %v428_v30 }
  0x15   : > { %501 = vmatpush.bf16.msra.mxu3 %v2137_v8  ;;  %v2131_v22 = vld [vmem:[%s2693_s1 + $0x40] sm:$0xff]  ;;  %v360_v31 = vpack.c.b16 %v2191_v20, %v359_v23  ;;  %v450_v32 = vrot.slane %v225_v24, 1  ;;  %v2142_v44 = vld [vmem:[%s2693_s1 + $0x98] sm:$0xff]  ;;  %v208_v45 = vunpack.c.l.b16 %v187_v34  ;;  %v2149_v51 = vld [vmem:[%s2693_s1 + $0xd0] sm:$0xff] }
  0x16   : > { %276 = vmatpush.bf16.msra.mxu0 %v2128_v9  ;;  %v2135_v26 = vld [vmem:[%s2693_s1 + $0x60] sm:$0xff]  ;;  %v219_v35 = vor.u32 %v218_v27, %v214_v17  ;;  %v2146_v50 = vld [vmem:[%s2693_s1 + $0xb8] sm:$0xff]  ;;  %v2153_v53 = vld [vmem:[%s2693_s1 + $0xf0] sm:$0xff]  ;;  %v440_v54 = vpack.c.b16 %v439_v42, %v2364_v38  ;;  %v2421_v6 = vor.u32 %v225_v24, %v2348_v28  ;;  %v2194_v27 = vunpack.c.l.b16 %v2325_v14 }
  0x17   : > { %331 = vmatpush.bf16.msra.mxu1 %v2124_v10  ;;  %v362_v39 = vrot.slane %v360_v31, 1  ;;  %v443_v40 = vshrl.u32 %v360_v31, 16  ;;  %v446_v41 = vshll.u32 %v360_v31, 16  ;;  %v452_v49 = vor.u32 %v451_v33, %v450_v32  ;;  %v2141_v56 = vld [vmem:[%s2693_s1 + $0x90] sm:$0xff]  ;;  %v2148_v59 = vld [vmem:[%s2693_s1 + $0xc8] sm:$0xff]  ;;  %v2147_v2 = vld [vmem:[%s2693_s1 + $0xc0] sm:$0xff] }
  0x18   : > { %406 = vmatpush.bf16.msra.mxu2 %v2132_v11  ;;  %v224_v43 = vsel %vm212_vm0, %v219_v35, %v2348_v28  ;;  %v2389_v55 = vpack.c.b16 %v208_v45, %v2364_v38  ;;  %v2145_v58 = vld [vmem:[%s2693_s1 + $0xb0] sm:$0xff]  ;;  %v455_v60 = vshrl.u32 %v440_v54, 16  ;;  %v458_v61 = vshll.u32 %v440_v54, 16  ;;  %v2152_v62 = vld [vmem:[%s2693_s1 + $0xe8] sm:$0xff]  ;;  %v2151_v5 = vld [vmem:[%s2693_s1 + $0xe0] sm:$0xff] }
  0x19   : > { %502 = vmatpush.bf16.msra.mxu3 %v2136_v12  ;;  %v364_v46 = vsel %vm361_vm1, %v362_v39, %v363_v29  ;;  %v445_v47 = vrot.slane %v443_v40, 1  ;;  %v448_v48 = vrot.slane %v446_v41, 2  ;;  %v2140_v0 = vld [vmem:[%s2693_s1 + $0x88] sm:$0xff]  ;;  %v2139_v8 = vld [vmem:[%s2693_s1 + $0x80] sm:$0xff]  ;;  %v2166_v17 = vld [vmem:[%s2693_s1 + $0x158] sm:$0xff]  ;;  %v293_v31 = vpack.c.b16 %v2364_v38, %v2364_v38 }
  0x1a   : > { %277 = vmatpush.bf16.msra.mxu0 %v2127_v16  ;;  %v229_v63 = vshll.u32 %v2389_v55, 16  ;;  %v2144_v1 = vld [vmem:[%s2693_s1 + $0xa8] sm:$0xff]  ;;  %v457_v3 = vrot.slane %v455_v60, 1  ;;  %v460_v4 = vrot.slane %v458_v61, 2  ;;  %v365_v9 = vrot.slane %v2389_v55, 1  ;;  %v2143_v10 = vld [vmem:[%s2693_s1 + $0xa0] sm:$0xff] }
  0x1b   : > { %332 = vmatpush.bf16.msra.mxu1 %v2123_v21  ;;  %v449_v52 = vor.u32 %v448_v48, %v445_v47  ;;  %v2170_v18 = vld [vmem:[%s2693_s1 + $0x178] sm:$0xff]  ;;  %v2169_v23 = vld [vmem:[%s2693_s1 + $0x170] sm:$0xff]  ;;  %v600_v24 = vld [vmem:[%s2319_s17 + $0x4] sm:$0xf]  ;;  %v536_v61 = vpack.c.b16 %v2194_v27, %v2191_v20 }
  0x1c   : > { %407 = vmatpush.bf16.msra.mxu2 %v2131_v22  ;;  %v231_v7 = vrot.slane %v229_v63, 1  ;;  %v461_v11 = vor.u32 %v460_v4, %v457_v3  ;;  %v366_v15 = vsel %vm361_vm1, %v363_v29, %v365_v9  ;;  %v2158_v19 = vld [vmem:[%s2693_s1 + $0x118] sm:$0xff]  ;;  %v2165_v22 = vld [vmem:[%s2693_s1 + $0x150] sm:$0xff]  ;;  %v621_v28 = vunpack.c.l.b16 %v600_v24  ;;  %v714_v29 = vld [vmem:[%s2319_s17 + $0x4] sm:$0xe] }
  0x1d   : > { %503 = vmatpush.bf16.msra.mxu3 %v2135_v26  ;;  %1717 = vmatmul.msk.bf16.vlgmr.msra.gmra.mxu0 %vm260_vm2, %v224_v43  ;;  %v453_v57 = vsel %vm441_vm3, %v449_v52, %v452_v49  ;;  %v2162_v21 = vld [vmem:[%s2693_s1 + $0x138] sm:$0xff]  ;;  %v233_v26 = vshrl.u32 %v2389_v55, 16  ;;  %v725_v32 = vunpack.c.l.b16 %v714_v29  ;;  %v2468_v34 = vld [vmem:[%s2319_s17 + $0xc] sm:$0xff]  }
  0x1e   : > { %1736 = vmatmul.msk.bf16.vlgmr.msra.gmra.mxu1 %vm260_vm2, %v2322_v13  ;;  %576 = vmatpush.bf16.msrb.mxu0 %v2142_v44  ;;  %v232_v12 = vsel %vm212_vm0, %v2421_v6, %v231_v7  ;;  %v462_v16 = vsel %vm441_vm3, %v452_v49, %v461_v11  ;;  %v627_v33 = vpack.c.b16 %v2194_v27, %v621_v28  ;;  %v2161_v39 = vld [vmem:[%s2693_s1 + $0x130] sm:$0xff]  ;;  %v2164_v40 = vld [vmem:[%s2693_s1 + $0x148] sm:$0xff]  ;;  %v638_v42 = vshll.u32 %v2468_v34, 16  ;;  %v605_v60 = vld [vmem:[%s2319_s17 + $0x18] sm:$0x1] }
  0x1f   : > { %1763 = vmatmul.msk.bf16.vlgmr.msra.gmra.mxu2 %vm260_vm2, %v364_v46  ;;  %690 = vmatpush.bf16.msrb.mxu1 %v2146_v50  ;;  %v235_v30 = vor.u32 %v233_v26, %v231_v7  ;;  %v726_v35 = vpack.c.b16 %v2194_v27, %v725_v32  ;;  %v2168_v41 = vld [vmem:[%s2693_s1 + $0x168] sm:$0xff]  ;;  %v642_v43 = vshrl.u32 %v2468_v34, 16  ;;  %v626_v3 = vunpack.c.l.b16 %v605_v60  ;;  %v2163_v7 = vld [vmem:[%s2693_s1 + $0x140] sm:$0xff]  ;;  %v2187_v29 = vld [vmem:[%s2693_s1 + $0x1f8] sm:$0xff] }
  0x20   : > { %769 = vmatpush.bf16.msrb.mxu2 %v2150_v36  ;;  %1790 = vmatmul.msk.bf16.vlgmr.msra.gmra.mxu3 %vm260_vm2, %v453_v57  ;;  %v633_v36 = vshll.u32 %v627_v33, 16  ;;  %v2156_v46 = vld [vmem:[%s2693_s1 + $0x108] sm:$0xff]  ;;  %v631_v47 = vshrl.u32 %v627_v33, 16  ;;  %v640_v55 = vrot.slane %v638_v42, 1  ;;  %v793_v57 = vld [vmem:[%s2319_s17 + $0x18] sm:$0x3] }
  0x21   : > { %864 = vmatpush.bf16.msrb.mxu3 %v2154_v37  ;;  %v2157_v37 = vld [vmem:[%s2693_s1 + $0x110] sm:$0xff]  ;;  %v807_v44 = vshrl.u32 %v726_v35, 16  ;;  %v810_v45 = vshll.u32 %v726_v35, 16  ;;  %v2160_v49 = vld [vmem:[%s2693_s1 + $0x128] sm:$0xff]  ;;  %v814_v52 = vrot.slane %v642_v43, 1 }
  0x22   : > { %577 = vmatpush.bf16.msrb.mxu0 %v2141_v56  ;;  %v635_v48 = vrot.slane %v633_v36, 1  ;;  %v2493_v56 = vld [vmem:[%s2319_s17 + $0x10] sm:$0xff]   ;;  %v1078_v36 = vld [vmem:[%s2319_s17 + $0x8] sm:$0xe]  ;;  %v969_v60 = vld [vmem:[%s2319_s17 + $0x1c] sm:$0x1] }
  0x23   : > { %691 = vmatpush.bf16.msrb.mxu1 %v2145_v58  ;;  %v809_v50 = vrot.slane %v807_v44, 1  ;;  %v727_v58 = vrot.slane %v726_v35, 1  ;;  %v2182_v32 = vld [vmem:[%s2693_s1 + $0x1d0] sm:$0xff]  ;;  %v2185_v44 = vld [vmem:[%s2693_s1 + $0x1e8] sm:$0xff] }
  0x24   : > { %770 = vmatpush.bf16.msrb.mxu2 %v2149_v51  ;;  %v812_v51 = vrot.slane %v810_v45, 2  ;;  %v636_v54 = vor.u32 %v635_v48, %v631_v47  ;;  %v2186_v33 = vld [vmem:[%s2693_s1 + $0x1f0] sm:$0xff]  ;;  %v1002_v45 = vshll.u32 %v2493_v56, 16 }
  0x25   : > { %865 = vmatpush.bf16.msrb.mxu3 %v2153_v53  ;;  %v815_v53 = vrot.slane %v638_v42, 2  ;;  %v2173_v42 = vld [vmem:[%s2693_s1 + $0x190] sm:$0xff] }
  0x26   : > { %578 = vmatpush.bf16.msrb.mxu0 %v2140_v0  ;;  %v2501_v0 = vunpack.c.h.b16 %v2493_v56 }
  0x27   : > { %692 = vmatpush.bf16.msrb.mxu1 %v2144_v1  ;;  %v816_v63 = vor.u32 %v815_v53, %v814_v52  ;;  %v804_v1 = vunpack.c.l.b16 %v793_v57  ;;  %v1179_v53 = vrot.slane %v1002_v45, 2  ;;  %v1157_v57 = vld [vmem:[%s2319_s17 + $0x1c] sm:$0x3] }
  0x28   : > { %771 = vmatpush.bf16.msrb.mxu2 %v2148_v59  ;;  %v728_v59 = vrot.slane %v2468_v34, 1  ;;  %v629_v20 = vpack.c.b16 %v626_v3, %v2501_v0  ;;  %v535_v34 = vunpack.c.h.b16 %v2343_v25  ;;  %v2178_v25 = vld [vmem:[%s2693_s1 + $0x1b0] sm:$0xff]  ;;  %v990_v3 = vunpack.c.l.b16 %v969_v60 }
  0x29   : > { %866 = vmatpush.bf16.msrb.mxu3 %v2152_v62  ;;  %v813_v62 = vor.u32 %v812_v51, %v809_v50  ;;  %v805_v13 = vpack.c.b16 %v804_v1, %v2501_v0  ;;  %v1168_v1 = vunpack.c.l.b16 %v1157_v57 }
  0x2a   : > { %579 = vmatpush.bf16.msrb.mxu0 %v2139_v8  ;;  %v729_v4 = vsel %vm361_vm1, %v727_v58, %v728_v59  ;;  %v2167_v8 = vld [vmem:[%s2693_s1 + $0x160] sm:$0xff]  ;;  %v650_v35 = vshrl.u32 %v629_v20, 16 }
  0x2b   : > { %693 = vmatpush.bf16.msrb.mxu1 %v2143_v10  ;;  %v819_v10 = vshrl.u32 %v805_v13, 16 }
  0x2c   : > { %772 = vmatpush.bf16.msrb.mxu2 %v2147_v2  ;;  %v641_v2 = vsel %vm212_vm0, %v636_v54, %v640_v55  ;;  %v1004_v54 = vrot.slane %v1002_v45, 1 }
  0x2d   : > { %867 = vmatpush.bf16.msrb.mxu3 %v2151_v5  ;;  %1718 = vmatmul.msk.bf16.gmra.mxu0 %vm260_vm2, %v232_v12  ;;  %v817_v5 = vsel %vm441_vm3, %v813_v62, %v816_v63  ;;  %v2159_v12 = vld [vmem:[%s2693_s1 + $0x120] sm:$0xff] }
  0x2e   : > { %1737 = vmatmul.msk.bf16.gmra.mxu1 %vm260_vm2, %v2325_v14  ;;  %940 = vmatpush.bf16.msra.mxu0 %v2158_v19  ;;  %v644_v19 = vor.u32 %v642_v43, %v640_v55  ;;  %v2181_v43 = vld [vmem:[%s2693_s1 + $0x1c8] sm:$0xff]  ;;  %v2579_v55 = vld [vmem:[%s2319_s17 + $0x18] sm:$0xff]  }
  0x2f   : > { %1764 = vmatmul.msk.bf16.gmra.mxu2 %vm260_vm2, %v366_v15  ;;  %1054 = vmatpush.bf16.msra.mxu1 %v2162_v21  ;;  %v646_v15 = vshll.u32 %v629_v20, 16 }
  0x30   : > { %1791 = vmatmul.msk.bf16.gmra.mxu3 %vm260_vm2, %v462_v16  ;;  %1133 = vmatpush.bf16.msra.mxu2 %v2166_v17  ;;  %v2525_v16 = vunpack.c.h.b16 %v2325_v14  ;;  %v821_v17 = vrot.slane %v819_v10, 1  ;;  %v2184_v10 = vld [vmem:[%s2693_s1 + $0x1e0] sm:$0xff] }
  0x31   : > { %1228 = vmatpush.bf16.msra.mxu3 %v2170_v18  ;;  %v648_v21 = vrot.slane %v646_v15, 1 }
  0x32   : > { %941 = vmatpush.bf16.msra.mxu0 %v2157_v37  ;;  %v538_v37 = vpack.c.b16 %v535_v34, %v535_v34 }
  0x33   : > { %1055 = vmatpush.bf16.msra.mxu1 %v2161_v39  ;;  %v649_v26 = vsel %vm212_vm0, %v644_v19, %v648_v21  ;;  %v652_v39 = vor.u32 %v650_v35, %v648_v21 }
  0x34   : > { %1134 = vmatpush.bf16.msra.mxu2 %v2165_v22  ;;  %v730_v22 = vrot.slane %v629_v20, 1 }
  0x35   : > { %1229 = vmatpush.bf16.msra.mxu3 %v2169_v23  ;;  %v537_v23 = vpack.c.b16 %v2364_v38, %v2525_v16  ;;  %v2183_v38 = vld [vmem:[%s2693_s1 + $0x1d8] sm:$0xff] }
  0x36   : > { %942 = vmatpush.bf16.msra.mxu0 %v2156_v46  ;;  %v731_v27 = vsel %vm361_vm1, %v728_v59, %v730_v22  ;;  %v1006_v46 = vshrl.u32 %v2493_v56, 16  ;;  %v1092_v59 = vrot.slane %v2493_v56, 1 }
  0x37   : > { %1056 = vmatpush.bf16.msra.mxu1 %v2160_v49  ;;  %v2172_v49 = vld [vmem:[%s2693_s1 + $0x188] sm:$0xff] }
  0x38   : > { %1135 = vmatpush.bf16.msra.mxu2 %v2164_v40  ;;  %v1089_v40 = vunpack.c.l.b16 %v1078_v36  ;;  %v1178_v52 = vrot.slane %v1006_v46, 1 }
  0x39   : > { %1230 = vmatpush.bf16.msra.mxu3 %v2168_v41 }
  0x3a   : > { %v1090_v41 = vpack.c.b16 %v2525_v16, %v1089_v40  ;;  %v1180_v62 = vor.u32 %v1179_v53, %v1178_v52  ;;  %v2210_v53 = vunpack.c.l.b16 %v2493_v56 }
  0x3b   : > { %1057 = vmatpush.bf16.msra.mxu1 %v2159_v12 }
  0x3c   : > { %1136 = vmatpush.bf16.msra.mxu2 %v2163_v7  ;;  %v1171_v47 = vshrl.u32 %v1090_v41, 16  ;;  %v1174_v48 = vshll.u32 %v1090_v41, 16  ;;  %v1091_v58 = vrot.slane %v1090_v41, 1 }
  0x3d   : > { %1719 = vmatmul.msk.bf16.gmra.mxu0 %vm260_vm2, %v235_v30  ;;  %1231 = vmatpush.bf16.msra.mxu3 %v2167_v8  ;;  %v2174_v30 = vld [vmem:[%s2693_s1 + $0x198] sm:$0xff] }
  0x3e   : > { %1738 = vmatmul.msk.bf16.gmra.mxu1 %vm260_vm2, %v293_v31  ;;  %v2179_v31 = vld [vmem:[%s2693_s1 + $0x1b8] sm:$0xff]  ;;  %v1173_v50 = vrot.slane %v1171_v47, 1  ;;  %v1176_v51 = vrot.slane %v1174_v48, 2 }
  0x3f   : > { %1765 = vmatmul.msk.bf16.gmra.mxu2 %vm260_vm2, %v365_v9  ;;  %v2155_v9 = vld [vmem:[%s2693_s1 + $0x100] sm:$0xff] }
  0x40   : > { %1792 = vmatmul.msk.bf16.gmra.mxu3 %vm260_vm2, %v461_v11  ;;  %v822_v11 = vshll.u32 %v805_v13, 16  ;;  %943 = vmatpush.bf16.msra.mxu0 %v2155_v9 }
  0x42   : > { %v824_v18 = vrot.slane %v822_v11, 2  ;;  %v2171_v11 = vld [vmem:[%s2693_s1 + $0x180] sm:$0xff] }
  0x44   : > { %v825_v24 = vor.u32 %v824_v18, %v821_v17  ;;  %v2176_v17 = vld [vmem:[%s2693_s1 + $0x1a0] sm:$0xff]  ;;  %v1008_v18 = vor.u32 %v1006_v46, %v1004_v54 }
  0x46   : > { %v826_v28 = vsel %vm441_vm3, %v816_v63, %v825_v24  ;;  %v2585_v63 = vunpack.c.l.b16 %v2579_v55 }
  0x48   : > { %v1169_v20 = vpack.c.b16 %v1168_v1, %v2585_v63 }
  0x4a   : > { %v1183_v7 = vshrl.u32 %v1169_v20, 16  ;;  %v1186_v8 = vshll.u32 %v1169_v20, 16 }
  0x4c   : > { %v1185_v12 = vrot.slane %v1183_v7, 1  ;;  %v1188_v15 = vrot.slane %v1186_v8, 2 }
  0x4d   : > { %1817 = vmatmul.msk.bf16.vlgmr.msrb.gmra.mxu0 %vm260_vm2, %v536_v61  ;;  %v1177_v61 = vor.u32 %v1176_v51, %v1173_v50 }
  0x4e   : > { %1844 = vmatmul.msk.bf16.vlgmr.msrb.gmra.mxu1 %vm260_vm2, %v641_v2  ;;  %1304 = vmatpush.bf16.msrb.mxu0 %v2174_v30  ;;  %v1005_v2 = vsel %vm212_vm0, %v2421_v6, %v1004_v54  ;;  %v993_v6 = vpack.c.b16 %v990_v3, %v2585_v63  ;;  %v1333_v3 = vld [vmem:[%s2319_s17 + $0x20] sm:$0x1] }
  0x4f   : > { %1871 = vmatmul.msk.bf16.vlgmr.msrb.gmra.mxu2 %vm260_vm2, %v729_v4  ;;  %1418 = vmatpush.bf16.msrb.mxu1 %v2179_v31  ;;  %v1093_v4 = vsel %vm361_vm1, %v1091_v58, %v1092_v59  ;;  %v1181_v13 = vsel %vm441_vm3, %v1177_v61, %v1180_v62  ;;  %v2236_v31 = vld [vmem:[%s2319_s17 + $0xc] sm:$0xe] }
  0x50   : > { %1898 = vmatmul.msk.bf16.vlgmr.msrb.gmra.mxu3 %vm260_vm2, %v817_v5  ;;  %1497 = vmatpush.bf16.msrb.mxu2 %v2183_v38  ;;  %v2177_v5 = vld [vmem:[%s2693_s1 + $0x1a8] sm:$0xff]  ;;  %v1010_v9 = vshll.u32 %v993_v6, 16  ;;  %v1094_v21 = vrot.slane %v993_v6, 1  ;;  %v2235_v38 = vld [vmem:[%s2319_s17 + $0xc] sm:$0xf0]  ;;  %v1014_v30 = vshrl.u32 %v993_v6, 16  ;;  %v1353_v6 = vunpack.c.h.b16 %v2579_v55 }
  0x51   : > { %1592 = vmatpush.bf16.msrb.mxu3 %v2187_v29 }
  0x52   : > { %1305 = vmatpush.bf16.msrb.mxu0 %v2173_v42  ;;  %v1012_v19 = vrot.slane %v1010_v9, 1 }
  0x53   : > { %1419 = vmatpush.bf16.msrb.mxu1 %v2178_v25 }
  0x54   : > { %1498 = vmatpush.bf16.msrb.mxu2 %v2182_v32 }
  0x55   : > { %1593 = vmatpush.bf16.msrb.mxu3 %v2186_v33  ;;  %v1016_v33 = vor.u32 %v1014_v30, %v1012_v19 }
  0x56   : > { %1306 = vmatpush.bf16.msrb.mxu0 %v2172_v49 }
  0x57   : > { %1420 = vmatpush.bf16.msrb.mxu1 %v2177_v5 }
  0x58   : > { %1499 = vmatpush.bf16.msrb.mxu2 %v2181_v43 }
  0x59   : > { %1594 = vmatpush.bf16.msrb.mxu3 %v2185_v44 }
  0x5a   : > { %1307 = vmatpush.bf16.msrb.mxu0 %v2171_v11 }
  0x5b   : > { %1421 = vmatpush.bf16.msrb.mxu1 %v2176_v17 }
  0x5d   : > { %1818 = vmatmul.msk.bf16.gmra.mxu0 %vm260_vm2, %v537_v23  ;;  %1595 = vmatpush.bf16.msrb.mxu3 %v2184_v10  ;;  %v1013_v23 = vsel %vm212_vm0, %v1008_v18, %v1012_v19  ;;  %v1354_v10 = vunpack.c.l.b16 %v1333_v3 }
  0x5e   : > { %1845 = vmatmul.msk.bf16.gmra.mxu1 %vm260_vm2, %v649_v26 }
  0x5f   : > { %1872 = vmatmul.msk.bf16.gmra.mxu2 %vm260_vm2, %v731_v27  ;;  %v2622_v27 = vld [vmem:[%s2319_s17 + $0x18] sm:$0xff]   ;;  %v1357_v18 = vpack.c.b16 %v1354_v10, %v1353_v6 }
  0x60   : > { %1899 = vmatmul.msk.bf16.gmra.mxu3 %vm260_vm2, %v826_v28  ;;  %v1328_v28 = vld [vmem:[%s2319_s17 + $0xc] sm:$0xff]   ;;  %v899_v29 = vunpack.c.l.b16 %v2622_v27 }
  0x61   : > { %v1361_v40 = vshll.u32 %v1328_v28, 16  ;;  %v1359_v48 = vshrl.u32 %v1328_v28, 16  ;;  %v1374_v28 = vshll.u32 %v1357_v18, 16 }
  0x62   : > { %v902_v32 = vpack.c.b16 %v899_v29, %v899_v29 }
  0x63   : > { %v1363_v49 = vrot.slane %v1361_v40, 1 }
  0x65   : > { %v1364_v60 = vor.u32 %v1363_v49, %v1359_v48 }
  0x6d   : > { %1819 = vmatmul.msk.bf16.gmra.mxu0 %vm260_vm2, %v538_v37  ;;  %v2631_v37 = vld [vmem:[%s2319_s17 + $0x14] sm:$0xff] }
  0x6e   : > { %1846 = vmatmul.msk.bf16.gmra.mxu1 %vm260_vm2, %v652_v39  ;;  %v2237_v39 = vor.u32 %v2236_v31, %v2235_v38  ;;  %v1366_v42 = vshll.u32 %v2631_v37, 16  ;;  %v1370_v25 = vshrl.u32 %v2631_v37, 16 }
  0x6f   : > { %1873 = vmatmul.msk.bf16.gmra.mxu2 %vm260_vm2, %v730_v22  ;;  %v1189_v22 = vor.u32 %v1188_v15, %v1185_v12 }
  0x70   : > { %1900 = vmatmul.msk.bf16.gmra.mxu3 %vm260_vm2, %v825_v24  ;;  %v1095_v24 = vsel %vm361_vm1, %v1092_v59, %v1094_v21  ;;  %v1535_v43 = vshrl.u32 %v2237_v39, 16  ;;  %v1538_v44 = vshll.u32 %v2237_v39, 16  ;;  %v1542_v58 = vrot.slane %v1370_v25, 1 }
  0x71   : > { %v1190_v26 = vsel %vm441_vm3, %v1180_v62, %v1189_v22  ;;  %v1543_v59 = vrot.slane %v1366_v42, 2  ;;  %v1368_v61 = vrot.slane %v1366_v42, 1  ;;  %v1521_v62 = vld [vmem:[%s2319_s17 + $0x20] sm:$0x3]  ;;  %v1455_v1 = vrot.slane %v2237_v39, 1  ;;  %s2225_s17 = smul.u32 40, %s2697_s15 }
  0x72   : > { %v1537_v54 = vrot.slane %v1535_v43, 1  ;;  %v1540_v57 = vrot.slane %v1538_v44, 2  ;;  %v1532_v7 = vunpack.c.l.b16 %v1521_v62 }
  0x73   : > { %v1544_v20 = vor.u32 %v1543_v59, %v1542_v58  ;;  %s2676_s23 = scalar_lea.vmem %s2695_s3, %s2225_s17 }
  0x74   : > { %v1533_v55 = vpack.c.b16 %v1532_v7, %v1353_v6 }
  0x7d   : > { %1925 = vmatmul.msk.bf16.vlgmr.msra.gmra.mxu0 %vm260_vm2, %v2325_v14  ;;  %v2180_v14 = vld [vmem:[%s2693_s1 + $0x1c0] sm:$0xff] }
  0x7e   : > { %1952 = vmatmul.msk.bf16.vlgmr.msra.gmra.mxu1 %vm260_vm2, %v1005_v2  ;;  %1500 = vmatpush.bf16.msrb.mxu2 %v2180_v14  ;;  %v1456_v2 = vrot.slane %v2631_v37, 1  ;;  %v1369_v14 = vsel %vm212_vm0, %v1364_v60, %v1368_v61  ;;  %v1265_v37 = vpack.c.b16 %v2585_v63, %v2501_v0 }
  0x7f   : > { %1979 = vmatmul.msk.bf16.vlgmr.msra.gmra.mxu2 %vm260_vm2, %v1093_v4  ;;  %v1264_v4 = vpack.c.b16 %v2210_v53, %v2525_v16  ;;  %v1263_v53 = vunpack.c.h.b16 %v2622_v27 }
  0x80   : > { %2006 = vmatmul.msk.bf16.vlgmr.msra.gmra.mxu3 %vm260_vm2, %v1181_v13  ;;  %v1541_v13 = vor.u32 %v1540_v57, %v1537_v54  ;;  %v1457_v15 = vsel %vm361_vm1, %v1455_v1, %v1456_v2  ;;  %v1378_v54 = vshrl.u32 %v1357_v18, 16 }
  0x81   : > { %v1266_v58 = vpack.c.b16 %v1263_v53, %v1263_v53 }
  0x82   : > { %v1545_v16 = vsel %vm441_vm3, %v1541_v13, %v1544_v20 }
  0x8d   : > { %1926 = vmatmul.msk.bf16.gmra.mxu0 %vm260_vm2, %v2493_v56 }
  0x8e   : > { %1953 = vmatmul.msk.bf16.gmra.mxu1 %vm260_vm2, %v1013_v23 }
  0x8f   : > { %1980 = vmatmul.msk.bf16.gmra.mxu2 %vm260_vm2, %v1095_v24 }
  0x90   : > { %2007 = vmatmul.msk.bf16.gmra.mxu3 %vm260_vm2, %v1190_v26 }
  0x9a   : > { %v279_v34 = vpop.f32.mrf.mxu0 }
  0x9b   : > { %v334_v35 = vpop.f32.mrf.mxu1 }
  0x9c   : > { %v335_v36 = vadd.f32 %v334_v35, %v279_v34  ;;  %v1376_v34 = vrot.slane %v1374_v28, 1  ;;  %v1458_v35 = vrot.slane %v1357_v18, 1 }
  0x9d   : > { %1927 = vmatmul.msk.bf16.gmra.mxu0 %vm260_vm2, %v902_v32 }
  0x9e   : > { %1954 = vmatmul.msk.bf16.gmra.mxu1 %vm260_vm2, %v1016_v33  ;;  %v1372_v33 = vor.u32 %v1370_v25, %v1368_v61  ;;  %v1380_v59 = vor.u32 %v1378_v54, %v1376_v34 }
  0x9f   : > { %1981 = vmatmul.msk.bf16.gmra.mxu2 %vm260_vm2, %v1094_v21  ;;  %v1547_v21 = vshrl.u32 %v1533_v55, 16 }
  0xa0   : > { %2008 = vmatmul.msk.bf16.gmra.mxu3 %vm260_vm2, %v1189_v22  ;;  %v1550_v22 = vshll.u32 %v1533_v55, 16  ;;  %v1377_v43 = vsel %vm212_vm0, %v1372_v33, %v1376_v34 }
  0xa1   : > { %v1549_v31 = vrot.slane %v1547_v21, 1 }
  0xa2   : > { %v409_v41 = vpop.f32.mrf.mxu2  ;;  %v281_v46 = vpop.f32.mrf.mxu0  ;;  %v1552_v32 = vrot.slane %v1550_v22, 2 }
  0xa3   : > { %v423_v45 = vadd.f32 %v409_v41, %v335_v36  ;;  %v336_v47 = vpop.f32.mrf.mxu1  ;;  %v505_v50 = vpop.f32.mrf.mxu3 }
  0xa4   : > { %v337_v51 = vadd.f32 %v336_v47, %v281_v46  ;;  %v1553_v39 = vor.u32 %v1552_v32, %v1549_v31  ;;  %v1459_v46 = vsel %vm361_vm1, %v1456_v2, %v1458_v35 }
  0xa5   : > { %v2637_v52 = vadd.f32 %v505_v50, %v423_v45 }
  0xa6   : > { %v1554_v25 = vsel %vm441_vm3, %v1544_v20, %v1553_v39 }
  0xaa   : > { %v411_v5 = vpop.f32.mrf.mxu2  ;;  %v284_v8 = vpop.f32.mrf.mxu0 }
  0xab   : > { %v424_v56 = vadd.f32 %v411_v5, %v337_v51  ;;  %v339_v9 = vpop.f32.mrf.mxu1  ;;  %v507_v11 = vpop.f32.mrf.mxu3 }
  0xac   : > { %v340_v12 = vadd.f32 %v339_v9, %v284_v8 }
  0xad   : > { %v2647_v17 = vadd.f32 %v507_v11, %v424_v56  ;;  %2033 = vmatmul.msk.bf16.vlgmr.msrb.gmra.mxu0 %vm260_vm2, %v1264_v4 }
  0xae   : > { %2064 = vmatmul.msk.bf16.vlgmr.msrb.gmra.mxu1 %vm260_vm2, %v1369_v14 }
  0xaf   : > { %2091 = vmatmul.msk.bf16.vlgmr.msrb.gmra.mxu2 %vm260_vm2, %v1457_v15 }
  0xb0   : > { %2118 = vmatmul.msk.bf16.vlgmr.msrb.gmra.mxu3 %vm260_vm2, %v1545_v16 }
  0xb2   : > { %v414_v19 = vpop.f32.mrf.mxu2  ;;  %v286_v24 = vpop.f32.mrf.mxu0 }
  0xb3   : > { %v425_v23 = vadd.f32 %v414_v19, %v340_v12  ;;  %v341_v26 = vpop.f32.mrf.mxu1  ;;  %v510_v38 = vpop.f32.mrf.mxu3 }
  0xb4   : > { %v342_v29 = vadd.f32 %v341_v26, %v286_v24 }
  0xb5   : > { %v521_v30 = vadd.f32 %v510_v38, %v425_v23 }
  0xba   : > { %v416_v36 = vpop.f32.mrf.mxu2  ;;  %v289_v41 = vpop.f32.mrf.mxu0 }
  0xbb   : > { %v426_v40 = vadd.f32 %v416_v36, %v342_v29  ;;  %v344_v42 = vpop.f32.mrf.mxu1  ;;  %v512_v44 = vpop.f32.mrf.mxu3 }
  0xbc   : > { %v345_v45 = vadd.f32 %v344_v42, %v289_v41 }
  0xbd   : > { %v522_v47 = vadd.f32 %v512_v44, %v426_v40  ;;  %2034 = vmatmul.msk.bf16.gmra.mxu0 %vm260_vm2, %v1265_v37 }
  0xbe   : > { %2065 = vmatmul.msk.bf16.gmra.mxu1 %vm260_vm2, %v1377_v43 }
  0xbf   : > { %2092 = vmatmul.msk.bf16.gmra.mxu2 %vm260_vm2, %v1459_v46 }
  0xc0   : > { %2119 = vmatmul.msk.bf16.gmra.mxu3 %vm260_vm2, %v1554_v25 }
  0xc2   : > { %v419_v0 = vpop.f32.mrf.mxu2  ;;  %v291_v48 = vpop.f32.mrf.mxu0 }
  0xc3   : > { %v427_v63 = vadd.f32 %v419_v0, %v345_v45  ;;  %v346_v49 = vpop.f32.mrf.mxu1  ;;  %v515_v50 = vpop.f32.mrf.mxu3 }
  0xc5   : > { %v523_v51 = vadd.f32 %v515_v50, %v427_v63 }
  0xca   : > { %v421_v57 = vpop.f32.mrf.mxu2  ;;  %v581_v60 = vpop.f32.mrf.mxu0 }
  0xcb   : > { %v695_v61 = vpop.f32.mrf.mxu1  ;;  %v517_v62 = vpop.f32.mrf.mxu3  ;;  %v595_v1 = vadd.f32 %v581_v60, %v2637_v52 }
  0xcd   : > { %v709_v2 = vadd.f32 %v695_v61, %v595_v1  ;;  %2035 = vmatmul.msk.bf16.gmra.mxu0 %vm260_vm2, %v1266_v58 }
  0xce   : > { %2066 = vmatmul.msk.bf16.gmra.mxu1 %vm260_vm2, %v1380_v59 }
  0xcf   : > { %2093 = vmatmul.msk.bf16.gmra.mxu2 %vm260_vm2, %v1458_v35 }
  0xd0   : > { %2120 = vmatmul.msk.bf16.gmra.mxu3 %vm260_vm2, %v1553_v39 }
  0xd2   : > { %v774_v3 = vpop.f32.mrf.mxu2  ;;  %v583_v4 = vpop.f32.mrf.mxu0 }
  0xd3   : > { %v788_v27 = vadd.f32 %v774_v3, %v709_v2  ;;  %v697_v5 = vpop.f32.mrf.mxu1  ;;  %v869_v13 = vpop.f32.mrf.mxu3  ;;  %v596_v20 = vadd.f32 %v583_v4, %v2647_v17 }
  0xd5   : > { %v883_v6 = vadd.f32 %v869_v13, %v788_v27  ;;  %v710_v7 = vadd.f32 %v697_v5, %v596_v20 }
  0xda   : > { %v776_v56 = vpop.f32.mrf.mxu2  ;;  %v586_v8 = vpop.f32.mrf.mxu0 }
  0xdb   : > { %v789_v52 = vadd.f32 %v776_v56, %v710_v7  ;;  %v700_v9 = vpop.f32.mrf.mxu1  ;;  %v871_v14 = vpop.f32.mrf.mxu3  ;;  %v597_v10 = vadd.f32 %v586_v8, %v521_v30 }
  0xdd   : > { %v884_v11 = vadd.f32 %v871_v14, %v789_v52  ;;  %v711_v12 = vadd.f32 %v700_v9, %v597_v10 }
  0xe2   : > { %v779_v15 = vpop.f32.mrf.mxu2  ;;  %v588_v55 = vpop.f32.mrf.mxu0 }
  0xe3   : > { %v790_v16 = vadd.f32 %v779_v15, %v711_v12  ;;  %v702_v18 = vpop.f32.mrf.mxu1  ;;  %v874_v19 = vpop.f32.mrf.mxu3  ;;  %v598_v21 = vadd.f32 %v588_v55, %v522_v47  ;;  %v2234_v15 = vld [vmem:[#allocation2] ss:$0 sm:$0xff] }
  0xe5   : > { %v885_v22 = vadd.f32 %v874_v19, %v790_v16  ;;  %v712_v23 = vadd.f32 %v702_v18, %v598_v21 }
  0xea   : > { %v781_v24 = vpop.f32.mrf.mxu2  ;;  %v591_v26 = vpop.f32.mrf.mxu0 }
  0xeb   : > { %v791_v17 = vadd.f32 %v781_v24, %v712_v23  ;;  %v705_v28 = vpop.f32.mrf.mxu1  ;;  %v876_v38 = vpop.f32.mrf.mxu3  ;;  %v599_v29 = vadd.f32 %v591_v26, %v523_v51 }
  0xed   : > { %v886_v31 = vadd.f32 %v876_v38, %v791_v17  ;;  %v713_v32 = vadd.f32 %v705_v28, %v599_v29 }
  0xf2   : > { %v784_v33 = vpop.f32.mrf.mxu2  ;;  %v593_v34 = vpop.f32.mrf.mxu0 }
  0xf3   : > { %v792_v30 = vadd.f32 %v784_v33, %v713_v32  ;;  %v707_v35 = vpop.f32.mrf.mxu1  ;;  %v879_v36 = vpop.f32.mrf.mxu3 }
  0xf5   : > { %v2670_v37 = vadd.f32 %v879_v36, %v792_v30 }
  0xfa   : > { %v786_v39 = vpop.f32.mrf.mxu2  ;;  %v945_v40 = vpop.f32.mrf.mxu0 }
  0xfb   : > { %v1059_v41 = vpop.f32.mrf.mxu1  ;;  %v881_v42 = vpop.f32.mrf.mxu3  ;;  %v959_v59 = vadd.f32 %v945_v40, %v883_v6 }
  0xfd   : > { %v1073_v2 = vadd.f32 %v1059_v41, %v959_v59 }
 0x102   : > { %v1138_v43 = vpop.f32.mrf.mxu2  ;;  %v947_v44 = vpop.f32.mrf.mxu0 }
 0x103   : > { %v1061_v45 = vpop.f32.mrf.mxu1  ;;  %v1233_v46 = vpop.f32.mrf.mxu3  ;;  %v1152_v3 = vadd.f32 %v1138_v43, %v1073_v2  ;;  %v960_v27 = vadd.f32 %v947_v44, %v884_v11 }
 0x105   : > { %v1247_v5 = vadd.f32 %v1233_v46, %v1152_v3  ;;  %v1074_v56 = vadd.f32 %v1061_v45, %v960_v27 }
 0x10a   : > { %v1140_v47 = vpop.f32.mrf.mxu2  ;;  %v950_v25 = vpop.f32.mrf.mxu0 }
 0x10b   : > { %v1064_v0 = vpop.f32.mrf.mxu1  ;;  %v1235_v63 = vpop.f32.mrf.mxu3  ;;  %v1153_v8 = vadd.f32 %v1140_v47, %v1074_v56  ;;  %v961_v9 = vadd.f32 %v950_v25, %v885_v22 }
 0x10d   : > { %v1248_v6 = vadd.f32 %v1235_v63, %v1153_v8  ;;  %v1075_v19 = vadd.f32 %v1064_v0, %v961_v9 }
 0x112   : > { %v1143_v48 = vpop.f32.mrf.mxu2  ;;  %v952_v49 = vpop.f32.mrf.mxu0 }
 0x113   : > { %v1066_v50 = vpop.f32.mrf.mxu1  ;;  %v1238_v51 = vpop.f32.mrf.mxu3  ;;  %v1154_v22 = vadd.f32 %v1143_v48, %v1075_v19  ;;  %v962_v24 = vadd.f32 %v952_v49, %v886_v31 }
 0x115   : > { %v1249_v28 = vadd.f32 %v1238_v51, %v1154_v22  ;;  %v1076_v30 = vadd.f32 %v1066_v50, %v962_v24 }
 0x11a   : > { %v1145_v53 = vpop.f32.mrf.mxu2  ;;  %v955_v54 = vpop.f32.mrf.mxu0 }
 0x11b   : > { %v1069_v57 = vpop.f32.mrf.mxu1  ;;  %v1240_v58 = vpop.f32.mrf.mxu3  ;;  %v1155_v36 = vadd.f32 %v1145_v53, %v1076_v30  ;;  %v963_v40 = vadd.f32 %v955_v54, %v2670_v37 }
 0x11d   : > { %v1250_v42 = vadd.f32 %v1240_v58, %v1155_v36  ;;  %v1077_v47 = vadd.f32 %v1069_v57, %v963_v40 }
 0x122   : > { %v1148_v60 = vpop.f32.mrf.mxu2  ;;  %v957_v61 = vpop.f32.mrf.mxu0 }
 0x123   : > { %v1071_v62 = vpop.f32.mrf.mxu1  ;;  %v1243_v1 = vpop.f32.mrf.mxu3  ;;  %v1156_v63 = vadd.f32 %v1148_v60, %v1077_v47 }
 0x125   : > { %v1251_v37 = vadd.f32 %v1243_v1, %v1156_v63 }
 0x12a   : > { %v1150_v4 = vpop.f32.mrf.mxu2  ;;  %v1309_v13 = vpop.f32.mrf.mxu0 }
 0x12b   : > { %v1423_v20 = vpop.f32.mrf.mxu1  ;;  %v1245_v7 = vpop.f32.mrf.mxu3  ;;  %v1323_v52 = vadd.f32 %v1309_v13, %v1247_v5 }
 0x12d   : > { %v1437_v14 = vadd.f32 %v1423_v20, %v1323_v52 }
 0x132   : > { %v1502_v10 = vpop.f32.mrf.mxu2  ;;  %v1311_v16 = vpop.f32.mrf.mxu0 }
 0x133   : > { %v1516_v12 = vadd.f32 %v1502_v10, %v1437_v14  ;;  %v1425_v55 = vpop.f32.mrf.mxu1  ;;  %v1597_v18 = vpop.f32.mrf.mxu3  ;;  %v1324_v21 = vadd.f32 %v1311_v16, %v1248_v6 }
 0x135   : > { %v1611_v11 = vadd.f32 %v1597_v18, %v1516_v12  ;;  %v1438_v17 = vadd.f32 %v1425_v55, %v1324_v21 }
 0x137   : > { %v1620_v23 = vadd.f32 %v2234_v15, %v1611_v11 }
 0x139   : > { %1626 = vst.msk [vmem:[%s2676_s23] sm:$0xff] %vm1625_vm4, %v1620_v23 }
 0x13a   : > { %v1504_v26 = vpop.f32.mrf.mxu2  ;;  %v1314_v29 = vpop.f32.mrf.mxu0 }
 0x13b   : > { %v1517_v38 = vadd.f32 %v1504_v26, %v1438_v17  ;;  %v1428_v32 = vpop.f32.mrf.mxu1  ;;  %v1599_v33 = vpop.f32.mrf.mxu3  ;;  %v1325_v35 = vadd.f32 %v1314_v29, %v1249_v28 }
 0x13d   : > { %v1612_v34 = vadd.f32 %v1599_v33, %v1517_v38  ;;  %v1439_v31 = vadd.f32 %v1428_v32, %v1325_v35 }
 0x13f   : > { %v1621_v39 = vadd.f32 %v2234_v15, %v1612_v34 }
 0x141   : > { %1627 = vst.msk [vmem:[%s2676_s23 + $0x8] sm:$0xff] %vm1625_vm4, %v1621_v39 }
 0x142   : > { %v1507_v41 = vpop.f32.mrf.mxu2  ;;  %v1316_v44 = vpop.f32.mrf.mxu0 }
 0x143   : > { %v1518_v43 = vadd.f32 %v1507_v41, %v1439_v31  ;;  %v1430_v45 = vpop.f32.mrf.mxu1  ;;  %v1602_v46 = vpop.f32.mrf.mxu3  ;;  %v1326_v0 = vadd.f32 %v1316_v44, %v1250_v42 }
 0x145   : > { %v1613_v25 = vadd.f32 %v1602_v46, %v1518_v43  ;;  %v1440_v49 = vadd.f32 %v1430_v45, %v1326_v0 }
 0x147   : > { %v1622_v48 = vadd.f32 %v2234_v15, %v1613_v25 }
 0x149   : > { %1628 = vst.msk [vmem:[%s2676_s23 + $0x10] sm:$0xff] %vm1625_vm4, %v1622_v48 }
 0x14a   : > { %v1509_v50 = vpop.f32.mrf.mxu2  ;;  %v1319_v53 = vpop.f32.mrf.mxu0 }
 0x14b   : > { %v1519_v51 = vadd.f32 %v1509_v50, %v1440_v49  ;;  %v1433_v54 = vpop.f32.mrf.mxu1  ;;  %v1604_v58 = vpop.f32.mrf.mxu3  ;;  %v1327_v61 = vadd.f32 %v1319_v53, %v1251_v37 }
 0x14d   : > { %v1614_v59 = vadd.f32 %v1604_v58, %v1519_v51  ;;  %v1441_v57 = vadd.f32 %v1433_v54, %v1327_v61 }
 0x14f   : > { %v1623_v62 = vadd.f32 %v2234_v15, %v1614_v59 }
 0x151   : > { %1629 = vst.msk [vmem:[%s2676_s23 + $0x18] sm:$0xff] %vm1625_vm4, %v1623_v62 }
 0x152   : > { %v1512_v2 = vpop.f32.mrf.mxu2  ;;  %v1321_v60 = vpop.f32.mrf.mxu0 }
 0x153   : > { %v1520_v3 = vadd.f32 %v1512_v2, %v1441_v57  ;;  %v1435_v27 = vpop.f32.mrf.mxu1  ;;  %v1607_v4 = vpop.f32.mrf.mxu3 }
 0x155   : > { %v1615_v5 = vadd.f32 %v1607_v4, %v1520_v3 }
 0x157   : > { %v1624_v13 = vadd.f32 %v2234_v15, %v1615_v5 }
 0x159   : > { %1630 = vst.msk [vmem:[%s2676_s23 + $0x20] sm:$0xff] %vm1625_vm4, %v1624_v13 }
 0x15a   : > { %v1514_v1 = vpop.f32.mrf.mxu2 }
 0x15b   : > { %v1609_v20 = vpop.f32.mrf.mxu3 }
 0x15c PF: > { %s15_s14 = sadd.s32 1, %s2244_s14  }
 0x15d   : > { %p12_p4 = scmp.ge.s32.totalorder %s15_s14, 4  }
 0x15f   :  { %14 = sbr.rel (!%p12_p4) target bundleno = 3 (0x3), region = 77 }

</bundles_post_ra>
